<compile_context>
chip_gen: v6e
topology: v6e:2x2x1
jax: 0.10.0
libtpu: 0.0.40
codegen_flags: <defaults>
</compile_context>

<pallas_src>
import functools

import jax
import jax.numpy as jnp
from jax.experimental import pallas as pl
from jax.experimental.pallas import tpu as pltpu

BN_EPS = 1e-5
LAYER_STRIDES = ((1, 1), (2, 1), (2, 1), (2, 1))


def _round_up(x, m):
    return (x + m - 1) // m * m


def _pick_tile(padded_total, candidates):
    for c in candidates:
        if padded_total % c == 0:
            return c
    return candidates[-1]


# ----------------------------------------------------------------------------
# Pallas kernels
# ----------------------------------------------------------------------------
def _matmul_bias_kernel(x_ref, w_ref, b_ref, o_ref, *, relu):
    """Tiled matmul, K-reduction accumulated directly into the resident
    output block (f32), fused bias (+ ReLU) epilogue on the last K step."""
    k = pl.program_id(2)

    @pl.when(k == 0)
    def _():
        o_ref[...] = jnp.zeros_like(o_ref)

    o_ref[...] += jnp.dot(x_ref[...], w_ref[...],
                          preferred_element_type=jnp.float32)

    @pl.when(k == pl.num_programs(2) - 1)
    def _():
        y = o_ref[...] + b_ref[...]
        if relu:
            y = jnp.maximum(y, 0.0)
        o_ref[...] = y


def _add_relu_kernel(a_ref, b_ref, o_ref):
    o_ref[...] = jnp.maximum(a_ref[...] + b_ref[...], 0.0)


def _max9_kernel(*refs):
    # 9 window-tap inputs, pairwise max, 1 output.
    o_ref = refs[-1]
    m = refs[0][...]
    for r in refs[1:-1]:
        m = jnp.maximum(m, r[...])
    o_ref[...] = m


def _mean_reduce_kernel(x_ref, o_ref):
    # x block: [1, H*W, C] -> mean over spatial axis.
    o_ref[...] = jnp.mean(x_ref[...], axis=1, keepdims=True)


# ----------------------------------------------------------------------------
# Pallas wrappers
# ----------------------------------------------------------------------------
def matmul_bias_act(x, w, b, relu=False):
    """y = act(x @ w + b).  x:[M,K] w:[K,N] b:[N].  bf16 operands, f32 acc."""
    M, K = x.shape
    _, N = w.shape

    Kp = _round_up(K, 128)
    Np = _round_up(N, 128)
    tk = _pick_tile(Kp, (512, 384, 256, 128))
    tn = _pick_tile(Np, (256, 128))
    tm = min(256, _round_up(M, 8))
    Mp = _round_up(M, tm)

    xp = x.astype(jnp.bfloat16)
    if (Mp, Kp) != (M, K):
        xp = jnp.pad(xp, ((0, Mp - M), (0, Kp - K)))
    wp = w.astype(jnp.bfloat16)
    if (Kp, Np) != (K, N):
        wp = jnp.pad(wp, ((0, Kp - K), (0, Np - N)))
    bp = jnp.pad(b.astype(jnp.float32), (0, Np - N)).reshape(1, Np)

    grid = (Mp // tm, Np // tn, Kp // tk)
    kernel = functools.partial(_matmul_bias_kernel, relu=relu)
    out = pl.pallas_call(
        kernel,
        out_shape=jax.ShapeDtypeStruct((Mp, Np), jnp.float32),
        grid=grid,
        in_specs=[
            pl.BlockSpec((tm, tk), lambda i, j, k: (i, k)),
            pl.BlockSpec((tk, tn), lambda i, j, k: (k, j)),
            pl.BlockSpec((1, tn), lambda i, j, k: (0, j)),
        ],
        out_specs=pl.BlockSpec((tm, tn), lambda i, j, k: (i, j)),
        compiler_params=pltpu.CompilerParams(
            dimension_semantics=("parallel", "parallel", "arbitrary")),
    )(xp, wp, bp)
    if (Mp, Np) != (M, N):
        out = out[:M, :N]
    return out


def add_relu(a, b):
    """Elementwise relu(a + b), tiled over rows so VMEM stays bounded."""
    M, C = a.shape
    bm = min(512, _round_up(M, 8))
    Mp = _round_up(M, bm)
    if Mp != M:
        a = jnp.pad(a, ((0, Mp - M), (0, 0)))
        b = jnp.pad(b, ((0, Mp - M), (0, 0)))
    out = pl.pallas_call(
        _add_relu_kernel,
        out_shape=jax.ShapeDtypeStruct((Mp, C), a.dtype),
        grid=(Mp // bm,),
        in_specs=[pl.BlockSpec((bm, C), lambda i: (i, 0)),
                  pl.BlockSpec((bm, C), lambda i: (i, 0))],
        out_specs=pl.BlockSpec((bm, C), lambda i: (i, 0)),
        compiler_params=pltpu.CompilerParams(
            dimension_semantics=("parallel",)),
    )(a, b)
    return out[:M] if Mp != M else out


def maxpool_3x3_s2_p1(x):
    """x: NHWC -> 3x3 max pool, stride 2, padding 1 (PyTorch semantics).
    Nine strided taps reduced pairwise in a gridded Pallas kernel (no 9x stack
    copy, rows tiled so the call is pipelined and VMEM-bounded)."""
    n, h, w, c = x.shape
    oh = (h + 2 - 3) // 2 + 1
    ow = (w + 2 - 3) // 2 + 1
    xp = jnp.pad(x, ((0, 0), (1, 1), (1, 1), (0, 0)),
                 constant_values=-jnp.inf)
    taps = [xp[:, i:i + 2 * oh:2, j:j + 2 * ow:2, :].reshape(n * oh * ow, c)
            for i in range(3) for j in range(3)]
    M = n * oh * ow
    bm = min(512, _round_up(M, 8))
    Mp = _round_up(M, bm)
    if Mp != M:
        taps = [jnp.pad(t, ((0, Mp - M), (0, 0))) for t in taps]
    spec = pl.BlockSpec((bm, c), lambda i: (i, 0))
    out = pl.pallas_call(
        _max9_kernel,
        out_shape=jax.ShapeDtypeStruct((Mp, c), x.dtype),
        grid=(Mp // bm,),
        in_specs=[spec] * 9,
        out_specs=spec,
        compiler_params=pltpu.CompilerParams(
            dimension_semantics=("parallel",)),
    )(*taps)
    if Mp != M:
        out = out[:M]
    return out.reshape(n, oh, ow, c)


def global_avgpool(x):
    """x: NHWC -> [N, C] (AdaptiveAvgPool2d((1,1)) + flatten)."""
    n, h, w, c = x.shape
    xr = x.reshape(n, h * w, c)
    out = pl.pallas_call(
        _mean_reduce_kernel,
        out_shape=jax.ShapeDtypeStruct((n, 1, c), x.dtype),
        grid=(n,),
        in_specs=[pl.BlockSpec((1, h * w, c), lambda i: (i, 0, 0))],
        out_specs=pl.BlockSpec((1, 1, c), lambda i: (i, 0, 0)),
        compiler_params=pltpu.CompilerParams(
            dimension_semantics=("parallel",)),
    )(xr)
    return out.reshape(n, c)


# ----------------------------------------------------------------------------
# ResNet18 building blocks (im2col glue in JAX, compute in Pallas)
# ----------------------------------------------------------------------------
def im2col(x, kh, kw, stride, pad):
    """x: NHWC -> bf16 patches [N*OH*OW, KH*KW*Cin] (tap order: kh, kw, cin)."""
    x = x.astype(jnp.bfloat16)  # halve HBM traffic of the patch materialization
    n, h, w, c = x.shape
    oh = (h + 2 * pad - kh) // stride + 1
    ow = (w + 2 * pad - kw) // stride + 1
    if pad:
        x = jnp.pad(x, ((0, 0), (pad, pad), (pad, pad), (0, 0)))
    cols = [x[:, i:i + stride * oh:stride, j:j + stride * ow:stride, :]
            for i in range(kh) for j in range(kw)]
    patches = jnp.concatenate(cols, axis=-1)  # [n, oh, ow, kh*kw*c]
    return patches.reshape(n * oh * ow, kh * kw * c), (n, oh, ow)


def conv_bn(x, p, kh, kw, stride, pad, relu):
    """conv(no bias) + pre-folded BatchNorm (+ ReLU): im2col + Pallas matmul."""
    # TODO(synk): im2col still materializes KH*KW-expanded patches in HBM; a
    # fully fused conv kernel (K grid axis over taps / manual DMA) would remove
    # that traffic.
    patches, (n, oh, ow) = im2col(x, kh, kw, stride, pad)
    cout = p["w"].shape[1]
    out = matmul_bias_act(patches, p["w"], p["b"], relu=relu)
    return out.reshape(n, oh, ow, cout)


def basic_block(x, blk, stride):
    out = conv_bn(x, blk["conv1"], 3, 3, stride, 1, relu=True)
    out = conv_bn(out, blk["conv2"], 3, 3, 1, 1, relu=False)
    if "downsample" in blk:
        identity = conv_bn(x, blk["downsample"], 1, 1, stride, 0, relu=False)
    else:
        identity = x
    n, h, w, c = out.shape
    res = add_relu(out.reshape(n * h * w, c), identity.reshape(n * h * w, c))
    return res.reshape(n, h, w, c)


def resnet18_forward(x_nchw, params):
    """Returns (penultimate_features [N,512], class_outputs [N,num_classes])."""
    x = jnp.transpose(x_nchw, (0, 2, 3, 1)).astype(jnp.float32)  # NCHW -> NHWC
    # stem: 7x7/2 conv + BN + ReLU, then 3x3/2 maxpool
    x = conv_bn(x, params["stem"], 7, 7, 2, 3, relu=True)
    x = maxpool_3x3_s2_p1(x)
    # layers 1-4 (two BasicBlocks each)
    for blocks, strides in zip(params["layers"], LAYER_STRIDES):
        for blk, stride in zip(blocks, strides):
            x = basic_block(x, blk, stride)
    feats = global_avgpool(x)  # [N, 512] == torch.flatten(avgpool(x), 1)
    logits = matmul_bias_act(feats, params["fc_w"], params["fc_b"], relu=False)
    return feats, logits


# ----------------------------------------------------------------------------
# Deterministic parameter initialization (synthetic, not a checkpoint)
# ----------------------------------------------------------------------------
def init_conv_bn(key, kh, kw, cin, cout):
    k1, k2, k3, k4, k5 = jax.random.split(key, 5)
    fan_in = kh * kw * cin
    return dict(
        w=jax.random.normal(k1, (kh, kw, cin, cout), jnp.float32)
        * (1.0 / jnp.sqrt(fan_in)),
        gamma=1.0 + 0.1 * jax.random.normal(k2, (cout,), jnp.float32),
        beta=0.1 * jax.random.normal(k3, (cout,), jnp.float32),
        mean=0.1 * jax.random.normal(k4, (cout,), jnp.float32),
        var=1.0 + 0.1 * jnp.abs(jax.random.normal(k5, (cout,), jnp.float32)),
    )


def init_params(key, num_classes=10):
    keys = iter(jax.random.split(key, 64))
    params = {"stem": init_conv_bn(next(keys), 7, 7, 3, 64)}

    layer_cfg = [(64, 64, 1), (64, 128, 2), (128, 256, 2), (256, 512, 2)]
    layers = []
    for cin, cout, stride in layer_cfg:
        blk0 = {
            "conv1": init_conv_bn(next(keys), 3, 3, cin, cout),
            "conv2": init_conv_bn(next(keys), 3, 3, cout, cout),
        }
        if stride != 1 or cin != cout:
            blk0["downsample"] = init_conv_bn(next(keys), 1, 1, cin, cout)
        blk1 = {
            "conv1": init_conv_bn(next(keys), 3, 3, cout, cout),
            "conv2": init_conv_bn(next(keys), 3, 3, cout, cout),
        }
        layers.append([blk0, blk1])
    params["layers"] = layers

    kfc_w, kfc_b = jax.random.split(next(keys))
    params["fc_w"] = jax.random.normal(kfc_w, (512, num_classes),
                                       jnp.float32) * (1.0 / jnp.sqrt(512.0))
    params["fc_b"] = 0.01 * jax.random.normal(kfc_b, (num_classes,),
                                              jnp.float32)
    return params


def fold_conv_bn(p):
    """Fold inference-mode BN into conv weights: done ONCE, outside forward."""
    kh, kw, cin, cout = p["w"].shape
    scale = p["gamma"] / jnp.sqrt(p["var"] + BN_EPS)
    w_folded = (p["w"] * scale).reshape(kh * kw * cin, cout).astype(jnp.bfloat16)
    b_folded = (p["beta"] - p["mean"] * scale).astype(jnp.float32)
    return {"w": w_folded, "b": b_folded}


def fold_params(raw):
    params = {"stem": fold_conv_bn(raw["stem"])}
    layers = []
    for blocks in raw["layers"]:
        fblocks = []
        for blk in blocks:
            f = {"conv1": fold_conv_bn(blk["conv1"]),
                 "conv2": fold_conv_bn(blk["conv2"])}
            if "downsample" in blk:
                f["downsample"] = fold_conv_bn(blk["downsample"])
            fblocks.append(f)
        layers.append(fblocks)
    params["layers"] = layers
    params["fc_w"] = raw["fc_w"]
    params["fc_b"] = raw["fc_b"]
    return params


# ----------------------------------------------------------------------------
# Main
# ----------------------------------------------------------------------------
if __name__ == "__main__":
    key = jax.random.PRNGKey(0)
    k_params, k_x = jax.random.split(key)

    num_classes = 10
    raw_params = init_params(k_params, num_classes=num_classes)
    params = fold_params(raw_params)  # BN folding hoisted out of forward path

    # Small NCHW input (PyTorch convention): batch=2, 3 channels, 32x32 spatial.
    x = jax.random.normal(k_x, (2, 3, 32, 32), jnp.float32)

    fwd = jax.jit(resnet18_forward)
    feats, logits = fwd(x, params)
    jax.block_until_ready((feats, logits))

    assert feats.shape == (2, 512), feats.shape
    assert logits.shape == (2, num_classes), logits.shape
    assert bool(jnp.all(jnp.isfinite(feats))) and bool(jnp.all(jnp.isfinite(logits)))

    print("KERNEL_OK")
</pallas_src>

<mosaic_0001>
module attributes {stable_mosaic.version = 11 : i64} {
  func.func @_matmul_bias_kernel(%arg0: i32, %arg1: i32, %arg2: i32, %arg3: memref<256x256xbf16, #tpu.memory_space<vmem>>, %arg4: memref<256x128xbf16, #tpu.memory_space<vmem>>, %arg5: memref<1x128xf32, #tpu.memory_space<vmem>>, %arg6: memref<256x128xf32, #tpu.memory_space<vmem>>) attributes {dimension_semantics = [#tpu.dimension_semantics<parallel>, #tpu.dimension_semantics<parallel>, #tpu.dimension_semantics<arbitrary>], iteration_bounds = array<i64: 2, 1, 1>, scalar_prefetch = 0 : i64, scratch_operands = 0 : i64, tpu.core_type = #tpu.core_type<tc>, window_params = [{transform_indices = @transform_0, window_bounds = array<i64: 256, 256>}, {transform_indices = @transform_1, window_bounds = array<i64: 256, 128>}, {transform_indices = @transform_2, window_bounds = array<i64: 1, 128>}, {transform_indices = @transform_3, window_bounds = array<i64: 256, 128>}]} {
    %c0_i32 = arith.constant 0 : i32
    %0 = arith.cmpi eq, %arg2, %c0_i32 : i32
    %1 = arith.extui %0 : i1 to i32
    %c0_i32_0 = arith.constant 0 : i32
    %2 = arith.cmpi ne, %1, %c0_i32_0 : i32
    scf.if %2 {
      %cst_10 = arith.constant 0.000000e+00 : f32
      %12 = vector.broadcast %cst_10 : f32 to vector<256x128xf32>
      %c0_11 = arith.constant 0 : index
      %c0_12 = arith.constant 0 : index
      %13 = vector.load %arg6[%c0_11, %c0_12] : memref<256x128xf32, #tpu.memory_space<vmem>>, vector<256x128xf32>
      tpu.vector_store %arg6[%c0_11, %c0_12], %12 {strides = array<i32>} : memref<256x128xf32, #tpu.memory_space<vmem>>, vector<256x128xf32>,
    } else {
    }
    %c0 = arith.constant 0 : index
    %c0_1 = arith.constant 0 : index
    %3 = vector.load %arg6[%c0, %c0_1] : memref<256x128xf32, #tpu.memory_space<vmem>>, vector<256x128xf32>
    %c0_2 = arith.constant 0 : index
    %c0_3 = arith.constant 0 : index
    %4 = vector.load %arg3[%c0_2, %c0_3] : memref<256x256xbf16, #tpu.memory_space<vmem>>, vector<256x256xbf16>
    %c0_4 = arith.constant 0 : index
    %c0_5 = arith.constant 0 : index
    %5 = vector.load %arg4[%c0_4, %c0_5] : memref<256x128xbf16, #tpu.memory_space<vmem>>, vector<256x128xbf16>
    %cst = arith.constant dense<0.000000e+00> : vector<256x128xf32>
    %6 = tpu.matmul %4, %5, %cst {dimension_numbers = #tpu.dot_dimension_numbers<[1], [0], [0], [1], [0, 0, 1, 1], [], []>} : vector<256x256xbf16>, vector<256x128xbf16>, vector<256x128xf32> -> vector<256x128xf32>
    %7 = arith.addf %3, %6 : vector<256x128xf32>
    %c0_6 = arith.constant 0 : index
    %c0_7 = arith.constant 0 : index
    %8 = vector.load %arg6[%c0_6, %c0_7] : memref<256x128xf32, #tpu.memory_space<vmem>>, vector<256x128xf32>
    tpu.vector_store %arg6[%c0_6, %c0_7], %7 {strides = array<i32>} : memref<256x128xf32, #tpu.memory_space<vmem>>, vector<256x128xf32>,
    %c0_i32_8 = arith.constant 0 : i32
    %9 = arith.cmpi eq, %arg2, %c0_i32_8 : i32
    %10 = arith.extui %9 : i1 to i32
    %c0_i32_9 = arith.constant 0 : i32
    %11 = arith.cmpi ne, %10, %c0_i32_9 : i32
    scf.if %11 {
      %c0_10 = arith.constant 0 : index
      %c0_11 = arith.constant 0 : index
      %12 = vector.load %arg6[%c0_10, %c0_11] : memref<256x128xf32, #tpu.memory_space<vmem>>, vector<256x128xf32>
      %c0_12 = arith.constant 0 : index
      %c0_13 = arith.constant 0 : index
      %13 = vector.load %arg5[%c0_12, %c0_13] : memref<1x128xf32, #tpu.memory_space<vmem>>, vector<1x128xf32>
      %14 = vector.broadcast %13 : vector<1x128xf32> to vector<256x128xf32>
      %15 = arith.addf %12, %14 : vector<256x128xf32>
      %cst_14 = arith.constant 0.000000e+00 : f32
      %16 = vector.broadcast %cst_14 : f32 to vector<256x128xf32>
      %17 = arith.maximumf %15, %16 : vector<256x128xf32>
      %c0_15 = arith.constant 0 : index
      %c0_16 = arith.constant 0 : index
      %18 = vector.load %arg6[%c0_15, %c0_16] : memref<256x128xf32, #tpu.memory_space<vmem>>, vector<256x128xf32>
      tpu.vector_store %arg6[%c0_15, %c0_16], %17 {strides = array<i32>} : memref<256x128xf32, #tpu.memory_space<vmem>>, vector<256x128xf32>,
    } else {
    }
    return
  }
  func.func @transform_0(%arg0: i32, %arg1: i32, %arg2: i32) -> (i32, i32) {
    %c0_i32 = arith.constant 0 : i32
    return %arg0, %arg2 : i32, i32
  }
  func.func @transform_1(%arg0: i32, %arg1: i32, %arg2: i32) -> (i32, i32) {
    %c0_i32 = arith.constant 0 : i32
    return %arg2, %arg1 : i32, i32
  }
  func.func @transform_2(%arg0: i32, %arg1: i32, %arg2: i32) -> (i32, i32) {
    %c0_i32 = arith.constant 0 : i32
    %c0_i32_0 = arith.constant 0 : i32
    return %c0_i32, %arg1 : i32, i32
  }
  func.func @transform_3(%arg0: i32, %arg1: i32, %arg2: i32) -> (i32, i32) {
    %c0_i32 = arith.constant 0 : i32
    return %arg0, %arg1 : i32, i32
  }
}

module attributes {stable_mosaic.version = 11 : i64} {
  func.func @_max9_kernel(%arg0: i32, %arg1: memref<128x64xf32, #tpu.memory_space<vmem>>, %arg2: memref<128x64xf32, #tpu.memory_space<vmem>>, %arg3: memref<128x64xf32, #tpu.memory_space<vmem>>, %arg4: memref<128x64xf32, #tpu.memory_space<vmem>>, %arg5: memref<128x64xf32, #tpu.memory_space<vmem>>, %arg6: memref<128x64xf32, #tpu.memory_space<vmem>>, %arg7: memref<128x64xf32, #tpu.memory_space<vmem>>, %arg8: memref<128x64xf32, #tpu.memory_space<vmem>>, %arg9: memref<128x64xf32, #tpu.memory_space<vmem>>, %arg10: memref<128x64xf32, #tpu.memory_space<vmem>>) attributes {dimension_semantics = [#tpu.dimension_semantics<parallel>], iteration_bounds = array<i64: 1>, scalar_prefetch = 0 : i64, scratch_operands = 0 : i64, tpu.core_type = #tpu.core_type<tc>, window_params = [{transform_indices = @transform_0, window_bounds = array<i64: 128, 64>}, {transform_indices = @transform_1, window_bounds = array<i64: 128, 64>}, {transform_indices = @transform_2, window_bounds = array<i64: 128, 64>}, {transform_indices = @transform_3, window_bounds = array<i64: 128, 64>}, {transform_indices = @transform_4, window_bounds = array<i64: 128, 64>}, {transform_indices = @transform_5, window_bounds = array<i64: 128, 64>}, {transform_indices = @transform_6, window_bounds = array<i64: 128, 64>}, {transform_indices = @transform_7, window_bounds = array<i64: 128, 64>}, {transform_indices = @transform_8, window_bounds = array<i64: 128, 64>}, {transform_indices = @transform_9, window_bounds = array<i64: 128, 64>}]} {
    %c0 = arith.constant 0 : index
    %c0_0 = arith.constant 0 : index
    %0 = vector.load %arg1[%c0, %c0_0] : memref<128x64xf32, #tpu.memory_space<vmem>>, vector<128x64xf32>
    %c0_1 = arith.constant 0 : index
    %c0_2 = arith.constant 0 : index
    %1 = vector.load %arg2[%c0_1, %c0_2] : memref<128x64xf32, #tpu.memory_space<vmem>>, vector<128x64xf32>
    %2 = arith.maximumf %0, %1 : vector<128x64xf32>
    %c0_3 = arith.constant 0 : index
    %c0_4 = arith.constant 0 : index
    %3 = vector.load %arg3[%c0_3, %c0_4] : memref<128x64xf32, #tpu.memory_space<vmem>>, vector<128x64xf32>
    %4 = arith.maximumf %2, %3 : vector<128x64xf32>
    %c0_5 = arith.constant 0 : index
    %c0_6 = arith.constant 0 : index
    %5 = vector.load %arg4[%c0_5, %c0_6] : memref<128x64xf32, #tpu.memory_space<vmem>>, vector<128x64xf32>
    %6 = arith.maximumf %4, %5 : vector<128x64xf32>
    %c0_7 = arith.constant 0 : index
    %c0_8 = arith.constant 0 : index
    %7 = vector.load %arg5[%c0_7, %c0_8] : memref<128x64xf32, #tpu.memory_space<vmem>>, vector<128x64xf32>
    %8 = arith.maximumf %6, %7 : vector<128x64xf32>
    %c0_9 = arith.constant 0 : index
    %c0_10 = arith.constant 0 : index
    %9 = vector.load %arg6[%c0_9, %c0_10] : memref<128x64xf32, #tpu.memory_space<vmem>>, vector<128x64xf32>
    %10 = arith.maximumf %8, %9 : vector<128x64xf32>
    %c0_11 = arith.constant 0 : index
    %c0_12 = arith.constant 0 : index
    %11 = vector.load %arg7[%c0_11, %c0_12] : memref<128x64xf32, #tpu.memory_space<vmem>>, vector<128x64xf32>
    %12 = arith.maximumf %10, %11 : vector<128x64xf32>
    %c0_13 = arith.constant 0 : index
    %c0_14 = arith.constant 0 : index
    %13 = vector.load %arg8[%c0_13, %c0_14] : memref<128x64xf32, #tpu.memory_space<vmem>>, vector<128x64xf32>
    %14 = arith.maximumf %12, %13 : vector<128x64xf32>
    %c0_15 = arith.constant 0 : index
    %c0_16 = arith.constant 0 : index
    %15 = vector.load %arg9[%c0_15, %c0_16] : memref<128x64xf32, #tpu.memory_space<vmem>>, vector<128x64xf32>
    %16 = arith.maximumf %14, %15 : vector<128x64xf32>
    %c0_17 = arith.constant 0 : index
    %c0_18 = arith.constant 0 : index
    %17 = vector.load %arg10[%c0_17, %c0_18] : memref<128x64xf32, #tpu.memory_space<vmem>>, vector<128x64xf32>
    tpu.vector_store %arg10[%c0_17, %c0_18], %16 {strides = array<i32>} : memref<128x64xf32, #tpu.memory_space<vmem>>, vector<128x64xf32>,
    return
  }
  func.func @transform_0(%arg0: i32) -> (i32, i32) {
    %c0_i32 = arith.constant 0 : i32
    %c0_i32_0 = arith.constant 0 : i32
    return %arg0, %c0_i32 : i32, i32
  }
  func.func @transform_1(%arg0: i32) -> (i32, i32) {
    %c0_i32 = arith.constant 0 : i32
    %c0_i32_0 = arith.constant 0 : i32
    return %arg0, %c0_i32 : i32, i32
  }
  func.func @transform_2(%arg0: i32) -> (i32, i32) {
    %c0_i32 = arith.constant 0 : i32
    %c0_i32_0 = arith.constant 0 : i32
    return %arg0, %c0_i32 : i32, i32
  }
  func.func @transform_3(%arg0: i32) -> (i32, i32) {
    %c0_i32 = arith.constant 0 : i32
    %c0_i32_0 = arith.constant 0 : i32
    return %arg0, %c0_i32 : i32, i32
  }
  func.func @transform_4(%arg0: i32) -> (i32, i32) {
    %c0_i32 = arith.constant 0 : i32
    %c0_i32_0 = arith.constant 0 : i32
    return %arg0, %c0_i32 : i32, i32
  }
  func.func @transform_5(%arg0: i32) -> (i32, i32) {
    %c0_i32 = arith.constant 0 : i32
    %c0_i32_0 = arith.constant 0 : i32
    return %arg0, %c0_i32 : i32, i32
  }
  func.func @transform_6(%arg0: i32) -> (i32, i32) {
    %c0_i32 = arith.constant 0 : i32
    %c0_i32_0 = arith.constant 0 : i32
    return %arg0, %c0_i32 : i32, i32
  }
  func.func @transform_7(%arg0: i32) -> (i32, i32) {
    %c0_i32 = arith.constant 0 : i32
    %c0_i32_0 = arith.constant 0 : i32
    return %arg0, %c0_i32 : i32, i32
  }
  func.func @transform_8(%arg0: i32) -> (i32, i32) {
    %c0_i32 = arith.constant 0 : i32
    %c0_i32_0 = arith.constant 0 : i32
    return %arg0, %c0_i32 : i32, i32
  }
  func.func @transform_9(%arg0: i32) -> (i32, i32) {
    %c0_i32 = arith.constant 0 : i32
    %c0_i32_0 = arith.constant 0 : i32
    return %arg0, %c0_i32 : i32, i32
  }
}

module attributes {stable_mosaic.version = 11 : i64} {
  func.func @_matmul_bias_kernel(%arg0: i32, %arg1: i32, %arg2: i32, %arg3: memref<128x128xbf16, #tpu.memory_space<vmem>>, %arg4: memref<128x128xbf16, #tpu.memory_space<vmem>>, %arg5: memref<1x128xf32, #tpu.memory_space<vmem>>, %arg6: memref<128x128xf32, #tpu.memory_space<vmem>>) attributes {dimension_semantics = [#tpu.dimension_semantics<parallel>, #tpu.dimension_semantics<parallel>, #tpu.dimension_semantics<arbitrary>], iteration_bounds = array<i64: 1, 1, 5>, scalar_prefetch = 0 : i64, scratch_operands = 0 : i64, tpu.core_type = #tpu.core_type<tc>, window_params = [{transform_indices = @transform_0, window_bounds = array<i64: 128, 128>}, {transform_indices = @transform_1, window_bounds = array<i64: 128, 128>}, {transform_indices = @transform_2, window_bounds = array<i64: 1, 128>}, {transform_indices = @transform_3, window_bounds = array<i64: 128, 128>}]} {
    %c0_i32 = arith.constant 0 : i32
    %0 = arith.cmpi eq, %arg2, %c0_i32 : i32
    %1 = arith.extui %0 : i1 to i32
    %c0_i32_0 = arith.constant 0 : i32
    %2 = arith.cmpi ne, %1, %c0_i32_0 : i32
    scf.if %2 {
      %cst_9 = arith.constant 0.000000e+00 : f32
      %12 = vector.broadcast %cst_9 : f32 to vector<128x128xf32>
      %c0_10 = arith.constant 0 : index
      %c0_11 = arith.constant 0 : index
      %13 = vector.load %arg6[%c0_10, %c0_11] : memref<128x128xf32, #tpu.memory_space<vmem>>, vector<128x128xf32>
      tpu.vector_store %arg6[%c0_10, %c0_11], %12 {strides = array<i32>} : memref<128x128xf32, #tpu.memory_space<vmem>>, vector<128x128xf32>,
    } else {
    }
    %c0 = arith.constant 0 : index
    %c0_1 = arith.constant 0 : index
    %3 = vector.load %arg6[%c0, %c0_1] : memref<128x128xf32, #tpu.memory_space<vmem>>, vector<128x128xf32>
    %c0_2 = arith.constant 0 : index
    %c0_3 = arith.constant 0 : index
    %4 = vector.load %arg3[%c0_2, %c0_3] : memref<128x128xbf16, #tpu.memory_space<vmem>>, vector<128x128xbf16>
    %c0_4 = arith.constant 0 : index
    %c0_5 = arith.constant 0 : index
    %5 = vector.load %arg4[%c0_4, %c0_5] : memref<128x128xbf16, #tpu.memory_space<vmem>>, vector<128x128xbf16>
    %cst = arith.constant dense<0.000000e+00> : vector<128x128xf32>
    %6 = tpu.matmul %4, %5, %cst {dimension_numbers = #tpu.dot_dimension_numbers<[1], [0], [0], [1], [0, 0, 1, 1], [], []>} : vector<128x128xbf16>, vector<128x128xbf16>, vector<128x128xf32> -> vector<128x128xf32>
    %7 = arith.addf %3, %6 : vector<128x128xf32>
    %c0_6 = arith.constant 0 : index
    %c0_7 = arith.constant 0 : index
    %8 = vector.load %arg6[%c0_6, %c0_7] : memref<128x128xf32, #tpu.memory_space<vmem>>, vector<128x128xf32>
    tpu.vector_store %arg6[%c0_6, %c0_7], %7 {strides = array<i32>} : memref<128x128xf32, #tpu.memory_space<vmem>>, vector<128x128xf32>,
    %c4_i32 = arith.constant 4 : i32
    %9 = arith.cmpi eq, %arg2, %c4_i32 : i32
    %10 = arith.extui %9 : i1 to i32
    %c0_i32_8 = arith.constant 0 : i32
    %11 = arith.cmpi ne, %10, %c0_i32_8 : i32
    scf.if %11 {
      %c0_9 = arith.constant 0 : index
      %c0_10 = arith.constant 0 : index
      %12 = vector.load %arg6[%c0_9, %c0_10] : memref<128x128xf32, #tpu.memory_space<vmem>>, vector<128x128xf32>
      %c0_11 = arith.constant 0 : index
      %c0_12 = arith.constant 0 : index
      %13 = vector.load %arg5[%c0_11, %c0_12] : memref<1x128xf32, #tpu.memory_space<vmem>>, vector<1x128xf32>
      %14 = vector.broadcast %13 : vector<1x128xf32> to vector<128x128xf32>
      %15 = arith.addf %12, %14 : vector<128x128xf32>
      %cst_13 = arith.constant 0.000000e+00 : f32
      %16 = vector.broadcast %cst_13 : f32 to vector<128x128xf32>
      %17 = arith.maximumf %15, %16 : vector<128x128xf32>
      %c0_14 = arith.constant 0 : index
      %c0_15 = arith.constant 0 : index
      %18 = vector.load %arg6[%c0_14, %c0_15] : memref<128x128xf32, #tpu.memory_space<vmem>>, vector<128x128xf32>
      tpu.vector_store %arg6[%c0_14, %c0_15], %17 {strides = array<i32>} : memref<128x128xf32, #tpu.memory_space<vmem>>, vector<128x128xf32>,
    } else {
    }
    return
  }
  func.func @transform_0(%arg0: i32, %arg1: i32, %arg2: i32) -> (i32, i32) {
    %c0_i32 = arith.constant 0 : i32
    return %arg0, %arg2 : i32, i32
  }
  func.func @transform_1(%arg0: i32, %arg1: i32, %arg2: i32) -> (i32, i32) {
    %c0_i32 = arith.constant 0 : i32
    return %arg2, %arg1 : i32, i32
  }
  func.func @transform_2(%arg0: i32, %arg1: i32, %arg2: i32) -> (i32, i32) {
    %c0_i32 = arith.constant 0 : i32
    %c0_i32_0 = arith.constant 0 : i32
    return %c0_i32, %arg1 : i32, i32
  }
  func.func @transform_3(%arg0: i32, %arg1: i32, %arg2: i32) -> (i32, i32) {
    %c0_i32 = arith.constant 0 : i32
    return %arg0, %arg1 : i32, i32
  }
}

module attributes {stable_mosaic.version = 11 : i64} {
  func.func @_add_relu_kernel(%arg0: i32, %arg1: memref<128x64xf32, #tpu.memory_space<vmem>>, %arg2: memref<128x64xf32, #tpu.memory_space<vmem>>, %arg3: memref<128x64xf32, #tpu.memory_space<vmem>>) attributes {dimension_semantics = [#tpu.dimension_semantics<parallel>], iteration_bounds = array<i64: 1>, scalar_prefetch = 0 : i64, scratch_operands = 0 : i64, tpu.core_type = #tpu.core_type<tc>, window_params = [{transform_indices = @transform_0, window_bounds = array<i64: 128, 64>}, {transform_indices = @transform_1, window_bounds = array<i64: 128, 64>}, {transform_indices = @transform_2, window_bounds = array<i64: 128, 64>}]} {
    %c0 = arith.constant 0 : index
    %c0_0 = arith.constant 0 : index
    %0 = vector.load %arg1[%c0, %c0_0] : memref<128x64xf32, #tpu.memory_space<vmem>>, vector<128x64xf32>
    %c0_1 = arith.constant 0 : index
    %c0_2 = arith.constant 0 : index
    %1 = vector.load %arg2[%c0_1, %c0_2] : memref<128x64xf32, #tpu.memory_space<vmem>>, vector<128x64xf32>
    %2 = arith.addf %0, %1 : vector<128x64xf32>
    %cst = arith.constant 0.000000e+00 : f32
    %3 = vector.broadcast %cst : f32 to vector<128x64xf32>
    %4 = arith.maximumf %2, %3 : vector<128x64xf32>
    %c0_3 = arith.constant 0 : index
    %c0_4 = arith.constant 0 : index
    %5 = vector.load %arg3[%c0_3, %c0_4] : memref<128x64xf32, #tpu.memory_space<vmem>>, vector<128x64xf32>
    tpu.vector_store %arg3[%c0_3, %c0_4], %4 {strides = array<i32>} : memref<128x64xf32, #tpu.memory_space<vmem>>, vector<128x64xf32>,
    return
  }
  func.func @transform_0(%arg0: i32) -> (i32, i32) {
    %c0_i32 = arith.constant 0 : i32
    %c0_i32_0 = arith.constant 0 : i32
    return %arg0, %c0_i32 : i32, i32
  }
  func.func @transform_1(%arg0: i32) -> (i32, i32) {
    %c0_i32 = arith.constant 0 : i32
    %c0_i32_0 = arith.constant 0 : i32
    return %arg0, %c0_i32 : i32, i32
  }
  func.func @transform_2(%arg0: i32) -> (i32, i32) {
    %c0_i32 = arith.constant 0 : i32
    %c0_i32_0 = arith.constant 0 : i32
    return %arg0, %c0_i32 : i32, i32
  }
}

module attributes {stable_mosaic.version = 11 : i64} {
  func.func @_matmul_bias_kernel(%arg0: i32, %arg1: i32, %arg2: i32, %arg3: memref<128x128xbf16, #tpu.memory_space<vmem>>, %arg4: memref<128x128xbf16, #tpu.memory_space<vmem>>, %arg5: memref<1x128xf32, #tpu.memory_space<vmem>>, %arg6: memref<128x128xf32, #tpu.memory_space<vmem>>) attributes {dimension_semantics = [#tpu.dimension_semantics<parallel>, #tpu.dimension_semantics<parallel>, #tpu.dimension_semantics<arbitrary>], iteration_bounds = array<i64: 1, 1, 5>, scalar_prefetch = 0 : i64, scratch_operands = 0 : i64, tpu.core_type = #tpu.core_type<tc>, window_params = [{transform_indices = @transform_0, window_bounds = array<i64: 128, 128>}, {transform_indices = @transform_1, window_bounds = array<i64: 128, 128>}, {transform_indices = @transform_2, window_bounds = array<i64: 1, 128>}, {transform_indices = @transform_3, window_bounds = array<i64: 128, 128>}]} {
    %c0_i32 = arith.constant 0 : i32
    %0 = arith.cmpi eq, %arg2, %c0_i32 : i32
    %1 = arith.extui %0 : i1 to i32
    %c0_i32_0 = arith.constant 0 : i32
    %2 = arith.cmpi ne, %1, %c0_i32_0 : i32
    scf.if %2 {
      %cst_9 = arith.constant 0.000000e+00 : f32
      %12 = vector.broadcast %cst_9 : f32 to vector<128x128xf32>
      %c0_10 = arith.constant 0 : index
      %c0_11 = arith.constant 0 : index
      %13 = vector.load %arg6[%c0_10, %c0_11] : memref<128x128xf32, #tpu.memory_space<vmem>>, vector<128x128xf32>
      tpu.vector_store %arg6[%c0_10, %c0_11], %12 {strides = array<i32>} : memref<128x128xf32, #tpu.memory_space<vmem>>, vector<128x128xf32>,
    } else {
    }
    %c0 = arith.constant 0 : index
    %c0_1 = arith.constant 0 : index
    %3 = vector.load %arg6[%c0, %c0_1] : memref<128x128xf32, #tpu.memory_space<vmem>>, vector<128x128xf32>
    %c0_2 = arith.constant 0 : index
    %c0_3 = arith.constant 0 : index
    %4 = vector.load %arg3[%c0_2, %c0_3] : memref<128x128xbf16, #tpu.memory_space<vmem>>, vector<128x128xbf16>
    %c0_4 = arith.constant 0 : index
    %c0_5 = arith.constant 0 : index
    %5 = vector.load %arg4[%c0_4, %c0_5] : memref<128x128xbf16, #tpu.memory_space<vmem>>, vector<128x128xbf16>
    %cst = arith.constant dense<0.000000e+00> : vector<128x128xf32>
    %6 = tpu.matmul %4, %5, %cst {dimension_numbers = #tpu.dot_dimension_numbers<[1], [0], [0], [1], [0, 0, 1, 1], [], []>} : vector<128x128xbf16>, vector<128x128xbf16>, vector<128x128xf32> -> vector<128x128xf32>
    %7 = arith.addf %3, %6 : vector<128x128xf32>
    %c0_6 = arith.constant 0 : index
    %c0_7 = arith.constant 0 : index
    %8 = vector.load %arg6[%c0_6, %c0_7] : memref<128x128xf32, #tpu.memory_space<vmem>>, vector<128x128xf32>
    tpu.vector_store %arg6[%c0_6, %c0_7], %7 {strides = array<i32>} : memref<128x128xf32, #tpu.memory_space<vmem>>, vector<128x128xf32>,
    %c4_i32 = arith.constant 4 : i32
    %9 = arith.cmpi eq, %arg2, %c4_i32 : i32
    %10 = arith.extui %9 : i1 to i32
    %c0_i32_8 = arith.constant 0 : i32
    %11 = arith.cmpi ne, %10, %c0_i32_8 : i32
    scf.if %11 {
      %c0_9 = arith.constant 0 : index
      %c0_10 = arith.constant 0 : index
      %12 = vector.load %arg6[%c0_9, %c0_10] : memref<128x128xf32, #tpu.memory_space<vmem>>, vector<128x128xf32>
      %c0_11 = arith.constant 0 : index
      %c0_12 = arith.constant 0 : index
      %13 = vector.load %arg5[%c0_11, %c0_12] : memref<1x128xf32, #tpu.memory_space<vmem>>, vector<1x128xf32>
      %14 = vector.broadcast %13 : vector<1x128xf32> to vector<128x128xf32>
      %15 = arith.addf %12, %14 : vector<128x128xf32>
      %c0_13 = arith.constant 0 : index
      %c0_14 = arith.constant 0 : index
      %16 = vector.load %arg6[%c0_13, %c0_14] : memref<128x128xf32, #tpu.memory_space<vmem>>, vector<128x128xf32>
      tpu.vector_store %arg6[%c0_13, %c0_14], %15 {strides = array<i32>} : memref<128x128xf32, #tpu.memory_space<vmem>>, vector<128x128xf32>,
    } else {
    }
    return
  }
  func.func @transform_0(%arg0: i32, %arg1: i32, %arg2: i32) -> (i32, i32) {
    %c0_i32 = arith.constant 0 : i32
    return %arg0, %arg2 : i32, i32
  }
  func.func @transform_1(%arg0: i32, %arg1: i32, %arg2: i32) -> (i32, i32) {
    %c0_i32 = arith.constant 0 : i32
    return %arg2, %arg1 : i32, i32
  }
  func.func @transform_2(%arg0: i32, %arg1: i32, %arg2: i32) -> (i32, i32) {
    %c0_i32 = arith.constant 0 : i32
    %c0_i32_0 = arith.constant 0 : i32
    return %c0_i32, %arg1 : i32, i32
  }
  func.func @transform_3(%arg0: i32, %arg1: i32, %arg2: i32) -> (i32, i32) {
    %c0_i32 = arith.constant 0 : i32
    return %arg0, %arg1 : i32, i32
  }
}

module attributes {stable_mosaic.version = 11 : i64} {
  func.func @_matmul_bias_kernel(%arg0: i32, %arg1: i32, %arg2: i32, %arg3: memref<32x128xbf16, #tpu.memory_space<vmem>>, %arg4: memref<128x128xbf16, #tpu.memory_space<vmem>>, %arg5: memref<1x128xf32, #tpu.memory_space<vmem>>, %arg6: memref<32x128xf32, #tpu.memory_space<vmem>>) attributes {dimension_semantics = [#tpu.dimension_semantics<parallel>, #tpu.dimension_semantics<parallel>, #tpu.dimension_semantics<arbitrary>], iteration_bounds = array<i64: 1, 1, 5>, scalar_prefetch = 0 : i64, scratch_operands = 0 : i64, tpu.core_type = #tpu.core_type<tc>, window_params = [{transform_indices = @transform_0, window_bounds = array<i64: 32, 128>}, {transform_indices = @transform_1, window_bounds = array<i64: 128, 128>}, {transform_indices = @transform_2, window_bounds = array<i64: 1, 128>}, {transform_indices = @transform_3, window_bounds = array<i64: 32, 128>}]} {
    %c0_i32 = arith.constant 0 : i32
    %0 = arith.cmpi eq, %arg2, %c0_i32 : i32
    %1 = arith.extui %0 : i1 to i32
    %c0_i32_0 = arith.constant 0 : i32
    %2 = arith.cmpi ne, %1, %c0_i32_0 : i32
    scf.if %2 {
      %cst_9 = arith.constant 0.000000e+00 : f32
      %12 = vector.broadcast %cst_9 : f32 to vector<32x128xf32>
      %c0_10 = arith.constant 0 : index
      %c0_11 = arith.constant 0 : index
      %13 = vector.load %arg6[%c0_10, %c0_11] : memref<32x128xf32, #tpu.memory_space<vmem>>, vector<32x128xf32>
      tpu.vector_store %arg6[%c0_10, %c0_11], %12 {strides = array<i32>} : memref<32x128xf32, #tpu.memory_space<vmem>>, vector<32x128xf32>,
    } else {
    }
    %c0 = arith.constant 0 : index
    %c0_1 = arith.constant 0 : index
    %3 = vector.load %arg6[%c0, %c0_1] : memref<32x128xf32, #tpu.memory_space<vmem>>, vector<32x128xf32>
    %c0_2 = arith.constant 0 : index
    %c0_3 = arith.constant 0 : index
    %4 = vector.load %arg3[%c0_2, %c0_3] : memref<32x128xbf16, #tpu.memory_space<vmem>>, vector<32x128xbf16>
    %c0_4 = arith.constant 0 : index
    %c0_5 = arith.constant 0 : index
    %5 = vector.load %arg4[%c0_4, %c0_5] : memref<128x128xbf16, #tpu.memory_space<vmem>>, vector<128x128xbf16>
    %cst = arith.constant dense<0.000000e+00> : vector<32x128xf32>
    %6 = tpu.matmul %4, %5, %cst {dimension_numbers = #tpu.dot_dimension_numbers<[1], [0], [0], [1], [0, 0, 1, 1], [], []>} : vector<32x128xbf16>, vector<128x128xbf16>, vector<32x128xf32> -> vector<32x128xf32>
    %7 = arith.addf %3, %6 : vector<32x128xf32>
    %c0_6 = arith.constant 0 : index
    %c0_7 = arith.constant 0 : index
    %8 = vector.load %arg6[%c0_6, %c0_7] : memref<32x128xf32, #tpu.memory_space<vmem>>, vector<32x128xf32>
    tpu.vector_store %arg6[%c0_6, %c0_7], %7 {strides = array<i32>} : memref<32x128xf32, #tpu.memory_space<vmem>>, vector<32x128xf32>,
    %c4_i32 = arith.constant 4 : i32
    %9 = arith.cmpi eq, %arg2, %c4_i32 : i32
    %10 = arith.extui %9 : i1 to i32
    %c0_i32_8 = arith.constant 0 : i32
    %11 = arith.cmpi ne, %10, %c0_i32_8 : i32
    scf.if %11 {
      %c0_9 = arith.constant 0 : index
      %c0_10 = arith.constant 0 : index
      %12 = vector.load %arg6[%c0_9, %c0_10] : memref<32x128xf32, #tpu.memory_space<vmem>>, vector<32x128xf32>
      %c0_11 = arith.constant 0 : index
      %c0_12 = arith.constant 0 : index
      %13 = vector.load %arg5[%c0_11, %c0_12] : memref<1x128xf32, #tpu.memory_space<vmem>>, vector<1x128xf32>
      %14 = vector.broadcast %13 : vector<1x128xf32> to vector<32x128xf32>
      %15 = arith.addf %12, %14 : vector<32x128xf32>
      %cst_13 = arith.constant 0.000000e+00 : f32
      %16 = vector.broadcast %cst_13 : f32 to vector<32x128xf32>
      %17 = arith.maximumf %15, %16 : vector<32x128xf32>
      %c0_14 = arith.constant 0 : index
      %c0_15 = arith.constant 0 : index
      %18 = vector.load %arg6[%c0_14, %c0_15] : memref<32x128xf32, #tpu.memory_space<vmem>>, vector<32x128xf32>
      tpu.vector_store %arg6[%c0_14, %c0_15], %17 {strides = array<i32>} : memref<32x128xf32, #tpu.memory_space<vmem>>, vector<32x128xf32>,
    } else {
    }
    return
  }
  func.func @transform_0(%arg0: i32, %arg1: i32, %arg2: i32) -> (i32, i32) {
    %c0_i32 = arith.constant 0 : i32
    return %arg0, %arg2 : i32, i32
  }
  func.func @transform_1(%arg0: i32, %arg1: i32, %arg2: i32) -> (i32, i32) {
    %c0_i32 = arith.constant 0 : i32
    return %arg2, %arg1 : i32, i32
  }
  func.func @transform_2(%arg0: i32, %arg1: i32, %arg2: i32) -> (i32, i32) {
    %c0_i32 = arith.constant 0 : i32
    %c0_i32_0 = arith.constant 0 : i32
    return %c0_i32, %arg1 : i32, i32
  }
  func.func @transform_3(%arg0: i32, %arg1: i32, %arg2: i32) -> (i32, i32) {
    %c0_i32 = arith.constant 0 : i32
    return %arg0, %arg1 : i32, i32
  }
}

module attributes {stable_mosaic.version = 11 : i64} {
  func.func @_matmul_bias_kernel(%arg0: i32, %arg1: i32, %arg2: i32, %arg3: memref<32x384xbf16, #tpu.memory_space<vmem>>, %arg4: memref<384x128xbf16, #tpu.memory_space<vmem>>, %arg5: memref<1x128xf32, #tpu.memory_space<vmem>>, %arg6: memref<32x128xf32, #tpu.memory_space<vmem>>) attributes {dimension_semantics = [#tpu.dimension_semantics<parallel>, #tpu.dimension_semantics<parallel>, #tpu.dimension_semantics<arbitrary>], iteration_bounds = array<i64: 1, 1, 3>, scalar_prefetch = 0 : i64, scratch_operands = 0 : i64, tpu.core_type = #tpu.core_type<tc>, window_params = [{transform_indices = @transform_0, window_bounds = array<i64: 32, 384>}, {transform_indices = @transform_1, window_bounds = array<i64: 384, 128>}, {transform_indices = @transform_2, window_bounds = array<i64: 1, 128>}, {transform_indices = @transform_3, window_bounds = array<i64: 32, 128>}]} {
    %c0_i32 = arith.constant 0 : i32
    %0 = arith.cmpi eq, %arg2, %c0_i32 : i32
    %1 = arith.extui %0 : i1 to i32
    %c0_i32_0 = arith.constant 0 : i32
    %2 = arith.cmpi ne, %1, %c0_i32_0 : i32
    scf.if %2 {
      %cst_9 = arith.constant 0.000000e+00 : f32
      %12 = vector.broadcast %cst_9 : f32 to vector<32x128xf32>
      %c0_10 = arith.constant 0 : index
      %c0_11 = arith.constant 0 : index
      %13 = vector.load %arg6[%c0_10, %c0_11] : memref<32x128xf32, #tpu.memory_space<vmem>>, vector<32x128xf32>
      tpu.vector_store %arg6[%c0_10, %c0_11], %12 {strides = array<i32>} : memref<32x128xf32, #tpu.memory_space<vmem>>, vector<32x128xf32>,
    } else {
    }
    %c0 = arith.constant 0 : index
    %c0_1 = arith.constant 0 : index
    %3 = vector.load %arg6[%c0, %c0_1] : memref<32x128xf32, #tpu.memory_space<vmem>>, vector<32x128xf32>
    %c0_2 = arith.constant 0 : index
    %c0_3 = arith.constant 0 : index
    %4 = vector.load %arg3[%c0_2, %c0_3] : memref<32x384xbf16, #tpu.memory_space<vmem>>, vector<32x384xbf16>
    %c0_4 = arith.constant 0 : index
    %c0_5 = arith.constant 0 : index
    %5 = vector.load %arg4[%c0_4, %c0_5] : memref<384x128xbf16, #tpu.memory_space<vmem>>, vector<384x128xbf16>
    %cst = arith.constant dense<0.000000e+00> : vector<32x128xf32>
    %6 = tpu.matmul %4, %5, %cst {dimension_numbers = #tpu.dot_dimension_numbers<[1], [0], [0], [1], [0, 0, 1, 1], [], []>} : vector<32x384xbf16>, vector<384x128xbf16>, vector<32x128xf32> -> vector<32x128xf32>
    %7 = arith.addf %3, %6 : vector<32x128xf32>
    %c0_6 = arith.constant 0 : index
    %c0_7 = arith.constant 0 : index
    %8 = vector.load %arg6[%c0_6, %c0_7] : memref<32x128xf32, #tpu.memory_space<vmem>>, vector<32x128xf32>
    tpu.vector_store %arg6[%c0_6, %c0_7], %7 {strides = array<i32>} : memref<32x128xf32, #tpu.memory_space<vmem>>, vector<32x128xf32>,
    %c2_i32 = arith.constant 2 : i32
    %9 = arith.cmpi eq, %arg2, %c2_i32 : i32
    %10 = arith.extui %9 : i1 to i32
    %c0_i32_8 = arith.constant 0 : i32
    %11 = arith.cmpi ne, %10, %c0_i32_8 : i32
    scf.if %11 {
      %c0_9 = arith.constant 0 : index
      %c0_10 = arith.constant 0 : index
      %12 = vector.load %arg6[%c0_9, %c0_10] : memref<32x128xf32, #tpu.memory_space<vmem>>, vector<32x128xf32>
      %c0_11 = arith.constant 0 : index
      %c0_12 = arith.constant 0 : index
      %13 = vector.load %arg5[%c0_11, %c0_12] : memref<1x128xf32, #tpu.memory_space<vmem>>, vector<1x128xf32>
      %14 = vector.broadcast %13 : vector<1x128xf32> to vector<32x128xf32>
      %15 = arith.addf %12, %14 : vector<32x128xf32>
      %c0_13 = arith.constant 0 : index
      %c0_14 = arith.constant 0 : index
      %16 = vector.load %arg6[%c0_13, %c0_14] : memref<32x128xf32, #tpu.memory_space<vmem>>, vector<32x128xf32>
      tpu.vector_store %arg6[%c0_13, %c0_14], %15 {strides = array<i32>} : memref<32x128xf32, #tpu.memory_space<vmem>>, vector<32x128xf32>,
    } else {
    }
    return
  }
  func.func @transform_0(%arg0: i32, %arg1: i32, %arg2: i32) -> (i32, i32) {
    %c0_i32 = arith.constant 0 : i32
    return %arg0, %arg2 : i32, i32
  }
  func.func @transform_1(%arg0: i32, %arg1: i32, %arg2: i32) -> (i32, i32) {
    %c0_i32 = arith.constant 0 : i32
    return %arg2, %arg1 : i32, i32
  }
  func.func @transform_2(%arg0: i32, %arg1: i32, %arg2: i32) -> (i32, i32) {
    %c0_i32 = arith.constant 0 : i32
    %c0_i32_0 = arith.constant 0 : i32
    return %c0_i32, %arg1 : i32, i32
  }
  func.func @transform_3(%arg0: i32, %arg1: i32, %arg2: i32) -> (i32, i32) {
    %c0_i32 = arith.constant 0 : i32
    return %arg0, %arg1 : i32, i32
  }
}

module attributes {stable_mosaic.version = 11 : i64} {
  func.func @_matmul_bias_kernel(%arg0: i32, %arg1: i32, %arg2: i32, %arg3: memref<32x128xbf16, #tpu.memory_space<vmem>>, %arg4: memref<128x128xbf16, #tpu.memory_space<vmem>>, %arg5: memref<1x128xf32, #tpu.memory_space<vmem>>, %arg6: memref<32x128xf32, #tpu.memory_space<vmem>>) attributes {dimension_semantics = [#tpu.dimension_semantics<parallel>, #tpu.dimension_semantics<parallel>, #tpu.dimension_semantics<arbitrary>], iteration_bounds = array<i64: 1, 1, 1>, scalar_prefetch = 0 : i64, scratch_operands = 0 : i64, tpu.core_type = #tpu.core_type<tc>, window_params = [{transform_indices = @transform_0, window_bounds = array<i64: 32, 128>}, {transform_indices = @transform_1, window_bounds = array<i64: 128, 128>}, {transform_indices = @transform_2, window_bounds = array<i64: 1, 128>}, {transform_indices = @transform_3, window_bounds = array<i64: 32, 128>}]} {
    %c0_i32 = arith.constant 0 : i32
    %0 = arith.cmpi eq, %arg2, %c0_i32 : i32
    %1 = arith.extui %0 : i1 to i32
    %c0_i32_0 = arith.constant 0 : i32
    %2 = arith.cmpi ne, %1, %c0_i32_0 : i32
    scf.if %2 {
      %cst_10 = arith.constant 0.000000e+00 : f32
      %12 = vector.broadcast %cst_10 : f32 to vector<32x128xf32>
      %c0_11 = arith.constant 0 : index
      %c0_12 = arith.constant 0 : index
      %13 = vector.load %arg6[%c0_11, %c0_12] : memref<32x128xf32, #tpu.memory_space<vmem>>, vector<32x128xf32>
      tpu.vector_store %arg6[%c0_11, %c0_12], %12 {strides = array<i32>} : memref<32x128xf32, #tpu.memory_space<vmem>>, vector<32x128xf32>,
    } else {
    }
    %c0 = arith.constant 0 : index
    %c0_1 = arith.constant 0 : index
    %3 = vector.load %arg6[%c0, %c0_1] : memref<32x128xf32, #tpu.memory_space<vmem>>, vector<32x128xf32>
    %c0_2 = arith.constant 0 : index
    %c0_3 = arith.constant 0 : index
    %4 = vector.load %arg3[%c0_2, %c0_3] : memref<32x128xbf16, #tpu.memory_space<vmem>>, vector<32x128xbf16>
    %c0_4 = arith.constant 0 : index
    %c0_5 = arith.constant 0 : index
    %5 = vector.load %arg4[%c0_4, %c0_5] : memref<128x128xbf16, #tpu.memory_space<vmem>>, vector<128x128xbf16>
    %cst = arith.constant dense<0.000000e+00> : vector<32x128xf32>
    %6 = tpu.matmul %4, %5, %cst {dimension_numbers = #tpu.dot_dimension_numbers<[1], [0], [0], [1], [0, 0, 1, 1], [], []>} : vector<32x128xbf16>, vector<128x128xbf16>, vector<32x128xf32> -> vector<32x128xf32>
    %7 = arith.addf %3, %6 : vector<32x128xf32>
    %c0_6 = arith.constant 0 : index
    %c0_7 = arith.constant 0 : index
    %8 = vector.load %arg6[%c0_6, %c0_7] : memref<32x128xf32, #tpu.memory_space<vmem>>, vector<32x128xf32>
    tpu.vector_store %arg6[%c0_6, %c0_7], %7 {strides = array<i32>} : memref<32x128xf32, #tpu.memory_space<vmem>>, vector<32x128xf32>,
    %c0_i32_8 = arith.constant 0 : i32
    %9 = arith.cmpi eq, %arg2, %c0_i32_8 : i32
    %10 = arith.extui %9 : i1 to i32
    %c0_i32_9 = arith.constant 0 : i32
    %11 = arith.cmpi ne, %10, %c0_i32_9 : i32
    scf.if %11 {
      %c0_10 = arith.constant 0 : index
      %c0_11 = arith.constant 0 : index
      %12 = vector.load %arg6[%c0_10, %c0_11] : memref<32x128xf32, #tpu.memory_space<vmem>>, vector<32x128xf32>
      %c0_12 = arith.constant 0 : index
      %c0_13 = arith.constant 0 : index
      %13 = vector.load %arg5[%c0_12, %c0_13] : memref<1x128xf32, #tpu.memory_space<vmem>>, vector<1x128xf32>
      %14 = vector.broadcast %13 : vector<1x128xf32> to vector<32x128xf32>
      %15 = arith.addf %12, %14 : vector<32x128xf32>
      %c0_14 = arith.constant 0 : index
      %c0_15 = arith.constant 0 : index
      %16 = vector.load %arg6[%c0_14, %c0_15] : memref<32x128xf32, #tpu.memory_space<vmem>>, vector<32x128xf32>
      tpu.vector_store %arg6[%c0_14, %c0_15], %15 {strides = array<i32>} : memref<32x128xf32, #tpu.memory_space<vmem>>, vector<32x128xf32>,
    } else {
    }
    return
  }
  func.func @transform_0(%arg0: i32, %arg1: i32, %arg2: i32) -> (i32, i32) {
    %c0_i32 = arith.constant 0 : i32
    return %arg0, %arg2 : i32, i32
  }
  func.func @transform_1(%arg0: i32, %arg1: i32, %arg2: i32) -> (i32, i32) {
    %c0_i32 = arith.constant 0 : i32
    return %arg2, %arg1 : i32, i32
  }
  func.func @transform_2(%arg0: i32, %arg1: i32, %arg2: i32) -> (i32, i32) {
    %c0_i32 = arith.constant 0 : i32
    %c0_i32_0 = arith.constant 0 : i32
    return %c0_i32, %arg1 : i32, i32
  }
  func.func @transform_3(%arg0: i32, %arg1: i32, %arg2: i32) -> (i32, i32) {
    %c0_i32 = arith.constant 0 : i32
    return %arg0, %arg1 : i32, i32
  }
}

module attributes {stable_mosaic.version = 11 : i64} {
  func.func @_add_relu_kernel(%arg0: i32, %arg1: memref<32x128xf32, #tpu.memory_space<vmem>>, %arg2: memref<32x128xf32, #tpu.memory_space<vmem>>, %arg3: memref<32x128xf32, #tpu.memory_space<vmem>>) attributes {dimension_semantics = [#tpu.dimension_semantics<parallel>], iteration_bounds = array<i64: 1>, scalar_prefetch = 0 : i64, scratch_operands = 0 : i64, tpu.core_type = #tpu.core_type<tc>, window_params = [{transform_indices = @transform_0, window_bounds = array<i64: 32, 128>}, {transform_indices = @transform_1, window_bounds = array<i64: 32, 128>}, {transform_indices = @transform_2, window_bounds = array<i64: 32, 128>}]} {
    %c0 = arith.constant 0 : index
    %c0_0 = arith.constant 0 : index
    %0 = vector.load %arg1[%c0, %c0_0] : memref<32x128xf32, #tpu.memory_space<vmem>>, vector<32x128xf32>
    %c0_1 = arith.constant 0 : index
    %c0_2 = arith.constant 0 : index
    %1 = vector.load %arg2[%c0_1, %c0_2] : memref<32x128xf32, #tpu.memory_space<vmem>>, vector<32x128xf32>
    %2 = arith.addf %0, %1 : vector<32x128xf32>
    %cst = arith.constant 0.000000e+00 : f32
    %3 = vector.broadcast %cst : f32 to vector<32x128xf32>
    %4 = arith.maximumf %2, %3 : vector<32x128xf32>
    %c0_3 = arith.constant 0 : index
    %c0_4 = arith.constant 0 : index
    %5 = vector.load %arg3[%c0_3, %c0_4] : memref<32x128xf32, #tpu.memory_space<vmem>>, vector<32x128xf32>
    tpu.vector_store %arg3[%c0_3, %c0_4], %4 {strides = array<i32>} : memref<32x128xf32, #tpu.memory_space<vmem>>, vector<32x128xf32>,
    return
  }
  func.func @transform_0(%arg0: i32) -> (i32, i32) {
    %c0_i32 = arith.constant 0 : i32
    %c0_i32_0 = arith.constant 0 : i32
    return %arg0, %c0_i32 : i32, i32
  }
  func.func @transform_1(%arg0: i32) -> (i32, i32) {
    %c0_i32 = arith.constant 0 : i32
    %c0_i32_0 = arith.constant 0 : i32
    return %arg0, %c0_i32 : i32, i32
  }
  func.func @transform_2(%arg0: i32) -> (i32, i32) {
    %c0_i32 = arith.constant 0 : i32
    %c0_i32_0 = arith.constant 0 : i32
    return %arg0, %c0_i32 : i32, i32
  }
}

module attributes {stable_mosaic.version = 11 : i64} {
  func.func @_matmul_bias_kernel(%arg0: i32, %arg1: i32, %arg2: i32, %arg3: memref<32x384xbf16, #tpu.memory_space<vmem>>, %arg4: memref<384x128xbf16, #tpu.memory_space<vmem>>, %arg5: memref<1x128xf32, #tpu.memory_space<vmem>>, %arg6: memref<32x128xf32, #tpu.memory_space<vmem>>) attributes {dimension_semantics = [#tpu.dimension_semantics<parallel>, #tpu.dimension_semantics<parallel>, #tpu.dimension_semantics<arbitrary>], iteration_bounds = array<i64: 1, 1, 3>, scalar_prefetch = 0 : i64, scratch_operands = 0 : i64, tpu.core_type = #tpu.core_type<tc>, window_params = [{transform_indices = @transform_0, window_bounds = array<i64: 32, 384>}, {transform_indices = @transform_1, window_bounds = array<i64: 384, 128>}, {transform_indices = @transform_2, window_bounds = array<i64: 1, 128>}, {transform_indices = @transform_3, window_bounds = array<i64: 32, 128>}]} {
    %c0_i32 = arith.constant 0 : i32
    %0 = arith.cmpi eq, %arg2, %c0_i32 : i32
    %1 = arith.extui %0 : i1 to i32
    %c0_i32_0 = arith.constant 0 : i32
    %2 = arith.cmpi ne, %1, %c0_i32_0 : i32
    scf.if %2 {
      %cst_9 = arith.constant 0.000000e+00 : f32
      %12 = vector.broadcast %cst_9 : f32 to vector<32x128xf32>
      %c0_10 = arith.constant 0 : index
      %c0_11 = arith.constant 0 : index
      %13 = vector.load %arg6[%c0_10, %c0_11] : memref<32x128xf32, #tpu.memory_space<vmem>>, vector<32x128xf32>
      tpu.vector_store %arg6[%c0_10, %c0_11], %12 {strides = array<i32>} : memref<32x128xf32, #tpu.memory_space<vmem>>, vector<32x128xf32>,
    } else {
    }
    %c0 = arith.constant 0 : index
    %c0_1 = arith.constant 0 : index
    %3 = vector.load %arg6[%c0, %c0_1] : memref<32x128xf32, #tpu.memory_space<vmem>>, vector<32x128xf32>
    %c0_2 = arith.constant 0 : index
    %c0_3 = arith.constant 0 : index
    %4 = vector.load %arg3[%c0_2, %c0_3] : memref<32x384xbf16, #tpu.memory_space<vmem>>, vector<32x384xbf16>
    %c0_4 = arith.constant 0 : index
    %c0_5 = arith.constant 0 : index
    %5 = vector.load %arg4[%c0_4, %c0_5] : memref<384x128xbf16, #tpu.memory_space<vmem>>, vector<384x128xbf16>
    %cst = arith.constant dense<0.000000e+00> : vector<32x128xf32>
    %6 = tpu.matmul %4, %5, %cst {dimension_numbers = #tpu.dot_dimension_numbers<[1], [0], [0], [1], [0, 0, 1, 1], [], []>} : vector<32x384xbf16>, vector<384x128xbf16>, vector<32x128xf32> -> vector<32x128xf32>
    %7 = arith.addf %3, %6 : vector<32x128xf32>
    %c0_6 = arith.constant 0 : index
    %c0_7 = arith.constant 0 : index
    %8 = vector.load %arg6[%c0_6, %c0_7] : memref<32x128xf32, #tpu.memory_space<vmem>>, vector<32x128xf32>
    tpu.vector_store %arg6[%c0_6, %c0_7], %7 {strides = array<i32>} : memref<32x128xf32, #tpu.memory_space<vmem>>, vector<32x128xf32>,
    %c2_i32 = arith.constant 2 : i32
    %9 = arith.cmpi eq, %arg2, %c2_i32 : i32
    %10 = arith.extui %9 : i1 to i32
    %c0_i32_8 = arith.constant 0 : i32
    %11 = arith.cmpi ne, %10, %c0_i32_8 : i32
    scf.if %11 {
      %c0_9 = arith.constant 0 : index
      %c0_10 = arith.constant 0 : index
      %12 = vector.load %arg6[%c0_9, %c0_10] : memref<32x128xf32, #tpu.memory_space<vmem>>, vector<32x128xf32>
      %c0_11 = arith.constant 0 : index
      %c0_12 = arith.constant 0 : index
      %13 = vector.load %arg5[%c0_11, %c0_12] : memref<1x128xf32, #tpu.memory_space<vmem>>, vector<1x128xf32>
      %14 = vector.broadcast %13 : vector<1x128xf32> to vector<32x128xf32>
      %15 = arith.addf %12, %14 : vector<32x128xf32>
      %cst_13 = arith.constant 0.000000e+00 : f32
      %16 = vector.broadcast %cst_13 : f32 to vector<32x128xf32>
      %17 = arith.maximumf %15, %16 : vector<32x128xf32>
      %c0_14 = arith.constant 0 : index
      %c0_15 = arith.constant 0 : index
      %18 = vector.load %arg6[%c0_14, %c0_15] : memref<32x128xf32, #tpu.memory_space<vmem>>, vector<32x128xf32>
      tpu.vector_store %arg6[%c0_14, %c0_15], %17 {strides = array<i32>} : memref<32x128xf32, #tpu.memory_space<vmem>>, vector<32x128xf32>,
    } else {
    }
    return
  }
  func.func @transform_0(%arg0: i32, %arg1: i32, %arg2: i32) -> (i32, i32) {
    %c0_i32 = arith.constant 0 : i32
    return %arg0, %arg2 : i32, i32
  }
  func.func @transform_1(%arg0: i32, %arg1: i32, %arg2: i32) -> (i32, i32) {
    %c0_i32 = arith.constant 0 : i32
    return %arg2, %arg1 : i32, i32
  }
  func.func @transform_2(%arg0: i32, %arg1: i32, %arg2: i32) -> (i32, i32) {
    %c0_i32 = arith.constant 0 : i32
    %c0_i32_0 = arith.constant 0 : i32
    return %c0_i32, %arg1 : i32, i32
  }
  func.func @transform_3(%arg0: i32, %arg1: i32, %arg2: i32) -> (i32, i32) {
    %c0_i32 = arith.constant 0 : i32
    return %arg0, %arg1 : i32, i32
  }
}

module attributes {stable_mosaic.version = 11 : i64} {
  func.func @_matmul_bias_kernel(%arg0: i32, %arg1: i32, %arg2: i32, %arg3: memref<8x384xbf16, #tpu.memory_space<vmem>>, %arg4: memref<384x256xbf16, #tpu.memory_space<vmem>>, %arg5: memref<1x256xf32, #tpu.memory_space<vmem>>, %arg6: memref<8x256xf32, #tpu.memory_space<vmem>>) attributes {dimension_semantics = [#tpu.dimension_semantics<parallel>, #tpu.dimension_semantics<parallel>, #tpu.dimension_semantics<arbitrary>], iteration_bounds = array<i64: 1, 1, 3>, scalar_prefetch = 0 : i64, scratch_operands = 0 : i64, tpu.core_type = #tpu.core_type<tc>, window_params = [{transform_indices = @transform_0, window_bounds = array<i64: 8, 384>}, {transform_indices = @transform_1, window_bounds = array<i64: 384, 256>}, {transform_indices = @transform_2, window_bounds = array<i64: 1, 256>}, {transform_indices = @transform_3, window_bounds = array<i64: 8, 256>}]} {
    %c0_i32 = arith.constant 0 : i32
    %0 = arith.cmpi eq, %arg2, %c0_i32 : i32
    %1 = arith.extui %0 : i1 to i32
    %c0_i32_0 = arith.constant 0 : i32
    %2 = arith.cmpi ne, %1, %c0_i32_0 : i32
    scf.if %2 {
      %cst_9 = arith.constant 0.000000e+00 : f32
      %12 = vector.broadcast %cst_9 : f32 to vector<8x256xf32>
      %c0_10 = arith.constant 0 : index
      %c0_11 = arith.constant 0 : index
      %13 = vector.load %arg6[%c0_10, %c0_11] : memref<8x256xf32, #tpu.memory_space<vmem>>, vector<8x256xf32>
      tpu.vector_store %arg6[%c0_10, %c0_11], %12 {strides = array<i32>} : memref<8x256xf32, #tpu.memory_space<vmem>>, vector<8x256xf32>,
    } else {
    }
    %c0 = arith.constant 0 : index
    %c0_1 = arith.constant 0 : index
    %3 = vector.load %arg6[%c0, %c0_1] : memref<8x256xf32, #tpu.memory_space<vmem>>, vector<8x256xf32>
    %c0_2 = arith.constant 0 : index
    %c0_3 = arith.constant 0 : index
    %4 = vector.load %arg3[%c0_2, %c0_3] : memref<8x384xbf16, #tpu.memory_space<vmem>>, vector<8x384xbf16>
    %c0_4 = arith.constant 0 : index
    %c0_5 = arith.constant 0 : index
    %5 = vector.load %arg4[%c0_4, %c0_5] : memref<384x256xbf16, #tpu.memory_space<vmem>>, vector<384x256xbf16>
    %cst = arith.constant dense<0.000000e+00> : vector<8x256xf32>
    %6 = tpu.matmul %4, %5, %cst {dimension_numbers = #tpu.dot_dimension_numbers<[1], [0], [0], [1], [0, 0, 1, 1], [], []>} : vector<8x384xbf16>, vector<384x256xbf16>, vector<8x256xf32> -> vector<8x256xf32>
    %7 = arith.addf %3, %6 : vector<8x256xf32>
    %c0_6 = arith.constant 0 : index
    %c0_7 = arith.constant 0 : index
    %8 = vector.load %arg6[%c0_6, %c0_7] : memref<8x256xf32, #tpu.memory_space<vmem>>, vector<8x256xf32>
    tpu.vector_store %arg6[%c0_6, %c0_7], %7 {strides = array<i32>} : memref<8x256xf32, #tpu.memory_space<vmem>>, vector<8x256xf32>,
    %c2_i32 = arith.constant 2 : i32
    %9 = arith.cmpi eq, %arg2, %c2_i32 : i32
    %10 = arith.extui %9 : i1 to i32
    %c0_i32_8 = arith.constant 0 : i32
    %11 = arith.cmpi ne, %10, %c0_i32_8 : i32
    scf.if %11 {
      %c0_9 = arith.constant 0 : index
      %c0_10 = arith.constant 0 : index
      %12 = vector.load %arg6[%c0_9, %c0_10] : memref<8x256xf32, #tpu.memory_space<vmem>>, vector<8x256xf32>
      %c0_11 = arith.constant 0 : index
      %c0_12 = arith.constant 0 : index
      %13 = vector.load %arg5[%c0_11, %c0_12] : memref<1x256xf32, #tpu.memory_space<vmem>>, vector<1x256xf32>
      %14 = vector.broadcast %13 : vector<1x256xf32> to vector<8x256xf32>
      %15 = arith.addf %12, %14 : vector<8x256xf32>
      %cst_13 = arith.constant 0.000000e+00 : f32
      %16 = vector.broadcast %cst_13 : f32 to vector<8x256xf32>
      %17 = arith.maximumf %15, %16 : vector<8x256xf32>
      %c0_14 = arith.constant 0 : index
      %c0_15 = arith.constant 0 : index
      %18 = vector.load %arg6[%c0_14, %c0_15] : memref<8x256xf32, #tpu.memory_space<vmem>>, vector<8x256xf32>
      tpu.vector_store %arg6[%c0_14, %c0_15], %17 {strides = array<i32>} : memref<8x256xf32, #tpu.memory_space<vmem>>, vector<8x256xf32>,
    } else {
    }
    return
  }
  func.func @transform_0(%arg0: i32, %arg1: i32, %arg2: i32) -> (i32, i32) {
    %c0_i32 = arith.constant 0 : i32
    return %arg0, %arg2 : i32, i32
  }
  func.func @transform_1(%arg0: i32, %arg1: i32, %arg2: i32) -> (i32, i32) {
    %c0_i32 = arith.constant 0 : i32
    return %arg2, %arg1 : i32, i32
  }
  func.func @transform_2(%arg0: i32, %arg1: i32, %arg2: i32) -> (i32, i32) {
    %c0_i32 = arith.constant 0 : i32
    %c0_i32_0 = arith.constant 0 : i32
    return %c0_i32, %arg1 : i32, i32
  }
  func.func @transform_3(%arg0: i32, %arg1: i32, %arg2: i32) -> (i32, i32) {
    %c0_i32 = arith.constant 0 : i32
    return %arg0, %arg1 : i32, i32
  }
}

module attributes {stable_mosaic.version = 11 : i64} {
  func.func @_matmul_bias_kernel(%arg0: i32, %arg1: i32, %arg2: i32, %arg3: memref<8x128xbf16, #tpu.memory_space<vmem>>, %arg4: memref<128x256xbf16, #tpu.memory_space<vmem>>, %arg5: memref<1x256xf32, #tpu.memory_space<vmem>>, %arg6: memref<8x256xf32, #tpu.memory_space<vmem>>) attributes {dimension_semantics = [#tpu.dimension_semantics<parallel>, #tpu.dimension_semantics<parallel>, #tpu.dimension_semantics<arbitrary>], iteration_bounds = array<i64: 1, 1, 1>, scalar_prefetch = 0 : i64, scratch_operands = 0 : i64, tpu.core_type = #tpu.core_type<tc>, window_params = [{transform_indices = @transform_0, window_bounds = array<i64: 8, 128>}, {transform_indices = @transform_1, window_bounds = array<i64: 128, 256>}, {transform_indices = @transform_2, window_bounds = array<i64: 1, 256>}, {transform_indices = @transform_3, window_bounds = array<i64: 8, 256>}]} {
    %c0_i32 = arith.constant 0 : i32
    %0 = arith.cmpi eq, %arg2, %c0_i32 : i32
    %1 = arith.extui %0 : i1 to i32
    %c0_i32_0 = arith.constant 0 : i32
    %2 = arith.cmpi ne, %1, %c0_i32_0 : i32
    scf.if %2 {
      %cst_10 = arith.constant 0.000000e+00 : f32
      %12 = vector.broadcast %cst_10 : f32 to vector<8x256xf32>
      %c0_11 = arith.constant 0 : index
      %c0_12 = arith.constant 0 : index
      %13 = vector.load %arg6[%c0_11, %c0_12] : memref<8x256xf32, #tpu.memory_space<vmem>>, vector<8x256xf32>
      tpu.vector_store %arg6[%c0_11, %c0_12], %12 {strides = array<i32>} : memref<8x256xf32, #tpu.memory_space<vmem>>, vector<8x256xf32>,
    } else {
    }
    %c0 = arith.constant 0 : index
    %c0_1 = arith.constant 0 : index
    %3 = vector.load %arg6[%c0, %c0_1] : memref<8x256xf32, #tpu.memory_space<vmem>>, vector<8x256xf32>
    %c0_2 = arith.constant 0 : index
    %c0_3 = arith.constant 0 : index
    %4 = vector.load %arg3[%c0_2, %c0_3] : memref<8x128xbf16, #tpu.memory_space<vmem>>, vector<8x128xbf16>
    %c0_4 = arith.constant 0 : index
    %c0_5 = arith.constant 0 : index
    %5 = vector.load %arg4[%c0_4, %c0_5] : memref<128x256xbf16, #tpu.memory_space<vmem>>, vector<128x256xbf16>
    %cst = arith.constant dense<0.000000e+00> : vector<8x256xf32>
    %6 = tpu.matmul %4, %5, %cst {dimension_numbers = #tpu.dot_dimension_numbers<[1], [0], [0], [1], [0, 0, 1, 1], [], []>} : vector<8x128xbf16>, vector<128x256xbf16>, vector<8x256xf32> -> vector<8x256xf32>
    %7 = arith.addf %3, %6 : vector<8x256xf32>
    %c0_6 = arith.constant 0 : index
    %c0_7 = arith.constant 0 : index
    %8 = vector.load %arg6[%c0_6, %c0_7] : memref<8x256xf32, #tpu.memory_space<vmem>>, vector<8x256xf32>
    tpu.vector_store %arg6[%c0_6, %c0_7], %7 {strides = array<i32>} : memref<8x256xf32, #tpu.memory_space<vmem>>, vector<8x256xf32>,
    %c0_i32_8 = arith.constant 0 : i32
    %9 = arith.cmpi eq, %arg2, %c0_i32_8 : i32
    %10 = arith.extui %9 : i1 to i32
    %c0_i32_9 = arith.constant 0 : i32
    %11 = arith.cmpi ne, %10, %c0_i32_9 : i32
    scf.if %11 {
      %c0_10 = arith.constant 0 : index
      %c0_11 = arith.constant 0 : index
      %12 = vector.load %arg6[%c0_10, %c0_11] : memref<8x256xf32, #tpu.memory_space<vmem>>, vector<8x256xf32>
      %c0_12 = arith.constant 0 : index
      %c0_13 = arith.constant 0 : index
      %13 = vector.load %arg5[%c0_12, %c0_13] : memref<1x256xf32, #tpu.memory_space<vmem>>, vector<1x256xf32>
      %14 = vector.broadcast %13 : vector<1x256xf32> to vector<8x256xf32>
      %15 = arith.addf %12, %14 : vector<8x256xf32>
      %c0_14 = arith.constant 0 : index
      %c0_15 = arith.constant 0 : index
      %16 = vector.load %arg6[%c0_14, %c0_15] : memref<8x256xf32, #tpu.memory_space<vmem>>, vector<8x256xf32>
      tpu.vector_store %arg6[%c0_14, %c0_15], %15 {strides = array<i32>} : memref<8x256xf32, #tpu.memory_space<vmem>>, vector<8x256xf32>,
    } else {
    }
    return
  }
  func.func @transform_0(%arg0: i32, %arg1: i32, %arg2: i32) -> (i32, i32) {
    %c0_i32 = arith.constant 0 : i32
    return %arg0, %arg2 : i32, i32
  }
  func.func @transform_1(%arg0: i32, %arg1: i32, %arg2: i32) -> (i32, i32) {
    %c0_i32 = arith.constant 0 : i32
    return %arg2, %arg1 : i32, i32
  }
  func.func @transform_2(%arg0: i32, %arg1: i32, %arg2: i32) -> (i32, i32) {
    %c0_i32 = arith.constant 0 : i32
    %c0_i32_0 = arith.constant 0 : i32
    return %c0_i32, %arg1 : i32, i32
  }
  func.func @transform_3(%arg0: i32, %arg1: i32, %arg2: i32) -> (i32, i32) {
    %c0_i32 = arith.constant 0 : i32
    return %arg0, %arg1 : i32, i32
  }
}

module attributes {stable_mosaic.version = 11 : i64} {
  func.func @_matmul_bias_kernel(%arg0: i32, %arg1: i32, %arg2: i32, %arg3: memref<8x384xbf16, #tpu.memory_space<vmem>>, %arg4: memref<384x256xbf16, #tpu.memory_space<vmem>>, %arg5: memref<1x256xf32, #tpu.memory_space<vmem>>, %arg6: memref<8x256xf32, #tpu.memory_space<vmem>>) attributes {dimension_semantics = [#tpu.dimension_semantics<parallel>, #tpu.dimension_semantics<parallel>, #tpu.dimension_semantics<arbitrary>], iteration_bounds = array<i64: 1, 1, 6>, scalar_prefetch = 0 : i64, scratch_operands = 0 : i64, tpu.core_type = #tpu.core_type<tc>, window_params = [{transform_indices = @transform_0, window_bounds = array<i64: 8, 384>}, {transform_indices = @transform_1, window_bounds = array<i64: 384, 256>}, {transform_indices = @transform_2, window_bounds = array<i64: 1, 256>}, {transform_indices = @transform_3, window_bounds = array<i64: 8, 256>}]} {
    %c0_i32 = arith.constant 0 : i32
    %0 = arith.cmpi eq, %arg2, %c0_i32 : i32
    %1 = arith.extui %0 : i1 to i32
    %c0_i32_0 = arith.constant 0 : i32
    %2 = arith.cmpi ne, %1, %c0_i32_0 : i32
    scf.if %2 {
      %cst_9 = arith.constant 0.000000e+00 : f32
      %12 = vector.broadcast %cst_9 : f32 to vector<8x256xf32>
      %c0_10 = arith.constant 0 : index
      %c0_11 = arith.constant 0 : index
      %13 = vector.load %arg6[%c0_10, %c0_11] : memref<8x256xf32, #tpu.memory_space<vmem>>, vector<8x256xf32>
      tpu.vector_store %arg6[%c0_10, %c0_11], %12 {strides = array<i32>} : memref<8x256xf32, #tpu.memory_space<vmem>>, vector<8x256xf32>,
    } else {
    }
    %c0 = arith.constant 0 : index
    %c0_1 = arith.constant 0 : index
    %3 = vector.load %arg6[%c0, %c0_1] : memref<8x256xf32, #tpu.memory_space<vmem>>, vector<8x256xf32>
    %c0_2 = arith.constant 0 : index
    %c0_3 = arith.constant 0 : index
    %4 = vector.load %arg3[%c0_2, %c0_3] : memref<8x384xbf16, #tpu.memory_space<vmem>>, vector<8x384xbf16>
    %c0_4 = arith.constant 0 : index
    %c0_5 = arith.constant 0 : index
    %5 = vector.load %arg4[%c0_4, %c0_5] : memref<384x256xbf16, #tpu.memory_space<vmem>>, vector<384x256xbf16>
    %cst = arith.constant dense<0.000000e+00> : vector<8x256xf32>
    %6 = tpu.matmul %4, %5, %cst {dimension_numbers = #tpu.dot_dimension_numbers<[1], [0], [0], [1], [0, 0, 1, 1], [], []>} : vector<8x384xbf16>, vector<384x256xbf16>, vector<8x256xf32> -> vector<8x256xf32>
    %7 = arith.addf %3, %6 : vector<8x256xf32>
    %c0_6 = arith.constant 0 : index
    %c0_7 = arith.constant 0 : index
    %8 = vector.load %arg6[%c0_6, %c0_7] : memref<8x256xf32, #tpu.memory_space<vmem>>, vector<8x256xf32>
    tpu.vector_store %arg6[%c0_6, %c0_7], %7 {strides = array<i32>} : memref<8x256xf32, #tpu.memory_space<vmem>>, vector<8x256xf32>,
    %c5_i32 = arith.constant 5 : i32
    %9 = arith.cmpi eq, %arg2, %c5_i32 : i32
    %10 = arith.extui %9 : i1 to i32
    %c0_i32_8 = arith.constant 0 : i32
    %11 = arith.cmpi ne, %10, %c0_i32_8 : i32
    scf.if %11 {
      %c0_9 = arith.constant 0 : index
      %c0_10 = arith.constant 0 : index
      %12 = vector.load %arg6[%c0_9, %c0_10] : memref<8x256xf32, #tpu.memory_space<vmem>>, vector<8x256xf32>
      %c0_11 = arith.constant 0 : index
      %c0_12 = arith.constant 0 : index
      %13 = vector.load %arg5[%c0_11, %c0_12] : memref<1x256xf32, #tpu.memory_space<vmem>>, vector<1x256xf32>
      %14 = vector.broadcast %13 : vector<1x256xf32> to vector<8x256xf32>
      %15 = arith.addf %12, %14 : vector<8x256xf32>
      %c0_13 = arith.constant 0 : index
      %c0_14 = arith.constant 0 : index
      %16 = vector.load %arg6[%c0_13, %c0_14] : memref<8x256xf32, #tpu.memory_space<vmem>>, vector<8x256xf32>
      tpu.vector_store %arg6[%c0_13, %c0_14], %15 {strides = array<i32>} : memref<8x256xf32, #tpu.memory_space<vmem>>, vector<8x256xf32>,
    } else {
    }
    return
  }
  func.func @transform_0(%arg0: i32, %arg1: i32, %arg2: i32) -> (i32, i32) {
    %c0_i32 = arith.constant 0 : i32
    return %arg0, %arg2 : i32, i32
  }
  func.func @transform_1(%arg0: i32, %arg1: i32, %arg2: i32) -> (i32, i32) {
    %c0_i32 = arith.constant 0 : i32
    return %arg2, %arg1 : i32, i32
  }
  func.func @transform_2(%arg0: i32, %arg1: i32, %arg2: i32) -> (i32, i32) {
    %c0_i32 = arith.constant 0 : i32
    %c0_i32_0 = arith.constant 0 : i32
    return %c0_i32, %arg1 : i32, i32
  }
  func.func @transform_3(%arg0: i32, %arg1: i32, %arg2: i32) -> (i32, i32) {
    %c0_i32 = arith.constant 0 : i32
    return %arg0, %arg1 : i32, i32
  }
}

module attributes {stable_mosaic.version = 11 : i64} {
  func.func @_add_relu_kernel(%arg0: i32, %arg1: memref<8x256xf32, #tpu.memory_space<vmem>>, %arg2: memref<8x256xf32, #tpu.memory_space<vmem>>, %arg3: memref<8x256xf32, #tpu.memory_space<vmem>>) attributes {dimension_semantics = [#tpu.dimension_semantics<parallel>], iteration_bounds = array<i64: 1>, scalar_prefetch = 0 : i64, scratch_operands = 0 : i64, tpu.core_type = #tpu.core_type<tc>, window_params = [{transform_indices = @transform_0, window_bounds = array<i64: 8, 256>}, {transform_indices = @transform_1, window_bounds = array<i64: 8, 256>}, {transform_indices = @transform_2, window_bounds = array<i64: 8, 256>}]} {
    %c0 = arith.constant 0 : index
    %c0_0 = arith.constant 0 : index
    %0 = vector.load %arg1[%c0, %c0_0] : memref<8x256xf32, #tpu.memory_space<vmem>>, vector<8x256xf32>
    %c0_1 = arith.constant 0 : index
    %c0_2 = arith.constant 0 : index
    %1 = vector.load %arg2[%c0_1, %c0_2] : memref<8x256xf32, #tpu.memory_space<vmem>>, vector<8x256xf32>
    %2 = arith.addf %0, %1 : vector<8x256xf32>
    %cst = arith.constant 0.000000e+00 : f32
    %3 = vector.broadcast %cst : f32 to vector<8x256xf32>
    %4 = arith.maximumf %2, %3 : vector<8x256xf32>
    %c0_3 = arith.constant 0 : index
    %c0_4 = arith.constant 0 : index
    %5 = vector.load %arg3[%c0_3, %c0_4] : memref<8x256xf32, #tpu.memory_space<vmem>>, vector<8x256xf32>
    tpu.vector_store %arg3[%c0_3, %c0_4], %4 {strides = array<i32>} : memref<8x256xf32, #tpu.memory_space<vmem>>, vector<8x256xf32>,
    return
  }
  func.func @transform_0(%arg0: i32) -> (i32, i32) {
    %c0_i32 = arith.constant 0 : i32
    %c0_i32_0 = arith.constant 0 : i32
    return %arg0, %c0_i32 : i32, i32
  }
  func.func @transform_1(%arg0: i32) -> (i32, i32) {
    %c0_i32 = arith.constant 0 : i32
    %c0_i32_0 = arith.constant 0 : i32
    return %arg0, %c0_i32 : i32, i32
  }
  func.func @transform_2(%arg0: i32) -> (i32, i32) {
    %c0_i32 = arith.constant 0 : i32
    %c0_i32_0 = arith.constant 0 : i32
    return %arg0, %c0_i32 : i32, i32
  }
}

module attributes {stable_mosaic.version = 11 : i64} {
  func.func @_matmul_bias_kernel(%arg0: i32, %arg1: i32, %arg2: i32, %arg3: memref<8x384xbf16, #tpu.memory_space<vmem>>, %arg4: memref<384x256xbf16, #tpu.memory_space<vmem>>, %arg5: memref<1x256xf32, #tpu.memory_space<vmem>>, %arg6: memref<8x256xf32, #tpu.memory_space<vmem>>) attributes {dimension_semantics = [#tpu.dimension_semantics<parallel>, #tpu.dimension_semantics<parallel>, #tpu.dimension_semantics<arbitrary>], iteration_bounds = array<i64: 1, 1, 6>, scalar_prefetch = 0 : i64, scratch_operands = 0 : i64, tpu.core_type = #tpu.core_type<tc>, window_params = [{transform_indices = @transform_0, window_bounds = array<i64: 8, 384>}, {transform_indices = @transform_1, window_bounds = array<i64: 384, 256>}, {transform_indices = @transform_2, window_bounds = array<i64: 1, 256>}, {transform_indices = @transform_3, window_bounds = array<i64: 8, 256>}]} {
    %c0_i32 = arith.constant 0 : i32
    %0 = arith.cmpi eq, %arg2, %c0_i32 : i32
    %1 = arith.extui %0 : i1 to i32
    %c0_i32_0 = arith.constant 0 : i32
    %2 = arith.cmpi ne, %1, %c0_i32_0 : i32
    scf.if %2 {
      %cst_9 = arith.constant 0.000000e+00 : f32
      %12 = vector.broadcast %cst_9 : f32 to vector<8x256xf32>
      %c0_10 = arith.constant 0 : index
      %c0_11 = arith.constant 0 : index
      %13 = vector.load %arg6[%c0_10, %c0_11] : memref<8x256xf32, #tpu.memory_space<vmem>>, vector<8x256xf32>
      tpu.vector_store %arg6[%c0_10, %c0_11], %12 {strides = array<i32>} : memref<8x256xf32, #tpu.memory_space<vmem>>, vector<8x256xf32>,
    } else {
    }
    %c0 = arith.constant 0 : index
    %c0_1 = arith.constant 0 : index
    %3 = vector.load %arg6[%c0, %c0_1] : memref<8x256xf32, #tpu.memory_space<vmem>>, vector<8x256xf32>
    %c0_2 = arith.constant 0 : index
    %c0_3 = arith.constant 0 : index
    %4 = vector.load %arg3[%c0_2, %c0_3] : memref<8x384xbf16, #tpu.memory_space<vmem>>, vector<8x384xbf16>
    %c0_4 = arith.constant 0 : index
    %c0_5 = arith.constant 0 : index
    %5 = vector.load %arg4[%c0_4, %c0_5] : memref<384x256xbf16, #tpu.memory_space<vmem>>, vector<384x256xbf16>
    %cst = arith.constant dense<0.000000e+00> : vector<8x256xf32>
    %6 = tpu.matmul %4, %5, %cst {dimension_numbers = #tpu.dot_dimension_numbers<[1], [0], [0], [1], [0, 0, 1, 1], [], []>} : vector<8x384xbf16>, vector<384x256xbf16>, vector<8x256xf32> -> vector<8x256xf32>
    %7 = arith.addf %3, %6 : vector<8x256xf32>
    %c0_6 = arith.constant 0 : index
    %c0_7 = arith.constant 0 : index
    %8 = vector.load %arg6[%c0_6, %c0_7] : memref<8x256xf32, #tpu.memory_space<vmem>>, vector<8x256xf32>
    tpu.vector_store %arg6[%c0_6, %c0_7], %7 {strides = array<i32>} : memref<8x256xf32, #tpu.memory_space<vmem>>, vector<8x256xf32>,
    %c5_i32 = arith.constant 5 : i32
    %9 = arith.cmpi eq, %arg2, %c5_i32 : i32
    %10 = arith.extui %9 : i1 to i32
    %c0_i32_8 = arith.constant 0 : i32
    %11 = arith.cmpi ne, %10, %c0_i32_8 : i32
    scf.if %11 {
      %c0_9 = arith.constant 0 : index
      %c0_10 = arith.constant 0 : index
      %12 = vector.load %arg6[%c0_9, %c0_10] : memref<8x256xf32, #tpu.memory_space<vmem>>, vector<8x256xf32>
      %c0_11 = arith.constant 0 : index
      %c0_12 = arith.constant 0 : index
      %13 = vector.load %arg5[%c0_11, %c0_12] : memref<1x256xf32, #tpu.memory_space<vmem>>, vector<1x256xf32>
      %14 = vector.broadcast %13 : vector<1x256xf32> to vector<8x256xf32>
      %15 = arith.addf %12, %14 : vector<8x256xf32>
      %cst_13 = arith.constant 0.000000e+00 : f32
      %16 = vector.broadcast %cst_13 : f32 to vector<8x256xf32>
      %17 = arith.maximumf %15, %16 : vector<8x256xf32>
      %c0_14 = arith.constant 0 : index
      %c0_15 = arith.constant 0 : index
      %18 = vector.load %arg6[%c0_14, %c0_15] : memref<8x256xf32, #tpu.memory_space<vmem>>, vector<8x256xf32>
      tpu.vector_store %arg6[%c0_14, %c0_15], %17 {strides = array<i32>} : memref<8x256xf32, #tpu.memory_space<vmem>>, vector<8x256xf32>,
    } else {
    }
    return
  }
  func.func @transform_0(%arg0: i32, %arg1: i32, %arg2: i32) -> (i32, i32) {
    %c0_i32 = arith.constant 0 : i32
    return %arg0, %arg2 : i32, i32
  }
  func.func @transform_1(%arg0: i32, %arg1: i32, %arg2: i32) -> (i32, i32) {
    %c0_i32 = arith.constant 0 : i32
    return %arg2, %arg1 : i32, i32
  }
  func.func @transform_2(%arg0: i32, %arg1: i32, %arg2: i32) -> (i32, i32) {
    %c0_i32 = arith.constant 0 : i32
    %c0_i32_0 = arith.constant 0 : i32
    return %c0_i32, %arg1 : i32, i32
  }
  func.func @transform_3(%arg0: i32, %arg1: i32, %arg2: i32) -> (i32, i32) {
    %c0_i32 = arith.constant 0 : i32
    return %arg0, %arg1 : i32, i32
  }
}

module attributes {stable_mosaic.version = 11 : i64} {
  func.func @_matmul_bias_kernel(%arg0: i32, %arg1: i32, %arg2: i32, %arg3: memref<8x384xbf16, #tpu.memory_space<vmem>>, %arg4: memref<384x256xbf16, #tpu.memory_space<vmem>>, %arg5: memref<1x256xf32, #tpu.memory_space<vmem>>, %arg6: memref<8x256xf32, #tpu.memory_space<vmem>>) attributes {dimension_semantics = [#tpu.dimension_semantics<parallel>, #tpu.dimension_semantics<parallel>, #tpu.dimension_semantics<arbitrary>], iteration_bounds = array<i64: 1, 2, 6>, scalar_prefetch = 0 : i64, scratch_operands = 0 : i64, tpu.core_type = #tpu.core_type<tc>, window_params = [{transform_indices = @transform_0, window_bounds = array<i64: 8, 384>}, {transform_indices = @transform_1, window_bounds = array<i64: 384, 256>}, {transform_indices = @transform_2, window_bounds = array<i64: 1, 256>}, {transform_indices = @transform_3, window_bounds = array<i64: 8, 256>}]} {
    %c0_i32 = arith.constant 0 : i32
    %0 = arith.cmpi eq, %arg2, %c0_i32 : i32
    %1 = arith.extui %0 : i1 to i32
    %c0_i32_0 = arith.constant 0 : i32
    %2 = arith.cmpi ne, %1, %c0_i32_0 : i32
    scf.if %2 {
      %cst_9 = arith.constant 0.000000e+00 : f32
      %12 = vector.broadcast %cst_9 : f32 to vector<8x256xf32>
      %c0_10 = arith.constant 0 : index
      %c0_11 = arith.constant 0 : index
      %13 = vector.load %arg6[%c0_10, %c0_11] : memref<8x256xf32, #tpu.memory_space<vmem>>, vector<8x256xf32>
      tpu.vector_store %arg6[%c0_10, %c0_11], %12 {strides = array<i32>} : memref<8x256xf32, #tpu.memory_space<vmem>>, vector<8x256xf32>,
    } else {
    }
    %c0 = arith.constant 0 : index
    %c0_1 = arith.constant 0 : index
    %3 = vector.load %arg6[%c0, %c0_1] : memref<8x256xf32, #tpu.memory_space<vmem>>, vector<8x256xf32>
    %c0_2 = arith.constant 0 : index
    %c0_3 = arith.constant 0 : index
    %4 = vector.load %arg3[%c0_2, %c0_3] : memref<8x384xbf16, #tpu.memory_space<vmem>>, vector<8x384xbf16>
    %c0_4 = arith.constant 0 : index
    %c0_5 = arith.constant 0 : index
    %5 = vector.load %arg4[%c0_4, %c0_5] : memref<384x256xbf16, #tpu.memory_space<vmem>>, vector<384x256xbf16>
    %cst = arith.constant dense<0.000000e+00> : vector<8x256xf32>
    %6 = tpu.matmul %4, %5, %cst {dimension_numbers = #tpu.dot_dimension_numbers<[1], [0], [0], [1], [0, 0, 1, 1], [], []>} : vector<8x384xbf16>, vector<384x256xbf16>, vector<8x256xf32> -> vector<8x256xf32>
    %7 = arith.addf %3, %6 : vector<8x256xf32>
    %c0_6 = arith.constant 0 : index
    %c0_7 = arith.constant 0 : index
    %8 = vector.load %arg6[%c0_6, %c0_7] : memref<8x256xf32, #tpu.memory_space<vmem>>, vector<8x256xf32>
    tpu.vector_store %arg6[%c0_6, %c0_7], %7 {strides = array<i32>} : memref<8x256xf32, #tpu.memory_space<vmem>>, vector<8x256xf32>,
    %c5_i32 = arith.constant 5 : i32
    %9 = arith.cmpi eq, %arg2, %c5_i32 : i32
    %10 = arith.extui %9 : i1 to i32
    %c0_i32_8 = arith.constant 0 : i32
    %11 = arith.cmpi ne, %10, %c0_i32_8 : i32
    scf.if %11 {
      %c0_9 = arith.constant 0 : index
      %c0_10 = arith.constant 0 : index
      %12 = vector.load %arg6[%c0_9, %c0_10] : memref<8x256xf32, #tpu.memory_space<vmem>>, vector<8x256xf32>
      %c0_11 = arith.constant 0 : index
      %c0_12 = arith.constant 0 : index
      %13 = vector.load %arg5[%c0_11, %c0_12] : memref<1x256xf32, #tpu.memory_space<vmem>>, vector<1x256xf32>
      %14 = vector.broadcast %13 : vector<1x256xf32> to vector<8x256xf32>
      %15 = arith.addf %12, %14 : vector<8x256xf32>
      %cst_13 = arith.constant 0.000000e+00 : f32
      %16 = vector.broadcast %cst_13 : f32 to vector<8x256xf32>
      %17 = arith.maximumf %15, %16 : vector<8x256xf32>
      %c0_14 = arith.constant 0 : index
      %c0_15 = arith.constant 0 : index
      %18 = vector.load %arg6[%c0_14, %c0_15] : memref<8x256xf32, #tpu.memory_space<vmem>>, vector<8x256xf32>
      tpu.vector_store %arg6[%c0_14, %c0_15], %17 {strides = array<i32>} : memref<8x256xf32, #tpu.memory_space<vmem>>, vector<8x256xf32>,
    } else {
    }
    return
  }
  func.func @transform_0(%arg0: i32, %arg1: i32, %arg2: i32) -> (i32, i32) {
    %c0_i32 = arith.constant 0 : i32
    return %arg0, %arg2 : i32, i32
  }
  func.func @transform_1(%arg0: i32, %arg1: i32, %arg2: i32) -> (i32, i32) {
    %c0_i32 = arith.constant 0 : i32
    return %arg2, %arg1 : i32, i32
  }
  func.func @transform_2(%arg0: i32, %arg1: i32, %arg2: i32) -> (i32, i32) {
    %c0_i32 = arith.constant 0 : i32
    %c0_i32_0 = arith.constant 0 : i32
    return %c0_i32, %arg1 : i32, i32
  }
  func.func @transform_3(%arg0: i32, %arg1: i32, %arg2: i32) -> (i32, i32) {
    %c0_i32 = arith.constant 0 : i32
    return %arg0, %arg1 : i32, i32
  }
}

module attributes {stable_mosaic.version = 11 : i64} {
  func.func @_matmul_bias_kernel(%arg0: i32, %arg1: i32, %arg2: i32, %arg3: memref<8x512xbf16, #tpu.memory_space<vmem>>, %arg4: memref<512x256xbf16, #tpu.memory_space<vmem>>, %arg5: memref<1x256xf32, #tpu.memory_space<vmem>>, %arg6: memref<8x256xf32, #tpu.memory_space<vmem>>) attributes {dimension_semantics = [#tpu.dimension_semantics<parallel>, #tpu.dimension_semantics<parallel>, #tpu.dimension_semantics<arbitrary>], iteration_bounds = array<i64: 1, 2, 9>, scalar_prefetch = 0 : i64, scratch_operands = 0 : i64, tpu.core_type = #tpu.core_type<tc>, window_params = [{transform_indices = @transform_0, window_bounds = array<i64: 8, 512>}, {transform_indices = @transform_1, window_bounds = array<i64: 512, 256>}, {transform_indices = @transform_2, window_bounds = array<i64: 1, 256>}, {transform_indices = @transform_3, window_bounds = array<i64: 8, 256>}]} {
    %c0_i32 = arith.constant 0 : i32
    %0 = arith.cmpi eq, %arg2, %c0_i32 : i32
    %1 = arith.extui %0 : i1 to i32
    %c0_i32_0 = arith.constant 0 : i32
    %2 = arith.cmpi ne, %1, %c0_i32_0 : i32
    scf.if %2 {
      %cst_9 = arith.constant 0.000000e+00 : f32
      %12 = vector.broadcast %cst_9 : f32 to vector<8x256xf32>
      %c0_10 = arith.constant 0 : index
      %c0_11 = arith.constant 0 : index
      %13 = vector.load %arg6[%c0_10, %c0_11] : memref<8x256xf32, #tpu.memory_space<vmem>>, vector<8x256xf32>
      tpu.vector_store %arg6[%c0_10, %c0_11], %12 {strides = array<i32>} : memref<8x256xf32, #tpu.memory_space<vmem>>, vector<8x256xf32>,
    } else {
    }
    %c0 = arith.constant 0 : index
    %c0_1 = arith.constant 0 : index
    %3 = vector.load %arg6[%c0, %c0_1] : memref<8x256xf32, #tpu.memory_space<vmem>>, vector<8x256xf32>
    %c0_2 = arith.constant 0 : index
    %c0_3 = arith.constant 0 : index
    %4 = vector.load %arg3[%c0_2, %c0_3] : memref<8x512xbf16, #tpu.memory_space<vmem>>, vector<8x512xbf16>
    %c0_4 = arith.constant 0 : index
    %c0_5 = arith.constant 0 : index
    %5 = vector.load %arg4[%c0_4, %c0_5] : memref<512x256xbf16, #tpu.memory_space<vmem>>, vector<512x256xbf16>
    %cst = arith.constant dense<0.000000e+00> : vector<8x256xf32>
    %6 = tpu.matmul %4, %5, %cst {dimension_numbers = #tpu.dot_dimension_numbers<[1], [0], [0], [1], [0, 0, 1, 1], [], []>} : vector<8x512xbf16>, vector<512x256xbf16>, vector<8x256xf32> -> vector<8x256xf32>
    %7 = arith.addf %3, %6 : vector<8x256xf32>
    %c0_6 = arith.constant 0 : index
    %c0_7 = arith.constant 0 : index
    %8 = vector.load %arg6[%c0_6, %c0_7] : memref<8x256xf32, #tpu.memory_space<vmem>>, vector<8x256xf32>
    tpu.vector_store %arg6[%c0_6, %c0_7], %7 {strides = array<i32>} : memref<8x256xf32, #tpu.memory_space<vmem>>, vector<8x256xf32>,
    %c8_i32 = arith.constant 8 : i32
    %9 = arith.cmpi eq, %arg2, %c8_i32 : i32
    %10 = arith.extui %9 : i1 to i32
    %c0_i32_8 = arith.constant 0 : i32
    %11 = arith.cmpi ne, %10, %c0_i32_8 : i32
    scf.if %11 {
      %c0_9 = arith.constant 0 : index
      %c0_10 = arith.constant 0 : index
      %12 = vector.load %arg6[%c0_9, %c0_10] : memref<8x256xf32, #tpu.memory_space<vmem>>, vector<8x256xf32>
      %c0_11 = arith.constant 0 : index
      %c0_12 = arith.constant 0 : index
      %13 = vector.load %arg5[%c0_11, %c0_12] : memref<1x256xf32, #tpu.memory_space<vmem>>, vector<1x256xf32>
      %14 = vector.broadcast %13 : vector<1x256xf32> to vector<8x256xf32>
      %15 = arith.addf %12, %14 : vector<8x256xf32>
      %c0_13 = arith.constant 0 : index
      %c0_14 = arith.constant 0 : index
      %16 = vector.load %arg6[%c0_13, %c0_14] : memref<8x256xf32, #tpu.memory_space<vmem>>, vector<8x256xf32>
      tpu.vector_store %arg6[%c0_13, %c0_14], %15 {strides = array<i32>} : memref<8x256xf32, #tpu.memory_space<vmem>>, vector<8x256xf32>,
    } else {
    }
    return
  }
  func.func @transform_0(%arg0: i32, %arg1: i32, %arg2: i32) -> (i32, i32) {
    %c0_i32 = arith.constant 0 : i32
    return %arg0, %arg2 : i32, i32
  }
  func.func @transform_1(%arg0: i32, %arg1: i32, %arg2: i32) -> (i32, i32) {
    %c0_i32 = arith.constant 0 : i32
    return %arg2, %arg1 : i32, i32
  }
  func.func @transform_2(%arg0: i32, %arg1: i32, %arg2: i32) -> (i32, i32) {
    %c0_i32 = arith.constant 0 : i32
    %c0_i32_0 = arith.constant 0 : i32
    return %c0_i32, %arg1 : i32, i32
  }
  func.func @transform_3(%arg0: i32, %arg1: i32, %arg2: i32) -> (i32, i32) {
    %c0_i32 = arith.constant 0 : i32
    return %arg0, %arg1 : i32, i32
  }
}

module attributes {stable_mosaic.version = 11 : i64} {
  func.func @_matmul_bias_kernel(%arg0: i32, %arg1: i32, %arg2: i32, %arg3: memref<8x256xbf16, #tpu.memory_space<vmem>>, %arg4: memref<256x256xbf16, #tpu.memory_space<vmem>>, %arg5: memref<1x256xf32, #tpu.memory_space<vmem>>, %arg6: memref<8x256xf32, #tpu.memory_space<vmem>>) attributes {dimension_semantics = [#tpu.dimension_semantics<parallel>, #tpu.dimension_semantics<parallel>, #tpu.dimension_semantics<arbitrary>], iteration_bounds = array<i64: 1, 2, 1>, scalar_prefetch = 0 : i64, scratch_operands = 0 : i64, tpu.core_type = #tpu.core_type<tc>, window_params = [{transform_indices = @transform_0, window_bounds = array<i64: 8, 256>}, {transform_indices = @transform_1, window_bounds = array<i64: 256, 256>}, {transform_indices = @transform_2, window_bounds = array<i64: 1, 256>}, {transform_indices = @transform_3, window_bounds = array<i64: 8, 256>}]} {
    %c0_i32 = arith.constant 0 : i32
    %0 = arith.cmpi eq, %arg2, %c0_i32 : i32
    %1 = arith.extui %0 : i1 to i32
    %c0_i32_0 = arith.constant 0 : i32
    %2 = arith.cmpi ne, %1, %c0_i32_0 : i32
    scf.if %2 {
      %cst_10 = arith.constant 0.000000e+00 : f32
      %12 = vector.broadcast %cst_10 : f32 to vector<8x256xf32>
      %c0_11 = arith.constant 0 : index
      %c0_12 = arith.constant 0 : index
      %13 = vector.load %arg6[%c0_11, %c0_12] : memref<8x256xf32, #tpu.memory_space<vmem>>, vector<8x256xf32>
      tpu.vector_store %arg6[%c0_11, %c0_12], %12 {strides = array<i32>} : memref<8x256xf32, #tpu.memory_space<vmem>>, vector<8x256xf32>,
    } else {
    }
    %c0 = arith.constant 0 : index
    %c0_1 = arith.constant 0 : index
    %3 = vector.load %arg6[%c0, %c0_1] : memref<8x256xf32, #tpu.memory_space<vmem>>, vector<8x256xf32>
    %c0_2 = arith.constant 0 : index
    %c0_3 = arith.constant 0 : index
    %4 = vector.load %arg3[%c0_2, %c0_3] : memref<8x256xbf16, #tpu.memory_space<vmem>>, vector<8x256xbf16>
    %c0_4 = arith.constant 0 : index
    %c0_5 = arith.constant 0 : index
    %5 = vector.load %arg4[%c0_4, %c0_5] : memref<256x256xbf16, #tpu.memory_space<vmem>>, vector<256x256xbf16>
    %cst = arith.constant dense<0.000000e+00> : vector<8x256xf32>
    %6 = tpu.matmul %4, %5, %cst {dimension_numbers = #tpu.dot_dimension_numbers<[1], [0], [0], [1], [0, 0, 1, 1], [], []>} : vector<8x256xbf16>, vector<256x256xbf16>, vector<8x256xf32> -> vector<8x256xf32>
    %7 = arith.addf %3, %6 : vector<8x256xf32>
    %c0_6 = arith.constant 0 : index
    %c0_7 = arith.constant 0 : index
    %8 = vector.load %arg6[%c0_6, %c0_7] : memref<8x256xf32, #tpu.memory_space<vmem>>, vector<8x256xf32>
    tpu.vector_store %arg6[%c0_6, %c0_7], %7 {strides = array<i32>} : memref<8x256xf32, #tpu.memory_space<vmem>>, vector<8x256xf32>,
    %c0_i32_8 = arith.constant 0 : i32
    %9 = arith.cmpi eq, %arg2, %c0_i32_8 : i32
    %10 = arith.extui %9 : i1 to i32
    %c0_i32_9 = arith.constant 0 : i32
    %11 = arith.cmpi ne, %10, %c0_i32_9 : i32
    scf.if %11 {
      %c0_10 = arith.constant 0 : index
      %c0_11 = arith.constant 0 : index
      %12 = vector.load %arg6[%c0_10, %c0_11] : memref<8x256xf32, #tpu.memory_space<vmem>>, vector<8x256xf32>
      %c0_12 = arith.constant 0 : index
      %c0_13 = arith.constant 0 : index
      %13 = vector.load %arg5[%c0_12, %c0_13] : memref<1x256xf32, #tpu.memory_space<vmem>>, vector<1x256xf32>
      %14 = vector.broadcast %13 : vector<1x256xf32> to vector<8x256xf32>
      %15 = arith.addf %12, %14 : vector<8x256xf32>
      %c0_14 = arith.constant 0 : index
      %c0_15 = arith.constant 0 : index
      %16 = vector.load %arg6[%c0_14, %c0_15] : memref<8x256xf32, #tpu.memory_space<vmem>>, vector<8x256xf32>
      tpu.vector_store %arg6[%c0_14, %c0_15], %15 {strides = array<i32>} : memref<8x256xf32, #tpu.memory_space<vmem>>, vector<8x256xf32>,
    } else {
    }
    return
  }
  func.func @transform_0(%arg0: i32, %arg1: i32, %arg2: i32) -> (i32, i32) {
    %c0_i32 = arith.constant 0 : i32
    return %arg0, %arg2 : i32, i32
  }
  func.func @transform_1(%arg0: i32, %arg1: i32, %arg2: i32) -> (i32, i32) {
    %c0_i32 = arith.constant 0 : i32
    return %arg2, %arg1 : i32, i32
  }
  func.func @transform_2(%arg0: i32, %arg1: i32, %arg2: i32) -> (i32, i32) {
    %c0_i32 = arith.constant 0 : i32
    %c0_i32_0 = arith.constant 0 : i32
    return %c0_i32, %arg1 : i32, i32
  }
  func.func @transform_3(%arg0: i32, %arg1: i32, %arg2: i32) -> (i32, i32) {
    %c0_i32 = arith.constant 0 : i32
    return %arg0, %arg1 : i32, i32
  }
}

module attributes {stable_mosaic.version = 11 : i64} {
  func.func @_add_relu_kernel(%arg0: i32, %arg1: memref<8x512xf32, #tpu.memory_space<vmem>>, %arg2: memref<8x512xf32, #tpu.memory_space<vmem>>, %arg3: memref<8x512xf32, #tpu.memory_space<vmem>>) attributes {dimension_semantics = [#tpu.dimension_semantics<parallel>], iteration_bounds = array<i64: 1>, scalar_prefetch = 0 : i64, scratch_operands = 0 : i64, tpu.core_type = #tpu.core_type<tc>, window_params = [{transform_indices = @transform_0, window_bounds = array<i64: 8, 512>}, {transform_indices = @transform_1, window_bounds = array<i64: 8, 512>}, {transform_indices = @transform_2, window_bounds = array<i64: 8, 512>}]} {
    %c0 = arith.constant 0 : index
    %c0_0 = arith.constant 0 : index
    %0 = vector.load %arg1[%c0, %c0_0] : memref<8x512xf32, #tpu.memory_space<vmem>>, vector<8x512xf32>
    %c0_1 = arith.constant 0 : index
    %c0_2 = arith.constant 0 : index
    %1 = vector.load %arg2[%c0_1, %c0_2] : memref<8x512xf32, #tpu.memory_space<vmem>>, vector<8x512xf32>
    %2 = arith.addf %0, %1 : vector<8x512xf32>
    %cst = arith.constant 0.000000e+00 : f32
    %3 = vector.broadcast %cst : f32 to vector<8x512xf32>
    %4 = arith.maximumf %2, %3 : vector<8x512xf32>
    %c0_3 = arith.constant 0 : index
    %c0_4 = arith.constant 0 : index
    %5 = vector.load %arg3[%c0_3, %c0_4] : memref<8x512xf32, #tpu.memory_space<vmem>>, vector<8x512xf32>
    tpu.vector_store %arg3[%c0_3, %c0_4], %4 {strides = array<i32>} : memref<8x512xf32, #tpu.memory_space<vmem>>, vector<8x512xf32>,
    return
  }
  func.func @transform_0(%arg0: i32) -> (i32, i32) {
    %c0_i32 = arith.constant 0 : i32
    %c0_i32_0 = arith.constant 0 : i32
    return %arg0, %c0_i32 : i32, i32
  }
  func.func @transform_1(%arg0: i32) -> (i32, i32) {
    %c0_i32 = arith.constant 0 : i32
    %c0_i32_0 = arith.constant 0 : i32
    return %arg0, %c0_i32 : i32, i32
  }
  func.func @transform_2(%arg0: i32) -> (i32, i32) {
    %c0_i32 = arith.constant 0 : i32
    %c0_i32_0 = arith.constant 0 : i32
    return %arg0, %c0_i32 : i32, i32
  }
}

module attributes {stable_mosaic.version = 11 : i64} {
  func.func @_matmul_bias_kernel(%arg0: i32, %arg1: i32, %arg2: i32, %arg3: memref<8x512xbf16, #tpu.memory_space<vmem>>, %arg4: memref<512x256xbf16, #tpu.memory_space<vmem>>, %arg5: memref<1x256xf32, #tpu.memory_space<vmem>>, %arg6: memref<8x256xf32, #tpu.memory_space<vmem>>) attributes {dimension_semantics = [#tpu.dimension_semantics<parallel>, #tpu.dimension_semantics<parallel>, #tpu.dimension_semantics<arbitrary>], iteration_bounds = array<i64: 1, 2, 9>, scalar_prefetch = 0 : i64, scratch_operands = 0 : i64, tpu.core_type = #tpu.core_type<tc>, window_params = [{transform_indices = @transform_0, window_bounds = array<i64: 8, 512>}, {transform_indices = @transform_1, window_bounds = array<i64: 512, 256>}, {transform_indices = @transform_2, window_bounds = array<i64: 1, 256>}, {transform_indices = @transform_3, window_bounds = array<i64: 8, 256>}]} {
    %c0_i32 = arith.constant 0 : i32
    %0 = arith.cmpi eq, %arg2, %c0_i32 : i32
    %1 = arith.extui %0 : i1 to i32
    %c0_i32_0 = arith.constant 0 : i32
    %2 = arith.cmpi ne, %1, %c0_i32_0 : i32
    scf.if %2 {
      %cst_9 = arith.constant 0.000000e+00 : f32
      %12 = vector.broadcast %cst_9 : f32 to vector<8x256xf32>
      %c0_10 = arith.constant 0 : index
      %c0_11 = arith.constant 0 : index
      %13 = vector.load %arg6[%c0_10, %c0_11] : memref<8x256xf32, #tpu.memory_space<vmem>>, vector<8x256xf32>
      tpu.vector_store %arg6[%c0_10, %c0_11], %12 {strides = array<i32>} : memref<8x256xf32, #tpu.memory_space<vmem>>, vector<8x256xf32>,
    } else {
    }
    %c0 = arith.constant 0 : index
    %c0_1 = arith.constant 0 : index
    %3 = vector.load %arg6[%c0, %c0_1] : memref<8x256xf32, #tpu.memory_space<vmem>>, vector<8x256xf32>
    %c0_2 = arith.constant 0 : index
    %c0_3 = arith.constant 0 : index
    %4 = vector.load %arg3[%c0_2, %c0_3] : memref<8x512xbf16, #tpu.memory_space<vmem>>, vector<8x512xbf16>
    %c0_4 = arith.constant 0 : index
    %c0_5 = arith.constant 0 : index
    %5 = vector.load %arg4[%c0_4, %c0_5] : memref<512x256xbf16, #tpu.memory_space<vmem>>, vector<512x256xbf16>
    %cst = arith.constant dense<0.000000e+00> : vector<8x256xf32>
    %6 = tpu.matmul %4, %5, %cst {dimension_numbers = #tpu.dot_dimension_numbers<[1], [0], [0], [1], [0, 0, 1, 1], [], []>} : vector<8x512xbf16>, vector<512x256xbf16>, vector<8x256xf32> -> vector<8x256xf32>
    %7 = arith.addf %3, %6 : vector<8x256xf32>
    %c0_6 = arith.constant 0 : index
    %c0_7 = arith.constant 0 : index
    %8 = vector.load %arg6[%c0_6, %c0_7] : memref<8x256xf32, #tpu.memory_space<vmem>>, vector<8x256xf32>
    tpu.vector_store %arg6[%c0_6, %c0_7], %7 {strides = array<i32>} : memref<8x256xf32, #tpu.memory_space<vmem>>, vector<8x256xf32>,
    %c8_i32 = arith.constant 8 : i32
    %9 = arith.cmpi eq, %arg2, %c8_i32 : i32
    %10 = arith.extui %9 : i1 to i32
    %c0_i32_8 = arith.constant 0 : i32
    %11 = arith.cmpi ne, %10, %c0_i32_8 : i32
    scf.if %11 {
      %c0_9 = arith.constant 0 : index
      %c0_10 = arith.constant 0 : index
      %12 = vector.load %arg6[%c0_9, %c0_10] : memref<8x256xf32, #tpu.memory_space<vmem>>, vector<8x256xf32>
      %c0_11 = arith.constant 0 : index
      %c0_12 = arith.constant 0 : index
      %13 = vector.load %arg5[%c0_11, %c0_12] : memref<1x256xf32, #tpu.memory_space<vmem>>, vector<1x256xf32>
      %14 = vector.broadcast %13 : vector<1x256xf32> to vector<8x256xf32>
      %15 = arith.addf %12, %14 : vector<8x256xf32>
      %cst_13 = arith.constant 0.000000e+00 : f32
      %16 = vector.broadcast %cst_13 : f32 to vector<8x256xf32>
      %17 = arith.maximumf %15, %16 : vector<8x256xf32>
      %c0_14 = arith.constant 0 : index
      %c0_15 = arith.constant 0 : index
      %18 = vector.load %arg6[%c0_14, %c0_15] : memref<8x256xf32, #tpu.memory_space<vmem>>, vector<8x256xf32>
      tpu.vector_store %arg6[%c0_14, %c0_15], %17 {strides = array<i32>} : memref<8x256xf32, #tpu.memory_space<vmem>>, vector<8x256xf32>,
    } else {
    }
    return
  }
  func.func @transform_0(%arg0: i32, %arg1: i32, %arg2: i32) -> (i32, i32) {
    %c0_i32 = arith.constant 0 : i32
    return %arg0, %arg2 : i32, i32
  }
  func.func @transform_1(%arg0: i32, %arg1: i32, %arg2: i32) -> (i32, i32) {
    %c0_i32 = arith.constant 0 : i32
    return %arg2, %arg1 : i32, i32
  }
  func.func @transform_2(%arg0: i32, %arg1: i32, %arg2: i32) -> (i32, i32) {
    %c0_i32 = arith.constant 0 : i32
    %c0_i32_0 = arith.constant 0 : i32
    return %c0_i32, %arg1 : i32, i32
  }
  func.func @transform_3(%arg0: i32, %arg1: i32, %arg2: i32) -> (i32, i32) {
    %c0_i32 = arith.constant 0 : i32
    return %arg0, %arg1 : i32, i32
  }
}

module attributes {stable_mosaic.version = 11 : i64} {
  func.func @_mean_reduce_kernel(%arg0: i32, %arg1: memref<1x1x512xf32, #tpu.memory_space<vmem>>, %arg2: memref<1x1x512xf32, #tpu.memory_space<vmem>>) attributes {dimension_semantics = [#tpu.dimension_semantics<parallel>], iteration_bounds = array<i64: 2>, scalar_prefetch = 0 : i64, scratch_operands = 0 : i64, tpu.core_type = #tpu.core_type<tc>, window_params = [{transform_indices = @transform_0, window_bounds = array<i64: 1, 1, 512>}, {transform_indices = @transform_1, window_bounds = array<i64: 1, 1, 512>}]} {
    %c0 = arith.constant 0 : index
    %c0_0 = arith.constant 0 : index
    %c0_1 = arith.constant 0 : index
    %0 = vector.load %arg1[%c0, %c0_0, %c0_1] : memref<1x1x512xf32, #tpu.memory_space<vmem>>, vector<1x1x512xf32>
    %cst = arith.constant dense<0.000000e+00> : vector<1x512xf32>
    %1 = vector.multi_reduction <add>, %0, %cst [1] : vector<1x1x512xf32> to vector<1x512xf32>
    %2 = vector.shape_cast %1 : vector<1x512xf32> to vector<1x1x512xf32>
    %cst_2 = arith.constant 1.000000e+00 : f32
    %3 = vector.broadcast %cst_2 : f32 to vector<1x1x512xf32>
    %4 = arith.divf %2, %3 : vector<1x1x512xf32>
    %c0_3 = arith.constant 0 : index
    %c0_4 = arith.constant 0 : index
    %c0_5 = arith.constant 0 : index
    %5 = vector.load %arg2[%c0_3, %c0_4, %c0_5] : memref<1x1x512xf32, #tpu.memory_space<vmem>>, vector<1x1x512xf32>
    tpu.vector_store %arg2[%c0_3, %c0_4, %c0_5], %4 {strides = array<i32>} : memref<1x1x512xf32, #tpu.memory_space<vmem>>, vector<1x1x512xf32>,
    return
  }
  func.func @transform_0(%arg0: i32) -> (i32, i32, i32) {
    %c0_i32 = arith.constant 0 : i32
    %c0_i32_0 = arith.constant 0 : i32
    %c0_i32_1 = arith.constant 0 : i32
    return %arg0, %c0_i32, %c0_i32_0 : i32, i32, i32
  }
  func.func @transform_1(%arg0: i32) -> (i32, i32, i32) {
    %c0_i32 = arith.constant 0 : i32
    %c0_i32_0 = arith.constant 0 : i32
    %c0_i32_1 = arith.constant 0 : i32
    return %arg0, %c0_i32, %c0_i32_0 : i32, i32, i32
  }
}

module attributes {stable_mosaic.version = 11 : i64} {
  func.func @_matmul_bias_kernel(%arg0: i32, %arg1: i32, %arg2: i32, %arg3: memref<8x512xbf16, #tpu.memory_space<vmem>>, %arg4: memref<512x128xbf16, #tpu.memory_space<vmem>>, %arg5: memref<1x128xf32, #tpu.memory_space<vmem>>, %arg6: memref<8x128xf32, #tpu.memory_space<vmem>>) attributes {dimension_semantics = [#tpu.dimension_semantics<parallel>, #tpu.dimension_semantics<parallel>, #tpu.dimension_semantics<arbitrary>], iteration_bounds = array<i64: 1, 1, 1>, scalar_prefetch = 0 : i64, scratch_operands = 0 : i64, tpu.core_type = #tpu.core_type<tc>, window_params = [{transform_indices = @transform_0, window_bounds = array<i64: 8, 512>}, {transform_indices = @transform_1, window_bounds = array<i64: 512, 128>}, {transform_indices = @transform_2, window_bounds = array<i64: 1, 128>}, {transform_indices = @transform_3, window_bounds = array<i64: 8, 128>}]} {
    %c0_i32 = arith.constant 0 : i32
    %0 = arith.cmpi eq, %arg2, %c0_i32 : i32
    %1 = arith.extui %0 : i1 to i32
    %c0_i32_0 = arith.constant 0 : i32
    %2 = arith.cmpi ne, %1, %c0_i32_0 : i32
    scf.if %2 {
      %cst_10 = arith.constant 0.000000e+00 : f32
      %12 = vector.broadcast %cst_10 : f32 to vector<8x128xf32>
      %c0_11 = arith.constant 0 : index
      %c0_12 = arith.constant 0 : index
      %13 = vector.load %arg6[%c0_11, %c0_12] : memref<8x128xf32, #tpu.memory_space<vmem>>, vector<8x128xf32>
      tpu.vector_store %arg6[%c0_11, %c0_12], %12 {strides = array<i32>} : memref<8x128xf32, #tpu.memory_space<vmem>>, vector<8x128xf32>,
    } else {
    }
    %c0 = arith.constant 0 : index
    %c0_1 = arith.constant 0 : index
    %3 = vector.load %arg6[%c0, %c0_1] : memref<8x128xf32, #tpu.memory_space<vmem>>, vector<8x128xf32>
    %c0_2 = arith.constant 0 : index
    %c0_3 = arith.constant 0 : index
    %4 = vector.load %arg3[%c0_2, %c0_3] : memref<8x512xbf16, #tpu.memory_space<vmem>>, vector<8x512xbf16>
    %c0_4 = arith.constant 0 : index
    %c0_5 = arith.constant 0 : index
    %5 = vector.load %arg4[%c0_4, %c0_5] : memref<512x128xbf16, #tpu.memory_space<vmem>>, vector<512x128xbf16>
    %cst = arith.constant dense<0.000000e+00> : vector<8x128xf32>
    %6 = tpu.matmul %4, %5, %cst {dimension_numbers = #tpu.dot_dimension_numbers<[1], [0], [0], [1], [0, 0, 1, 1], [], []>} : vector<8x512xbf16>, vector<512x128xbf16>, vector<8x128xf32> -> vector<8x128xf32>
    %7 = arith.addf %3, %6 : vector<8x128xf32>
    %c0_6 = arith.constant 0 : index
    %c0_7 = arith.constant 0 : index
    %8 = vector.load %arg6[%c0_6, %c0_7] : memref<8x128xf32, #tpu.memory_space<vmem>>, vector<8x128xf32>
    tpu.vector_store %arg6[%c0_6, %c0_7], %7 {strides = array<i32>} : memref<8x128xf32, #tpu.memory_space<vmem>>, vector<8x128xf32>,
    %c0_i32_8 = arith.constant 0 : i32
    %9 = arith.cmpi eq, %arg2, %c0_i32_8 : i32
    %10 = arith.extui %9 : i1 to i32
    %c0_i32_9 = arith.constant 0 : i32
    %11 = arith.cmpi ne, %10, %c0_i32_9 : i32
    scf.if %11 {
      %c0_10 = arith.constant 0 : index
      %c0_11 = arith.constant 0 : index
      %12 = vector.load %arg6[%c0_10, %c0_11] : memref<8x128xf32, #tpu.memory_space<vmem>>, vector<8x128xf32>
      %c0_12 = arith.constant 0 : index
      %c0_13 = arith.constant 0 : index
      %13 = vector.load %arg5[%c0_12, %c0_13] : memref<1x128xf32, #tpu.memory_space<vmem>>, vector<1x128xf32>
      %14 = vector.broadcast %13 : vector<1x128xf32> to vector<8x128xf32>
      %15 = arith.addf %12, %14 : vector<8x128xf32>
      %c0_14 = arith.constant 0 : index
      %c0_15 = arith.constant 0 : index
      %16 = vector.load %arg6[%c0_14, %c0_15] : memref<8x128xf32, #tpu.memory_space<vmem>>, vector<8x128xf32>
      tpu.vector_store %arg6[%c0_14, %c0_15], %15 {strides = array<i32>} : memref<8x128xf32, #tpu.memory_space<vmem>>, vector<8x128xf32>,
    } else {
    }
    return
  }
  func.func @transform_0(%arg0: i32, %arg1: i32, %arg2: i32) -> (i32, i32) {
    %c0_i32 = arith.constant 0 : i32
    return %arg0, %arg2 : i32, i32
  }
  func.func @transform_1(%arg0: i32, %arg1: i32, %arg2: i32) -> (i32, i32) {
    %c0_i32 = arith.constant 0 : i32
    return %arg2, %arg1 : i32, i32
  }
  func.func @transform_2(%arg0: i32, %arg1: i32, %arg2: i32) -> (i32, i32) {
    %c0_i32 = arith.constant 0 : i32
    %c0_i32_0 = arith.constant 0 : i32
    return %c0_i32, %arg1 : i32, i32
  }
  func.func @transform_3(%arg0: i32, %arg1: i32, %arg2: i32) -> (i32, i32) {
    %c0_i32 = arith.constant 0 : i32
    return %arg0, %arg1 : i32, i32
  }
}

</mosaic_0001>

<bundles_post_ra>
// kernel: resnet18_forward.32
= control target key start
LH: loop header
LB: loop body
LE: loop exit
PB: predicated region body
PF: predicated region fallthrough
CT: control target
= control target key end

     0   :  { %vm304_vm0 = vcmask 523264   ;;  %s871_s0 = inlined_call_operand.vmem [shape: f32[128,64], index: 0, kind: input, shape index: {}]   ;;  %s872_s1 = inlined_call_operand.vmem [shape: f32[128,64], index: 1, kind: input, shape index: {}]   ;;  %s873_s2 = inlined_call_operand.vmem [shape: f32[128,64], index: 2, kind: input, shape index: {}]   ;;  %s874_s3 = inlined_call_operand.vmem [shape: f32[128,64], index: 3, kind: input, shape index: {}]   ;;  %s875_s4 = inlined_call_operand.vmem [shape: f32[128,64], index: 4, kind: input, shape index: {}]   ;;  %s876_s5 = inlined_call_operand.vmem [shape: f32[128,64], index: 5, kind: input, shape index: {}]   ;;  %s877_s6 = inlined_call_operand.vmem [shape: f32[128,64], index: 6, kind: input, shape index: {}]   ;;  %s878_s7 = inlined_call_operand.vmem [shape: f32[128,64], index: 7, kind: input, shape index: {}]   ;;  %s879_s8 = inlined_call_operand.vmem [shape: f32[128,64], index: 8, kind: input, shape index: {}]   ;;  %s880_s9 = inlined_call_operand.vmem [shape: f32[128,64], index: 9, kind: output, shape index: {}]  }
   0x1   :  { %v32_v0 = vld [vmem:[%s871_s0] sm:$0xff]  ;;  %v33_v6 = vld [vmem:[%s871_s0 + $0x8] sm:$0xff]  ;;  %v34_v15 = vld [vmem:[%s871_s0 + $0x10] sm:$0xff] }
   0x2   :  { %v48_v1 = vld [vmem:[%s872_s1] sm:$0xff]  ;;  %v49_v7 = vld [vmem:[%s872_s1 + $0x8] sm:$0xff]  ;;  %v50_v16 = vld [vmem:[%s872_s1 + $0x10] sm:$0xff] }
   0x3   :  { %v80_v2 = vld [vmem:[%s873_s2] sm:$0xff]  ;;  %v64_v3 = vmax.f32 %v32_v0, %v48_v1  ;;  %v81_v8 = vld [vmem:[%s873_s2 + $0x8] sm:$0xff]  ;;  %v65_v10 = vmax.f32 %v33_v6, %v49_v7  ;;  %v82_v17 = vld [vmem:[%s873_s2 + $0x10] sm:$0xff]  ;;  %v66_v20 = vmax.f32 %v34_v15, %v50_v16 }
   0x4   :  { %v112_v4 = vld [vmem:[%s874_s3] sm:$0xff]  ;;  %v113_v13 = vld [vmem:[%s874_s3 + $0x8] sm:$0xff]  ;;  %v114_v24 = vld [vmem:[%s874_s3 + $0x10] sm:$0xff] }
   0x5   :  { %v96_v5 = vmax.f32 %v64_v3, %v80_v2  ;;  %v144_v9 = vld [vmem:[%s875_s4] sm:$0xff]  ;;  %v97_v14 = vmax.f32 %v65_v10, %v81_v8  ;;  %v145_v19 = vld [vmem:[%s875_s4 + $0x8] sm:$0xff]  ;;  %v98_v26 = vmax.f32 %v66_v20, %v82_v17  ;;  %v35_v27 = vld [vmem:[%s871_s0 + $0x18] sm:$0xff] }
   0x6   :  { %v176_v12 = vld [vmem:[%s876_s5] sm:$0xff]  ;;  %v177_v23 = vld [vmem:[%s876_s5 + $0x8] sm:$0xff]  ;;  %v51_v28 = vld [vmem:[%s872_s1 + $0x18] sm:$0xff] }
   0x7   :  { %v128_v11 = vmax.f32 %v96_v5, %v112_v4  ;;  %v208_v21 = vld [vmem:[%s877_s6] sm:$0xff]  ;;  %v129_v22 = vmax.f32 %v97_v14, %v113_v13  ;;  %v83_v29 = vld [vmem:[%s873_s2 + $0x18] sm:$0xff]  ;;  %v146_v33 = vld [vmem:[%s875_s4 + $0x10] sm:$0xff]  ;;  %v67_v34 = vmax.f32 %v35_v27, %v51_v28  ;;  %v130_v37 = vmax.f32 %v98_v26, %v114_v24 }
   0x8   :  { %v240_v30 = vld [vmem:[%s878_s7] sm:$0xff]  ;;  %v209_v36 = vld [vmem:[%s877_s6 + $0x8] sm:$0xff]  ;;  %v178_v38 = vld [vmem:[%s876_s5 + $0x10] sm:$0xff] }
   0x9   :  { %v160_v18 = vmax.f32 %v128_v11, %v144_v9  ;;  %v272_v31 = vld [vmem:[%s879_s8] sm:$0xff]  ;;  %v161_v32 = vmax.f32 %v129_v22, %v145_v19  ;;  %v115_v39 = vld [vmem:[%s874_s3 + $0x18] sm:$0xff]  ;;  %v99_v41 = vmax.f32 %v67_v34, %v83_v29  ;;  %v241_v46 = vld [vmem:[%s878_s7 + $0x8] sm:$0xff]  ;;  %v162_v48 = vmax.f32 %v130_v37, %v146_v33 }
   0xa   :  { %v36_v42 = vld [vmem:[%s871_s0 + $0x20] sm:$0xff]  ;;  %v273_v47 = vld [vmem:[%s879_s8 + $0x8] sm:$0xff]  ;;  %v147_v49 = vld [vmem:[%s875_s4 + $0x18] sm:$0xff] }
   0xb   :  { %v192_v25 = vmax.f32 %v160_v18, %v176_v12  ;;  %v193_v40 = vmax.f32 %v161_v32, %v177_v23  ;;  %v52_v43 = vld [vmem:[%s872_s1 + $0x20] sm:$0xff]  ;;  %v210_v52 = vld [vmem:[%s877_s6 + $0x10] sm:$0xff]  ;;  %v131_v53 = vmax.f32 %v99_v41, %v115_v39  ;;  %v179_v54 = vld [vmem:[%s876_s5 + $0x18] sm:$0xff]  ;;  %v194_v57 = vmax.f32 %v162_v48, %v178_v38 }
   0xc   :  { %v84_v44 = vld [vmem:[%s873_s2 + $0x20] sm:$0xff]  ;;  %v68_v50 = vmax.f32 %v36_v42, %v52_v43  ;;  %v37_v59 = vld [vmem:[%s871_s0 + $0x28] sm:$0xff]  ;;  %v242_v63 = vld [vmem:[%s878_s7 + $0x10] sm:$0xff] }
   0xd   :  { %v224_v35 = vmax.f32 %v192_v25, %v208_v21  ;;  %v225_v51 = vmax.f32 %v193_v40, %v209_v36  ;;  %v116_v55 = vld [vmem:[%s874_s3 + $0x20] sm:$0xff]  ;;  %v53_v60 = vld [vmem:[%s872_s1 + $0x28] sm:$0xff]  ;;  %v274_v0 = vld [vmem:[%s879_s8 + $0x10] sm:$0xff]  ;;  %v163_v1 = vmax.f32 %v131_v53, %v147_v49  ;;  %v226_v4 = vmax.f32 %v194_v57, %v210_v52 }
   0xe   :  { %v100_v58 = vmax.f32 %v68_v50, %v84_v44  ;;  %v85_v61 = vld [vmem:[%s873_s2 + $0x28] sm:$0xff]  ;;  %v148_v2 = vld [vmem:[%s875_s4 + $0x20] sm:$0xff]  ;;  %v69_v3 = vmax.f32 %v37_v59, %v53_v60  ;;  %v211_v5 = vld [vmem:[%s877_s6 + $0x18] sm:$0xff] }
   0xf   :  { %v256_v45 = vmax.f32 %v224_v35, %v240_v30  ;;  %v257_v62 = vmax.f32 %v225_v51, %v241_v46  ;;  %v180_v7 = vld [vmem:[%s876_s5 + $0x20] sm:$0xff]  ;;  %v117_v8 = vld [vmem:[%s874_s3 + $0x28] sm:$0xff]  ;;  %v195_v10 = vmax.f32 %v163_v1, %v179_v54  ;;  %v38_v12 = vld [vmem:[%s871_s0 + $0x30] sm:$0xff]  ;;  %v258_v15 = vmax.f32 %v226_v4, %v242_v63 }
  0x10   :  { %v132_v6 = vmax.f32 %v100_v58, %v116_v55  ;;  %v101_v11 = vmax.f32 %v69_v3, %v85_v61  ;;  %v54_v13 = vld [vmem:[%s872_s1 + $0x30] sm:$0xff]  ;;  %v243_v16 = vld [vmem:[%s878_s7 + $0x18] sm:$0xff]  ;;  %v149_v19 = vld [vmem:[%s875_s4 + $0x28] sm:$0xff] }
  0x11   :  { %v288_v56 = vmax.f32 %v256_v45, %v272_v31  ;;  %v289_v9 = vmax.f32 %v257_v62, %v273_v47  ;;  %v86_v14 = vld [vmem:[%s873_s2 + $0x30] sm:$0xff]  ;;  %v275_v17 = vld [vmem:[%s879_s8 + $0x18] sm:$0xff]  ;;  %v70_v20 = vmax.f32 %v38_v12, %v54_v13  ;;  %v227_v21 = vmax.f32 %v195_v10, %v211_v5  ;;  %v212_v22 = vld [vmem:[%s877_s6 + $0x20] sm:$0xff] }
  0x12   :  { %v164_v18 = vmax.f32 %v132_v6, %v148_v2  ;;  %v133_v23 = vmax.f32 %v101_v11, %v117_v8  ;;  %v181_v24 = vld [vmem:[%s876_s5 + $0x28] sm:$0xff]  ;;  %v118_v25 = vld [vmem:[%s874_s3 + $0x30] sm:$0xff]  ;;  %v290_v26 = vmax.f32 %v258_v15, %v274_v0  ;;  %v39_v29 = vld [vmem:[%s871_s0 + $0x38] sm:$0xff] }
  0x13   :  { %305 = vst.msk [vmem:[%s880_s9] sm:$0xff] %vm304_vm0, %v288_v56  ;;  %306 = vst.msk [vmem:[%s880_s9 + $0x8] sm:$0xff] %vm304_vm0, %v289_v9  ;;  %v102_v28 = vmax.f32 %v70_v20, %v86_v14  ;;  %v55_v30 = vld [vmem:[%s872_s1 + $0x38] sm:$0xff]  ;;  %v259_v32 = vmax.f32 %v227_v21, %v243_v16  ;;  %v244_v33 = vld [vmem:[%s878_s7 + $0x20] sm:$0xff] }
  0x14   :  { %v196_v27 = vmax.f32 %v164_v18, %v180_v7  ;;  %v87_v31 = vld [vmem:[%s873_s2 + $0x38] sm:$0xff]  ;;  %v276_v34 = vld [vmem:[%s879_s8 + $0x20] sm:$0xff]  ;;  %v165_v35 = vmax.f32 %v133_v23, %v149_v19  ;;  %v150_v36 = vld [vmem:[%s875_s4 + $0x30] sm:$0xff]  ;;  %v71_v37 = vmax.f32 %v39_v29, %v55_v30  ;;  %307 = vst.msk [vmem:[%s880_s9 + $0x10] sm:$0xff] %vm304_vm0, %v290_v26 }
  0x15   :  { %v213_v39 = vld [vmem:[%s877_s6 + $0x28] sm:$0xff]  ;;  %v134_v40 = vmax.f32 %v102_v28, %v118_v25  ;;  %v182_v41 = vld [vmem:[%s876_s5 + $0x30] sm:$0xff]  ;;  %v119_v42 = vld [vmem:[%s874_s3 + $0x38] sm:$0xff]  ;;  %v291_v43 = vmax.f32 %v259_v32, %v275_v17 }
  0x16   :  { %v228_v38 = vmax.f32 %v196_v27, %v212_v22  ;;  %v197_v44 = vmax.f32 %v165_v35, %v181_v24  ;;  %v103_v45 = vmax.f32 %v71_v37, %v87_v31  ;;  %v40_v46 = vld [vmem:[%s871_s0 + $0x40] sm:$0xff]  ;;  %v245_v50 = vld [vmem:[%s878_s7 + $0x28] sm:$0xff]  ;;  %v151_v53 = vld [vmem:[%s875_s4 + $0x38] sm:$0xff] }
  0x17   :  { %v56_v47 = vld [vmem:[%s872_s1 + $0x40] sm:$0xff]  ;;  %v277_v51 = vld [vmem:[%s879_s8 + $0x28] sm:$0xff]  ;;  %v166_v52 = vmax.f32 %v134_v40, %v150_v36  ;;  %308 = vst.msk [vmem:[%s880_s9 + $0x18] sm:$0xff] %vm304_vm0, %v291_v43  ;;  %v214_v56 = vld [vmem:[%s877_s6 + $0x30] sm:$0xff] }
  0x18   :  { %v88_v48 = vld [vmem:[%s873_s2 + $0x40] sm:$0xff]  ;;  %v260_v49 = vmax.f32 %v228_v38, %v244_v33  ;;  %v72_v54 = vmax.f32 %v40_v46, %v56_v47  ;;  %v229_v55 = vmax.f32 %v197_v44, %v213_v39  ;;  %v135_v57 = vmax.f32 %v103_v45, %v119_v42  ;;  %v183_v58 = vld [vmem:[%s876_s5 + $0x38] sm:$0xff]  ;;  %v41_v63 = vld [vmem:[%s871_s0 + $0x48] sm:$0xff] }
  0x19   :  { %v120_v59 = vld [vmem:[%s874_s3 + $0x40] sm:$0xff]  ;;  %v198_v61 = vmax.f32 %v166_v52, %v182_v41  ;;  %v57_v0 = vld [vmem:[%s872_s1 + $0x48] sm:$0xff]  ;;  %v246_v3 = vld [vmem:[%s878_s7 + $0x30] sm:$0xff] }
  0x1a   :  { %v292_v60 = vmax.f32 %v260_v49, %v276_v34  ;;  %v104_v62 = vmax.f32 %v72_v54, %v88_v48  ;;  %v89_v1 = vld [vmem:[%s873_s2 + $0x48] sm:$0xff]  ;;  %v261_v2 = vmax.f32 %v229_v55, %v245_v50  ;;  %v278_v4 = vld [vmem:[%s879_s8 + $0x30] sm:$0xff]  ;;  %v167_v5 = vmax.f32 %v135_v57, %v151_v53  ;;  %v152_v6 = vld [vmem:[%s875_s4 + $0x40] sm:$0xff] }
  0x1b   :  { %v73_v7 = vmax.f32 %v41_v63, %v57_v0  ;;  %v230_v8 = vmax.f32 %v198_v61, %v214_v56  ;;  %v215_v9 = vld [vmem:[%s877_s6 + $0x38] sm:$0xff]  ;;  %v184_v11 = vld [vmem:[%s876_s5 + $0x40] sm:$0xff]  ;;  %v121_v12 = vld [vmem:[%s874_s3 + $0x48] sm:$0xff] }
  0x1c   :  { %309 = vst.msk [vmem:[%s880_s9 + $0x20] sm:$0xff] %vm304_vm0, %v292_v60  ;;  %v136_v10 = vmax.f32 %v104_v62, %v120_v59  ;;  %v293_v13 = vmax.f32 %v261_v2, %v277_v51  ;;  %v199_v14 = vmax.f32 %v167_v5, %v183_v58  ;;  %v42_v16 = vld [vmem:[%s871_s0 + $0x50] sm:$0xff]  ;;  %v247_v20 = vld [vmem:[%s878_s7 + $0x38] sm:$0xff]  ;;  %v153_v23 = vld [vmem:[%s875_s4 + $0x48] sm:$0xff] }
  0x1d   :  { %v105_v15 = vmax.f32 %v73_v7, %v89_v1  ;;  %v58_v17 = vld [vmem:[%s872_s1 + $0x50] sm:$0xff]  ;;  %v262_v19 = vmax.f32 %v230_v8, %v246_v3  ;;  %v279_v21 = vld [vmem:[%s879_s8 + $0x38] sm:$0xff]  ;;  %v216_v26 = vld [vmem:[%s877_s6 + $0x40] sm:$0xff] }
  0x1e   :  { %v90_v18 = vld [vmem:[%s873_s2 + $0x50] sm:$0xff]  ;;  %v168_v22 = vmax.f32 %v136_v10, %v152_v6  ;;  %v74_v24 = vmax.f32 %v42_v16, %v58_v17  ;;  %310 = vst.msk [vmem:[%s880_s9 + $0x28] sm:$0xff] %vm304_vm0, %v293_v13  ;;  %v231_v25 = vmax.f32 %v199_v14, %v215_v9  ;;  %v185_v28 = vld [vmem:[%s876_s5 + $0x48] sm:$0xff]  ;;  %v43_v33 = vld [vmem:[%s871_s0 + $0x58] sm:$0xff] }
  0x1f   :  { %v137_v27 = vmax.f32 %v105_v15, %v121_v12  ;;  %v122_v29 = vld [vmem:[%s874_s3 + $0x50] sm:$0xff]  ;;  %v294_v30 = vmax.f32 %v262_v19, %v278_v4  ;;  %v59_v34 = vld [vmem:[%s872_s1 + $0x58] sm:$0xff]  ;;  %v248_v37 = vld [vmem:[%s878_s7 + $0x40] sm:$0xff] }
  0x20   :  { %v200_v31 = vmax.f32 %v168_v22, %v184_v11  ;;  %v106_v32 = vmax.f32 %v74_v24, %v90_v18  ;;  %v91_v35 = vld [vmem:[%s873_s2 + $0x58] sm:$0xff]  ;;  %v263_v36 = vmax.f32 %v231_v25, %v247_v20  ;;  %v280_v38 = vld [vmem:[%s879_s8 + $0x40] sm:$0xff]  ;;  %v154_v40 = vld [vmem:[%s875_s4 + $0x50] sm:$0xff]  ;;  %v75_v41 = vmax.f32 %v43_v33, %v59_v34 }
  0x21   :  { %v169_v39 = vmax.f32 %v137_v27, %v153_v23  ;;  %311 = vst.msk [vmem:[%s880_s9 + $0x30] sm:$0xff] %vm304_vm0, %v294_v30  ;;  %v217_v43 = vld [vmem:[%s877_s6 + $0x48] sm:$0xff]  ;;  %v186_v45 = vld [vmem:[%s876_s5 + $0x50] sm:$0xff]  ;;  %v123_v46 = vld [vmem:[%s874_s3 + $0x58] sm:$0xff] }
  0x22   :  { %v232_v42 = vmax.f32 %v200_v31, %v216_v26  ;;  %v138_v44 = vmax.f32 %v106_v32, %v122_v29  ;;  %v295_v47 = vmax.f32 %v263_v36, %v279_v21  ;;  %v107_v49 = vmax.f32 %v75_v41, %v91_v35  ;;  %v44_v50 = vld [vmem:[%s871_s0 + $0x60] sm:$0xff]  ;;  %v249_v54 = vld [vmem:[%s878_s7 + $0x48] sm:$0xff]  ;;  %v155_v57 = vld [vmem:[%s875_s4 + $0x58] sm:$0xff] }
  0x23   :  { %v201_v48 = vmax.f32 %v169_v39, %v185_v28  ;;  %v60_v51 = vld [vmem:[%s872_s1 + $0x60] sm:$0xff]  ;;  %v281_v55 = vld [vmem:[%s879_s8 + $0x48] sm:$0xff]  ;;  %v218_v60 = vld [vmem:[%s877_s6 + $0x50] sm:$0xff] }
  0x24   :  { %v92_v52 = vld [vmem:[%s873_s2 + $0x60] sm:$0xff]  ;;  %v264_v53 = vmax.f32 %v232_v42, %v248_v37  ;;  %v170_v56 = vmax.f32 %v138_v44, %v154_v40  ;;  %v76_v58 = vmax.f32 %v44_v50, %v60_v51  ;;  %312 = vst.msk [vmem:[%s880_s9 + $0x38] sm:$0xff] %vm304_vm0, %v295_v47  ;;  %v139_v61 = vmax.f32 %v107_v49, %v123_v46  ;;  %v187_v62 = vld [vmem:[%s876_s5 + $0x58] sm:$0xff]  ;;  %v45_v3 = vld [vmem:[%s871_s0 + $0x68] sm:$0xff] }
  0x25   :  { %v233_v59 = vmax.f32 %v201_v48, %v217_v43  ;;  %v124_v63 = vld [vmem:[%s874_s3 + $0x60] sm:$0xff]  ;;  %v61_v4 = vld [vmem:[%s872_s1 + $0x68] sm:$0xff]  ;;  %v250_v7 = vld [vmem:[%s878_s7 + $0x50] sm:$0xff] }
  0x26   :  { %v296_v0 = vmax.f32 %v264_v53, %v280_v38  ;;  %v202_v1 = vmax.f32 %v170_v56, %v186_v45  ;;  %v108_v2 = vmax.f32 %v76_v58, %v92_v52  ;;  %v93_v5 = vld [vmem:[%s873_s2 + $0x68] sm:$0xff]  ;;  %v282_v8 = vld [vmem:[%s879_s8 + $0x50] sm:$0xff]  ;;  %v171_v9 = vmax.f32 %v139_v61, %v155_v57  ;;  %v156_v10 = vld [vmem:[%s875_s4 + $0x60] sm:$0xff] }
  0x27   :  { %v265_v6 = vmax.f32 %v233_v59, %v249_v54  ;;  %v77_v11 = vmax.f32 %v45_v3, %v61_v4  ;;  %v219_v13 = vld [vmem:[%s877_s6 + $0x58] sm:$0xff]  ;;  %v188_v15 = vld [vmem:[%s876_s5 + $0x60] sm:$0xff]  ;;  %v125_v16 = vld [vmem:[%s874_s3 + $0x68] sm:$0xff] }
  0x28   :  { %313 = vst.msk [vmem:[%s880_s9 + $0x40] sm:$0xff] %vm304_vm0, %v296_v0  ;;  %v234_v12 = vmax.f32 %v202_v1, %v218_v60  ;;  %v140_v14 = vmax.f32 %v108_v2, %v124_v63  ;;  %v203_v18 = vmax.f32 %v171_v9, %v187_v62  ;;  %v46_v20 = vld [vmem:[%s871_s0 + $0x70] sm:$0xff]  ;;  %v251_v24 = vld [vmem:[%s878_s7 + $0x58] sm:$0xff]  ;;  %v157_v27 = vld [vmem:[%s875_s4 + $0x68] sm:$0xff] }
  0x29   :  { %v297_v17 = vmax.f32 %v265_v6, %v281_v55  ;;  %v109_v19 = vmax.f32 %v77_v11, %v93_v5  ;;  %v62_v21 = vld [vmem:[%s872_s1 + $0x70] sm:$0xff]  ;;  %v283_v25 = vld [vmem:[%s879_s8 + $0x58] sm:$0xff]  ;;  %v220_v30 = vld [vmem:[%s877_s6 + $0x60] sm:$0xff] }
  0x2a   :  { %v94_v22 = vld [vmem:[%s873_s2 + $0x70] sm:$0xff]  ;;  %v266_v23 = vmax.f32 %v234_v12, %v250_v7  ;;  %v172_v26 = vmax.f32 %v140_v14, %v156_v10  ;;  %v78_v28 = vmax.f32 %v46_v20, %v62_v21  ;;  %v235_v29 = vmax.f32 %v203_v18, %v219_v13  ;;  %v189_v32 = vld [vmem:[%s876_s5 + $0x68] sm:$0xff]  ;;  %v47_v37 = vld [vmem:[%s871_s0 + $0x78] sm:$0xff] }
  0x2b   :  { %314 = vst.msk [vmem:[%s880_s9 + $0x48] sm:$0xff] %vm304_vm0, %v297_v17  ;;  %v141_v31 = vmax.f32 %v109_v19, %v125_v16  ;;  %v126_v33 = vld [vmem:[%s874_s3 + $0x70] sm:$0xff]  ;;  %v63_v38 = vld [vmem:[%s872_s1 + $0x78] sm:$0xff]  ;;  %v252_v41 = vld [vmem:[%s878_s7 + $0x60] sm:$0xff] }
  0x2c   :  { %v298_v34 = vmax.f32 %v266_v23, %v282_v8  ;;  %v204_v35 = vmax.f32 %v172_v26, %v188_v15  ;;  %v110_v36 = vmax.f32 %v78_v28, %v94_v22  ;;  %v95_v39 = vld [vmem:[%s873_s2 + $0x78] sm:$0xff]  ;;  %v267_v40 = vmax.f32 %v235_v29, %v251_v24  ;;  %v158_v43 = vld [vmem:[%s875_s4 + $0x70] sm:$0xff]  ;;  %v221_v46 = vld [vmem:[%s877_s6 + $0x68] sm:$0xff] }
  0x2d   :  { %v173_v42 = vmax.f32 %v141_v31, %v157_v27  ;;  %v79_v44 = vmax.f32 %v47_v37, %v63_v38  ;;  %v127_v48 = vld [vmem:[%s874_s3 + $0x78] sm:$0xff]  ;;  %v284_v50 = vld [vmem:[%s879_s8 + $0x60] sm:$0xff]  ;;  %v190_v52 = vld [vmem:[%s876_s5 + $0x70] sm:$0xff] }
  0x2e   :  { %315 = vst.msk [vmem:[%s880_s9 + $0x50] sm:$0xff] %vm304_vm0, %v298_v34  ;;  %v236_v45 = vmax.f32 %v204_v35, %v220_v30  ;;  %v142_v47 = vmax.f32 %v110_v36, %v126_v33  ;;  %v299_v49 = vmax.f32 %v267_v40, %v283_v25  ;;  %v253_v55 = vld [vmem:[%s878_s7 + $0x68] sm:$0xff]  ;;  %v159_v57 = vld [vmem:[%s875_s4 + $0x78] sm:$0xff]  ;;  %v222_v59 = vld [vmem:[%s877_s6 + $0x70] sm:$0xff] }
  0x2f   :  { %v205_v51 = vmax.f32 %v173_v42, %v189_v32  ;;  %v111_v53 = vmax.f32 %v79_v44, %v95_v39  ;;  %v285_v62 = vld [vmem:[%s879_s8 + $0x68] sm:$0xff]  ;;  %v191_v0 = vld [vmem:[%s876_s5 + $0x78] sm:$0xff]  ;;  %v254_v2 = vld [vmem:[%s878_s7 + $0x70] sm:$0xff] }
  0x30   :  { %v268_v54 = vmax.f32 %v236_v45, %v252_v41  ;;  %v174_v56 = vmax.f32 %v142_v47, %v158_v43  ;;  %316 = vst.msk [vmem:[%s880_s9 + $0x58] sm:$0xff] %vm304_vm0, %v299_v49  ;;  %v223_v5 = vld [vmem:[%s877_s6 + $0x78] sm:$0xff]  ;;  %v286_v7 = vld [vmem:[%s879_s8 + $0x70] sm:$0xff] }
  0x31   :  { %v237_v58 = vmax.f32 %v205_v51, %v221_v46  ;;  %v143_v60 = vmax.f32 %v111_v53, %v127_v48  ;;  %v255_v10 = vld [vmem:[%s878_s7 + $0x78] sm:$0xff] }
  0x32   :  { %v300_v61 = vmax.f32 %v268_v54, %v284_v50  ;;  %v206_v63 = vmax.f32 %v174_v56, %v190_v52  ;;  %v287_v13 = vld [vmem:[%s879_s8 + $0x78] sm:$0xff] }
  0x33   :  { %v269_v1 = vmax.f32 %v237_v58, %v253_v55  ;;  %v175_v3 = vmax.f32 %v143_v60, %v159_v57 }
  0x34   :  { %317 = vst.msk [vmem:[%s880_s9 + $0x60] sm:$0xff] %vm304_vm0, %v300_v61  ;;  %v238_v4 = vmax.f32 %v206_v63, %v222_v59 }
  0x35   :  { %v301_v6 = vmax.f32 %v269_v1, %v285_v62  ;;  %v207_v8 = vmax.f32 %v175_v3, %v191_v0 }
  0x36   :  { %v270_v9 = vmax.f32 %v238_v4, %v254_v2 }
  0x37   :  { %318 = vst.msk [vmem:[%s880_s9 + $0x68] sm:$0xff] %vm304_vm0, %v301_v6  ;;  %v239_v11 = vmax.f32 %v207_v8, %v223_v5 }
  0x38   :  { %v302_v12 = vmax.f32 %v270_v9, %v286_v7 }
  0x39   :  { %v271_v14 = vmax.f32 %v239_v11, %v255_v10 }
  0x3a   :  { %319 = vst.msk [vmem:[%s880_s9 + $0x70] sm:$0xff] %vm304_vm0, %v302_v12 }
  0x3b   :  { %v303_v15 = vmax.f32 %v271_v14, %v287_v13 }
  0x3d   :  { %320 = vst.msk [vmem:[%s880_s9 + $0x78] sm:$0xff] %vm304_vm0, %v303_v15 }

// kernel: resnet18_forward.31
= control target key start
LH: loop header
LB: loop body
LE: loop exit
PB: predicated region body
PF: predicated region fallthrough
CT: control target
= control target key end

     0   :  { %s1458_s12 = smov 0   ;;  %s1460_s13 = smov 0   ;;  %s1651_s0 = inlined_call_operand.vmem [shape: bf16[512,256], index: 0, kind: input, shape index: {}]   ;;  %s1652_s1 = inlined_call_operand.vmem [shape: bf16[256,128], index: 1, kind: input, shape index: {}]   ;;  %s1653_s2 = inlined_call_operand.vmem [shape: f32[1,128], index: 2, kind: input, shape index: {}]   ;;  %s1654_s3 = inlined_call_operand.vmem [shape: f32[512,128], index: 3, kind: output, shape index: {}]  }
   0x1   :  { %s1462_s14 = smov 0  }
   0x2 LB: > { %s32_s15 = sadd.s32 1, %s1432_s13  ;;  %p1139_p0 = scmp.ge.s32.totalorder %s1436_s14, 1  ;;  %s1436_s14 = sphi %s1462_s14, %s13_s14   ;;  %s1432_s13 = sphi %s1460_s13, %s1656_s13   ;;  %s1428_s12 = sphi %s1458_s12, %s1655_s12  }
   0x3   : > { %p34_p1 = scmp.ge.s32.totalorder %s32_s15, 2  ;;  %p191_p2 = scmp.lt.s32.totalorder %s1436_s14, 3 }
   0x5   : > { %s1658_s15 = smov (%p34_p1, %s32_s15), 0  ;;  %p192_p3 = pnand %p1139_p0, %p191_p2 }
   0x6   : > { %s1140_s18 = sshll.u32 (!%p192_p3), %s1428_s12, 5 }
   0x7   : > { %195 = sbr.rel (%p192_p3) target bundleno = 307 (0x133), region = 32  ;;  %p236_p4 = scmp.lt.s32.totalorder (!%p192_p3), %s1140_s18, 63 }
   0xc   : > { %v1350_v0 = vld [vmem:[%s1652_s1 + $0x78] sm:$0xff]   ;;  %v1352_v2 = vld [vmem:[%s1652_s1 + $0x70] sm:$0xff]   ;;  %v1354_v4 = vld [vmem:[%s1652_s1 + $0x68] sm:$0xff]   ;;  %s1660_s18 = smov (!%p236_p4, %s1140_s18), 63 }
   0xd   : > { %v1351_v1 = vld [vmem:[%s1652_s1 + $0x38] sm:$0xff]   ;;  %1197 = vmatprep.subr.bf16.mxu0 %v1350_v0  ;;  %1309 = vmatprep.subr.bf16.mxu1 %v1350_v0  ;;  %v1353_v3 = vld [vmem:[%s1652_s1 + $0x30] sm:$0xff]   ;;  %v1355_v5 = vld [vmem:[%s1652_s1 + $0x28] sm:$0xff]   ;;  %s1196_s6 = sshll.u32 %s1660_s18, 3 }
   0xe   : > { %1198 = vmatpush3.bf16.msra.mxu0 %v1351_v1  ;;  %1317 = vmatpush3.bf16.msra.mxu1 %v1351_v1  ;;  %v1356_v6 = vld [vmem:[%s1652_s1 + $0x60] sm:$0xff]   ;;  %v1358_v8 = vld [vmem:[%s1652_s1 + $0x58] sm:$0xff]   ;;  %s1511_s11 = scalar_lea.vmem %s1651_s0, %s1196_s6  ;;  %v1360_v10 = vld [vmem:[%s1652_s1 + $0x50] sm:$0xff]   ;;  %s1578_s8 = scalar_lea.vmem %s1654_s3, %s1196_s6 }
   0xf   : > { %1199 = vmatprep.subr.bf16.mxu0 %v1352_v2  ;;  %1310 = vmatprep.subr.bf16.mxu1 %v1352_v2  ;;  %v1357_v7 = vld [vmem:[%s1652_s1 + $0x20] sm:$0xff]   ;;  %v1359_v9 = vld [vmem:[%s1652_s1 + $0x18] sm:$0xff]   ;;  %v1361_v13 = vld [vmem:[%s1652_s1 + $0x10] sm:$0xff]  }
  0x10   : > { %v1368_v11 = vld [vmem:[%s1511_s11 + $0x4] ss:$8 sps:$4 sm:$0xff]   ;;  %v1366_v18 = vld [vmem:[%s1511_s11] ss:$8 sps:$4 sm:$0xff]   ;;  %v1372_v20 = vld [vmem:[%s1511_s11 + $0x14] ss:$8 sps:$4 sm:$0xff]  }
  0x11   : > { %v1371_v12 = vld [vmem:[%s1511_s11 + $0x84] ss:$8 sps:$4 sm:$0xff]   ;;  %688 = vmatprep.mubr.bf16.mxu0 %v1368_v11  ;;  %v1369_v19 = vld [vmem:[%s1511_s11 + $0x80] ss:$8 sps:$4 sm:$0xff]   ;;  %v1374_v21 = vld [vmem:[%s1511_s11 + $0x94] ss:$8 sps:$4 sm:$0xff]  }
  0x12   : > { %1200 = vmatpush3.bf16.msra.mxu0 %v1353_v3  ;;  %1318 = vmatpush3.bf16.msra.mxu1 %v1353_v3  ;;  %v1362_v14 = vld [vmem:[%s1652_s1 + $0x48] sm:$0xff]   ;;  %v1364_v16 = vld [vmem:[%s1652_s1 + $0x40] sm:$0xff]   ;;  %v1376_v22 = vld [vmem:[%s1511_s11 + $0x10] ss:$8 sps:$4 sm:$0xff]  }
  0x13   : > { %1201 = vmatprep.subr.bf16.mxu0 %v1354_v4  ;;  %1311 = vmatprep.subr.bf16.mxu1 %v1354_v4  ;;  %v1363_v15 = vld [vmem:[%s1652_s1 + $0x8] sm:$0xff]   ;;  %v1365_v17 = vld [vmem:[%s1652_s1] sm:$0xff]   ;;  %v1377_v23 = vld [vmem:[%s1511_s11 + $0x90] ss:$8 sps:$4 sm:$0xff]  }
  0x14   : > { %752 = vmatprep.mubr.bf16.mxu1 %v1371_v12  ;;  %v1378_v24 = vld [vmem:[%s1511_s11 + $0x24] ss:$8 sps:$4 sm:$0xff]   ;;  %v1382_v26 = vld [vmem:[%s1511_s11 + $0x20] ss:$8 sps:$4 sm:$0xff]   ;;  %v1384_v28 = vld [vmem:[%s1511_s11 + $0x34] ss:$8 sps:$4 sm:$0xff]  }
  0x15   : > { %v1380_v25 = vld [vmem:[%s1511_s11 + $0xa4] ss:$8 sps:$4 sm:$0xff]   ;;  %v1383_v27 = vld [vmem:[%s1511_s11 + $0xa0] ss:$8 sps:$4 sm:$0xff]   ;;  %v1386_v29 = vld [vmem:[%s1511_s11 + $0xb4] ss:$8 sps:$4 sm:$0xff]  }
  0x16   : > { %1202 = vmatpush3.bf16.msra.mxu0 %v1355_v5  ;;  %1319 = vmatpush3.bf16.msra.mxu1 %v1355_v5  ;;  %v1388_v30 = vld [vmem:[%s1511_s11 + $0x30] ss:$8 sps:$4 sm:$0xff]   ;;  %v1390_v32 = vld [vmem:[%s1511_s11 + $0x44] ss:$8 sps:$4 sm:$0xff]   ;;  %v1394_v34 = vld [vmem:[%s1511_s11 + $0x40] ss:$8 sps:$4 sm:$0xff]  }
  0x17   : > { %1203 = vmatprep.subr.bf16.mxu0 %v1356_v6  ;;  %1312 = vmatprep.subr.bf16.mxu1 %v1356_v6  ;;  %v1389_v31 = vld [vmem:[%s1511_s11 + $0xb0] ss:$8 sps:$4 sm:$0xff]   ;;  %v1392_v33 = vld [vmem:[%s1511_s11 + $0xc4] ss:$8 sps:$4 sm:$0xff]   ;;  %v1395_v35 = vld [vmem:[%s1511_s11 + $0xc0] ss:$8 sps:$4 sm:$0xff]  }
  0x18   : > { %v1396_v36 = vld [vmem:[%s1511_s11 + $0x54] ss:$8 sps:$4 sm:$0xff]   ;;  %v1400_v38 = vld [vmem:[%s1511_s11 + $0x50] ss:$8 sps:$4 sm:$0xff]   ;;  %v1402_v40 = vld [vmem:[%s1511_s11 + $0x64] ss:$8 sps:$4 sm:$0xff]  }
  0x19   : > { %v1398_v37 = vld [vmem:[%s1511_s11 + $0xd4] ss:$8 sps:$4 sm:$0xff]   ;;  %v1401_v39 = vld [vmem:[%s1511_s11 + $0xd0] ss:$8 sps:$4 sm:$0xff]   ;;  %v1404_v41 = vld [vmem:[%s1511_s11 + $0xe4] ss:$8 sps:$4 sm:$0xff]  }
  0x1a   : > { %1204 = vmatpush3.bf16.msra.mxu0 %v1357_v7  ;;  %1320 = vmatpush3.bf16.msra.mxu1 %v1357_v7  ;;  %v1406_v42 = vld [vmem:[%s1511_s11 + $0x60] ss:$8 sps:$4 sm:$0xff]   ;;  %v1408_v44 = vld [vmem:[%s1511_s11 + $0x74] ss:$8 sps:$4 sm:$0xff]   ;;  %v1412_v46 = vld [vmem:[%s1511_s11 + $0x70] ss:$8 sps:$4 sm:$0xff]  }
  0x1b   : > { %1205 = vmatprep.subr.bf16.mxu0 %v1358_v8  ;;  %1313 = vmatprep.subr.bf16.mxu1 %v1358_v8  ;;  %v1407_v43 = vld [vmem:[%s1511_s11 + $0xe0] ss:$8 sps:$4 sm:$0xff]   ;;  %v1410_v45 = vld [vmem:[%s1511_s11 + $0xf4] ss:$8 sps:$4 sm:$0xff]   ;;  %v1413_v47 = vld [vmem:[%s1511_s11 + $0xf0] ss:$8 sps:$4 sm:$0xff]  }
  0x1c   : > { %v1569_v54 = vld [vmem:[%s1653_s2] ss:$0 sm:$0xff] }
  0x1e   : > { %1206 = vmatpush3.bf16.msra.mxu0 %v1359_v9  ;;  %1321 = vmatpush3.bf16.msra.mxu1 %v1359_v9 }
  0x1f   : > { %1207 = vmatprep.subr.bf16.mxu0 %v1360_v10  ;;  %1314 = vmatprep.subr.bf16.mxu1 %v1360_v10 }
  0x22   : > { %1208 = vmatpush3.bf16.msra.mxu0 %v1361_v13  ;;  %1322 = vmatpush3.bf16.msra.mxu1 %v1361_v13 }
  0x23   : > { %1209 = vmatprep.subr.bf16.mxu0 %v1362_v14  ;;  %1315 = vmatprep.subr.bf16.mxu1 %v1362_v14 }
  0x26   : > { %1210 = vmatpush3.bf16.msra.mxu0 %v1363_v15  ;;  %1323 = vmatpush3.bf16.msra.mxu1 %v1363_v15 }
  0x27   : > { %1211 = vmatprep.subr.bf16.mxu0 %v1364_v16  ;;  %1316 = vmatprep.subr.bf16.mxu1 %v1364_v16 }
  0x2a   : > { %1212 = vmatpush3.bf16.msra.mxu0 %v1365_v17  ;;  %1324 = vmatpush3.bf16.msra.mxu1 %v1365_v17 }
  0x2d   : > { %689 = vmatmul.mubr.bf16.vlgmr.msra.gmra.mxu0 %v1366_v18  ;;  %753 = vmatmul.mubr.bf16.vlgmr.msra.gmra.mxu1 %v1369_v19 }
  0x2e   : > { %696 = vmatprep.mubr.bf16.mxu0 %v1372_v20  ;;  %760 = vmatprep.mubr.bf16.mxu1 %v1374_v21 }
  0x35   : > { %697 = vmatmul.mubr.bf16.gmra.mxu0 %v1376_v22  ;;  %761 = vmatmul.mubr.bf16.gmra.mxu1 %v1377_v23 }
  0x36   : > { %704 = vmatprep.mubr.bf16.mxu0 %v1378_v24  ;;  %768 = vmatprep.mubr.bf16.mxu1 %v1380_v25 }
  0x3d   : > { %705 = vmatmul.mubr.bf16.gmra.mxu0 %v1382_v26  ;;  %769 = vmatmul.mubr.bf16.gmra.mxu1 %v1383_v27 }
  0x3e   : > { %712 = vmatprep.mubr.bf16.mxu0 %v1384_v28  ;;  %776 = vmatprep.mubr.bf16.mxu1 %v1386_v29 }
  0x45   : > { %713 = vmatmul.mubr.bf16.gmra.mxu0 %v1388_v30  ;;  %777 = vmatmul.mubr.bf16.gmra.mxu1 %v1389_v31 }
  0x46   : > { %720 = vmatprep.mubr.bf16.mxu0 %v1390_v32  ;;  %784 = vmatprep.mubr.bf16.mxu1 %v1392_v33 }
  0x4d   : > { %721 = vmatmul.mubr.bf16.gmra.mxu0 %v1394_v34  ;;  %785 = vmatmul.mubr.bf16.gmra.mxu1 %v1395_v35 }
  0x4e   : > { %728 = vmatprep.mubr.bf16.mxu0 %v1396_v36  ;;  %792 = vmatprep.mubr.bf16.mxu1 %v1398_v37 }
  0x55   : > { %729 = vmatmul.mubr.bf16.gmra.mxu0 %v1400_v38  ;;  %793 = vmatmul.mubr.bf16.gmra.mxu1 %v1401_v39 }
  0x56   : > { %736 = vmatprep.mubr.bf16.mxu0 %v1402_v40  ;;  %800 = vmatprep.mubr.bf16.mxu1 %v1404_v41 }
  0x5d   : > { %737 = vmatmul.mubr.bf16.gmra.mxu0 %v1406_v42  ;;  %801 = vmatmul.mubr.bf16.gmra.mxu1 %v1407_v43 }
  0x5e   : > { %744 = vmatprep.mubr.bf16.mxu0 %v1408_v44  ;;  %808 = vmatprep.mubr.bf16.mxu1 %v1410_v45 }
  0x65   : > { %745 = vmatmul.mubr.bf16.gmra.mxu0 %v1412_v46  ;;  %809 = vmatmul.mubr.bf16.gmra.mxu1 %v1413_v47 }
  0xed   : > { %v1213_v48 = vpop.f32.mrf.mxu0  ;;  %v1261_v49 = vpop.f32.mrf.mxu1 }
  0xef   : > { %v1214_v50 = vpop.f32.mrf.mxu0  ;;  %v1262_v51 = vpop.f32.mrf.mxu1 }
  0xf0   : > { %v1215_v52 = vadd.f32 %v1214_v50, %v1213_v48  ;;  %v1263_v53 = vadd.f32 %v1262_v51, %v1261_v49 }
  0xf1   : > { %v1216_v55 = vpop.f32.mrf.mxu0  ;;  %v1264_v56 = vpop.f32.mrf.mxu1 }
  0xf2   : > { %v923_v59 = vadd.f32 %v1215_v52, %v1569_v54  ;;  %v939_v60 = vadd.f32 %v1263_v53, %v1569_v54 }
  0xf3   : > { %v1217_v57 = vpop.f32.mrf.mxu0  ;;  %v1265_v58 = vpop.f32.mrf.mxu1 }
  0xf4   : > { %v1218_v61 = vadd.f32 %v1217_v57, %v1216_v55  ;;  %v1266_v62 = vadd.f32 %v1265_v58, %v1264_v56  ;;  %v955_v1 = vmax.f32 %v923_v59, 0.0  ;;  %v971_v2 = vmax.f32 %v939_v60, 0.0 }
  0xf5   : > { %v1219_v63 = vpop.f32.mrf.mxu0  ;;  %v1267_v0 = vpop.f32.mrf.mxu1 }
  0xf6   : > { %987 = vst [vmem:[%s1578_s8] sm:$0xff] %v955_v1  ;;  %1003 = vst [vmem:[%s1578_s8 + $0x80] sm:$0xff] %v971_v2  ;;  %v924_v5 = vadd.f32 %v1218_v61, %v1569_v54  ;;  %v940_v6 = vadd.f32 %v1266_v62, %v1569_v54 }
  0xf7   : > { %v1220_v3 = vpop.f32.mrf.mxu0  ;;  %v1268_v4 = vpop.f32.mrf.mxu1 }
  0xf8   : > { %v1221_v7 = vadd.f32 %v1220_v3, %v1219_v63  ;;  %v1269_v8 = vadd.f32 %v1268_v4, %v1267_v0  ;;  %v956_v11 = vmax.f32 %v924_v5, 0.0  ;;  %v972_v12 = vmax.f32 %v940_v6, 0.0 }
  0xf9   : > { %v1222_v9 = vpop.f32.mrf.mxu0  ;;  %v1270_v10 = vpop.f32.mrf.mxu1 }
  0xfa   : > { %988 = vst [vmem:[%s1578_s8 + $0x8] sm:$0xff] %v956_v11  ;;  %1004 = vst [vmem:[%s1578_s8 + $0x88] sm:$0xff] %v972_v12  ;;  %v925_v15 = vadd.f32 %v1221_v7, %v1569_v54  ;;  %v941_v16 = vadd.f32 %v1269_v8, %v1569_v54 }
  0xfb   : > { %v1223_v13 = vpop.f32.mrf.mxu0  ;;  %v1271_v14 = vpop.f32.mrf.mxu1 }
  0xfc   : > { %v1224_v17 = vadd.f32 %v1223_v13, %v1222_v9  ;;  %v1272_v18 = vadd.f32 %v1271_v14, %v1270_v10  ;;  %v957_v21 = vmax.f32 %v925_v15, 0.0  ;;  %v973_v22 = vmax.f32 %v941_v16, 0.0 }
  0xfd   : > { %v1225_v19 = vpop.f32.mrf.mxu0  ;;  %v1273_v20 = vpop.f32.mrf.mxu1 }
  0xfe   : > { %989 = vst [vmem:[%s1578_s8 + $0x10] sm:$0xff] %v957_v21  ;;  %1005 = vst [vmem:[%s1578_s8 + $0x90] sm:$0xff] %v973_v22  ;;  %v926_v25 = vadd.f32 %v1224_v17, %v1569_v54  ;;  %v942_v26 = vadd.f32 %v1272_v18, %v1569_v54 }
  0xff   : > { %v1226_v23 = vpop.f32.mrf.mxu0  ;;  %v1274_v24 = vpop.f32.mrf.mxu1 }
 0x100   : > { %v1227_v27 = vadd.f32 %v1226_v23, %v1225_v19  ;;  %v1275_v28 = vadd.f32 %v1274_v24, %v1273_v20  ;;  %v958_v31 = vmax.f32 %v926_v25, 0.0  ;;  %v974_v32 = vmax.f32 %v942_v26, 0.0 }
 0x101   : > { %v1228_v29 = vpop.f32.mrf.mxu0  ;;  %v1276_v30 = vpop.f32.mrf.mxu1 }
 0x102   : > { %990 = vst [vmem:[%s1578_s8 + $0x18] sm:$0xff] %v958_v31  ;;  %1006 = vst [vmem:[%s1578_s8 + $0x98] sm:$0xff] %v974_v32  ;;  %v927_v35 = vadd.f32 %v1227_v27, %v1569_v54  ;;  %v943_v36 = vadd.f32 %v1275_v28, %v1569_v54 }
 0x103   : > { %v1229_v33 = vpop.f32.mrf.mxu0  ;;  %v1277_v34 = vpop.f32.mrf.mxu1 }
 0x104   : > { %v1230_v37 = vadd.f32 %v1229_v33, %v1228_v29  ;;  %v1278_v38 = vadd.f32 %v1277_v34, %v1276_v30  ;;  %v959_v41 = vmax.f32 %v927_v35, 0.0  ;;  %v975_v42 = vmax.f32 %v943_v36, 0.0 }
 0x105   : > { %v1231_v39 = vpop.f32.mrf.mxu0  ;;  %v1279_v40 = vpop.f32.mrf.mxu1 }
 0x106   : > { %991 = vst [vmem:[%s1578_s8 + $0x20] sm:$0xff] %v959_v41  ;;  %1007 = vst [vmem:[%s1578_s8 + $0xa0] sm:$0xff] %v975_v42  ;;  %v928_v45 = vadd.f32 %v1230_v37, %v1569_v54  ;;  %v944_v46 = vadd.f32 %v1278_v38, %v1569_v54 }
 0x107   : > { %v1232_v43 = vpop.f32.mrf.mxu0  ;;  %v1280_v44 = vpop.f32.mrf.mxu1 }
 0x108   : > { %v1233_v47 = vadd.f32 %v1232_v43, %v1231_v39  ;;  %v1281_v48 = vadd.f32 %v1280_v44, %v1279_v40  ;;  %v960_v51 = vmax.f32 %v928_v45, 0.0  ;;  %v976_v52 = vmax.f32 %v944_v46, 0.0 }
 0x109   : > { %v1234_v49 = vpop.f32.mrf.mxu0  ;;  %v1282_v50 = vpop.f32.mrf.mxu1 }
 0x10a   : > { %992 = vst [vmem:[%s1578_s8 + $0x28] sm:$0xff] %v960_v51  ;;  %1008 = vst [vmem:[%s1578_s8 + $0xa8] sm:$0xff] %v976_v52  ;;  %v929_v56 = vadd.f32 %v1233_v47, %v1569_v54  ;;  %v945_v57 = vadd.f32 %v1281_v48, %v1569_v54 }
 0x10b   : > { %v1235_v53 = vpop.f32.mrf.mxu0  ;;  %v1283_v55 = vpop.f32.mrf.mxu1 }
 0x10c   : > { %v1236_v58 = vadd.f32 %v1235_v53, %v1234_v49  ;;  %v1284_v59 = vadd.f32 %v1283_v55, %v1282_v50  ;;  %v961_v62 = vmax.f32 %v929_v56, 0.0  ;;  %v977_v63 = vmax.f32 %v945_v57, 0.0 }
 0x10d   : > { %v1237_v60 = vpop.f32.mrf.mxu0  ;;  %v1285_v61 = vpop.f32.mrf.mxu1 }
 0x10e   : > { %993 = vst [vmem:[%s1578_s8 + $0x30] sm:$0xff] %v961_v62  ;;  %1009 = vst [vmem:[%s1578_s8 + $0xb0] sm:$0xff] %v977_v63  ;;  %v930_v2 = vadd.f32 %v1236_v58, %v1569_v54  ;;  %v946_v3 = vadd.f32 %v1284_v59, %v1569_v54 }
 0x10f   : > { %v1238_v0 = vpop.f32.mrf.mxu0  ;;  %v1286_v1 = vpop.f32.mrf.mxu1 }
 0x110   : > { %v1239_v4 = vadd.f32 %v1238_v0, %v1237_v60  ;;  %v1287_v5 = vadd.f32 %v1286_v1, %v1285_v61  ;;  %v962_v8 = vmax.f32 %v930_v2, 0.0  ;;  %v978_v9 = vmax.f32 %v946_v3, 0.0 }
 0x111   : > { %v1240_v6 = vpop.f32.mrf.mxu0  ;;  %v1288_v7 = vpop.f32.mrf.mxu1 }
 0x112   : > { %994 = vst [vmem:[%s1578_s8 + $0x38] sm:$0xff] %v962_v8  ;;  %1010 = vst [vmem:[%s1578_s8 + $0xb8] sm:$0xff] %v978_v9  ;;  %v931_v12 = vadd.f32 %v1239_v4, %v1569_v54  ;;  %v947_v13 = vadd.f32 %v1287_v5, %v1569_v54 }
 0x113   : > { %v1241_v10 = vpop.f32.mrf.mxu0  ;;  %v1289_v11 = vpop.f32.mrf.mxu1 }
 0x114   : > { %v1242_v14 = vadd.f32 %v1241_v10, %v1240_v6  ;;  %v1290_v15 = vadd.f32 %v1289_v11, %v1288_v7  ;;  %v963_v18 = vmax.f32 %v931_v12, 0.0  ;;  %v979_v19 = vmax.f32 %v947_v13, 0.0 }
 0x115   : > { %v1243_v16 = vpop.f32.mrf.mxu0  ;;  %v1291_v17 = vpop.f32.mrf.mxu1 }
 0x116   : > { %995 = vst [vmem:[%s1578_s8 + $0x40] sm:$0xff] %v963_v18  ;;  %1011 = vst [vmem:[%s1578_s8 + $0xc0] sm:$0xff] %v979_v19  ;;  %v932_v22 = vadd.f32 %v1242_v14, %v1569_v54  ;;  %v948_v23 = vadd.f32 %v1290_v15, %v1569_v54 }
 0x117   : > { %v1244_v20 = vpop.f32.mrf.mxu0  ;;  %v1292_v21 = vpop.f32.mrf.mxu1 }
 0x118   : > { %v1245_v24 = vadd.f32 %v1244_v20, %v1243_v16  ;;  %v1293_v25 = vadd.f32 %v1292_v21, %v1291_v17  ;;  %v964_v28 = vmax.f32 %v932_v22, 0.0  ;;  %v980_v29 = vmax.f32 %v948_v23, 0.0 }
 0x119   : > { %v1246_v26 = vpop.f32.mrf.mxu0  ;;  %v1294_v27 = vpop.f32.mrf.mxu1 }
 0x11a   : > { %996 = vst [vmem:[%s1578_s8 + $0x48] sm:$0xff] %v964_v28  ;;  %1012 = vst [vmem:[%s1578_s8 + $0xc8] sm:$0xff] %v980_v29  ;;  %v933_v32 = vadd.f32 %v1245_v24, %v1569_v54  ;;  %v949_v33 = vadd.f32 %v1293_v25, %v1569_v54 }
 0x11b   : > { %v1247_v30 = vpop.f32.mrf.mxu0  ;;  %v1295_v31 = vpop.f32.mrf.mxu1 }
 0x11c   : > { %v1248_v34 = vadd.f32 %v1247_v30, %v1246_v26  ;;  %v1296_v35 = vadd.f32 %v1295_v31, %v1294_v27  ;;  %v965_v38 = vmax.f32 %v933_v32, 0.0  ;;  %v981_v39 = vmax.f32 %v949_v33, 0.0 }
 0x11d   : > { %v1249_v36 = vpop.f32.mrf.mxu0  ;;  %v1297_v37 = vpop.f32.mrf.mxu1 }
 0x11e   : > { %997 = vst [vmem:[%s1578_s8 + $0x50] sm:$0xff] %v965_v38  ;;  %1013 = vst [vmem:[%s1578_s8 + $0xd0] sm:$0xff] %v981_v39  ;;  %v934_v42 = vadd.f32 %v1248_v34, %v1569_v54  ;;  %v950_v43 = vadd.f32 %v1296_v35, %v1569_v54 }
 0x11f   : > { %v1250_v40 = vpop.f32.mrf.mxu0  ;;  %v1298_v41 = vpop.f32.mrf.mxu1 }
 0x120   : > { %v1251_v44 = vadd.f32 %v1250_v40, %v1249_v36  ;;  %v1299_v45 = vadd.f32 %v1298_v41, %v1297_v37  ;;  %v966_v48 = vmax.f32 %v934_v42, 0.0  ;;  %v982_v49 = vmax.f32 %v950_v43, 0.0 }
 0x121   : > { %v1252_v46 = vpop.f32.mrf.mxu0  ;;  %v1300_v47 = vpop.f32.mrf.mxu1 }
 0x122   : > { %998 = vst [vmem:[%s1578_s8 + $0x58] sm:$0xff] %v966_v48  ;;  %1014 = vst [vmem:[%s1578_s8 + $0xd8] sm:$0xff] %v982_v49  ;;  %v935_v52 = vadd.f32 %v1251_v44, %v1569_v54  ;;  %v951_v53 = vadd.f32 %v1299_v45, %v1569_v54 }
 0x123   : > { %v1253_v50 = vpop.f32.mrf.mxu0  ;;  %v1301_v51 = vpop.f32.mrf.mxu1 }
 0x124   : > { %v1254_v55 = vadd.f32 %v1253_v50, %v1252_v46  ;;  %v1302_v56 = vadd.f32 %v1301_v51, %v1300_v47  ;;  %v967_v59 = vmax.f32 %v935_v52, 0.0  ;;  %v983_v60 = vmax.f32 %v951_v53, 0.0 }
 0x125   : > { %v1255_v57 = vpop.f32.mrf.mxu0  ;;  %v1303_v58 = vpop.f32.mrf.mxu1 }
 0x126   : > { %999 = vst [vmem:[%s1578_s8 + $0x60] sm:$0xff] %v967_v59  ;;  %1015 = vst [vmem:[%s1578_s8 + $0xe0] sm:$0xff] %v983_v60  ;;  %v936_v63 = vadd.f32 %v1254_v55, %v1569_v54  ;;  %v952_v0 = vadd.f32 %v1302_v56, %v1569_v54 }
 0x127   : > { %v1256_v61 = vpop.f32.mrf.mxu0  ;;  %v1304_v62 = vpop.f32.mrf.mxu1 }
 0x128   : > { %v1257_v1 = vadd.f32 %v1256_v61, %v1255_v57  ;;  %v1305_v2 = vadd.f32 %v1304_v62, %v1303_v58  ;;  %v968_v5 = vmax.f32 %v936_v63, 0.0  ;;  %v984_v6 = vmax.f32 %v952_v0, 0.0 }
 0x129   : > { %v1258_v3 = vpop.f32.mrf.mxu0  ;;  %v1306_v4 = vpop.f32.mrf.mxu1 }
 0x12a   : > { %1000 = vst [vmem:[%s1578_s8 + $0x68] sm:$0xff] %v968_v5  ;;  %1016 = vst [vmem:[%s1578_s8 + $0xe8] sm:$0xff] %v984_v6  ;;  %v937_v9 = vadd.f32 %v1257_v1, %v1569_v54  ;;  %v953_v10 = vadd.f32 %v1305_v2, %v1569_v54 }
 0x12b   : > { %v1259_v7 = vpop.f32.mrf.mxu0  ;;  %v1307_v8 = vpop.f32.mrf.mxu1 }
 0x12c   : > { %v1260_v11 = vadd.f32 %v1259_v7, %v1258_v3  ;;  %v1308_v12 = vadd.f32 %v1307_v8, %v1306_v4  ;;  %v969_v13 = vmax.f32 %v937_v9, 0.0  ;;  %v985_v14 = vmax.f32 %v953_v10, 0.0 }
 0x12e   : > { %1001 = vst [vmem:[%s1578_s8 + $0x70] sm:$0xff] %v969_v13  ;;  %1017 = vst [vmem:[%s1578_s8 + $0xf0] sm:$0xff] %v985_v14  ;;  %v938_v15 = vadd.f32 %v1260_v11, %v1569_v54  ;;  %v954_v16 = vadd.f32 %v1308_v12, %v1569_v54 }
 0x130   : > { %v970_v17 = vmax.f32 %v938_v15, 0.0  ;;  %v986_v18 = vmax.f32 %v954_v16, 0.0 }
 0x132   : > { %1002 = vst [vmem:[%s1578_s8 + $0x78] sm:$0xff] %v970_v17  ;;  %1018 = vst [vmem:[%s1578_s8 + $0xf8] sm:$0xff] %v986_v18 }
 0x133 PF: > { %s13_s14 = sadd.s32 1, %s1436_s14   ;;  %s1655_s12 = smov %s1432_s13 }
 0x134   : > { %p10_p5 = scmp.ge.s32.totalorder %s13_s14, 4   ;;  %s1656_s13 = smov %s1658_s15 }
 0x136   :  { %12 = sbr.rel (!%p10_p5) target bundleno = 2 (0x2), region = 76 }

// kernel: resnet18_forward.35
= control target key start
LH: loop header
LB: loop body
LE: loop exit
PB: predicated region body
PF: predicated region fallthrough
CT: control target
= control target key end

     0   :  { %vm75_vm0 = vcmask 523264   ;;  %s271_s0 = inlined_call_operand.vmem [shape: f32[128,64], index: 0, kind: input, shape index: {}]   ;;  %s272_s1 = inlined_call_operand.vmem [shape: f32[128,64], index: 1, kind: input, shape index: {}]   ;;  %s273_s2 = inlined_call_operand.vmem [shape: f32[128,64], index: 2, kind: output, shape index: {}]  }
   0x1   :  { %v11_v0 = vld [vmem:[%s271_s0] sm:$0xff]  ;;  %v12_v2 = vld [vmem:[%s271_s0 + $0x8] sm:$0xff]  ;;  %v13_v5 = vld [vmem:[%s271_s0 + $0x10] sm:$0xff] }
   0x2   :  { %v27_v1 = vld [vmem:[%s272_s1] sm:$0xff]  ;;  %v28_v4 = vld [vmem:[%s272_s1 + $0x8] sm:$0xff]  ;;  %v29_v6 = vld [vmem:[%s272_s1 + $0x10] sm:$0xff] }
   0x3   :  { %v43_v3 = vadd.f32 %v27_v1, %v11_v0  ;;  %v44_v7 = vadd.f32 %v28_v4, %v12_v2  ;;  %v45_v8 = vadd.f32 %v29_v6, %v13_v5  ;;  %v14_v9 = vld [vmem:[%s271_s0 + $0x18] sm:$0xff]  ;;  %v15_v11 = vld [vmem:[%s271_s0 + $0x20] sm:$0xff]  ;;  %v16_v15 = vld [vmem:[%s271_s0 + $0x28] sm:$0xff] }
   0x4   :  { %v30_v10 = vld [vmem:[%s272_s1 + $0x18] sm:$0xff]  ;;  %v31_v14 = vld [vmem:[%s272_s1 + $0x20] sm:$0xff]  ;;  %v32_v16 = vld [vmem:[%s272_s1 + $0x28] sm:$0xff] }
   0x5   :  { %v59_v12 = vmax.f32 %v43_v3, 0.0  ;;  %v46_v13 = vadd.f32 %v30_v10, %v14_v9  ;;  %v60_v17 = vmax.f32 %v44_v7, 0.0  ;;  %v61_v18 = vmax.f32 %v45_v8, 0.0  ;;  %v17_v21 = vld [vmem:[%s271_s0 + $0x30] sm:$0xff]  ;;  %v18_v23 = vld [vmem:[%s271_s0 + $0x38] sm:$0xff]  ;;  %v19_v27 = vld [vmem:[%s271_s0 + $0x40] sm:$0xff] }
   0x6   :  { %v47_v19 = vadd.f32 %v31_v14, %v15_v11  ;;  %v48_v20 = vadd.f32 %v32_v16, %v16_v15  ;;  %v33_v22 = vld [vmem:[%s272_s1 + $0x30] sm:$0xff]  ;;  %v34_v26 = vld [vmem:[%s272_s1 + $0x38] sm:$0xff]  ;;  %v35_v28 = vld [vmem:[%s272_s1 + $0x40] sm:$0xff] }
   0x7   :  { %76 = vst.msk [vmem:[%s273_s2] sm:$0xff] %vm75_vm0, %v59_v12  ;;  %v62_v24 = vmax.f32 %v46_v13, 0.0  ;;  %v49_v25 = vadd.f32 %v33_v22, %v17_v21  ;;  %77 = vst.msk [vmem:[%s273_s2 + $0x8] sm:$0xff] %vm75_vm0, %v60_v17  ;;  %v50_v31 = vadd.f32 %v34_v26, %v18_v23  ;;  %v51_v32 = vadd.f32 %v35_v28, %v19_v27  ;;  %v20_v33 = vld [vmem:[%s271_s0 + $0x48] sm:$0xff]  ;;  %v21_v35 = vld [vmem:[%s271_s0 + $0x50] sm:$0xff] }
   0x8   :  { %78 = vst.msk [vmem:[%s273_s2 + $0x10] sm:$0xff] %vm75_vm0, %v61_v18  ;;  %v63_v29 = vmax.f32 %v47_v19, 0.0  ;;  %v64_v30 = vmax.f32 %v48_v20, 0.0  ;;  %v36_v34 = vld [vmem:[%s272_s1 + $0x48] sm:$0xff]  ;;  %v37_v38 = vld [vmem:[%s272_s1 + $0x50] sm:$0xff]  ;;  %v22_v39 = vld [vmem:[%s271_s0 + $0x58] sm:$0xff] }
   0x9   :  { %79 = vst.msk [vmem:[%s273_s2 + $0x18] sm:$0xff] %vm75_vm0, %v62_v24  ;;  %v65_v36 = vmax.f32 %v49_v25, 0.0  ;;  %v52_v37 = vadd.f32 %v36_v34, %v20_v33  ;;  %v38_v40 = vld [vmem:[%s272_s1 + $0x58] sm:$0xff]  ;;  %v66_v41 = vmax.f32 %v50_v31, 0.0  ;;  %v67_v42 = vmax.f32 %v51_v32, 0.0  ;;  %v23_v45 = vld [vmem:[%s271_s0 + $0x60] sm:$0xff] }
   0xa   :  { %80 = vst.msk [vmem:[%s273_s2 + $0x20] sm:$0xff] %vm75_vm0, %v63_v29  ;;  %81 = vst.msk [vmem:[%s273_s2 + $0x28] sm:$0xff] %vm75_vm0, %v64_v30  ;;  %v53_v43 = vadd.f32 %v37_v38, %v21_v35  ;;  %v54_v44 = vadd.f32 %v38_v40, %v22_v39  ;;  %v39_v46 = vld [vmem:[%s272_s1 + $0x60] sm:$0xff]  ;;  %v24_v47 = vld [vmem:[%s271_s0 + $0x68] sm:$0xff] }
   0xb   :  { %82 = vst.msk [vmem:[%s273_s2 + $0x30] sm:$0xff] %vm75_vm0, %v65_v36  ;;  %v68_v48 = vmax.f32 %v52_v37, 0.0  ;;  %v55_v49 = vadd.f32 %v39_v46, %v23_v45  ;;  %v40_v50 = vld [vmem:[%s272_s1 + $0x68] sm:$0xff]  ;;  %v25_v51 = vld [vmem:[%s271_s0 + $0x70] sm:$0xff]  ;;  %83 = vst.msk [vmem:[%s273_s2 + $0x38] sm:$0xff] %vm75_vm0, %v66_v41 }
   0xc   :  { %v41_v52 = vld [vmem:[%s272_s1 + $0x70] sm:$0xff]  ;;  %84 = vst.msk [vmem:[%s273_s2 + $0x40] sm:$0xff] %vm75_vm0, %v67_v42  ;;  %v69_v53 = vmax.f32 %v53_v43, 0.0  ;;  %v70_v54 = vmax.f32 %v54_v44, 0.0  ;;  %v56_v55 = vadd.f32 %v40_v50, %v24_v47  ;;  %v26_v57 = vld [vmem:[%s271_s0 + $0x78] sm:$0xff] }
   0xd   :  { %v57_v56 = vadd.f32 %v41_v52, %v25_v51  ;;  %v42_v58 = vld [vmem:[%s272_s1 + $0x78] sm:$0xff]  ;;  %85 = vst.msk [vmem:[%s273_s2 + $0x48] sm:$0xff] %vm75_vm0, %v68_v48  ;;  %v71_v59 = vmax.f32 %v55_v49, 0.0 }
   0xe   :  { %v58_v60 = vadd.f32 %v42_v58, %v26_v57  ;;  %86 = vst.msk [vmem:[%s273_s2 + $0x50] sm:$0xff] %vm75_vm0, %v69_v53  ;;  %87 = vst.msk [vmem:[%s273_s2 + $0x58] sm:$0xff] %vm75_vm0, %v70_v54  ;;  %v72_v61 = vmax.f32 %v56_v55, 0.0 }
   0xf   :  { %v73_v62 = vmax.f32 %v57_v56, 0.0  ;;  %88 = vst.msk [vmem:[%s273_s2 + $0x60] sm:$0xff] %vm75_vm0, %v71_v59 }
  0x10   :  { %v74_v63 = vmax.f32 %v58_v60, 0.0  ;;  %89 = vst.msk [vmem:[%s273_s2 + $0x68] sm:$0xff] %vm75_vm0, %v72_v61 }
  0x11   :  { %90 = vst.msk [vmem:[%s273_s2 + $0x70] sm:$0xff] %vm75_vm0, %v73_v62 }
  0x12   :  { %91 = vst.msk [vmem:[%s273_s2 + $0x78] sm:$0xff] %vm75_vm0, %v74_v63 }

// kernel: resnet18_forward.33
= control target key start
LH: loop header
LB: loop body
LE: loop exit
PB: predicated region body
PF: predicated region fallthrough
CT: control target
= control target key end

     0   :  { %s1049_s12 = smov 0   ;;  %s1051_s13 = smov 0   ;;  %s1397_s0 = inlined_call_operand.vmem [shape: bf16[128,640], index: 0, kind: input, shape index: {}]   ;;  %s1398_s1 = inlined_call_operand.vmem [shape: bf16[640,128], index: 1, kind: input, shape index: {}]   ;;  %s1399_s2 = inlined_call_operand.vmem [shape: f32[1,128], index: 2, kind: input, shape index: {}]   ;;  %s1400_s3 = inlined_call_operand.vmem [shape: f32[128,128], index: 3, kind: output, shape index: {}]  }
   0x1   :  { %s1053_s14 = smov 0   ;;  %s1055_s15 = smov 0  }
   0x2   :  { %s1057_s16 = smov 0  }
   0x3 LB: > { %s25_s17 = sadd.s32 1, %s1022_s15  ;;  %p48_p1 = scmp.ne.s32.totalorder %s1014_s13, %s1010_s12  ;;  %s1026_s16 = sphi %s1057_s16, %s13_s16   ;;  %s1022_s15 = sphi %s1055_s15, %s1404_s15   ;;  %s1018_s14 = sphi %s1053_s14, %s1403_s14   ;;  %s1014_s13 = sphi %s1051_s13, %s1402_s13   ;;  %s1010_s12 = sphi %s1049_s12, %s1401_s12  }
   0x4   : > { %p26_p0 = scmp.ge.s32.totalorder %s25_s17, 5  ;;  %p49_p2 = scmp.eq.s32.totalorder %s1026_s16, 0 }
   0x5   : > { %s41_s19 = sadd.s32 1, %s1014_s13  ;;  %p837_p5 = scmp.ge.s32.totalorder %s1026_s16, 5 }
   0x6   : > { %s1406_s17 = smov (%p26_p0, %s25_s17), 0  ;;  %p50_p3 = por %p49_p2, %p48_p1 }
   0x7   : > { %s37_s18 = ssub.s32 %s1022_s15, %s1406_s17  ;;  %162 = sbr.rel (%p837_p5) target bundleno = 26 (0x1a), region = 20 }
   0x8   : > { %p39_p4 = scmp.eq.s32.totalorder %s37_s18, 0 }
   0xa   : > { %s1084_s20 = scalar_select %p39_p4, %s1014_s13, %s41_s19  }
   0xc   : > { %165 = sbr.rel (!%p50_p3) target bundleno = 26 (0x1a), region = 24  ;;  %s167_s21 = sand.u32 (%p50_p3), 1, %s1014_s13  }
   0xd   : > { %s839_s22 = sshll.u32 (%p50_p3), %s1022_s15, 2  ;;  %s838_s23 = sshll.u32 (%p50_p3), %s167_s21, 6 }
   0xe   : > { %s1092_s26 = scalar_lea.vmem (%p50_p3), %s1397_s0, %s839_s22  ;;  %s169_s27 = scalar_lea.vmem (%p50_p3), [#allocation2], %s838_s23 }
   0xf   : > { %v191_v0 = vld [vmem:[%s1092_s26] sm:$0xf] (%p50_p3)  ;;  %v193_v1 = vld [vmem:[%s1092_s26 + $0x14] sm:$0xf] (%p50_p3)  ;;  %v195_v2 = vld [vmem:[%s1092_s26 + $0x28] sm:$0xf] (%p50_p3) }
  0x10   : > { %192 = vst [vmem:[%s169_s27] sm:$0xf] (%p50_p3), %v191_v0  ;;  %194 = vst [vmem:[%s169_s27 + $0x4] sm:$0xf] (%p50_p3), %v193_v1  ;;  %v197_v3 = vld [vmem:[%s1092_s26 + $0x3c] sm:$0xf] (%p50_p3) }
  0x11   : > { %v199_v4 = vld [vmem:[%s1092_s26 + $0x50] sm:$0xf]  ;;  %196 = vst [vmem:[%s169_s27 + $0x8] sm:$0xf] %v195_v2  ;;  %198 = vst [vmem:[%s169_s27 + $0xc] sm:$0xf] %v197_v3 }
  0x12   : > { %200 = vst [vmem:[%s169_s27 + $0x10] sm:$0xf] %v199_v4  ;;  %v201_v5 = vld [vmem:[%s1092_s26 + $0x64] sm:$0xf]  ;;  %v203_v6 = vld [vmem:[%s1092_s26 + $0x78] sm:$0xf] }
  0x13   : > { %v205_v7 = vld [vmem:[%s1092_s26 + $0x8c] sm:$0xf]  ;;  %202 = vst [vmem:[%s169_s27 + $0x14] sm:$0xf] %v201_v5  ;;  %204 = vst [vmem:[%s169_s27 + $0x18] sm:$0xf] %v203_v6 }
  0x14   : > { %206 = vst [vmem:[%s169_s27 + $0x1c] sm:$0xf] %v205_v7  ;;  %v207_v8 = vld [vmem:[%s1092_s26 + $0xa0] sm:$0xf]  ;;  %v209_v9 = vld [vmem:[%s1092_s26 + $0xb4] sm:$0xf] }
  0x15   : > { %v211_v10 = vld [vmem:[%s1092_s26 + $0xc8] sm:$0xf]  ;;  %208 = vst [vmem:[%s169_s27 + $0x20] sm:$0xf] %v207_v8  ;;  %210 = vst [vmem:[%s169_s27 + $0x24] sm:$0xf] %v209_v9 }
  0x16   : > { %212 = vst [vmem:[%s169_s27 + $0x28] sm:$0xf] %v211_v10  ;;  %v213_v11 = vld [vmem:[%s1092_s26 + $0xdc] sm:$0xf]  ;;  %v215_v12 = vld [vmem:[%s1092_s26 + $0xf0] sm:$0xf] }
  0x17   : > { %v217_v13 = vld [vmem:[%s1092_s26 + $0x104] sm:$0xf]  ;;  %214 = vst [vmem:[%s169_s27 + $0x2c] sm:$0xf] %v213_v11  ;;  %216 = vst [vmem:[%s169_s27 + $0x30] sm:$0xf] %v215_v12 }
  0x18   : > { %218 = vst [vmem:[%s169_s27 + $0x34] sm:$0xf] %v217_v13  ;;  %v219_v14 = vld [vmem:[%s1092_s26 + $0x118] sm:$0xf]  ;;  %v221_v15 = vld [vmem:[%s1092_s26 + $0x12c] sm:$0xf] }
  0x19   : > { %220 = vst [vmem:[%s169_s27 + $0x38] sm:$0xf] %v219_v14  ;;  %222 = vst [vmem:[%s169_s27 + $0x3c] sm:$0xf] %v221_v15 }
  0x1a PF: > { %p840_p6 = scmp.ge.s32.totalorder %s1026_s16, 1  ;;  %p289_p7 = scmp.lt.s32.totalorder %s1026_s16, 6 }
  0x1c   : > { %p290_p8 = pnand %p840_p6, %p289_p7 }
  0x1d   : > { %s296_s28 = sand.u32 (!%p290_p8), 1, %s1010_s12   ;;  %s842_s29 = sshll.u32 (!%p290_p8), %s1018_s14, 4 }
  0x1e   : > { %293 = sbr.rel (%p290_p8) target bundleno = 306 (0x132), region = 69  ;;  %s841_s30 = sshll.u32 (!%p290_p8), %s296_s28, 6 }
  0x1f   : > { %p335_p9 = scmp.lt.s32.totalorder (!%p290_p8), %s842_s29, 79  ;;  %s1119_s8 = scalar_lea.vmem (!%p290_p8), [#allocation2], %s841_s30 }
  0x20   : > { %p844_p10 = scmp.ne.s32.totalorder (!%p290_p8), %s1018_s14, 0 }
  0x23   : > { %s1408_s29 = smov (!%p335_p9, %s842_s29), 79  ;;  %359 = sbr.rel (%p844_p10) target bundleno = 49 (0x31), region = 77 }
  0x24   : > { %s843_s4 = sshll.u32 %s1408_s29, 2 }
  0x25   : > { %s1117_s7 = scalar_lea.vmem %s1398_s1, %s843_s4 }
  0x28   : > { %v1028_v16 = vmov 0.0  }
  0x29   : > { %360 = vst [vmem:[%s1400_s3] sm:$0xff] %v1028_v16  ;;  %361 = vst [vmem:[%s1400_s3 + $0x8] sm:$0xff] %v1028_v16 }
  0x2a   : > { %362 = vst [vmem:[%s1400_s3 + $0x10] sm:$0xff] %v1028_v16  ;;  %363 = vst [vmem:[%s1400_s3 + $0x18] sm:$0xff] %v1028_v16 }
  0x2b   : > { %364 = vst [vmem:[%s1400_s3 + $0x20] sm:$0xff] %v1028_v16  ;;  %365 = vst [vmem:[%s1400_s3 + $0x28] sm:$0xff] %v1028_v16 }
  0x2c   : > { %366 = vst [vmem:[%s1400_s3 + $0x30] sm:$0xff] %v1028_v16  ;;  %367 = vst [vmem:[%s1400_s3 + $0x38] sm:$0xff] %v1028_v16 }
  0x2d   : > { %368 = vst [vmem:[%s1400_s3 + $0x40] sm:$0xff] %v1028_v16  ;;  %369 = vst [vmem:[%s1400_s3 + $0x48] sm:$0xff] %v1028_v16 }
  0x2e   : > { %370 = vst [vmem:[%s1400_s3 + $0x50] sm:$0xff] %v1028_v16  ;;  %371 = vst [vmem:[%s1400_s3 + $0x58] sm:$0xff] %v1028_v16 }
  0x2f   : > { %372 = vst [vmem:[%s1400_s3 + $0x60] sm:$0xff] %v1028_v16  ;;  %373 = vst [vmem:[%s1400_s3 + $0x68] sm:$0xff] %v1028_v16 }
  0x30   : > { %374 = vst [vmem:[%s1400_s3 + $0x70] sm:$0xff] %v1028_v16  ;;  %375 = vst [vmem:[%s1400_s3 + $0x78] sm:$0xff] %v1028_v16 }
  0x31 PF: > { %v972_v17 = vld [vmem:[%s1117_s7 + $0x38] sm:$0xff]   ;;  %v973_v18 = vld [vmem:[%s1117_s7 + $0x30] sm:$0xff]   ;;  %v974_v19 = vld [vmem:[%s1117_s7 + $0x28] sm:$0xff]   ;;  %p861_p11 = scmp.ne.s32.totalorder %s1018_s14, 4 }
  0x32   : > { %883 = vmatprep.subr.bf16.mxu0 %v972_v17  ;;  %915 = vmatprep.subr.bf16.mxu1 %v972_v17  ;;  %v975_v20 = vld [vmem:[%s1117_s7 + $0x20] sm:$0xff]   ;;  %v976_v23 = vld [vmem:[%s1117_s7 + $0x18] sm:$0xff]   ;;  %v977_v24 = vld [vmem:[%s1117_s7 + $0x10] sm:$0xff]  }
  0x33   : > { %884 = vmatpush3.bf16.msra.mxu0 %v972_v17  ;;  %923 = vmatpush3.bf16.msra.mxu1 %v972_v17  ;;  %v980_v21 = vld [vmem:[%s1119_s8] sm:$0xff]   ;;  %v978_v25 = vld [vmem:[%s1117_s7 + $0x8] sm:$0xff]   ;;  %v984_v29 = vld [vmem:[%s1119_s8 + $0x10] sm:$0xff]  }
  0x34   : > { %885 = vmatprep.subr.bf16.mxu0 %v973_v18  ;;  %916 = vmatprep.subr.bf16.mxu1 %v973_v18  ;;  %v981_v22 = vld [vmem:[%s1119_s8 + $0x20] sm:$0xff]   ;;  %v982_v27 = vld [vmem:[%s1119_s8 + $0x8] sm:$0xff]   ;;  %v985_v30 = vld [vmem:[%s1119_s8 + $0x30] sm:$0xff]  }
  0x35   : > { %899 = vmatprep.mubr.bf16.mxu0 %v980_v21  ;;  %907 = vmatprep.mubr.bf16.mxu1 %v981_v22  ;;  %v979_v26 = vld [vmem:[%s1117_s7] sm:$0xff]   ;;  %v983_v28 = vld [vmem:[%s1119_s8 + $0x28] sm:$0xff]   ;;  %v986_v31 = vld [vmem:[%s1119_s8 + $0x18] sm:$0xff]  }
  0x36   : > { %v987_v32 = vld [vmem:[%s1119_s8 + $0x38] sm:$0xff]   ;;  %v378_v33 = vld [vmem:[%s1400_s3 + $0x10] sm:$0xff]  ;;  %v376_v37 = vld [vmem:[%s1400_s3] sm:$0xff] }
  0x37   : > { %886 = vmatpush3.bf16.msra.mxu0 %v973_v18  ;;  %924 = vmatpush3.bf16.msra.mxu1 %v973_v18  ;;  %v386_v34 = vld [vmem:[%s1400_s3 + $0x50] sm:$0xff]  ;;  %v384_v38 = vld [vmem:[%s1400_s3 + $0x40] sm:$0xff]  ;;  %v379_v43 = vld [vmem:[%s1400_s3 + $0x18] sm:$0xff] }
  0x38   : > { %887 = vmatprep.subr.bf16.mxu0 %v974_v19  ;;  %917 = vmatprep.subr.bf16.mxu1 %v974_v19  ;;  %v387_v44 = vld [vmem:[%s1400_s3 + $0x58] sm:$0xff]  ;;  %v377_v49 = vld [vmem:[%s1400_s3 + $0x8] sm:$0xff]  ;;  %v382_v55 = vld [vmem:[%s1400_s3 + $0x30] sm:$0xff] }
  0x39   : > { %v385_v50 = vld [vmem:[%s1400_s3 + $0x48] sm:$0xff]  ;;  %v390_v56 = vld [vmem:[%s1400_s3 + $0x70] sm:$0xff]  ;;  %v380_v61 = vld [vmem:[%s1400_s3 + $0x20] sm:$0xff] }
  0x3a   : > { %v388_v62 = vld [vmem:[%s1400_s3 + $0x60] sm:$0xff]  ;;  %v383_v3 = vld [vmem:[%s1400_s3 + $0x38] sm:$0xff]  ;;  %v381_v9 = vld [vmem:[%s1400_s3 + $0x28] sm:$0xff] }
  0x3b   : > { %888 = vmatpush3.bf16.msra.mxu0 %v974_v19  ;;  %925 = vmatpush3.bf16.msra.mxu1 %v974_v19  ;;  %v391_v4 = vld [vmem:[%s1400_s3 + $0x78] sm:$0xff]  ;;  %v389_v10 = vld [vmem:[%s1400_s3 + $0x68] sm:$0xff] }
  0x3c   : > { %889 = vmatprep.subr.bf16.mxu0 %v975_v20  ;;  %918 = vmatprep.subr.bf16.mxu1 %v975_v20 }
  0x3f   : > { %890 = vmatpush3.bf16.msra.mxu0 %v975_v20  ;;  %926 = vmatpush3.bf16.msra.mxu1 %v975_v20 }
  0x40   : > { %891 = vmatprep.subr.bf16.mxu0 %v976_v23  ;;  %919 = vmatprep.subr.bf16.mxu1 %v976_v23 }
  0x43   : > { %892 = vmatpush3.bf16.msra.mxu0 %v976_v23  ;;  %927 = vmatpush3.bf16.msra.mxu1 %v976_v23 }
  0x44   : > { %893 = vmatprep.subr.bf16.mxu0 %v977_v24  ;;  %920 = vmatprep.subr.bf16.mxu1 %v977_v24 }
  0x47   : > { %894 = vmatpush3.bf16.msra.mxu0 %v977_v24  ;;  %928 = vmatpush3.bf16.msra.mxu1 %v977_v24 }
  0x48   : > { %895 = vmatprep.subr.bf16.mxu0 %v978_v25  ;;  %921 = vmatprep.subr.bf16.mxu1 %v978_v25 }
  0x4b   : > { %896 = vmatpush3.bf16.msra.mxu0 %v978_v25  ;;  %929 = vmatpush3.bf16.msra.mxu1 %v978_v25 }
  0x4c   : > { %897 = vmatprep.subr.bf16.mxu0 %v979_v26  ;;  %922 = vmatprep.subr.bf16.mxu1 %v979_v26 }
  0x4f   : > { %898 = vmatpush3.bf16.msra.mxu0 %v979_v26  ;;  %930 = vmatpush3.bf16.msra.mxu1 %v979_v26 }
  0x52   : > { %900 = vmatmul.mubr.bf16.vlgmr.msra.gmra.mxu0 %v982_v27  ;;  %908 = vmatmul.mubr.bf16.vlgmr.msra.gmra.mxu1 %v983_v28 }
  0x53   : > { %903 = vmatprep.mubr.bf16.mxu0 %v984_v29  ;;  %911 = vmatprep.mubr.bf16.mxu1 %v985_v30 }
  0x5a   : > { %904 = vmatmul.mubr.bf16.gmra.mxu0 %v986_v31  ;;  %912 = vmatmul.mubr.bf16.gmra.mxu1 %v987_v32 }
 0x112   : > { %v901_v35 = vpop.f32.mrf.mxu0  ;;  %v909_v36 = vpop.f32.mrf.mxu1 }
 0x113   : > { %v619_v39 = vadd.f32 %v901_v35, %v378_v33  ;;  %v627_v40 = vadd.f32 %v909_v36, %v386_v34 }
 0x114   : > { %v554_v41 = vpop.f32.mrf.mxu0  ;;  %v586_v42 = vpop.f32.mrf.mxu1 }
 0x115   : > { %635 = vst [vmem:[%s1400_s3 + $0x10] sm:$0xff] %v619_v39  ;;  %643 = vst [vmem:[%s1400_s3 + $0x50] sm:$0xff] %v627_v40  ;;  %v617_v45 = vadd.f32 %v554_v41, %v376_v37  ;;  %v625_v46 = vadd.f32 %v586_v42, %v384_v38 }
 0x116   : > { %v902_v47 = vpop.f32.mrf.mxu0  ;;  %v910_v48 = vpop.f32.mrf.mxu1 }
 0x117   : > { %633 = vst [vmem:[%s1400_s3] sm:$0xff] %v617_v45  ;;  %641 = vst [vmem:[%s1400_s3 + $0x40] sm:$0xff] %v625_v46  ;;  %v620_v51 = vadd.f32 %v902_v47, %v379_v43  ;;  %v628_v52 = vadd.f32 %v910_v48, %v387_v44 }
 0x118   : > { %v557_v53 = vpop.f32.mrf.mxu0  ;;  %v589_v54 = vpop.f32.mrf.mxu1 }
 0x119   : > { %636 = vst [vmem:[%s1400_s3 + $0x18] sm:$0xff] %v620_v51  ;;  %644 = vst [vmem:[%s1400_s3 + $0x58] sm:$0xff] %v628_v52  ;;  %v618_v57 = vadd.f32 %v557_v53, %v377_v49  ;;  %v626_v58 = vadd.f32 %v589_v54, %v385_v50 }
 0x11a   : > { %v905_v59 = vpop.f32.mrf.mxu0  ;;  %v913_v60 = vpop.f32.mrf.mxu1 }
 0x11b   : > { %634 = vst [vmem:[%s1400_s3 + $0x8] sm:$0xff] %v618_v57  ;;  %642 = vst [vmem:[%s1400_s3 + $0x48] sm:$0xff] %v626_v58  ;;  %v623_v63 = vadd.f32 %v905_v59, %v382_v55  ;;  %v631_v0 = vadd.f32 %v913_v60, %v390_v56 }
 0x11c   : > { %v570_v1 = vpop.f32.mrf.mxu0  ;;  %v602_v2 = vpop.f32.mrf.mxu1 }
 0x11d   : > { %639 = vst [vmem:[%s1400_s3 + $0x30] sm:$0xff] %v623_v63  ;;  %647 = vst [vmem:[%s1400_s3 + $0x70] sm:$0xff] %v631_v0  ;;  %v621_v5 = vadd.f32 %v570_v1, %v380_v61  ;;  %v629_v6 = vadd.f32 %v602_v2, %v388_v62 }
 0x11e   : > { %v906_v7 = vpop.f32.mrf.mxu0  ;;  %v914_v8 = vpop.f32.mrf.mxu1 }
 0x11f   : > { %637 = vst [vmem:[%s1400_s3 + $0x20] sm:$0xff] %v621_v5  ;;  %645 = vst [vmem:[%s1400_s3 + $0x60] sm:$0xff] %v629_v6  ;;  %v624_v11 = vadd.f32 %v906_v7, %v383_v3  ;;  %v632_v12 = vadd.f32 %v914_v8, %v391_v4  ;;  %652 = sbr.rel (%p861_p11) target bundleno = 306 (0x132), region = 81 }
 0x120   : > { %v573_v13 = vpop.f32.mrf.mxu0  ;;  %v605_v14 = vpop.f32.mrf.mxu1 }
 0x121   : > { %640 = vst [vmem:[%s1400_s3 + $0x38] sm:$0xff] %v624_v11  ;;  %648 = vst [vmem:[%s1400_s3 + $0x78] sm:$0xff] %v632_v12  ;;  %v622_v15 = vadd.f32 %v573_v13, %v381_v9  ;;  %v630_v16 = vadd.f32 %v605_v14, %v389_v10 }
 0x123   : > { %638 = vst [vmem:[%s1400_s3 + $0x28] sm:$0xff] %v622_v15  ;;  %646 = vst [vmem:[%s1400_s3 + $0x68] sm:$0xff] %v630_v16 }
 0x124   : > { %v653_v17 = vld [vmem:[%s1400_s3] sm:$0xff]  ;;  %v654_v19 = vld [vmem:[%s1400_s3 + $0x8] sm:$0xff]  ;;  %v655_v22 = vld [vmem:[%s1400_s3 + $0x10] sm:$0xff] }
 0x125   : > { %v862_v18 = vld [vmem:[%s1399_s2] ss:$0 sm:$0xff]  ;;  %v656_v23 = vld [vmem:[%s1400_s3 + $0x18] sm:$0xff]  ;;  %v659_v29 = vld [vmem:[%s1400_s3 + $0x30] sm:$0xff] }
 0x126   : > { %v676_v20 = vadd.f32 %v862_v18, %v653_v17  ;;  %v677_v21 = vadd.f32 %v862_v18, %v654_v19  ;;  %v657_v24 = vld [vmem:[%s1400_s3 + $0x20] sm:$0xff]  ;;  %v678_v25 = vadd.f32 %v862_v18, %v655_v22  ;;  %v679_v26 = vadd.f32 %v862_v18, %v656_v23  ;;  %v662_v36 = vld [vmem:[%s1400_s3 + $0x48] sm:$0xff]  ;;  %v663_v37 = vld [vmem:[%s1400_s3 + $0x50] sm:$0xff] }
 0x127   : > { %v680_v27 = vadd.f32 %v862_v18, %v657_v24  ;;  %v682_v34 = vadd.f32 %v862_v18, %v659_v29  ;;  %v661_v35 = vld [vmem:[%s1400_s3 + $0x40] sm:$0xff]  ;;  %v664_v42 = vld [vmem:[%s1400_s3 + $0x58] sm:$0xff]  ;;  %v685_v48 = vadd.f32 %v862_v18, %v662_v36  ;;  %v667_v49 = vld [vmem:[%s1400_s3 + $0x70] sm:$0xff]  ;;  %v686_v52 = vadd.f32 %v862_v18, %v663_v37 }
 0x128   : > { %v660_v30 = vld [vmem:[%s1400_s3 + $0x38] sm:$0xff]  ;;  %v692_v31 = vmax.f32 %v676_v20, 0.0  ;;  %v693_v32 = vmax.f32 %v677_v21, 0.0  ;;  %v694_v38 = vmax.f32 %v678_v25, 0.0  ;;  %v695_v39 = vmax.f32 %v679_v26, 0.0  ;;  %v665_v43 = vld [vmem:[%s1400_s3 + $0x60] sm:$0xff] }
 0x129   : > { %v696_v40 = vmax.f32 %v680_v27, 0.0  ;;  %v683_v41 = vadd.f32 %v862_v18, %v660_v30  ;;  %v698_v46 = vmax.f32 %v682_v34, 0.0  ;;  %v684_v47 = vadd.f32 %v862_v18, %v661_v35  ;;  %v668_v50 = vld [vmem:[%s1400_s3 + $0x78] sm:$0xff] }
 0x12a   : > { %v658_v28 = vld [vmem:[%s1400_s3 + $0x28] sm:$0xff]  ;;  %708 = vst [vmem:[%s1400_s3] sm:$0xff] %v692_v31  ;;  %709 = vst [vmem:[%s1400_s3 + $0x8] sm:$0xff] %v693_v32  ;;  %v687_v53 = vadd.f32 %v862_v18, %v664_v42  ;;  %v688_v54 = vadd.f32 %v862_v18, %v665_v43  ;;  %v701_v56 = vmax.f32 %v685_v48, 0.0  ;;  %v690_v58 = vadd.f32 %v862_v18, %v667_v49 }
 0x12b   : > { %v681_v33 = vadd.f32 %v862_v18, %v658_v28  ;;  %v666_v44 = vld [vmem:[%s1400_s3 + $0x68] sm:$0xff]  ;;  %710 = vst [vmem:[%s1400_s3 + $0x10] sm:$0xff] %v694_v38  ;;  %711 = vst [vmem:[%s1400_s3 + $0x18] sm:$0xff] %v695_v39  ;;  %v699_v51 = vmax.f32 %v683_v41, 0.0  ;;  %v700_v55 = vmax.f32 %v684_v47, 0.0  ;;  %v702_v59 = vmax.f32 %v686_v52, 0.0 }
 0x12c   : > { %712 = vst [vmem:[%s1400_s3 + $0x20] sm:$0xff] %v696_v40  ;;  %714 = vst [vmem:[%s1400_s3 + $0x30] sm:$0xff] %v698_v46  ;;  %v689_v57 = vadd.f32 %v862_v18, %v666_v44  ;;  %v703_v60 = vmax.f32 %v687_v53, 0.0  ;;  %v704_v61 = vmax.f32 %v688_v54, 0.0  ;;  %v691_v62 = vadd.f32 %v862_v18, %v668_v50 }
 0x12d   : > { %v697_v45 = vmax.f32 %v681_v33, 0.0  ;;  %715 = vst [vmem:[%s1400_s3 + $0x38] sm:$0xff] %v699_v51  ;;  %716 = vst [vmem:[%s1400_s3 + $0x40] sm:$0xff] %v700_v55  ;;  %v706_v0 = vmax.f32 %v690_v58, 0.0 }
 0x12e   : > { %717 = vst [vmem:[%s1400_s3 + $0x48] sm:$0xff] %v701_v56  ;;  %v705_v63 = vmax.f32 %v689_v57, 0.0  ;;  %718 = vst [vmem:[%s1400_s3 + $0x50] sm:$0xff] %v702_v59  ;;  %v707_v1 = vmax.f32 %v691_v62, 0.0 }
 0x12f   : > { %713 = vst [vmem:[%s1400_s3 + $0x28] sm:$0xff] %v697_v45  ;;  %719 = vst [vmem:[%s1400_s3 + $0x58] sm:$0xff] %v703_v60 }
 0x130   : > { %720 = vst [vmem:[%s1400_s3 + $0x60] sm:$0xff] %v704_v61  ;;  %721 = vst [vmem:[%s1400_s3 + $0x68] sm:$0xff] %v705_v63 }
 0x131   : > { %722 = vst [vmem:[%s1400_s3 + $0x70] sm:$0xff] %v706_v0  ;;  %723 = vst [vmem:[%s1400_s3 + $0x78] sm:$0xff] %v707_v1 }
 0x132 PF: > { %s13_s16 = sadd.s32 1, %s1026_s16   ;;  %s1401_s12 = smov %s1014_s13 }
 0x133   : > { %p10_p12 = scmp.ge.s32.totalorder %s13_s16, 7   ;;  %s1402_s13 = smov %s1084_s20 }
 0x134   : > { %s1403_s14 = smov %s1022_s15  ;;  %s1404_s15 = smov %s1406_s17 }
 0x135   :  { %12 = sbr.rel (!%p10_p12) target bundleno = 3 (0x3), region = 122 }

// kernel: resnet18_forward.34
= control target key start
LH: loop header
LB: loop body
LE: loop exit
PB: predicated region body
PF: predicated region fallthrough
CT: control target
= control target key end

     0   :  { %s1033_s12 = smov 0   ;;  %s1035_s13 = smov 0   ;;  %s1381_s0 = inlined_call_operand.vmem [shape: bf16[128,640], index: 0, kind: input, shape index: {}]   ;;  %s1382_s1 = inlined_call_operand.vmem [shape: bf16[640,128], index: 1, kind: input, shape index: {}]   ;;  %s1383_s2 = inlined_call_operand.vmem [shape: f32[1,128], index: 2, kind: input, shape index: {}]   ;;  %s1384_s3 = inlined_call_operand.vmem [shape: f32[128,128], index: 3, kind: output, shape index: {}]  }
   0x1   :  { %s1037_s14 = smov 0   ;;  %s1039_s15 = smov 0  }
   0x2   :  { %s1041_s16 = smov 0  }
   0x3 LB: > { %s25_s17 = sadd.s32 1, %s1006_s15  ;;  %p48_p1 = scmp.ne.s32.totalorder %s998_s13, %s994_s12  ;;  %s1010_s16 = sphi %s1041_s16, %s13_s16   ;;  %s1006_s15 = sphi %s1039_s15, %s1388_s15   ;;  %s1002_s14 = sphi %s1037_s14, %s1387_s14   ;;  %s998_s13 = sphi %s1035_s13, %s1386_s13   ;;  %s994_s12 = sphi %s1033_s12, %s1385_s12  }
   0x4   : > { %p26_p0 = scmp.ge.s32.totalorder %s25_s17, 5  ;;  %p49_p2 = scmp.eq.s32.totalorder %s1010_s16, 0 }
   0x5   : > { %s41_s19 = sadd.s32 1, %s998_s13  ;;  %p821_p5 = scmp.ge.s32.totalorder %s1010_s16, 5 }
   0x6   : > { %s1390_s17 = smov (%p26_p0, %s25_s17), 0  ;;  %p50_p3 = por %p49_p2, %p48_p1 }
   0x7   : > { %s37_s18 = ssub.s32 %s1006_s15, %s1390_s17  ;;  %162 = sbr.rel (%p821_p5) target bundleno = 26 (0x1a), region = 20 }
   0x8   : > { %p39_p4 = scmp.eq.s32.totalorder %s37_s18, 0 }
   0xa   : > { %s1068_s20 = scalar_select %p39_p4, %s998_s13, %s41_s19  }
   0xc   : > { %165 = sbr.rel (!%p50_p3) target bundleno = 26 (0x1a), region = 24  ;;  %s167_s21 = sand.u32 (%p50_p3), 1, %s998_s13  }
   0xd   : > { %s823_s22 = sshll.u32 (%p50_p3), %s1006_s15, 2  ;;  %s822_s23 = sshll.u32 (%p50_p3), %s167_s21, 6 }
   0xe   : > { %s1076_s26 = scalar_lea.vmem (%p50_p3), %s1381_s0, %s823_s22  ;;  %s169_s27 = scalar_lea.vmem (%p50_p3), [#allocation2], %s822_s23 }
   0xf   : > { %v191_v0 = vld [vmem:[%s1076_s26] sm:$0xf] (%p50_p3)  ;;  %v193_v1 = vld [vmem:[%s1076_s26 + $0x14] sm:$0xf] (%p50_p3)  ;;  %v195_v2 = vld [vmem:[%s1076_s26 + $0x28] sm:$0xf] (%p50_p3) }
  0x10   : > { %192 = vst [vmem:[%s169_s27] sm:$0xf] (%p50_p3), %v191_v0  ;;  %194 = vst [vmem:[%s169_s27 + $0x4] sm:$0xf] (%p50_p3), %v193_v1  ;;  %v197_v3 = vld [vmem:[%s1076_s26 + $0x3c] sm:$0xf] (%p50_p3) }
  0x11   : > { %v199_v4 = vld [vmem:[%s1076_s26 + $0x50] sm:$0xf]  ;;  %196 = vst [vmem:[%s169_s27 + $0x8] sm:$0xf] %v195_v2  ;;  %198 = vst [vmem:[%s169_s27 + $0xc] sm:$0xf] %v197_v3 }
  0x12   : > { %200 = vst [vmem:[%s169_s27 + $0x10] sm:$0xf] %v199_v4  ;;  %v201_v5 = vld [vmem:[%s1076_s26 + $0x64] sm:$0xf]  ;;  %v203_v6 = vld [vmem:[%s1076_s26 + $0x78] sm:$0xf] }
  0x13   : > { %v205_v7 = vld [vmem:[%s1076_s26 + $0x8c] sm:$0xf]  ;;  %202 = vst [vmem:[%s169_s27 + $0x14] sm:$0xf] %v201_v5  ;;  %204 = vst [vmem:[%s169_s27 + $0x18] sm:$0xf] %v203_v6 }
  0x14   : > { %206 = vst [vmem:[%s169_s27 + $0x1c] sm:$0xf] %v205_v7  ;;  %v207_v8 = vld [vmem:[%s1076_s26 + $0xa0] sm:$0xf]  ;;  %v209_v9 = vld [vmem:[%s1076_s26 + $0xb4] sm:$0xf] }
  0x15   : > { %v211_v10 = vld [vmem:[%s1076_s26 + $0xc8] sm:$0xf]  ;;  %208 = vst [vmem:[%s169_s27 + $0x20] sm:$0xf] %v207_v8  ;;  %210 = vst [vmem:[%s169_s27 + $0x24] sm:$0xf] %v209_v9 }
  0x16   : > { %212 = vst [vmem:[%s169_s27 + $0x28] sm:$0xf] %v211_v10  ;;  %v213_v11 = vld [vmem:[%s1076_s26 + $0xdc] sm:$0xf]  ;;  %v215_v12 = vld [vmem:[%s1076_s26 + $0xf0] sm:$0xf] }
  0x17   : > { %v217_v13 = vld [vmem:[%s1076_s26 + $0x104] sm:$0xf]  ;;  %214 = vst [vmem:[%s169_s27 + $0x2c] sm:$0xf] %v213_v11  ;;  %216 = vst [vmem:[%s169_s27 + $0x30] sm:$0xf] %v215_v12 }
  0x18   : > { %218 = vst [vmem:[%s169_s27 + $0x34] sm:$0xf] %v217_v13  ;;  %v219_v14 = vld [vmem:[%s1076_s26 + $0x118] sm:$0xf]  ;;  %v221_v15 = vld [vmem:[%s1076_s26 + $0x12c] sm:$0xf] }
  0x19   : > { %220 = vst [vmem:[%s169_s27 + $0x38] sm:$0xf] %v219_v14  ;;  %222 = vst [vmem:[%s169_s27 + $0x3c] sm:$0xf] %v221_v15 }
  0x1a PF: > { %p824_p6 = scmp.ge.s32.totalorder %s1010_s16, 1  ;;  %p289_p7 = scmp.lt.s32.totalorder %s1010_s16, 6 }
  0x1c   : > { %p290_p8 = pnand %p824_p6, %p289_p7 }
  0x1d   : > { %s296_s28 = sand.u32 (!%p290_p8), 1, %s994_s12   ;;  %s826_s29 = sshll.u32 (!%p290_p8), %s1002_s14, 4 }
  0x1e   : > { %293 = sbr.rel (%p290_p8) target bundleno = 304 (0x130), region = 69  ;;  %s825_s30 = sshll.u32 (!%p290_p8), %s296_s28, 6 }
  0x1f   : > { %p335_p9 = scmp.lt.s32.totalorder (!%p290_p8), %s826_s29, 79  ;;  %s1103_s8 = scalar_lea.vmem (!%p290_p8), [#allocation2], %s825_s30 }
  0x20   : > { %p828_p10 = scmp.ne.s32.totalorder (!%p290_p8), %s1002_s14, 0 }
  0x23   : > { %s1392_s29 = smov (!%p335_p9, %s826_s29), 79  ;;  %359 = sbr.rel (%p828_p10) target bundleno = 49 (0x31), region = 77 }
  0x24   : > { %s827_s4 = sshll.u32 %s1392_s29, 2 }
  0x25   : > { %s1101_s7 = scalar_lea.vmem %s1382_s1, %s827_s4 }
  0x28   : > { %v1012_v16 = vmov 0.0  }
  0x29   : > { %360 = vst [vmem:[%s1384_s3] sm:$0xff] %v1012_v16  ;;  %361 = vst [vmem:[%s1384_s3 + $0x8] sm:$0xff] %v1012_v16 }
  0x2a   : > { %362 = vst [vmem:[%s1384_s3 + $0x10] sm:$0xff] %v1012_v16  ;;  %363 = vst [vmem:[%s1384_s3 + $0x18] sm:$0xff] %v1012_v16 }
  0x2b   : > { %364 = vst [vmem:[%s1384_s3 + $0x20] sm:$0xff] %v1012_v16  ;;  %365 = vst [vmem:[%s1384_s3 + $0x28] sm:$0xff] %v1012_v16 }
  0x2c   : > { %366 = vst [vmem:[%s1384_s3 + $0x30] sm:$0xff] %v1012_v16  ;;  %367 = vst [vmem:[%s1384_s3 + $0x38] sm:$0xff] %v1012_v16 }
  0x2d   : > { %368 = vst [vmem:[%s1384_s3 + $0x40] sm:$0xff] %v1012_v16  ;;  %369 = vst [vmem:[%s1384_s3 + $0x48] sm:$0xff] %v1012_v16 }
  0x2e   : > { %370 = vst [vmem:[%s1384_s3 + $0x50] sm:$0xff] %v1012_v16  ;;  %371 = vst [vmem:[%s1384_s3 + $0x58] sm:$0xff] %v1012_v16 }
  0x2f   : > { %372 = vst [vmem:[%s1384_s3 + $0x60] sm:$0xff] %v1012_v16  ;;  %373 = vst [vmem:[%s1384_s3 + $0x68] sm:$0xff] %v1012_v16 }
  0x30   : > { %374 = vst [vmem:[%s1384_s3 + $0x70] sm:$0xff] %v1012_v16  ;;  %375 = vst [vmem:[%s1384_s3 + $0x78] sm:$0xff] %v1012_v16 }
  0x31 PF: > { %v956_v17 = vld [vmem:[%s1101_s7 + $0x38] sm:$0xff]   ;;  %v957_v18 = vld [vmem:[%s1101_s7 + $0x30] sm:$0xff]   ;;  %v958_v19 = vld [vmem:[%s1101_s7 + $0x28] sm:$0xff]   ;;  %p845_p11 = scmp.ne.s32.totalorder %s1002_s14, 4 }
  0x32   : > { %867 = vmatprep.subr.bf16.mxu0 %v956_v17  ;;  %899 = vmatprep.subr.bf16.mxu1 %v956_v17  ;;  %v959_v20 = vld [vmem:[%s1101_s7 + $0x20] sm:$0xff]   ;;  %v960_v23 = vld [vmem:[%s1101_s7 + $0x18] sm:$0xff]   ;;  %v961_v24 = vld [vmem:[%s1101_s7 + $0x10] sm:$0xff]  }
  0x33   : > { %868 = vmatpush3.bf16.msra.mxu0 %v956_v17  ;;  %907 = vmatpush3.bf16.msra.mxu1 %v956_v17  ;;  %v964_v21 = vld [vmem:[%s1103_s8] sm:$0xff]   ;;  %v962_v25 = vld [vmem:[%s1101_s7 + $0x8] sm:$0xff]   ;;  %v968_v29 = vld [vmem:[%s1103_s8 + $0x10] sm:$0xff]  }
  0x34   : > { %869 = vmatprep.subr.bf16.mxu0 %v957_v18  ;;  %900 = vmatprep.subr.bf16.mxu1 %v957_v18  ;;  %v965_v22 = vld [vmem:[%s1103_s8 + $0x20] sm:$0xff]   ;;  %v966_v27 = vld [vmem:[%s1103_s8 + $0x8] sm:$0xff]   ;;  %v969_v30 = vld [vmem:[%s1103_s8 + $0x30] sm:$0xff]  }
  0x35   : > { %883 = vmatprep.mubr.bf16.mxu0 %v964_v21  ;;  %891 = vmatprep.mubr.bf16.mxu1 %v965_v22  ;;  %v963_v26 = vld [vmem:[%s1101_s7] sm:$0xff]   ;;  %v967_v28 = vld [vmem:[%s1103_s8 + $0x28] sm:$0xff]   ;;  %v970_v31 = vld [vmem:[%s1103_s8 + $0x18] sm:$0xff]  }
  0x36   : > { %v971_v32 = vld [vmem:[%s1103_s8 + $0x38] sm:$0xff]   ;;  %v378_v33 = vld [vmem:[%s1384_s3 + $0x10] sm:$0xff]  ;;  %v376_v37 = vld [vmem:[%s1384_s3] sm:$0xff] }
  0x37   : > { %870 = vmatpush3.bf16.msra.mxu0 %v957_v18  ;;  %908 = vmatpush3.bf16.msra.mxu1 %v957_v18  ;;  %v386_v34 = vld [vmem:[%s1384_s3 + $0x50] sm:$0xff]  ;;  %v384_v38 = vld [vmem:[%s1384_s3 + $0x40] sm:$0xff]  ;;  %v379_v43 = vld [vmem:[%s1384_s3 + $0x18] sm:$0xff] }
  0x38   : > { %871 = vmatprep.subr.bf16.mxu0 %v958_v19  ;;  %901 = vmatprep.subr.bf16.mxu1 %v958_v19  ;;  %v387_v44 = vld [vmem:[%s1384_s3 + $0x58] sm:$0xff]  ;;  %v377_v49 = vld [vmem:[%s1384_s3 + $0x8] sm:$0xff]  ;;  %v382_v55 = vld [vmem:[%s1384_s3 + $0x30] sm:$0xff] }
  0x39   : > { %v385_v50 = vld [vmem:[%s1384_s3 + $0x48] sm:$0xff]  ;;  %v390_v56 = vld [vmem:[%s1384_s3 + $0x70] sm:$0xff]  ;;  %v380_v61 = vld [vmem:[%s1384_s3 + $0x20] sm:$0xff] }
  0x3a   : > { %v388_v62 = vld [vmem:[%s1384_s3 + $0x60] sm:$0xff]  ;;  %v383_v3 = vld [vmem:[%s1384_s3 + $0x38] sm:$0xff]  ;;  %v381_v9 = vld [vmem:[%s1384_s3 + $0x28] sm:$0xff] }
  0x3b   : > { %872 = vmatpush3.bf16.msra.mxu0 %v958_v19  ;;  %909 = vmatpush3.bf16.msra.mxu1 %v958_v19  ;;  %v391_v4 = vld [vmem:[%s1384_s3 + $0x78] sm:$0xff]  ;;  %v389_v10 = vld [vmem:[%s1384_s3 + $0x68] sm:$0xff] }
  0x3c   : > { %873 = vmatprep.subr.bf16.mxu0 %v959_v20  ;;  %902 = vmatprep.subr.bf16.mxu1 %v959_v20 }
  0x3f   : > { %874 = vmatpush3.bf16.msra.mxu0 %v959_v20  ;;  %910 = vmatpush3.bf16.msra.mxu1 %v959_v20 }
  0x40   : > { %875 = vmatprep.subr.bf16.mxu0 %v960_v23  ;;  %903 = vmatprep.subr.bf16.mxu1 %v960_v23 }
  0x43   : > { %876 = vmatpush3.bf16.msra.mxu0 %v960_v23  ;;  %911 = vmatpush3.bf16.msra.mxu1 %v960_v23 }
  0x44   : > { %877 = vmatprep.subr.bf16.mxu0 %v961_v24  ;;  %904 = vmatprep.subr.bf16.mxu1 %v961_v24 }
  0x47   : > { %878 = vmatpush3.bf16.msra.mxu0 %v961_v24  ;;  %912 = vmatpush3.bf16.msra.mxu1 %v961_v24 }
  0x48   : > { %879 = vmatprep.subr.bf16.mxu0 %v962_v25  ;;  %905 = vmatprep.subr.bf16.mxu1 %v962_v25 }
  0x4b   : > { %880 = vmatpush3.bf16.msra.mxu0 %v962_v25  ;;  %913 = vmatpush3.bf16.msra.mxu1 %v962_v25 }
  0x4c   : > { %881 = vmatprep.subr.bf16.mxu0 %v963_v26  ;;  %906 = vmatprep.subr.bf16.mxu1 %v963_v26 }
  0x4f   : > { %882 = vmatpush3.bf16.msra.mxu0 %v963_v26  ;;  %914 = vmatpush3.bf16.msra.mxu1 %v963_v26 }
  0x52   : > { %884 = vmatmul.mubr.bf16.vlgmr.msra.gmra.mxu0 %v966_v27  ;;  %892 = vmatmul.mubr.bf16.vlgmr.msra.gmra.mxu1 %v967_v28 }
  0x53   : > { %887 = vmatprep.mubr.bf16.mxu0 %v968_v29  ;;  %895 = vmatprep.mubr.bf16.mxu1 %v969_v30 }
  0x5a   : > { %888 = vmatmul.mubr.bf16.gmra.mxu0 %v970_v31  ;;  %896 = vmatmul.mubr.bf16.gmra.mxu1 %v971_v32 }
 0x112   : > { %v885_v35 = vpop.f32.mrf.mxu0  ;;  %v893_v36 = vpop.f32.mrf.mxu1 }
 0x113   : > { %v619_v39 = vadd.f32 %v885_v35, %v378_v33  ;;  %v627_v40 = vadd.f32 %v893_v36, %v386_v34 }
 0x114   : > { %v554_v41 = vpop.f32.mrf.mxu0  ;;  %v586_v42 = vpop.f32.mrf.mxu1 }
 0x115   : > { %635 = vst [vmem:[%s1384_s3 + $0x10] sm:$0xff] %v619_v39  ;;  %643 = vst [vmem:[%s1384_s3 + $0x50] sm:$0xff] %v627_v40  ;;  %v617_v45 = vadd.f32 %v554_v41, %v376_v37  ;;  %v625_v46 = vadd.f32 %v586_v42, %v384_v38 }
 0x116   : > { %v886_v47 = vpop.f32.mrf.mxu0  ;;  %v894_v48 = vpop.f32.mrf.mxu1 }
 0x117   : > { %633 = vst [vmem:[%s1384_s3] sm:$0xff] %v617_v45  ;;  %641 = vst [vmem:[%s1384_s3 + $0x40] sm:$0xff] %v625_v46  ;;  %v620_v51 = vadd.f32 %v886_v47, %v379_v43  ;;  %v628_v52 = vadd.f32 %v894_v48, %v387_v44 }
 0x118   : > { %v557_v53 = vpop.f32.mrf.mxu0  ;;  %v589_v54 = vpop.f32.mrf.mxu1 }
 0x119   : > { %636 = vst [vmem:[%s1384_s3 + $0x18] sm:$0xff] %v620_v51  ;;  %644 = vst [vmem:[%s1384_s3 + $0x58] sm:$0xff] %v628_v52  ;;  %v618_v57 = vadd.f32 %v557_v53, %v377_v49  ;;  %v626_v58 = vadd.f32 %v589_v54, %v385_v50 }
 0x11a   : > { %v889_v59 = vpop.f32.mrf.mxu0  ;;  %v897_v60 = vpop.f32.mrf.mxu1 }
 0x11b   : > { %634 = vst [vmem:[%s1384_s3 + $0x8] sm:$0xff] %v618_v57  ;;  %642 = vst [vmem:[%s1384_s3 + $0x48] sm:$0xff] %v626_v58  ;;  %v623_v63 = vadd.f32 %v889_v59, %v382_v55  ;;  %v631_v0 = vadd.f32 %v897_v60, %v390_v56 }
 0x11c   : > { %v570_v1 = vpop.f32.mrf.mxu0  ;;  %v602_v2 = vpop.f32.mrf.mxu1 }
 0x11d   : > { %639 = vst [vmem:[%s1384_s3 + $0x30] sm:$0xff] %v623_v63  ;;  %647 = vst [vmem:[%s1384_s3 + $0x70] sm:$0xff] %v631_v0  ;;  %v621_v5 = vadd.f32 %v570_v1, %v380_v61  ;;  %v629_v6 = vadd.f32 %v602_v2, %v388_v62 }
 0x11e   : > { %v890_v7 = vpop.f32.mrf.mxu0  ;;  %v898_v8 = vpop.f32.mrf.mxu1 }
 0x11f   : > { %637 = vst [vmem:[%s1384_s3 + $0x20] sm:$0xff] %v621_v5  ;;  %645 = vst [vmem:[%s1384_s3 + $0x60] sm:$0xff] %v629_v6  ;;  %v624_v11 = vadd.f32 %v890_v7, %v383_v3  ;;  %v632_v12 = vadd.f32 %v898_v8, %v391_v4  ;;  %652 = sbr.rel (%p845_p11) target bundleno = 304 (0x130), region = 81 }
 0x120   : > { %v573_v13 = vpop.f32.mrf.mxu0  ;;  %v605_v14 = vpop.f32.mrf.mxu1 }
 0x121   : > { %640 = vst [vmem:[%s1384_s3 + $0x38] sm:$0xff] %v624_v11  ;;  %648 = vst [vmem:[%s1384_s3 + $0x78] sm:$0xff] %v632_v12  ;;  %v622_v15 = vadd.f32 %v573_v13, %v381_v9  ;;  %v630_v16 = vadd.f32 %v605_v14, %v389_v10 }
 0x123   : > { %638 = vst [vmem:[%s1384_s3 + $0x28] sm:$0xff] %v622_v15  ;;  %646 = vst [vmem:[%s1384_s3 + $0x68] sm:$0xff] %v630_v16 }
 0x124   : > { %v653_v17 = vld [vmem:[%s1384_s3] sm:$0xff]  ;;  %v654_v19 = vld [vmem:[%s1384_s3 + $0x8] sm:$0xff]  ;;  %v655_v22 = vld [vmem:[%s1384_s3 + $0x10] sm:$0xff] }
 0x125   : > { %v846_v18 = vld [vmem:[%s1383_s2] ss:$0 sm:$0xff]  ;;  %v656_v23 = vld [vmem:[%s1384_s3 + $0x18] sm:$0xff]  ;;  %v659_v29 = vld [vmem:[%s1384_s3 + $0x30] sm:$0xff] }
 0x126   : > { %v676_v20 = vadd.f32 %v846_v18, %v653_v17  ;;  %v677_v21 = vadd.f32 %v846_v18, %v654_v19  ;;  %v657_v24 = vld [vmem:[%s1384_s3 + $0x20] sm:$0xff]  ;;  %v678_v25 = vadd.f32 %v846_v18, %v655_v22  ;;  %v679_v26 = vadd.f32 %v846_v18, %v656_v23  ;;  %v662_v35 = vld [vmem:[%s1384_s3 + $0x48] sm:$0xff]  ;;  %v663_v36 = vld [vmem:[%s1384_s3 + $0x50] sm:$0xff] }
 0x127   : > { %v680_v27 = vadd.f32 %v846_v18, %v657_v24  ;;  %v682_v32 = vadd.f32 %v846_v18, %v659_v29  ;;  %v661_v34 = vld [vmem:[%s1384_s3 + $0x40] sm:$0xff]  ;;  %v685_v38 = vadd.f32 %v846_v18, %v662_v35  ;;  %v686_v39 = vadd.f32 %v846_v18, %v663_v36  ;;  %v664_v40 = vld [vmem:[%s1384_s3 + $0x58] sm:$0xff]  ;;  %v667_v46 = vld [vmem:[%s1384_s3 + $0x70] sm:$0xff] }
 0x128   : > { %v660_v30 = vld [vmem:[%s1384_s3 + $0x38] sm:$0xff]  ;;  %692 = vst [vmem:[%s1384_s3] sm:$0xff] %v676_v20  ;;  %693 = vst [vmem:[%s1384_s3 + $0x8] sm:$0xff] %v677_v21  ;;  %v684_v37 = vadd.f32 %v846_v18, %v661_v34  ;;  %v665_v41 = vld [vmem:[%s1384_s3 + $0x60] sm:$0xff]  ;;  %v687_v43 = vadd.f32 %v846_v18, %v664_v40  ;;  %v690_v48 = vadd.f32 %v846_v18, %v667_v46 }
 0x129   : > { %v683_v33 = vadd.f32 %v846_v18, %v660_v30  ;;  %694 = vst [vmem:[%s1384_s3 + $0x10] sm:$0xff] %v678_v25  ;;  %695 = vst [vmem:[%s1384_s3 + $0x18] sm:$0xff] %v679_v26  ;;  %v688_v44 = vadd.f32 %v846_v18, %v665_v41  ;;  %v668_v47 = vld [vmem:[%s1384_s3 + $0x78] sm:$0xff] }
 0x12a   : > { %v658_v28 = vld [vmem:[%s1384_s3 + $0x28] sm:$0xff]  ;;  %696 = vst [vmem:[%s1384_s3 + $0x20] sm:$0xff] %v680_v27  ;;  %698 = vst [vmem:[%s1384_s3 + $0x30] sm:$0xff] %v682_v32  ;;  %v691_v49 = vadd.f32 %v846_v18, %v668_v47 }
 0x12b   : > { %v681_v31 = vadd.f32 %v846_v18, %v658_v28  ;;  %v666_v42 = vld [vmem:[%s1384_s3 + $0x68] sm:$0xff]  ;;  %699 = vst [vmem:[%s1384_s3 + $0x38] sm:$0xff] %v683_v33  ;;  %700 = vst [vmem:[%s1384_s3 + $0x40] sm:$0xff] %v684_v37 }
 0x12c   : > { %v689_v45 = vadd.f32 %v846_v18, %v666_v42  ;;  %701 = vst [vmem:[%s1384_s3 + $0x48] sm:$0xff] %v685_v38  ;;  %702 = vst [vmem:[%s1384_s3 + $0x50] sm:$0xff] %v686_v39 }
 0x12d   : > { %697 = vst [vmem:[%s1384_s3 + $0x28] sm:$0xff] %v681_v31  ;;  %703 = vst [vmem:[%s1384_s3 + $0x58] sm:$0xff] %v687_v43 }
 0x12e   : > { %704 = vst [vmem:[%s1384_s3 + $0x60] sm:$0xff] %v688_v44  ;;  %705 = vst [vmem:[%s1384_s3 + $0x68] sm:$0xff] %v689_v45 }
 0x12f   : > { %706 = vst [vmem:[%s1384_s3 + $0x70] sm:$0xff] %v690_v48  ;;  %707 = vst [vmem:[%s1384_s3 + $0x78] sm:$0xff] %v691_v49 }
 0x130 PF: > { %s13_s16 = sadd.s32 1, %s1010_s16   ;;  %s1385_s12 = smov %s998_s13 }
 0x131   : > { %p10_p12 = scmp.ge.s32.totalorder %s13_s16, 7   ;;  %s1386_s13 = smov %s1068_s20 }
 0x132   : > { %s1387_s14 = smov %s1006_s15  ;;  %s1388_s15 = smov %s1390_s17 }
 0x133   :  { %12 = sbr.rel (!%p10_p12) target bundleno = 3 (0x3), region = 122 }

// kernel: resnet18_forward.39
= control target key start
LH: loop header
LB: loop body
LE: loop exit
PB: predicated region body
PF: predicated region fallthrough
CT: control target
= control target key end

     0   :  { %s763_s12 = smov 0   ;;  %s765_s13 = smov 0   ;;  %s910_s0 = inlined_call_operand.vmem [shape: bf16[32,640], index: 0, kind: input, shape index: {}]   ;;  %s911_s1 = inlined_call_operand.vmem [shape: bf16[640,128], index: 1, kind: input, shape index: {}]   ;;  %s912_s2 = inlined_call_operand.vmem [shape: f32[1,128], index: 2, kind: input, shape index: {}]   ;;  %s913_s3 = inlined_call_operand.vmem [shape: f32[32,128], index: 3, kind: output, shape index: {}]  }
   0x1   :  { %s767_s14 = smov 0   ;;  %s769_s15 = smov 0  }
   0x2   :  { %s771_s16 = smov 0  }
   0x3 LB: > { %s25_s17 = sadd.s32 1, %s736_s15  ;;  %p48_p1 = scmp.ne.s32.totalorder %s728_s13, %s724_s12  ;;  %s740_s16 = sphi %s771_s16, %s13_s16   ;;  %s736_s15 = sphi %s769_s15, %s917_s15   ;;  %s732_s14 = sphi %s767_s14, %s916_s14   ;;  %s728_s13 = sphi %s765_s13, %s915_s13   ;;  %s724_s12 = sphi %s763_s12, %s914_s12  }
   0x4   : > { %p26_p0 = scmp.ge.s32.totalorder %s25_s17, 5  ;;  %p49_p2 = scmp.eq.s32.totalorder %s740_s16, 0 }
   0x5   : > { %s41_s19 = sadd.s32 1, %s728_s13  ;;  %p597_p5 = scmp.ge.s32.totalorder %s740_s16, 5 }
   0x6   : > { %s919_s17 = smov (%p26_p0, %s25_s17), 0  ;;  %p50_p3 = por %p49_p2, %p48_p1 }
   0x7   : > { %s37_s18 = ssub.s32 %s736_s15, %s919_s17  ;;  %162 = sbr.rel (%p597_p5) target bundleno = 18 (0x12), region = 20 }
   0x8   : > { %p39_p4 = scmp.eq.s32.totalorder %s37_s18, 0 }
   0xa   : > { %s798_s20 = scalar_select %p39_p4, %s728_s13, %s41_s19  }
   0xc   : > { %165 = sbr.rel (!%p50_p3) target bundleno = 18 (0x12), region = 24  ;;  %s167_s21 = sand.u32 (%p50_p3), 1, %s728_s13  }
   0xd   : > { %s599_s22 = sshll.u32 (%p50_p3), %s736_s15, 2  ;;  %s598_s23 = sshll.u32 (%p50_p3), %s167_s21, 4 }
   0xe   : > { %s174_s26 = scalar_lea.vmem (%p50_p3), %s910_s0, %s599_s22  ;;  %s169_s27 = scalar_lea.vmem (%p50_p3), [#allocation2], %s598_s23 }
   0xf   : > { %v191_v0 = vld [vmem:[%s174_s26] sm:$0xf] (%p50_p3)  ;;  %v193_v1 = vld [vmem:[%s174_s26 + $0x14] sm:$0xf] (%p50_p3)  ;;  %v195_v2 = vld [vmem:[%s174_s26 + $0x28] sm:$0xf] (%p50_p3) }
  0x10   : > { %192 = vst [vmem:[%s169_s27] sm:$0xf] (%p50_p3), %v191_v0  ;;  %194 = vst [vmem:[%s169_s27 + $0x4] sm:$0xf] (%p50_p3), %v193_v1  ;;  %v197_v3 = vld [vmem:[%s174_s26 + $0x3c] sm:$0xf] (%p50_p3) }
  0x11   : > { %196 = vst [vmem:[%s169_s27 + $0x8] sm:$0xf] %v195_v2  ;;  %198 = vst [vmem:[%s169_s27 + $0xc] sm:$0xf] %v197_v3 }
  0x12 PF: > { %p600_p6 = scmp.ge.s32.totalorder %s740_s16, 1  ;;  %p241_p7 = scmp.lt.s32.totalorder %s740_s16, 6 }
  0x14   : > { %p242_p8 = pnand %p600_p6, %p241_p7 }
  0x15   : > { %s248_s28 = sand.u32 (!%p242_p8), 1, %s724_s12   ;;  %s602_s29 = sshll.u32 (!%p242_p8), %s732_s14, 4 }
  0x16   : > { %245 = sbr.rel (%p242_p8) target bundleno = 282 (0x11a), region = 69  ;;  %s810_s30 = sshll.u32 (!%p242_p8), %s248_s28, 4 }
  0x17   : > { %p287_p9 = scmp.lt.s32.totalorder (!%p242_p8), %s602_s29, 79  ;;  %s250_s8 = scalar_lea.vmem (!%p242_p8), [#allocation2], %s810_s30 }
  0x18   : > { %p604_p10 = scmp.ne.s32.totalorder (!%p242_p8), %s732_s14, 0 }
  0x1b   : > { %s921_s29 = smov (!%p287_p9, %s602_s29), 79  ;;  %311 = sbr.rel (%p604_p10) target bundleno = 35 (0x23), region = 77 }
  0x1c   : > { %s603_s4 = sshll.u32 %s921_s29, 2 }
  0x1d   : > { %s815_s7 = scalar_lea.vmem %s911_s1, %s603_s4 }
  0x20   : > { %v742_v4 = vmov 0.0  }
  0x21   : > { %312 = vst [vmem:[%s913_s3] sm:$0xff] %v742_v4  ;;  %313 = vst [vmem:[%s913_s3 + $0x8] sm:$0xff] %v742_v4 }
  0x22   : > { %314 = vst [vmem:[%s913_s3 + $0x10] sm:$0xff] %v742_v4  ;;  %315 = vst [vmem:[%s913_s3 + $0x18] sm:$0xff] %v742_v4 }
  0x23 PF: > { %v692_v5 = vld [vmem:[%s815_s7 + $0x38] sm:$0xff]   ;;  %v693_v6 = vld [vmem:[%s815_s7 + $0x30] sm:$0xff]   ;;  %v694_v7 = vld [vmem:[%s815_s7 + $0x28] sm:$0xff]   ;;  %p615_p11 = scmp.ne.s32.totalorder %s732_s14, 4 }
  0x24   : > { %631 = vmatprep.subr.bf16.mxu0 %v692_v5  ;;  %v695_v8 = vld [vmem:[%s815_s7 + $0x20] sm:$0xff]   ;;  %v696_v10 = vld [vmem:[%s815_s7 + $0x18] sm:$0xff]   ;;  %v697_v11 = vld [vmem:[%s815_s7 + $0x10] sm:$0xff]  }
  0x25   : > { %632 = vmatpush3.bf16.msra.mxu0 %v692_v5  ;;  %v700_v9 = vld [vmem:[%s250_s8] sm:$0xff]   ;;  %v698_v12 = vld [vmem:[%s815_s7 + $0x8] sm:$0xff]  }
  0x26   : > { %633 = vmatprep.subr.bf16.mxu0 %v693_v6  ;;  %647 = vmatprep.mubr.bf16.mxu0 %v700_v9  ;;  %v699_v13 = vld [vmem:[%s815_s7] sm:$0xff]   ;;  %v701_v14 = vld [vmem:[%s250_s8 + $0x8] sm:$0xff]  }
  0x28   : > { %v316_v17 = vld [vmem:[%s913_s3] sm:$0xff]  ;;  %v317_v23 = vld [vmem:[%s913_s3 + $0x8] sm:$0xff] }
  0x29   : > { %634 = vmatpush3.bf16.msra.mxu0 %v693_v6  ;;  %v318_v15 = vld [vmem:[%s913_s3 + $0x10] sm:$0xff]  ;;  %v319_v20 = vld [vmem:[%s913_s3 + $0x18] sm:$0xff] }
  0x2a   : > { %635 = vmatprep.subr.bf16.mxu0 %v694_v7 }
  0x2d   : > { %636 = vmatpush3.bf16.msra.mxu0 %v694_v7 }
  0x2e   : > { %637 = vmatprep.subr.bf16.mxu0 %v695_v8 }
  0x31   : > { %638 = vmatpush3.bf16.msra.mxu0 %v695_v8 }
  0x32   : > { %639 = vmatprep.subr.bf16.mxu0 %v696_v10 }
  0x35   : > { %640 = vmatpush3.bf16.msra.mxu0 %v696_v10 }
  0x36   : > { %641 = vmatprep.subr.bf16.mxu0 %v697_v11 }
  0x39   : > { %642 = vmatpush3.bf16.msra.mxu0 %v697_v11 }
  0x3a   : > { %643 = vmatprep.subr.bf16.mxu0 %v698_v12 }
  0x3d   : > { %644 = vmatpush3.bf16.msra.mxu0 %v698_v12 }
  0x3e   : > { %645 = vmatprep.subr.bf16.mxu0 %v699_v13 }
  0x41   : > { %646 = vmatpush3.bf16.msra.mxu0 %v699_v13 }
  0x44   : > { %648 = vmatmul.mubr.bf16.vlgmr.msra.gmra.mxu0 %v701_v14 }
 0x104   : > { %v649_v16 = vpop.f32.mrf.mxu0 }
 0x105   : > { %v451_v18 = vadd.f32 %v649_v16, %v318_v15 }
 0x106   : > { %v434_v19 = vpop.f32.mrf.mxu0 }
 0x107   : > { %455 = vst [vmem:[%s913_s3 + $0x10] sm:$0xff] %v451_v18  ;;  %v449_v21 = vadd.f32 %v434_v19, %v316_v17 }
 0x108   : > { %v650_v22 = vpop.f32.mrf.mxu0 }
 0x109   : > { %453 = vst [vmem:[%s913_s3] sm:$0xff] %v449_v21  ;;  %v452_v24 = vadd.f32 %v650_v22, %v319_v20  ;;  %460 = sbr.rel (%p615_p11) target bundleno = 282 (0x11a), region = 81 }
 0x10a   : > { %v437_v25 = vpop.f32.mrf.mxu0 }
 0x10b   : > { %456 = vst [vmem:[%s913_s3 + $0x18] sm:$0xff] %v452_v24  ;;  %v450_v26 = vadd.f32 %v437_v25, %v317_v23 }
 0x10d   : > { %454 = vst [vmem:[%s913_s3 + $0x8] sm:$0xff] %v450_v26 }
 0x10e   : > { %v616_v28 = vld [vmem:[%s912_s2] ss:$0 sm:$0xff]  ;;  %v463_v32 = vld [vmem:[%s913_s3 + $0x10] sm:$0xff] }
 0x10f   : > { %v474_v34 = vadd.f32 %v616_v28, %v463_v32 }
 0x110   : > { %v461_v27 = vld [vmem:[%s913_s3] sm:$0xff] }
 0x111   : > { %v472_v30 = vadd.f32 %v616_v28, %v461_v27  ;;  %v478_v38 = vmax.f32 %v474_v34, 0.0 }
 0x112   : > { %v464_v33 = vld [vmem:[%s913_s3 + $0x18] sm:$0xff] }
 0x113   : > { %v475_v35 = vadd.f32 %v616_v28, %v464_v33  ;;  %v476_v36 = vmax.f32 %v472_v30, 0.0  ;;  %482 = vst [vmem:[%s913_s3 + $0x10] sm:$0xff] %v478_v38 }
 0x114   : > { %v462_v29 = vld [vmem:[%s913_s3 + $0x8] sm:$0xff] }
 0x115   : > { %v473_v31 = vadd.f32 %v616_v28, %v462_v29  ;;  %v479_v39 = vmax.f32 %v475_v35, 0.0  ;;  %480 = vst [vmem:[%s913_s3] sm:$0xff] %v476_v36 }
 0x117   : > { %v477_v37 = vmax.f32 %v473_v31, 0.0  ;;  %483 = vst [vmem:[%s913_s3 + $0x18] sm:$0xff] %v479_v39 }
 0x119   : > { %481 = vst [vmem:[%s913_s3 + $0x8] sm:$0xff] %v477_v37 }
 0x11a PF: > { %s13_s16 = sadd.s32 1, %s740_s16   ;;  %s914_s12 = smov %s728_s13 }
 0x11b   : > { %p10_p12 = scmp.ge.s32.totalorder %s13_s16, 7   ;;  %s915_s13 = smov %s798_s20 }
 0x11c   : > { %s916_s14 = smov %s736_s15  ;;  %s917_s15 = smov %s919_s17 }
 0x11d   :  { %12 = sbr.rel (!%p10_p12) target bundleno = 3 (0x3), region = 122 }

// kernel: resnet18_forward.42
= control target key start
LH: loop header
LB: loop body
LE: loop exit
PB: predicated region body
PF: predicated region fallthrough
CT: control target
= control target key end

     0   :  { %s86_s0 = inlined_call_operand.vmem [shape: f32[32,128], index: 0, kind: input, shape index: {}]   ;;  %s87_s1 = inlined_call_operand.vmem [shape: f32[32,128], index: 1, kind: input, shape index: {}]   ;;  %s88_s2 = inlined_call_operand.vmem [shape: f32[32,128], index: 2, kind: output, shape index: {}]  }
   0x1   :  { %v11_v0 = vld [vmem:[%s86_s0] sm:$0xff]  ;;  %v12_v2 = vld [vmem:[%s86_s0 + $0x8] sm:$0xff]  ;;  %v13_v5 = vld [vmem:[%s86_s0 + $0x10] sm:$0xff] }
   0x2   :  { %v15_v1 = vld [vmem:[%s87_s1] sm:$0xff]  ;;  %v16_v4 = vld [vmem:[%s87_s1 + $0x8] sm:$0xff]  ;;  %v17_v6 = vld [vmem:[%s87_s1 + $0x10] sm:$0xff] }
   0x3   :  { %v19_v3 = vadd.f32 %v15_v1, %v11_v0  ;;  %v20_v7 = vadd.f32 %v16_v4, %v12_v2  ;;  %v21_v8 = vadd.f32 %v17_v6, %v13_v5  ;;  %v14_v9 = vld [vmem:[%s86_s0 + $0x18] sm:$0xff] }
   0x4   :  { %v18_v10 = vld [vmem:[%s87_s1 + $0x18] sm:$0xff] }
   0x5   :  { %v23_v11 = vmax.f32 %v19_v3, 0.0  ;;  %v22_v12 = vadd.f32 %v18_v10, %v14_v9  ;;  %v24_v13 = vmax.f32 %v20_v7, 0.0  ;;  %v25_v14 = vmax.f32 %v21_v8, 0.0 }
   0x7   :  { %27 = vst [vmem:[%s88_s2] sm:$0xff] %v23_v11  ;;  %v26_v15 = vmax.f32 %v22_v12, 0.0  ;;  %28 = vst [vmem:[%s88_s2 + $0x8] sm:$0xff] %v24_v13 }
   0x8   :  { %29 = vst [vmem:[%s88_s2 + $0x10] sm:$0xff] %v25_v14 }
   0x9   :  { %30 = vst [vmem:[%s88_s2 + $0x18] sm:$0xff] %v26_v15 }

// kernel: resnet18_forward.40
= control target key start
LH: loop header
LB: loop body
LE: loop exit
PB: predicated region body
PF: predicated region fallthrough
CT: control target
= control target key end

     0   :  { %s1033_s12 = smov 0   ;;  %s1035_s13 = smov 0   ;;  %s1197_s0 = inlined_call_operand.vmem [shape: bf16[32,1152], index: 0, kind: input, shape index: {}]   ;;  %s1198_s1 = inlined_call_operand.vmem [shape: bf16[1152,128], index: 1, kind: input, shape index: {}]   ;;  %s1199_s2 = inlined_call_operand.vmem [shape: f32[1,128], index: 2, kind: input, shape index: {}]   ;;  %s1200_s3 = inlined_call_operand.vmem [shape: f32[32,128], index: 3, kind: output, shape index: {}]  }
   0x1   :  { %s1037_s14 = smov 0   ;;  %s1039_s15 = smov 0  }
   0x2   :  { %s1041_s16 = smov 0  }
   0x3 LB: > { %s25_s17 = sadd.s32 1, %s1006_s15  ;;  %p48_p1 = scmp.ne.s32.totalorder %s998_s13, %s994_s12  ;;  %s1010_s16 = sphi %s1041_s16, %s13_s16   ;;  %s1006_s15 = sphi %s1039_s15, %s1204_s15   ;;  %s1002_s14 = sphi %s1037_s14, %s1203_s14   ;;  %s998_s13 = sphi %s1035_s13, %s1202_s13   ;;  %s994_s12 = sphi %s1033_s12, %s1201_s12  }
   0x4   : > { %p26_p0 = scmp.ge.s32.totalorder %s25_s17, 3  ;;  %p49_p2 = scmp.eq.s32.totalorder %s1010_s16, 0 }
   0x5   : > { %s41_s19 = sadd.s32 1, %s998_s13  ;;  %p789_p5 = scmp.ge.s32.totalorder %s1010_s16, 3 }
   0x6   : > { %s1206_s17 = smov (%p26_p0, %s25_s17), 0  ;;  %p50_p3 = por %p49_p2, %p48_p1 }
   0x7   : > { %s37_s18 = ssub.s32 %s1006_s15, %s1206_s17  ;;  %162 = sbr.rel (%p789_p5) target bundleno = 21 (0x15), region = 20 }
   0x8   : > { %p39_p4 = scmp.eq.s32.totalorder %s37_s18, 0 }
   0xa   : > { %s1068_s20 = scalar_select %p39_p4, %s998_s13, %s41_s19  }
   0xc   : > { %165 = sbr.rel (!%p50_p3) target bundleno = 21 (0x15), region = 24  ;;  %s167_s21 = sand.u32 (%p50_p3), 1, %s998_s13  }
   0xd   : > { %s838_s22 = smul.u32 (%p50_p3), 12, %s1006_s15 }
   0xe   : > { %s897_s23 = smul.u32 (%p50_p3), 48, %s167_s21 }
   0xf   : > { %s175_s26 = scalar_lea.vmem (%p50_p3), %s1197_s0, %s838_s22 }
  0x10   : > { %v190_v0 = vld [vmem:[%s175_s26] sm:$0xff] (%p50_p3)  ;;  %v194_v2 = vld [vmem:[%s175_s26 + $0x48] sm:$0xff] (%p50_p3)  ;;  %s169_s27 = scalar_lea.vmem (%p50_p3), [#allocation2], %s897_s23  ;;  %v795_v6 = vld [vmem:[%s175_s26 + $0x50] sm:$0xf] (%p50_p3) }
  0x11   : > { %v192_v1 = vld [vmem:[%s175_s26 + $0x24] sm:$0xff]  ;;  %191 = vst [vmem:[%s169_s27] sm:$0xff] %v190_v0  ;;  %195 = vst [vmem:[%s169_s27 + $0x18] sm:$0xff] %v194_v2  ;;  %v196_v3 = vld [vmem:[%s175_s26 + $0x6c] sm:$0xff] }
  0x12   : > { %193 = vst [vmem:[%s169_s27 + $0xc] sm:$0xff] %v192_v1  ;;  %v791_v4 = vld [vmem:[%s175_s26 + $0x8] sm:$0xf]  ;;  %v793_v5 = vld [vmem:[%s175_s26 + $0x2c] sm:$0xf]  ;;  %197 = vst [vmem:[%s169_s27 + $0x24] sm:$0xff] %v196_v3 }
  0x13   : > { %792 = vst [vmem:[%s169_s27 + $0x8] sm:$0xf] %v791_v4  ;;  %794 = vst [vmem:[%s169_s27 + $0x14] sm:$0xf] %v793_v5  ;;  %v797_v7 = vld [vmem:[%s175_s26 + $0x74] sm:$0xf] }
  0x14   : > { %796 = vst [vmem:[%s169_s27 + $0x20] sm:$0xf] %v795_v6  ;;  %798 = vst [vmem:[%s169_s27 + $0x2c] sm:$0xf] %v797_v7 }
  0x15 PF: > { %p799_p6 = scmp.ge.s32.totalorder %s1010_s16, 1  ;;  %p230_p7 = scmp.lt.s32.totalorder %s1010_s16, 4 }
  0x17   : > { %p231_p8 = pnand %p799_p6, %p230_p7 }
  0x18   : > { %s237_s28 = sand.u32 (!%p231_p8), 1, %s994_s12   ;;  %s276_s29 = smul.u32 (!%p231_p8), 48, %s1002_s14 }
  0x19   : > { %234 = sbr.rel (%p231_p8) target bundleno = 295 (0x127), region = 54  ;;  %p801_p10 = scmp.ne.s32.totalorder (!%p231_p8), %s1002_s14, 0 }
  0x1a   : > { %s898_s30 = smul.u32 (!%p231_p8), 48, %s237_s28  ;;  %p277_p9 = scmp.lt.s32.totalorder (!%p231_p8), %s276_s29, 143 }
  0x1c   : > { %s1085_s8 = scalar_lea.vmem (!%p231_p8), [#allocation2], %s898_s30 }
  0x1e   : > { %s1208_s29 = smov (!%p277_p9, %s276_s29), 143  ;;  %301 = sbr.rel (%p801_p10) target bundleno = 38 (0x26), region = 62 }
  0x1f   : > { %s800_s4 = sshll.u32 %s1208_s29, 2 }
  0x20   : > { %s1083_s7 = scalar_lea.vmem %s1198_s1, %s800_s4 }
  0x23   : > { %v1012_v8 = vmov 0.0  }
  0x24   : > { %302 = vst [vmem:[%s1200_s3] sm:$0xff] %v1012_v8  ;;  %303 = vst [vmem:[%s1200_s3 + $0x8] sm:$0xff] %v1012_v8 }
  0x25   : > { %304 = vst [vmem:[%s1200_s3 + $0x10] sm:$0xff] %v1012_v8  ;;  %305 = vst [vmem:[%s1200_s3 + $0x18] sm:$0xff] %v1012_v8 }
  0x26 PF: > { %v940_v9 = vld [vmem:[%s1083_s7 + $0x78] sm:$0xff]   ;;  %v943_v12 = vld [vmem:[%s1083_s7 + $0x70] sm:$0xff]   ;;  %v946_v15 = vld [vmem:[%s1083_s7 + $0x68] sm:$0xff]   ;;  %p832_p11 = scmp.ne.s32.totalorder %s1002_s14, 2 }
  0x27   : > { %v941_v10 = vld [vmem:[%s1083_s7 + $0x38] sm:$0xff]   ;;  %839 = vmatprep.subr.bf16.mxu0 %v940_v9  ;;  %v944_v13 = vld [vmem:[%s1083_s7 + $0x30] sm:$0xff]   ;;  %v947_v16 = vld [vmem:[%s1083_s7 + $0x28] sm:$0xff]  }
  0x28   : > { %v942_v11 = vld [vmem:[%s1083_s7 + $0xb8] sm:$0xff]   ;;  %840 = vmatpush3.bf16.msra.mxu0 %v941_v10  ;;  %v945_v14 = vld [vmem:[%s1083_s7 + $0xb0] sm:$0xff]   ;;  %v948_v17 = vld [vmem:[%s1083_s7 + $0xa8] sm:$0xff]  }
  0x29   : > { %877 = vmatprep.subr.bf16.mxu1 %v942_v11  ;;  %841 = vmatprep.subr.bf16.mxu0 %v943_v12  ;;  %v949_v18 = vld [vmem:[%s1083_s7 + $0x60] sm:$0xff]   ;;  %v952_v21 = vld [vmem:[%s1083_s7 + $0x58] sm:$0xff]   ;;  %v955_v24 = vld [vmem:[%s1083_s7 + $0x50] sm:$0xff]  }
  0x2a   : > { %878 = vmatpush3.bf16.msra.mxu1 %v942_v11  ;;  %v950_v19 = vld [vmem:[%s1083_s7 + $0x20] sm:$0xff]   ;;  %v954_v22 = vld [vmem:[%s1083_s7 + $0x98] sm:$0xff]   ;;  %v957_v25 = vld [vmem:[%s1083_s7 + $0x90] sm:$0xff]  }
  0x2b   : > { %879 = vmatprep.subr.bf16.mxu1 %v945_v14  ;;  %v951_v20 = vld [vmem:[%s1083_s7 + $0xa0] sm:$0xff]   ;;  %v953_v23 = vld [vmem:[%s1083_s7 + $0x18] sm:$0xff]   ;;  %v956_v26 = vld [vmem:[%s1083_s7 + $0x10] sm:$0xff]  }
  0x2c   : > { %842 = vmatpush3.bf16.msra.mxu0 %v944_v13  ;;  %v958_v27 = vld [vmem:[%s1083_s7 + $0x48] sm:$0xff]   ;;  %v961_v30 = vld [vmem:[%s1083_s7 + $0x40] sm:$0xff]   ;;  %v308_v58 = vld [vmem:[%s1200_s3 + $0x10] sm:$0xff] }
  0x2d   : > { %843 = vmatprep.subr.bf16.mxu0 %v946_v15  ;;  %v959_v28 = vld [vmem:[%s1083_s7 + $0x8] sm:$0xff]   ;;  %v963_v31 = vld [vmem:[%s1083_s7 + $0x80] sm:$0xff]   ;;  %v309_v0 = vld [vmem:[%s1200_s3 + $0x18] sm:$0xff] }
  0x2e   : > { %880 = vmatpush3.bf16.msra.mxu1 %v945_v14  ;;  %v960_v29 = vld [vmem:[%s1083_s7 + $0x88] sm:$0xff]   ;;  %v966_v32 = vld [vmem:[%s1085_s8 + $0x4] ss:$12 sps:$4 sm:$0xff]  }
  0x2f   : > { %881 = vmatprep.subr.bf16.mxu1 %v948_v17  ;;  %v967_v33 = vld [vmem:[%s1085_s8 + $0x8] ss:$12 sps:$4 sm:$0xff]   ;;  %574 = vmatprep.mubr.bf16.mxu0 %v966_v32  ;;  %v964_v35 = vld [vmem:[%s1085_s8] ss:$12 sps:$4 sm:$0xff]   ;;  %v971_v38 = vld [vmem:[%s1085_s8 + $0x18] ss:$12 sps:$4 sm:$0xff]  }
  0x30   : > { %844 = vmatpush3.bf16.msra.mxu0 %v947_v16  ;;  %v962_v34 = vld [vmem:[%s1083_s7] sm:$0xff]   ;;  %893 = vmatprep.mubr.bf16.mxu1 %v967_v33  ;;  %v969_v36 = vld [vmem:[%s1085_s8 + $0x1c] ss:$12 sps:$4 sm:$0xff]  }
  0x31   : > { %845 = vmatprep.subr.bf16.mxu0 %v949_v18  ;;  %v968_v37 = vld [vmem:[%s1085_s8 + $0x20] ss:$12 sps:$4 sm:$0xff]  }
  0x32   : > { %882 = vmatpush3.bf16.msra.mxu1 %v948_v17  ;;  %v306_v44 = vld [vmem:[%s1200_s3] sm:$0xff]  ;;  %v307_v52 = vld [vmem:[%s1200_s3 + $0x8] sm:$0xff] }
  0x33   : > { %883 = vmatprep.subr.bf16.mxu1 %v951_v20 }
  0x34   : > { %846 = vmatpush3.bf16.msra.mxu0 %v950_v19 }
  0x35   : > { %847 = vmatprep.subr.bf16.mxu0 %v952_v21 }
  0x36   : > { %884 = vmatpush3.bf16.msra.mxu1 %v951_v20 }
  0x37   : > { %885 = vmatprep.subr.bf16.mxu1 %v954_v22 }
  0x38   : > { %848 = vmatpush3.bf16.msra.mxu0 %v953_v23 }
  0x39   : > { %849 = vmatprep.subr.bf16.mxu0 %v955_v24 }
  0x3a   : > { %886 = vmatpush3.bf16.msra.mxu1 %v954_v22 }
  0x3b   : > { %887 = vmatprep.subr.bf16.mxu1 %v957_v25 }
  0x3c   : > { %850 = vmatpush3.bf16.msra.mxu0 %v956_v26 }
  0x3d   : > { %851 = vmatprep.subr.bf16.mxu0 %v958_v27 }
  0x3e   : > { %888 = vmatpush3.bf16.msra.mxu1 %v957_v25 }
  0x3f   : > { %889 = vmatprep.subr.bf16.mxu1 %v960_v29 }
  0x40   : > { %852 = vmatpush3.bf16.msra.mxu0 %v959_v28 }
  0x41   : > { %853 = vmatprep.subr.bf16.mxu0 %v961_v30 }
  0x42   : > { %890 = vmatpush3.bf16.msra.mxu1 %v960_v29 }
  0x43   : > { %891 = vmatprep.subr.bf16.mxu1 %v963_v31 }
  0x44   : > { %854 = vmatpush3.bf16.msra.mxu0 %v962_v34 }
  0x46   : > { %892 = vmatpush3.bf16.msra.mxu1 %v963_v31 }
  0x47   : > { %575 = vmatmul.mubr.bf16.vlgmr.msra.gmra.mxu0 %v964_v35 }
  0x48   : > { %582 = vmatprep.mubr.bf16.mxu0 %v969_v36 }
  0x49   : > { %894 = vmatmul.mubr.bf16.vlgmr.msra.gmra.mxu1 %v968_v37 }
  0x4f   : > { %583 = vmatmul.mubr.bf16.gmra.mxu0 %v971_v38 }
 0x107   : > { %v855_v39 = vpop.f32.mrf.mxu0 }
 0x109   : > { %v856_v40 = vpop.f32.mrf.mxu0  ;;  %v895_v41 = vpop.f32.mrf.mxu1 }
 0x10a   : > { %v857_v42 = vadd.f32 %v856_v40, %v855_v39 }
 0x10b   : > { %v858_v43 = vpop.f32.mrf.mxu0  ;;  %v625_v45 = vpop.f32.mrf.mxu1 }
 0x10c   : > { %v626_v46 = vadd.f32 %v857_v42, %v625_v45 }
 0x10d   : > { %v859_v47 = vpop.f32.mrf.mxu0  ;;  %v896_v48 = vpop.f32.mrf.mxu1 }
 0x10e   : > { %v640_v49 = vadd.f32 %v626_v46, %v306_v44  ;;  %v860_v50 = vadd.f32 %v859_v47, %v858_v43 }
 0x10f   : > { %v861_v51 = vpop.f32.mrf.mxu0  ;;  %v628_v53 = vpop.f32.mrf.mxu1 }
 0x110   : > { %644 = vst [vmem:[%s1200_s3] sm:$0xff] %v640_v49  ;;  %v629_v54 = vadd.f32 %v860_v50, %v628_v53 }
 0x111   : > { %v862_v55 = vpop.f32.mrf.mxu0 }
 0x112   : > { %v641_v56 = vadd.f32 %v629_v54, %v307_v52  ;;  %v863_v57 = vadd.f32 %v862_v55, %v861_v51 }
 0x113   : > { %v864_v59 = vpop.f32.mrf.mxu0 }
 0x114   : > { %645 = vst [vmem:[%s1200_s3 + $0x8] sm:$0xff] %v641_v56  ;;  %v634_v60 = vadd.f32 %v895_v41, %v863_v57 }
 0x115   : > { %v865_v61 = vpop.f32.mrf.mxu0 }
 0x116   : > { %v642_v62 = vadd.f32 %v634_v60, %v308_v58  ;;  %v866_v63 = vadd.f32 %v865_v61, %v864_v59 }
 0x118   : > { %646 = vst [vmem:[%s1200_s3 + $0x10] sm:$0xff] %v642_v62  ;;  %v637_v1 = vadd.f32 %v896_v48, %v866_v63  ;;  %651 = sbr.rel (%p832_p11) target bundleno = 295 (0x127), region = 66 }
 0x11a   : > { %v643_v2 = vadd.f32 %v637_v1, %v309_v0 }
 0x11c   : > { %647 = vst [vmem:[%s1200_s3 + $0x18] sm:$0xff] %v643_v2 }
 0x11d   : > { %v652_v3 = vld [vmem:[%s1200_s3] sm:$0xff]  ;;  %v653_v5 = vld [vmem:[%s1200_s3 + $0x8] sm:$0xff] }
 0x11e   : > { %v833_v4 = vld [vmem:[%s1199_s2] ss:$0 sm:$0xff] }
 0x11f   : > { %v663_v6 = vadd.f32 %v833_v4, %v652_v3  ;;  %v664_v7 = vadd.f32 %v833_v4, %v653_v5  ;;  %v654_v8 = vld [vmem:[%s1200_s3 + $0x10] sm:$0xff] }
 0x120   : > { %v665_v10 = vadd.f32 %v833_v4, %v654_v8 }
 0x121   : > { %667 = vst [vmem:[%s1200_s3] sm:$0xff] %v663_v6  ;;  %668 = vst [vmem:[%s1200_s3 + $0x8] sm:$0xff] %v664_v7 }
 0x122   : > { %669 = vst [vmem:[%s1200_s3 + $0x10] sm:$0xff] %v665_v10 }
 0x123   : > { %v655_v9 = vld [vmem:[%s1200_s3 + $0x18] sm:$0xff] }
 0x124   : > { %v666_v11 = vadd.f32 %v833_v4, %v655_v9 }
 0x126   : > { %670 = vst [vmem:[%s1200_s3 + $0x18] sm:$0xff] %v666_v11 }
 0x127 PF: > { %s13_s16 = sadd.s32 1, %s1010_s16   ;;  %s1201_s12 = smov %s998_s13 }
 0x128   : > { %p10_p12 = scmp.ge.s32.totalorder %s13_s16, 5   ;;  %s1202_s13 = smov %s1068_s20 }
 0x129   : > { %s1203_s14 = smov %s1006_s15  ;;  %s1204_s15 = smov %s1206_s17 }
 0x12a   :  { %12 = sbr.rel (!%p10_p12) target bundleno = 3 (0x3), region = 113 }

// kernel: resnet18_forward.41
= control target key start
LH: loop header
LB: loop body
LE: loop exit
PB: predicated region body
PF: predicated region fallthrough
CT: control target
= control target key end

     0   :  { %s307_s1 = inlined_call_operand.vmem [shape: bf16[128,128], index: 1, kind: input, shape index: {}]   ;;  %s308_s0 = inlined_call_operand.vmem [shape: bf16[32,128], index: 0, kind: input, shape index: {}]   ;;  %s309_s2 = inlined_call_operand.vmem [shape: f32[1,128], index: 2, kind: input, shape index: {}]   ;;  %s310_s3 = inlined_call_operand.vmem [shape: f32[32,128], index: 3, kind: output, shape index: {}]  }
   0x1   :  { %v232_v0 = vld [vmem:[%s307_s1 + $0x38] sm:$0xff]   ;;  %v233_v1 = vld [vmem:[%s307_s1 + $0x30] sm:$0xff]   ;;  %v234_v2 = vld [vmem:[%s307_s1 + $0x28] sm:$0xff]  }
   0x2   :  { %211 = vmatprep.subr.bf16.mxu0 %v232_v0  ;;  %v235_v3 = vld [vmem:[%s307_s1 + $0x20] sm:$0xff]   ;;  %v236_v5 = vld [vmem:[%s307_s1 + $0x18] sm:$0xff]   ;;  %v237_v6 = vld [vmem:[%s307_s1 + $0x10] sm:$0xff]  }
   0x3   :  { %212 = vmatpush3.bf16.msra.mxu0 %v232_v0  ;;  %v240_v4 = vld [vmem:[%s308_s0] sm:$0xff]   ;;  %v238_v7 = vld [vmem:[%s307_s1 + $0x8] sm:$0xff]  }
   0x4   :  { %213 = vmatprep.subr.bf16.mxu0 %v233_v1  ;;  %227 = vmatprep.mubr.bf16.mxu0 %v240_v4  ;;  %v239_v8 = vld [vmem:[%s307_s1] sm:$0xff]   ;;  %v241_v9 = vld [vmem:[%s308_s0 + $0x8] sm:$0xff]  }
   0x5   :  { %v200_v11 = vld [vmem:[%s309_s2] ss:$0 sm:$0xff] }
   0x7   :  { %214 = vmatpush3.bf16.msra.mxu0 %v233_v1 }
   0x8   :  { %215 = vmatprep.subr.bf16.mxu0 %v234_v2 }
   0xb   :  { %216 = vmatpush3.bf16.msra.mxu0 %v234_v2 }
   0xc   :  { %217 = vmatprep.subr.bf16.mxu0 %v235_v3 }
   0xf   :  { %218 = vmatpush3.bf16.msra.mxu0 %v235_v3 }
  0x10   :  { %219 = vmatprep.subr.bf16.mxu0 %v236_v5 }
  0x13   :  { %220 = vmatpush3.bf16.msra.mxu0 %v236_v5 }
  0x14   :  { %221 = vmatprep.subr.bf16.mxu0 %v237_v6 }
  0x17   :  { %222 = vmatpush3.bf16.msra.mxu0 %v237_v6 }
  0x18   :  { %223 = vmatprep.subr.bf16.mxu0 %v238_v7 }
  0x1b   :  { %224 = vmatpush3.bf16.msra.mxu0 %v238_v7 }
  0x1c   :  { %225 = vmatprep.subr.bf16.mxu0 %v239_v8 }
  0x1f   :  { %226 = vmatpush3.bf16.msra.mxu0 %v239_v8 }
  0x22   :  { %228 = vmatmul.mubr.bf16.vlgmr.msra.gmra.mxu0 %v241_v9 }
  0xe2   :  { %v229_v10 = vpop.f32.mrf.mxu0 }
  0xe3   :  { %v180_v13 = vadd.f32 %v229_v10, %v200_v11 }
  0xe4   :  { %v141_v12 = vpop.f32.mrf.mxu0 }
  0xe5   :  { %184 = vst [vmem:[%s310_s3 + $0x10] sm:$0xff] %v180_v13  ;;  %v178_v15 = vadd.f32 %v200_v11, %v141_v12 }
  0xe6   :  { %v230_v14 = vpop.f32.mrf.mxu0 }
  0xe7   :  { %182 = vst [vmem:[%s310_s3] sm:$0xff] %v178_v15  ;;  %v181_v17 = vadd.f32 %v230_v14, %v200_v11 }
  0xe8   :  { %v144_v16 = vpop.f32.mrf.mxu0 }
  0xe9   :  { %185 = vst [vmem:[%s310_s3 + $0x18] sm:$0xff] %v181_v17  ;;  %v179_v18 = vadd.f32 %v200_v11, %v144_v16 }
  0xeb   :  { %183 = vst [vmem:[%s310_s3 + $0x8] sm:$0xff] %v179_v18 }

// kernel: resnet18_forward.43
= control target key start
LH: loop header
LB: loop body
LE: loop exit
PB: predicated region body
PF: predicated region fallthrough
CT: control target
= control target key end

     0   :  { %s1037_s12 = smov 0   ;;  %s1039_s13 = smov 0   ;;  %s1201_s0 = inlined_call_operand.vmem [shape: bf16[32,1152], index: 0, kind: input, shape index: {}]   ;;  %s1202_s1 = inlined_call_operand.vmem [shape: bf16[1152,128], index: 1, kind: input, shape index: {}]   ;;  %s1203_s2 = inlined_call_operand.vmem [shape: f32[1,128], index: 2, kind: input, shape index: {}]   ;;  %s1204_s3 = inlined_call_operand.vmem [shape: f32[32,128], index: 3, kind: output, shape index: {}]  }
   0x1   :  { %s1041_s14 = smov 0   ;;  %s1043_s15 = smov 0  }
   0x2   :  { %s1045_s16 = smov 0  }
   0x3 LB: > { %s25_s17 = sadd.s32 1, %s1010_s15  ;;  %p48_p1 = scmp.ne.s32.totalorder %s1002_s13, %s998_s12  ;;  %s1014_s16 = sphi %s1045_s16, %s13_s16   ;;  %s1010_s15 = sphi %s1043_s15, %s1208_s15   ;;  %s1006_s14 = sphi %s1041_s14, %s1207_s14   ;;  %s1002_s13 = sphi %s1039_s13, %s1206_s13   ;;  %s998_s12 = sphi %s1037_s12, %s1205_s12  }
   0x4   : > { %p26_p0 = scmp.ge.s32.totalorder %s25_s17, 3  ;;  %p49_p2 = scmp.eq.s32.totalorder %s1014_s16, 0 }
   0x5   : > { %s41_s19 = sadd.s32 1, %s1002_s13  ;;  %p793_p5 = scmp.ge.s32.totalorder %s1014_s16, 3 }
   0x6   : > { %s1210_s17 = smov (%p26_p0, %s25_s17), 0  ;;  %p50_p3 = por %p49_p2, %p48_p1 }
   0x7   : > { %s37_s18 = ssub.s32 %s1010_s15, %s1210_s17  ;;  %162 = sbr.rel (%p793_p5) target bundleno = 21 (0x15), region = 20 }
   0x8   : > { %p39_p4 = scmp.eq.s32.totalorder %s37_s18, 0 }
   0xa   : > { %s1072_s20 = scalar_select %p39_p4, %s1002_s13, %s41_s19  }
   0xc   : > { %165 = sbr.rel (!%p50_p3) target bundleno = 21 (0x15), region = 24  ;;  %s167_s21 = sand.u32 (%p50_p3), 1, %s1002_s13  }
   0xd   : > { %s842_s22 = smul.u32 (%p50_p3), 12, %s1010_s15 }
   0xe   : > { %s901_s23 = smul.u32 (%p50_p3), 48, %s167_s21 }
   0xf   : > { %s175_s26 = scalar_lea.vmem (%p50_p3), %s1201_s0, %s842_s22 }
  0x10   : > { %v190_v0 = vld [vmem:[%s175_s26] sm:$0xff] (%p50_p3)  ;;  %v194_v2 = vld [vmem:[%s175_s26 + $0x48] sm:$0xff] (%p50_p3)  ;;  %s169_s27 = scalar_lea.vmem (%p50_p3), [#allocation2], %s901_s23  ;;  %v799_v6 = vld [vmem:[%s175_s26 + $0x50] sm:$0xf] (%p50_p3) }
  0x11   : > { %v192_v1 = vld [vmem:[%s175_s26 + $0x24] sm:$0xff]  ;;  %191 = vst [vmem:[%s169_s27] sm:$0xff] %v190_v0  ;;  %195 = vst [vmem:[%s169_s27 + $0x18] sm:$0xff] %v194_v2  ;;  %v196_v3 = vld [vmem:[%s175_s26 + $0x6c] sm:$0xff] }
  0x12   : > { %193 = vst [vmem:[%s169_s27 + $0xc] sm:$0xff] %v192_v1  ;;  %v795_v4 = vld [vmem:[%s175_s26 + $0x8] sm:$0xf]  ;;  %v797_v5 = vld [vmem:[%s175_s26 + $0x2c] sm:$0xf]  ;;  %197 = vst [vmem:[%s169_s27 + $0x24] sm:$0xff] %v196_v3 }
  0x13   : > { %796 = vst [vmem:[%s169_s27 + $0x8] sm:$0xf] %v795_v4  ;;  %798 = vst [vmem:[%s169_s27 + $0x14] sm:$0xf] %v797_v5  ;;  %v801_v7 = vld [vmem:[%s175_s26 + $0x74] sm:$0xf] }
  0x14   : > { %800 = vst [vmem:[%s169_s27 + $0x20] sm:$0xf] %v799_v6  ;;  %802 = vst [vmem:[%s169_s27 + $0x2c] sm:$0xf] %v801_v7 }
  0x15 PF: > { %p803_p6 = scmp.ge.s32.totalorder %s1014_s16, 1  ;;  %p230_p7 = scmp.lt.s32.totalorder %s1014_s16, 4 }
  0x17   : > { %p231_p8 = pnand %p803_p6, %p230_p7 }
  0x18   : > { %s237_s28 = sand.u32 (!%p231_p8), 1, %s998_s12   ;;  %s276_s29 = smul.u32 (!%p231_p8), 48, %s1006_s14 }
  0x19   : > { %234 = sbr.rel (%p231_p8) target bundleno = 297 (0x129), region = 54  ;;  %p805_p10 = scmp.ne.s32.totalorder (!%p231_p8), %s1006_s14, 0 }
  0x1a   : > { %s902_s30 = smul.u32 (!%p231_p8), 48, %s237_s28  ;;  %p277_p9 = scmp.lt.s32.totalorder (!%p231_p8), %s276_s29, 143 }
  0x1c   : > { %s1089_s8 = scalar_lea.vmem (!%p231_p8), [#allocation2], %s902_s30 }
  0x1e   : > { %s1212_s29 = smov (!%p277_p9, %s276_s29), 143  ;;  %301 = sbr.rel (%p805_p10) target bundleno = 38 (0x26), region = 62 }
  0x1f   : > { %s804_s4 = sshll.u32 %s1212_s29, 2 }
  0x20   : > { %s1087_s7 = scalar_lea.vmem %s1202_s1, %s804_s4 }
  0x23   : > { %v1016_v8 = vmov 0.0  }
  0x24   : > { %302 = vst [vmem:[%s1204_s3] sm:$0xff] %v1016_v8  ;;  %303 = vst [vmem:[%s1204_s3 + $0x8] sm:$0xff] %v1016_v8 }
  0x25   : > { %304 = vst [vmem:[%s1204_s3 + $0x10] sm:$0xff] %v1016_v8  ;;  %305 = vst [vmem:[%s1204_s3 + $0x18] sm:$0xff] %v1016_v8 }
  0x26 PF: > { %v944_v9 = vld [vmem:[%s1087_s7 + $0x78] sm:$0xff]   ;;  %v947_v12 = vld [vmem:[%s1087_s7 + $0x70] sm:$0xff]   ;;  %v950_v15 = vld [vmem:[%s1087_s7 + $0x68] sm:$0xff]   ;;  %p836_p11 = scmp.ne.s32.totalorder %s1006_s14, 2 }
  0x27   : > { %v945_v10 = vld [vmem:[%s1087_s7 + $0x38] sm:$0xff]   ;;  %843 = vmatprep.subr.bf16.mxu0 %v944_v9  ;;  %v948_v13 = vld [vmem:[%s1087_s7 + $0x30] sm:$0xff]   ;;  %v951_v16 = vld [vmem:[%s1087_s7 + $0x28] sm:$0xff]  }
  0x28   : > { %v946_v11 = vld [vmem:[%s1087_s7 + $0xb8] sm:$0xff]   ;;  %844 = vmatpush3.bf16.msra.mxu0 %v945_v10  ;;  %v949_v14 = vld [vmem:[%s1087_s7 + $0xb0] sm:$0xff]   ;;  %v952_v17 = vld [vmem:[%s1087_s7 + $0xa8] sm:$0xff]  }
  0x29   : > { %881 = vmatprep.subr.bf16.mxu1 %v946_v11  ;;  %845 = vmatprep.subr.bf16.mxu0 %v947_v12  ;;  %v953_v18 = vld [vmem:[%s1087_s7 + $0x60] sm:$0xff]   ;;  %v956_v21 = vld [vmem:[%s1087_s7 + $0x58] sm:$0xff]   ;;  %v959_v24 = vld [vmem:[%s1087_s7 + $0x50] sm:$0xff]  }
  0x2a   : > { %882 = vmatpush3.bf16.msra.mxu1 %v946_v11  ;;  %v954_v19 = vld [vmem:[%s1087_s7 + $0x20] sm:$0xff]   ;;  %v958_v22 = vld [vmem:[%s1087_s7 + $0x98] sm:$0xff]   ;;  %v961_v25 = vld [vmem:[%s1087_s7 + $0x90] sm:$0xff]  }
  0x2b   : > { %883 = vmatprep.subr.bf16.mxu1 %v949_v14  ;;  %v955_v20 = vld [vmem:[%s1087_s7 + $0xa0] sm:$0xff]   ;;  %v957_v23 = vld [vmem:[%s1087_s7 + $0x18] sm:$0xff]   ;;  %v960_v26 = vld [vmem:[%s1087_s7 + $0x10] sm:$0xff]  }
  0x2c   : > { %846 = vmatpush3.bf16.msra.mxu0 %v948_v13  ;;  %v962_v27 = vld [vmem:[%s1087_s7 + $0x48] sm:$0xff]   ;;  %v965_v30 = vld [vmem:[%s1087_s7 + $0x40] sm:$0xff]   ;;  %v308_v58 = vld [vmem:[%s1204_s3 + $0x10] sm:$0xff] }
  0x2d   : > { %847 = vmatprep.subr.bf16.mxu0 %v950_v15  ;;  %v963_v28 = vld [vmem:[%s1087_s7 + $0x8] sm:$0xff]   ;;  %v967_v31 = vld [vmem:[%s1087_s7 + $0x80] sm:$0xff]   ;;  %v309_v0 = vld [vmem:[%s1204_s3 + $0x18] sm:$0xff] }
  0x2e   : > { %884 = vmatpush3.bf16.msra.mxu1 %v949_v14  ;;  %v964_v29 = vld [vmem:[%s1087_s7 + $0x88] sm:$0xff]   ;;  %v970_v32 = vld [vmem:[%s1089_s8 + $0x4] ss:$12 sps:$4 sm:$0xff]  }
  0x2f   : > { %885 = vmatprep.subr.bf16.mxu1 %v952_v17  ;;  %v971_v33 = vld [vmem:[%s1089_s8 + $0x8] ss:$12 sps:$4 sm:$0xff]   ;;  %574 = vmatprep.mubr.bf16.mxu0 %v970_v32  ;;  %v968_v35 = vld [vmem:[%s1089_s8] ss:$12 sps:$4 sm:$0xff]   ;;  %v975_v38 = vld [vmem:[%s1089_s8 + $0x18] ss:$12 sps:$4 sm:$0xff]  }
  0x30   : > { %848 = vmatpush3.bf16.msra.mxu0 %v951_v16  ;;  %v966_v34 = vld [vmem:[%s1087_s7] sm:$0xff]   ;;  %897 = vmatprep.mubr.bf16.mxu1 %v971_v33  ;;  %v973_v36 = vld [vmem:[%s1089_s8 + $0x1c] ss:$12 sps:$4 sm:$0xff]  }
  0x31   : > { %849 = vmatprep.subr.bf16.mxu0 %v953_v18  ;;  %v972_v37 = vld [vmem:[%s1089_s8 + $0x20] ss:$12 sps:$4 sm:$0xff]  }
  0x32   : > { %886 = vmatpush3.bf16.msra.mxu1 %v952_v17  ;;  %v306_v44 = vld [vmem:[%s1204_s3] sm:$0xff]  ;;  %v307_v52 = vld [vmem:[%s1204_s3 + $0x8] sm:$0xff] }
  0x33   : > { %887 = vmatprep.subr.bf16.mxu1 %v955_v20 }
  0x34   : > { %850 = vmatpush3.bf16.msra.mxu0 %v954_v19 }
  0x35   : > { %851 = vmatprep.subr.bf16.mxu0 %v956_v21 }
  0x36   : > { %888 = vmatpush3.bf16.msra.mxu1 %v955_v20 }
  0x37   : > { %889 = vmatprep.subr.bf16.mxu1 %v958_v22 }
  0x38   : > { %852 = vmatpush3.bf16.msra.mxu0 %v957_v23 }
  0x39   : > { %853 = vmatprep.subr.bf16.mxu0 %v959_v24 }
  0x3a   : > { %890 = vmatpush3.bf16.msra.mxu1 %v958_v22 }
  0x3b   : > { %891 = vmatprep.subr.bf16.mxu1 %v961_v25 }
  0x3c   : > { %854 = vmatpush3.bf16.msra.mxu0 %v960_v26 }
  0x3d   : > { %855 = vmatprep.subr.bf16.mxu0 %v962_v27 }
  0x3e   : > { %892 = vmatpush3.bf16.msra.mxu1 %v961_v25 }
  0x3f   : > { %893 = vmatprep.subr.bf16.mxu1 %v964_v29 }
  0x40   : > { %856 = vmatpush3.bf16.msra.mxu0 %v963_v28 }
  0x41   : > { %857 = vmatprep.subr.bf16.mxu0 %v965_v30 }
  0x42   : > { %894 = vmatpush3.bf16.msra.mxu1 %v964_v29 }
  0x43   : > { %895 = vmatprep.subr.bf16.mxu1 %v967_v31 }
  0x44   : > { %858 = vmatpush3.bf16.msra.mxu0 %v966_v34 }
  0x46   : > { %896 = vmatpush3.bf16.msra.mxu1 %v967_v31 }
  0x47   : > { %575 = vmatmul.mubr.bf16.vlgmr.msra.gmra.mxu0 %v968_v35 }
  0x48   : > { %582 = vmatprep.mubr.bf16.mxu0 %v973_v36 }
  0x49   : > { %898 = vmatmul.mubr.bf16.vlgmr.msra.gmra.mxu1 %v972_v37 }
  0x4f   : > { %583 = vmatmul.mubr.bf16.gmra.mxu0 %v975_v38 }
 0x107   : > { %v859_v39 = vpop.f32.mrf.mxu0 }
 0x109   : > { %v860_v40 = vpop.f32.mrf.mxu0  ;;  %v899_v41 = vpop.f32.mrf.mxu1 }
 0x10a   : > { %v861_v42 = vadd.f32 %v860_v40, %v859_v39 }
 0x10b   : > { %v862_v43 = vpop.f32.mrf.mxu0  ;;  %v625_v45 = vpop.f32.mrf.mxu1 }
 0x10c   : > { %v626_v46 = vadd.f32 %v861_v42, %v625_v45 }
 0x10d   : > { %v863_v47 = vpop.f32.mrf.mxu0  ;;  %v900_v48 = vpop.f32.mrf.mxu1 }
 0x10e   : > { %v640_v49 = vadd.f32 %v626_v46, %v306_v44  ;;  %v864_v50 = vadd.f32 %v863_v47, %v862_v43 }
 0x10f   : > { %v865_v51 = vpop.f32.mrf.mxu0  ;;  %v628_v53 = vpop.f32.mrf.mxu1 }
 0x110   : > { %644 = vst [vmem:[%s1204_s3] sm:$0xff] %v640_v49  ;;  %v629_v54 = vadd.f32 %v864_v50, %v628_v53 }
 0x111   : > { %v866_v55 = vpop.f32.mrf.mxu0 }
 0x112   : > { %v641_v56 = vadd.f32 %v629_v54, %v307_v52  ;;  %v867_v57 = vadd.f32 %v866_v55, %v865_v51 }
 0x113   : > { %v868_v59 = vpop.f32.mrf.mxu0 }
 0x114   : > { %645 = vst [vmem:[%s1204_s3 + $0x8] sm:$0xff] %v641_v56  ;;  %v634_v60 = vadd.f32 %v899_v41, %v867_v57 }
 0x115   : > { %v869_v61 = vpop.f32.mrf.mxu0 }
 0x116   : > { %v642_v62 = vadd.f32 %v634_v60, %v308_v58  ;;  %v870_v63 = vadd.f32 %v869_v61, %v868_v59 }
 0x118   : > { %646 = vst [vmem:[%s1204_s3 + $0x10] sm:$0xff] %v642_v62  ;;  %v637_v1 = vadd.f32 %v900_v48, %v870_v63  ;;  %651 = sbr.rel (%p836_p11) target bundleno = 297 (0x129), region = 66 }
 0x11a   : > { %v643_v2 = vadd.f32 %v637_v1, %v309_v0 }
 0x11c   : > { %647 = vst [vmem:[%s1204_s3 + $0x18] sm:$0xff] %v643_v2 }
 0x11d   : > { %v652_v3 = vld [vmem:[%s1204_s3] sm:$0xff]  ;;  %v653_v5 = vld [vmem:[%s1204_s3 + $0x8] sm:$0xff] }
 0x11e   : > { %v837_v4 = vld [vmem:[%s1203_s2] ss:$0 sm:$0xff] }
 0x11f   : > { %v663_v6 = vadd.f32 %v837_v4, %v652_v3  ;;  %v664_v7 = vadd.f32 %v837_v4, %v653_v5  ;;  %v654_v8 = vld [vmem:[%s1204_s3 + $0x10] sm:$0xff] }
 0x120   : > { %v665_v10 = vadd.f32 %v837_v4, %v654_v8 }
 0x121   : > { %v667_v12 = vmax.f32 %v663_v6, 0.0  ;;  %v668_v13 = vmax.f32 %v664_v7, 0.0 }
 0x122   : > { %v669_v14 = vmax.f32 %v665_v10, 0.0 }
 0x123   : > { %v655_v9 = vld [vmem:[%s1204_s3 + $0x18] sm:$0xff]  ;;  %671 = vst [vmem:[%s1204_s3] sm:$0xff] %v667_v12  ;;  %672 = vst [vmem:[%s1204_s3 + $0x8] sm:$0xff] %v668_v13 }
 0x124   : > { %v666_v11 = vadd.f32 %v837_v4, %v655_v9  ;;  %673 = vst [vmem:[%s1204_s3 + $0x10] sm:$0xff] %v669_v14 }
 0x126   : > { %v670_v15 = vmax.f32 %v666_v11, 0.0 }
 0x128   : > { %674 = vst [vmem:[%s1204_s3 + $0x18] sm:$0xff] %v670_v15 }
 0x129 PF: > { %s13_s16 = sadd.s32 1, %s1014_s16   ;;  %s1205_s12 = smov %s1002_s13 }
 0x12a   : > { %p10_p12 = scmp.ge.s32.totalorder %s13_s16, 5   ;;  %s1206_s13 = smov %s1072_s20 }
 0x12b   : > { %s1207_s14 = smov %s1010_s15  ;;  %s1208_s15 = smov %s1210_s17 }
 0x12c   :  { %12 = sbr.rel (!%p10_p12) target bundleno = 3 (0x3), region = 113 }

// kernel: resnet18_forward.46
= control target key start
LH: loop header
LB: loop body
LE: loop exit
PB: predicated region body
PF: predicated region fallthrough
CT: control target
= control target key end

     0   :  { %s1027_s12 = smov 0   ;;  %s1029_s13 = smov 0   ;;  %s1153_s0 = inlined_call_operand.vmem [shape: bf16[8,1152], index: 0, kind: input, shape index: {}]   ;;  %s1154_s1 = inlined_call_operand.vmem [shape: bf16[1152,256], index: 1, kind: input, shape index: {}]   ;;  %s1155_s2 = inlined_call_operand.vmem [shape: f32[1,256], index: 2, kind: input, shape index: {}]   ;;  %s1156_s3 = inlined_call_operand.vmem [shape: f32[8,256], index: 3, kind: output, shape index: {}]  }
   0x1   :  { %s1031_s14 = smov 0  }
   0x2 LB: > { %s25_s15 = sadd.s32 1, %s999_s13  ;;  %p818_p0 = scmp.ge.s32.totalorder %s1003_s14, 1  ;;  %s1003_s14 = sphi %s1031_s14, %s13_s14   ;;  %s999_s13 = sphi %s1029_s13, %s1158_s13   ;;  %s995_s12 = sphi %s1027_s12, %s1157_s12  }
   0x3   : > { %p26_p1 = scmp.ge.s32.totalorder %s25_s15, 3  ;;  %p194_p2 = scmp.lt.s32.totalorder %s1003_s14, 4 }
   0x5   : > { %s1160_s15 = smov (%p26_p1, %s25_s15), 0  ;;  %p195_p3 = pnand %p818_p0, %p194_p2 }
   0x6   : > { %s240_s16 = smul.u32 (!%p195_p3), 3, %s995_s12  ;;  %p822_p6 = scmp.ne.s32.totalorder (!%p195_p3), %s995_s12, 0 }
   0x7   : > { %198 = sbr.rel (%p195_p3) target bundleno = 300 (0x12c), region = 32 }
   0x8   : > { %s250_s17 = smul.u32 (!%p195_p3), 48, %s995_s12  ;;  %p243_p4 = scmp.lt.s32.totalorder (!%p195_p3), %s240_s16, 8 }
   0xa   : > { %p252_p5 = scmp.lt.s32.totalorder (!%p195_p3), %s250_s17, 143 }
   0xc   : > { %s1162_s16 = smov (!%p243_p4, %s240_s16), 8  ;;  %s1164_s17 = smov (!%p252_p5, %s250_s17), 143 }
   0xd   : > { %s819_s18 = sshll.u32 %s1162_s16, 2  ;;  %s879_s22 = sshll.u32 %s1164_s17, 3 }
   0xe   : > { %s1052_s21 = scalar_lea.vmem %s1153_s0, %s819_s18  ;;  %s1057_s25 = scalar_lea.vmem %s1154_s1, %s879_s22 }
   0xf   : > { %281 = sbr.rel (%p822_p6) target bundleno = 22 (0x16), region = 36 }
  0x14   : > { %v1005_v0 = vmov 0.0  }
  0x15   : > { %282 = vst [vmem:[%s1156_s3] sm:$0xff] %v1005_v0  ;;  %283 = vst [vmem:[%s1156_s3 + $0x8] sm:$0xff] %v1005_v0 }
  0x16 PF: > { %v906_v1 = vld [vmem:[%s1057_s25 + $0x74] ss:$8 sps:$4 sm:$0xff]   ;;  %v908_v2 = vld [vmem:[%s1057_s25 + $0x70] ss:$8 sps:$4 sm:$0xff]   ;;  %v1006_v3 = vmov 0   ;;  %v286_v34 = vld [vmem:[%s1052_s21] sm:$0xff] }
  0x17   : > { %660 = vmatprep.mubr.bf16.mxu1 %v1006_v3  ;;  %587 = vmatprep.subr.bf16.mxu0 %v906_v1  ;;  %v909_v4 = vld [vmem:[%s1057_s25 + $0x64] ss:$8 sps:$4 sm:$0xff]   ;;  %v911_v5 = vld [vmem:[%s1057_s25 + $0x60] ss:$8 sps:$4 sm:$0xff]   ;;  %v912_v6 = vld [vmem:[%s1057_s25 + $0x54] ss:$8 sps:$4 sm:$0xff]   ;;  %v824_v36 = vcombine.high %v286_v34, %v286_v34  ;;  %v823_v53 = vcombine.low %v286_v34, %v286_v34 }
  0x18   : > { %588 = vmatpush1.bf16.msra.mxu0 %v908_v2  ;;  %v914_v7 = vld [vmem:[%s1057_s25 + $0x50] ss:$8 sps:$4 sm:$0xff]   ;;  %v915_v8 = vld [vmem:[%s1057_s25 + $0x44] ss:$8 sps:$4 sm:$0xff]   ;;  %v927_v9 = vld [vmem:[%s1057_s25 + $0x174] ss:$8 sps:$4 sm:$0xff]  }
  0x19   : > { %589 = vmatprep.subr.bf16.mxu0 %v909_v4  ;;  %v929_v10 = vld [vmem:[%s1057_s25 + $0x170] ss:$8 sps:$4 sm:$0xff]   ;;  %v917_v11 = vld [vmem:[%s1057_s25 + $0x40] ss:$8 sps:$4 sm:$0xff]   ;;  %v918_v12 = vld [vmem:[%s1057_s25 + $0x34] ss:$8 sps:$4 sm:$0xff]   ;;  %628 = vmatprep.subr.bf16.mxu1 %v927_v9 }
  0x1a   : > { %v933_v13 = vld [vmem:[%s1057_s25 + $0x164] ss:$8 sps:$4 sm:$0xff]   ;;  %629 = vmatpush1.bf16.msra.mxu1 %v929_v10  ;;  %v935_v14 = vld [vmem:[%s1057_s25 + $0x160] ss:$8 sps:$4 sm:$0xff]   ;;  %v920_v15 = vld [vmem:[%s1057_s25 + $0x30] ss:$8 sps:$4 sm:$0xff]   ;;  %619 = vmatprep.mubr.bf16.mxu0 %v824_v36 }
  0x1b   : > { %630 = vmatprep.subr.bf16.mxu1 %v933_v13  ;;  %v939_v16 = vld [vmem:[%s1057_s25 + $0x154] ss:$8 sps:$4 sm:$0xff]   ;;  %v921_v17 = vld [vmem:[%s1057_s25 + $0x24] ss:$8 sps:$4 sm:$0xff]   ;;  %v941_v18 = vld [vmem:[%s1057_s25 + $0x150] ss:$8 sps:$4 sm:$0xff]  }
  0x1c   : > { %590 = vmatpush1.bf16.msra.mxu0 %v911_v5  ;;  %v945_v19 = vld [vmem:[%s1057_s25 + $0x144] ss:$8 sps:$4 sm:$0xff]   ;;  %v923_v20 = vld [vmem:[%s1057_s25 + $0x20] ss:$8 sps:$4 sm:$0xff]   ;;  %v924_v21 = vld [vmem:[%s1057_s25 + $0x14] ss:$8 sps:$4 sm:$0xff]  }
  0x1d   : > { %591 = vmatprep.subr.bf16.mxu0 %v912_v6  ;;  %v947_v22 = vld [vmem:[%s1057_s25 + $0x140] ss:$8 sps:$4 sm:$0xff]   ;;  %v951_v23 = vld [vmem:[%s1057_s25 + $0x134] ss:$8 sps:$4 sm:$0xff]   ;;  %v926_v24 = vld [vmem:[%s1057_s25 + $0x10] ss:$8 sps:$4 sm:$0xff]  }
  0x1e   : > { %631 = vmatpush1.bf16.msra.mxu1 %v935_v14  ;;  %v930_v25 = vld [vmem:[%s1057_s25 + $0x4] ss:$8 sps:$4 sm:$0xff]   ;;  %v953_v26 = vld [vmem:[%s1057_s25 + $0x130] ss:$8 sps:$4 sm:$0xff]   ;;  %v932_v28 = vld [vmem:[%s1057_s25] ss:$8 sps:$4 sm:$0xff]  }
  0x1f   : > { %632 = vmatprep.subr.bf16.mxu1 %v939_v16  ;;  %v957_v27 = vld [vmem:[%s1057_s25 + $0x124] ss:$8 sps:$4 sm:$0xff]   ;;  %v936_v29 = vld [vmem:[%s1057_s25 + $0xf4] ss:$8 sps:$4 sm:$0xff]   ;;  %v959_v30 = vld [vmem:[%s1057_s25 + $0x120] ss:$8 sps:$4 sm:$0xff]  }
  0x20   : > { %592 = vmatpush1.bf16.msra.mxu0 %v914_v7  ;;  %v963_v31 = vld [vmem:[%s1057_s25 + $0x114] ss:$8 sps:$4 sm:$0xff]   ;;  %v938_v32 = vld [vmem:[%s1057_s25 + $0xf0] ss:$8 sps:$4 sm:$0xff]   ;;  %v942_v33 = vld [vmem:[%s1057_s25 + $0xe4] ss:$8 sps:$4 sm:$0xff]  }
  0x21   : > { %593 = vmatprep.subr.bf16.mxu0 %v915_v8  ;;  %v965_v35 = vld [vmem:[%s1057_s25 + $0x110] ss:$8 sps:$4 sm:$0xff]   ;;  %v969_v37 = vld [vmem:[%s1057_s25 + $0x104] ss:$8 sps:$4 sm:$0xff]   ;;  %v944_v38 = vld [vmem:[%s1057_s25 + $0xe0] ss:$8 sps:$4 sm:$0xff]  }
  0x22   : > { %633 = vmatpush1.bf16.msra.mxu1 %v941_v18  ;;  %v948_v39 = vld [vmem:[%s1057_s25 + $0xd4] ss:$8 sps:$4 sm:$0xff]   ;;  %v971_v40 = vld [vmem:[%s1057_s25 + $0x100] ss:$8 sps:$4 sm:$0xff]   ;;  %v950_v41 = vld [vmem:[%s1057_s25 + $0xd0] ss:$8 sps:$4 sm:$0xff]  }
  0x23   : > { %634 = vmatprep.subr.bf16.mxu1 %v945_v19  ;;  %v954_v42 = vld [vmem:[%s1057_s25 + $0xc4] ss:$8 sps:$4 sm:$0xff]   ;;  %v975_v43 = vld [vmem:[%s1052_s21 + $0x8] ss:$0 sps:$4 sm:$0xff]   ;;  %v960_v45 = vld [vmem:[%s1057_s25 + $0xb4] ss:$8 sps:$4 sm:$0xff]  }
  0x24   : > { %594 = vmatpush1.bf16.msra.mxu0 %v917_v11  ;;  %v956_v44 = vld [vmem:[%s1057_s25 + $0xc0] ss:$8 sps:$4 sm:$0xff]   ;;  %v962_v46 = vld [vmem:[%s1057_s25 + $0xb0] ss:$8 sps:$4 sm:$0xff]   ;;  %v966_v47 = vld [vmem:[%s1057_s25 + $0xa4] ss:$8 sps:$4 sm:$0xff]  }
  0x25   : > { %595 = vmatprep.subr.bf16.mxu0 %v918_v12  ;;  %v968_v48 = vld [vmem:[%s1057_s25 + $0xa0] ss:$8 sps:$4 sm:$0xff]   ;;  %v972_v49 = vld [vmem:[%s1057_s25 + $0x94] ss:$8 sps:$4 sm:$0xff]   ;;  %v974_v50 = vld [vmem:[%s1057_s25 + $0x90] ss:$8 sps:$4 sm:$0xff]  }
  0x26   : > { %635 = vmatpush1.bf16.msra.mxu1 %v947_v22  ;;  %v976_v51 = vld [vmem:[%s1057_s25 + $0x84] ss:$8 sps:$4 sm:$0xff]   ;;  %v978_v52 = vld [vmem:[%s1057_s25 + $0x80] ss:$8 sps:$4 sm:$0xff]   ;;  %p874_p7 = scmp.ne.s32.totalorder %s995_s12, 2 }
  0x27   : > { %636 = vmatprep.subr.bf16.mxu1 %v951_v23  ;;  %v284_v58 = vld [vmem:[%s1156_s3] sm:$0xff]  ;;  %v285_v61 = vld [vmem:[%s1156_s3 + $0x8] sm:$0xff] }
  0x28   : > { %596 = vmatpush1.bf16.msra.mxu0 %v920_v15 }
  0x29   : > { %597 = vmatprep.subr.bf16.mxu0 %v921_v17 }
  0x2a   : > { %637 = vmatpush1.bf16.msra.mxu1 %v953_v26 }
  0x2b   : > { %638 = vmatprep.subr.bf16.mxu1 %v957_v27 }
  0x2c   : > { %598 = vmatpush1.bf16.msra.mxu0 %v923_v20 }
  0x2d   : > { %599 = vmatprep.subr.bf16.mxu0 %v924_v21 }
  0x2e   : > { %639 = vmatpush1.bf16.msra.mxu1 %v959_v30 }
  0x2f   : > { %640 = vmatprep.subr.bf16.mxu1 %v963_v31 }
  0x30   : > { %600 = vmatpush1.bf16.msra.mxu0 %v926_v24 }
  0x31   : > { %601 = vmatprep.subr.bf16.mxu0 %v930_v25 }
  0x32   : > { %641 = vmatpush1.bf16.msra.mxu1 %v965_v35 }
  0x33   : > { %642 = vmatprep.subr.bf16.mxu1 %v969_v37 }
  0x34   : > { %602 = vmatpush1.bf16.msra.mxu0 %v932_v28 }
  0x35   : > { %603 = vmatprep.subr.bf16.mxu0 %v936_v29 }
  0x36   : > { %643 = vmatpush1.bf16.msra.mxu1 %v971_v40 }
  0x38   : > { %604 = vmatpush2.bf16.msra.mxu0 %v938_v32 }
  0x39   : > { %605 = vmatprep.subr.bf16.mxu0 %v942_v33  ;;  %661 = vmatmul.mubr.bf16.vlgmr.msra.gmra.mxu1 %v975_v43 }
  0x3c   : > { %606 = vmatpush2.bf16.msra.mxu0 %v944_v38 }
  0x3d   : > { %607 = vmatprep.subr.bf16.mxu0 %v948_v39 }
  0x40   : > { %608 = vmatpush2.bf16.msra.mxu0 %v950_v41 }
  0x41   : > { %609 = vmatprep.subr.bf16.mxu0 %v954_v42 }
  0x44   : > { %610 = vmatpush2.bf16.msra.mxu0 %v956_v44 }
  0x45   : > { %611 = vmatprep.subr.bf16.mxu0 %v960_v45 }
  0x48   : > { %612 = vmatpush2.bf16.msra.mxu0 %v962_v46 }
  0x49   : > { %613 = vmatprep.subr.bf16.mxu0 %v966_v47 }
  0x4c   : > { %614 = vmatpush2.bf16.msra.mxu0 %v968_v48 }
  0x4d   : > { %615 = vmatprep.subr.bf16.mxu0 %v972_v49 }
  0x50   : > { %616 = vmatpush2.bf16.msra.mxu0 %v974_v50 }
  0x51   : > { %617 = vmatprep.subr.bf16.mxu0 %v976_v51 }
  0x54   : > { %618 = vmatpush2.bf16.msra.mxu0 %v978_v52 }
  0x57   : > { %620 = vmatmul.mubr.bf16.vlgmr.msra.gmra.mxu0 %v823_v53 }
  0xf9   : > { %v662_v54 = vpop.f32.mrf.mxu1 }
  0xfb   : > { %v664_v55 = vpop.f32.mrf.mxu1 }
  0xfd   : > { %v666_v56 = vpop.f32.mrf.mxu1 }
  0xff   : > { %v667_v57 = vpop.f32.mrf.mxu1 }
 0x117   : > { %v621_v59 = vpop.f32.mrf.mxu0 }
 0x118   : > { %v663_v60 = vadd.f32 %v662_v54, %v621_v59 }
 0x119   : > { %v623_v62 = vpop.f32.mrf.mxu0 }
 0x11a   : > { %v669_v63 = vadd.f32 %v663_v60, %v284_v58  ;;  %v665_v0 = vadd.f32 %v664_v55, %v623_v62  ;;  %676 = sbr.rel (%p874_p7) target bundleno = 300 (0x12c), region = 40 }
 0x11b   : > { %v625_v1 = vpop.f32.mrf.mxu0 }
 0x11c   : > { %671 = vst [vmem:[%s1156_s3] sm:$0xff] %v669_v63  ;;  %v670_v2 = vadd.f32 %v665_v0, %v285_v61 }
 0x11d   : > { %v626_v3 = vpop.f32.mrf.mxu0 }
 0x11e   : > { %672 = vst [vmem:[%s1156_s3 + $0x8] sm:$0xff] %v670_v2 }
 0x11f   : > { %v681_v4 = vlaneseq  ;;  %v679_v6 = vld [vmem:[%s1155_s2] sm:$0x3] }
 0x121   : > { %v682_v5 = vshrl.u32 %v681_v4, 7 }
 0x123   : > { %v683_v7 = vsub.s32 0, %v682_v5  ;;  %v687_v8 = vsub.s32 1, %v682_v5  ;;  %v677_v9 = vld [vmem:[%s1156_s3] sm:$0xff] }
 0x125   : > { %v678_v10 = vld [vmem:[%s1156_s3 + $0x8] sm:$0xff]  ;;  %v684_v11 = vrot.slane %v679_v6, %v683_v7  ;;  %v688_v12 = vrot.slane %v679_v6, %v687_v8 }
 0x127   : > { %v691_v13 = vadd.f32 %v684_v11, %v677_v9  ;;  %v692_v14 = vadd.f32 %v688_v12, %v678_v10 }
 0x129   : > { %v693_v15 = vmax.f32 %v691_v13, 0.0  ;;  %v694_v16 = vmax.f32 %v692_v14, 0.0 }
 0x12b   : > { %695 = vst [vmem:[%s1156_s3] sm:$0xff] %v693_v15  ;;  %696 = vst [vmem:[%s1156_s3 + $0x8] sm:$0xff] %v694_v16 }
 0x12c PF: > { %s13_s14 = sadd.s32 1, %s1003_s14   ;;  %s1157_s12 = smov %s999_s13 }
 0x12d   : > { %p10_p8 = scmp.ge.s32.totalorder %s13_s14, 5   ;;  %s1158_s13 = smov %s1160_s15 }
 0x12f   :  { %12 = sbr.rel (!%p10_p8) target bundleno = 2 (0x2), region = 76 }

// kernel: resnet18_forward.48
= control target key start
LH: loop header
LB: loop body
LE: loop exit
PB: predicated region body
PF: predicated region fallthrough
CT: control target
= control target key end

     0   :  { %v232_v1 = vmov 0   ;;  %v172_v18 = vlaneseq  ;;  %s313_s1 = inlined_call_operand.vmem [shape: bf16[128,256], index: 1, kind: input, shape index: {}]   ;;  %s314_s0 = inlined_call_operand.vmem [shape: bf16[8,128], index: 0, kind: input, shape index: {}]   ;;  %s315_s2 = inlined_call_operand.vmem [shape: f32[1,256], index: 2, kind: input, shape index: {}]   ;;  %s316_s3 = inlined_call_operand.vmem [shape: f32[8,256], index: 3, kind: output, shape index: {}]  }
   0x1   :  { %v208_v0 = vld [vmem:[%s313_s1 + $0x74] ss:$8 sps:$4 sm:$0xff]   ;;  %152 = vmatprep.mubr.bf16.mxu0 %v232_v1  ;;  %v210_v2 = vld [vmem:[%s313_s1 + $0x70] ss:$8 sps:$4 sm:$0xff]   ;;  %v211_v3 = vld [vmem:[%s313_s1 + $0x64] ss:$8 sps:$4 sm:$0xff]  }
   0x2   :  { %120 = vmatprep.subr.bf16.mxu0 %v208_v0  ;;  %v213_v4 = vld [vmem:[%s313_s1 + $0x60] ss:$8 sps:$4 sm:$0xff]   ;;  %v214_v5 = vld [vmem:[%s313_s1 + $0x54] ss:$8 sps:$4 sm:$0xff]   ;;  %v216_v6 = vld [vmem:[%s313_s1 + $0x50] ss:$8 sps:$4 sm:$0xff]  }
   0x3   :  { %121 = vmatpush1.bf16.msra.mxu0 %v210_v2  ;;  %v217_v7 = vld [vmem:[%s313_s1 + $0x44] ss:$8 sps:$4 sm:$0xff]   ;;  %v219_v8 = vld [vmem:[%s313_s1 + $0x40] ss:$8 sps:$4 sm:$0xff]   ;;  %v220_v9 = vld [vmem:[%s313_s1 + $0x34] ss:$8 sps:$4 sm:$0xff]  }
   0x4   :  { %122 = vmatprep.subr.bf16.mxu0 %v211_v3  ;;  %v222_v10 = vld [vmem:[%s313_s1 + $0x30] ss:$8 sps:$4 sm:$0xff]   ;;  %v223_v11 = vld [vmem:[%s313_s1 + $0x24] ss:$8 sps:$4 sm:$0xff]   ;;  %v225_v12 = vld [vmem:[%s313_s1 + $0x20] ss:$8 sps:$4 sm:$0xff]  }
   0x5   :  { %v226_v13 = vld [vmem:[%s313_s1 + $0x14] ss:$8 sps:$4 sm:$0xff]   ;;  %v228_v14 = vld [vmem:[%s313_s1 + $0x10] ss:$8 sps:$4 sm:$0xff]   ;;  %v229_v15 = vld [vmem:[%s313_s1 + $0x4] ss:$8 sps:$4 sm:$0xff]  }
   0x6   :  { %v231_v16 = vld [vmem:[%s313_s1] ss:$8 sps:$4 sm:$0xff]   ;;  %v173_v19 = vshrl.u32 %v172_v18, 7 }
   0x7   :  { %123 = vmatpush1.bf16.msra.mxu0 %v213_v4  ;;  %v23_v17 = vld [vmem:[%s314_s0] sm:$0xf] }
   0x8   :  { %124 = vmatprep.subr.bf16.mxu0 %v214_v5  ;;  %v174_v20 = vsub.s32 0, %v173_v19  ;;  %v170_v21 = vld [vmem:[%s315_s2] sm:$0x3]  ;;  %v178_v22 = vsub.s32 1, %v173_v19 }
   0xa   :  { %v175_v23 = vrot.slane %v170_v21, %v174_v20  ;;  %v179_v25 = vrot.slane %v170_v21, %v178_v22 }
   0xb   :  { %125 = vmatpush1.bf16.msra.mxu0 %v216_v6 }
   0xc   :  { %126 = vmatprep.subr.bf16.mxu0 %v217_v7 }
   0xf   :  { %127 = vmatpush1.bf16.msra.mxu0 %v219_v8 }
  0x10   :  { %128 = vmatprep.subr.bf16.mxu0 %v220_v9 }
  0x13   :  { %129 = vmatpush1.bf16.msra.mxu0 %v222_v10 }
  0x14   :  { %130 = vmatprep.subr.bf16.mxu0 %v223_v11 }
  0x17   :  { %131 = vmatpush1.bf16.msra.mxu0 %v225_v12 }
  0x18   :  { %132 = vmatprep.subr.bf16.mxu0 %v226_v13 }
  0x1b   :  { %133 = vmatpush1.bf16.msra.mxu0 %v228_v14 }
  0x1c   :  { %134 = vmatprep.subr.bf16.mxu0 %v229_v15 }
  0x1f   :  { %135 = vmatpush1.bf16.msra.mxu0 %v231_v16 }
  0x22   :  { %153 = vmatmul.mubr.bf16.vlgmr.msra.gmra.mxu0 %v23_v17 }
  0xe2   :  { %v154_v24 = vpop.f32.mrf.mxu0 }
  0xe3   :  { %v182_v27 = vadd.f32 %v175_v23, %v154_v24 }
  0xe4   :  { %v156_v26 = vpop.f32.mrf.mxu0 }
  0xe5   :  { %184 = vst [vmem:[%s316_s3] sm:$0xff] %v182_v27  ;;  %v183_v29 = vadd.f32 %v179_v25, %v156_v26 }
  0xe6   :  { %v158_v28 = vpop.f32.mrf.mxu0 }
  0xe7   :  { %185 = vst [vmem:[%s316_s3 + $0x8] sm:$0xff] %v183_v29 }
  0xe8   :  { %v159_v30 = vpop.f32.mrf.mxu0 }

// kernel: resnet18_forward.49
= control target key start
LH: loop header
LB: loop body
LE: loop exit
PB: predicated region body
PF: predicated region fallthrough
CT: control target
= control target key end

     0   :  { %s58_s0 = inlined_call_operand.vmem [shape: f32[8,256], index: 0, kind: input, shape index: {}]   ;;  %s59_s1 = inlined_call_operand.vmem [shape: f32[8,256], index: 1, kind: input, shape index: {}]   ;;  %s60_s2 = inlined_call_operand.vmem [shape: f32[8,256], index: 2, kind: output, shape index: {}]  }
   0x1   :  { %v11_v0 = vld [vmem:[%s58_s0] sm:$0xff]  ;;  %v12_v2 = vld [vmem:[%s58_s0 + $0x8] sm:$0xff] }
   0x2   :  { %v13_v1 = vld [vmem:[%s59_s1] sm:$0xff]  ;;  %v14_v4 = vld [vmem:[%s59_s1 + $0x8] sm:$0xff] }
   0x3   :  { %v15_v3 = vadd.f32 %v13_v1, %v11_v0  ;;  %v16_v5 = vadd.f32 %v14_v4, %v12_v2 }
   0x5   :  { %v17_v6 = vmax.f32 %v15_v3, 0.0  ;;  %v18_v7 = vmax.f32 %v16_v5, 0.0 }
   0x7   :  { %19 = vst [vmem:[%s60_s2] sm:$0xff] %v17_v6  ;;  %20 = vst [vmem:[%s60_s2 + $0x8] sm:$0xff] %v18_v7 }

// kernel: resnet18_forward.47
= control target key start
LH: loop header
LB: loop body
LE: loop exit
PB: predicated region body
PF: predicated region fallthrough
CT: control target
= control target key end

     0   :  { %s1025_s12 = smov 0   ;;  %s1027_s13 = smov 0   ;;  %s1151_s0 = inlined_call_operand.vmem [shape: bf16[8,2304], index: 0, kind: input, shape index: {}]   ;;  %s1152_s1 = inlined_call_operand.vmem [shape: bf16[2304,256], index: 1, kind: input, shape index: {}]   ;;  %s1153_s2 = inlined_call_operand.vmem [shape: f32[1,256], index: 2, kind: input, shape index: {}]   ;;  %s1154_s3 = inlined_call_operand.vmem [shape: f32[8,256], index: 3, kind: output, shape index: {}]  }
   0x1   :  { %s1029_s14 = smov 0  }
   0x2 LB: > { %s25_s15 = sadd.s32 1, %s997_s13  ;;  %p816_p0 = scmp.ge.s32.totalorder %s1001_s14, 1  ;;  %s1001_s14 = sphi %s1029_s14, %s13_s14   ;;  %s997_s13 = sphi %s1027_s13, %s1156_s13   ;;  %s993_s12 = sphi %s1025_s12, %s1155_s12  }
   0x3   : > { %p26_p1 = scmp.ge.s32.totalorder %s25_s15, 6  ;;  %p194_p2 = scmp.lt.s32.totalorder %s1001_s14, 7 }
   0x5   : > { %s1158_s15 = smov (%p26_p1, %s25_s15), 0  ;;  %p195_p3 = pnand %p816_p0, %p194_p2 }
   0x6   : > { %s240_s16 = smul.u32 (!%p195_p3), 3, %s993_s12  ;;  %p820_p6 = scmp.ne.s32.totalorder (!%p195_p3), %s993_s12, 0 }
   0x7   : > { %198 = sbr.rel (%p195_p3) target bundleno = 298 (0x12a), region = 32 }
   0x8   : > { %s250_s17 = smul.u32 (!%p195_p3), 48, %s993_s12  ;;  %p243_p4 = scmp.lt.s32.totalorder (!%p195_p3), %s240_s16, 17 }
   0xa   : > { %p252_p5 = scmp.lt.s32.totalorder (!%p195_p3), %s250_s17, 287 }
   0xc   : > { %s1160_s16 = smov (!%p243_p4, %s240_s16), 17  ;;  %s1162_s17 = smov (!%p252_p5, %s250_s17), 287 }
   0xd   : > { %s817_s18 = sshll.u32 %s1160_s16, 2  ;;  %s877_s22 = sshll.u32 %s1162_s17, 3 }
   0xe   : > { %s1050_s21 = scalar_lea.vmem %s1151_s0, %s817_s18  ;;  %s1055_s25 = scalar_lea.vmem %s1152_s1, %s877_s22 }
   0xf   : > { %281 = sbr.rel (%p820_p6) target bundleno = 22 (0x16), region = 36 }
  0x14   : > { %v1003_v0 = vmov 0.0  }
  0x15   : > { %282 = vst [vmem:[%s1154_s3] sm:$0xff] %v1003_v0  ;;  %283 = vst [vmem:[%s1154_s3 + $0x8] sm:$0xff] %v1003_v0 }
  0x16 PF: > { %v904_v1 = vld [vmem:[%s1055_s25 + $0x74] ss:$8 sps:$4 sm:$0xff]   ;;  %v906_v2 = vld [vmem:[%s1055_s25 + $0x70] ss:$8 sps:$4 sm:$0xff]   ;;  %v1004_v3 = vmov 0   ;;  %v286_v34 = vld [vmem:[%s1050_s21] sm:$0xff] }
  0x17   : > { %660 = vmatprep.mubr.bf16.mxu1 %v1004_v3  ;;  %587 = vmatprep.subr.bf16.mxu0 %v904_v1  ;;  %v907_v4 = vld [vmem:[%s1055_s25 + $0x64] ss:$8 sps:$4 sm:$0xff]   ;;  %v909_v5 = vld [vmem:[%s1055_s25 + $0x60] ss:$8 sps:$4 sm:$0xff]   ;;  %v910_v6 = vld [vmem:[%s1055_s25 + $0x54] ss:$8 sps:$4 sm:$0xff]   ;;  %v822_v36 = vcombine.high %v286_v34, %v286_v34  ;;  %v821_v53 = vcombine.low %v286_v34, %v286_v34 }
  0x18   : > { %588 = vmatpush1.bf16.msra.mxu0 %v906_v2  ;;  %v912_v7 = vld [vmem:[%s1055_s25 + $0x50] ss:$8 sps:$4 sm:$0xff]   ;;  %v913_v8 = vld [vmem:[%s1055_s25 + $0x44] ss:$8 sps:$4 sm:$0xff]   ;;  %v925_v9 = vld [vmem:[%s1055_s25 + $0x174] ss:$8 sps:$4 sm:$0xff]  }
  0x19   : > { %589 = vmatprep.subr.bf16.mxu0 %v907_v4  ;;  %v927_v10 = vld [vmem:[%s1055_s25 + $0x170] ss:$8 sps:$4 sm:$0xff]   ;;  %v915_v11 = vld [vmem:[%s1055_s25 + $0x40] ss:$8 sps:$4 sm:$0xff]   ;;  %v916_v12 = vld [vmem:[%s1055_s25 + $0x34] ss:$8 sps:$4 sm:$0xff]   ;;  %628 = vmatprep.subr.bf16.mxu1 %v925_v9 }
  0x1a   : > { %v931_v13 = vld [vmem:[%s1055_s25 + $0x164] ss:$8 sps:$4 sm:$0xff]   ;;  %629 = vmatpush1.bf16.msra.mxu1 %v927_v10  ;;  %v933_v14 = vld [vmem:[%s1055_s25 + $0x160] ss:$8 sps:$4 sm:$0xff]   ;;  %v918_v15 = vld [vmem:[%s1055_s25 + $0x30] ss:$8 sps:$4 sm:$0xff]   ;;  %619 = vmatprep.mubr.bf16.mxu0 %v822_v36 }
  0x1b   : > { %630 = vmatprep.subr.bf16.mxu1 %v931_v13  ;;  %v937_v16 = vld [vmem:[%s1055_s25 + $0x154] ss:$8 sps:$4 sm:$0xff]   ;;  %v919_v17 = vld [vmem:[%s1055_s25 + $0x24] ss:$8 sps:$4 sm:$0xff]   ;;  %v939_v18 = vld [vmem:[%s1055_s25 + $0x150] ss:$8 sps:$4 sm:$0xff]  }
  0x1c   : > { %590 = vmatpush1.bf16.msra.mxu0 %v909_v5  ;;  %v943_v19 = vld [vmem:[%s1055_s25 + $0x144] ss:$8 sps:$4 sm:$0xff]   ;;  %v921_v20 = vld [vmem:[%s1055_s25 + $0x20] ss:$8 sps:$4 sm:$0xff]   ;;  %v922_v21 = vld [vmem:[%s1055_s25 + $0x14] ss:$8 sps:$4 sm:$0xff]  }
  0x1d   : > { %591 = vmatprep.subr.bf16.mxu0 %v910_v6  ;;  %v945_v22 = vld [vmem:[%s1055_s25 + $0x140] ss:$8 sps:$4 sm:$0xff]   ;;  %v949_v23 = vld [vmem:[%s1055_s25 + $0x134] ss:$8 sps:$4 sm:$0xff]   ;;  %v924_v24 = vld [vmem:[%s1055_s25 + $0x10] ss:$8 sps:$4 sm:$0xff]  }
  0x1e   : > { %631 = vmatpush1.bf16.msra.mxu1 %v933_v14  ;;  %v928_v25 = vld [vmem:[%s1055_s25 + $0x4] ss:$8 sps:$4 sm:$0xff]   ;;  %v951_v26 = vld [vmem:[%s1055_s25 + $0x130] ss:$8 sps:$4 sm:$0xff]   ;;  %v930_v28 = vld [vmem:[%s1055_s25] ss:$8 sps:$4 sm:$0xff]  }
  0x1f   : > { %632 = vmatprep.subr.bf16.mxu1 %v937_v16  ;;  %v955_v27 = vld [vmem:[%s1055_s25 + $0x124] ss:$8 sps:$4 sm:$0xff]   ;;  %v934_v29 = vld [vmem:[%s1055_s25 + $0xf4] ss:$8 sps:$4 sm:$0xff]   ;;  %v957_v30 = vld [vmem:[%s1055_s25 + $0x120] ss:$8 sps:$4 sm:$0xff]  }
  0x20   : > { %592 = vmatpush1.bf16.msra.mxu0 %v912_v7  ;;  %v961_v31 = vld [vmem:[%s1055_s25 + $0x114] ss:$8 sps:$4 sm:$0xff]   ;;  %v936_v32 = vld [vmem:[%s1055_s25 + $0xf0] ss:$8 sps:$4 sm:$0xff]   ;;  %v940_v33 = vld [vmem:[%s1055_s25 + $0xe4] ss:$8 sps:$4 sm:$0xff]  }
  0x21   : > { %593 = vmatprep.subr.bf16.mxu0 %v913_v8  ;;  %v963_v35 = vld [vmem:[%s1055_s25 + $0x110] ss:$8 sps:$4 sm:$0xff]   ;;  %v967_v37 = vld [vmem:[%s1055_s25 + $0x104] ss:$8 sps:$4 sm:$0xff]   ;;  %v942_v38 = vld [vmem:[%s1055_s25 + $0xe0] ss:$8 sps:$4 sm:$0xff]  }
  0x22   : > { %633 = vmatpush1.bf16.msra.mxu1 %v939_v18  ;;  %v946_v39 = vld [vmem:[%s1055_s25 + $0xd4] ss:$8 sps:$4 sm:$0xff]   ;;  %v969_v40 = vld [vmem:[%s1055_s25 + $0x100] ss:$8 sps:$4 sm:$0xff]   ;;  %v948_v41 = vld [vmem:[%s1055_s25 + $0xd0] ss:$8 sps:$4 sm:$0xff]  }
  0x23   : > { %634 = vmatprep.subr.bf16.mxu1 %v943_v19  ;;  %v952_v42 = vld [vmem:[%s1055_s25 + $0xc4] ss:$8 sps:$4 sm:$0xff]   ;;  %v973_v43 = vld [vmem:[%s1050_s21 + $0x8] ss:$0 sps:$4 sm:$0xff]   ;;  %v958_v45 = vld [vmem:[%s1055_s25 + $0xb4] ss:$8 sps:$4 sm:$0xff]  }
  0x24   : > { %594 = vmatpush1.bf16.msra.mxu0 %v915_v11  ;;  %v954_v44 = vld [vmem:[%s1055_s25 + $0xc0] ss:$8 sps:$4 sm:$0xff]   ;;  %v960_v46 = vld [vmem:[%s1055_s25 + $0xb0] ss:$8 sps:$4 sm:$0xff]   ;;  %v964_v47 = vld [vmem:[%s1055_s25 + $0xa4] ss:$8 sps:$4 sm:$0xff]  }
  0x25   : > { %595 = vmatprep.subr.bf16.mxu0 %v916_v12  ;;  %v966_v48 = vld [vmem:[%s1055_s25 + $0xa0] ss:$8 sps:$4 sm:$0xff]   ;;  %v970_v49 = vld [vmem:[%s1055_s25 + $0x94] ss:$8 sps:$4 sm:$0xff]   ;;  %v972_v50 = vld [vmem:[%s1055_s25 + $0x90] ss:$8 sps:$4 sm:$0xff]  }
  0x26   : > { %635 = vmatpush1.bf16.msra.mxu1 %v945_v22  ;;  %v974_v51 = vld [vmem:[%s1055_s25 + $0x84] ss:$8 sps:$4 sm:$0xff]   ;;  %v976_v52 = vld [vmem:[%s1055_s25 + $0x80] ss:$8 sps:$4 sm:$0xff]   ;;  %p872_p7 = scmp.ne.s32.totalorder %s993_s12, 5 }
  0x27   : > { %636 = vmatprep.subr.bf16.mxu1 %v949_v23  ;;  %v284_v58 = vld [vmem:[%s1154_s3] sm:$0xff]  ;;  %v285_v61 = vld [vmem:[%s1154_s3 + $0x8] sm:$0xff] }
  0x28   : > { %596 = vmatpush1.bf16.msra.mxu0 %v918_v15 }
  0x29   : > { %597 = vmatprep.subr.bf16.mxu0 %v919_v17 }
  0x2a   : > { %637 = vmatpush1.bf16.msra.mxu1 %v951_v26 }
  0x2b   : > { %638 = vmatprep.subr.bf16.mxu1 %v955_v27 }
  0x2c   : > { %598 = vmatpush1.bf16.msra.mxu0 %v921_v20 }
  0x2d   : > { %599 = vmatprep.subr.bf16.mxu0 %v922_v21 }
  0x2e   : > { %639 = vmatpush1.bf16.msra.mxu1 %v957_v30 }
  0x2f   : > { %640 = vmatprep.subr.bf16.mxu1 %v961_v31 }
  0x30   : > { %600 = vmatpush1.bf16.msra.mxu0 %v924_v24 }
  0x31   : > { %601 = vmatprep.subr.bf16.mxu0 %v928_v25 }
  0x32   : > { %641 = vmatpush1.bf16.msra.mxu1 %v963_v35 }
  0x33   : > { %642 = vmatprep.subr.bf16.mxu1 %v967_v37 }
  0x34   : > { %602 = vmatpush1.bf16.msra.mxu0 %v930_v28 }
  0x35   : > { %603 = vmatprep.subr.bf16.mxu0 %v934_v29 }
  0x36   : > { %643 = vmatpush1.bf16.msra.mxu1 %v969_v40 }
  0x38   : > { %604 = vmatpush2.bf16.msra.mxu0 %v936_v32 }
  0x39   : > { %605 = vmatprep.subr.bf16.mxu0 %v940_v33  ;;  %661 = vmatmul.mubr.bf16.vlgmr.msra.gmra.mxu1 %v973_v43 }
  0x3c   : > { %606 = vmatpush2.bf16.msra.mxu0 %v942_v38 }
  0x3d   : > { %607 = vmatprep.subr.bf16.mxu0 %v946_v39 }
  0x40   : > { %608 = vmatpush2.bf16.msra.mxu0 %v948_v41 }
  0x41   : > { %609 = vmatprep.subr.bf16.mxu0 %v952_v42 }
  0x44   : > { %610 = vmatpush2.bf16.msra.mxu0 %v954_v44 }
  0x45   : > { %611 = vmatprep.subr.bf16.mxu0 %v958_v45 }
  0x48   : > { %612 = vmatpush2.bf16.msra.mxu0 %v960_v46 }
  0x49   : > { %613 = vmatprep.subr.bf16.mxu0 %v964_v47 }
  0x4c   : > { %614 = vmatpush2.bf16.msra.mxu0 %v966_v48 }
  0x4d   : > { %615 = vmatprep.subr.bf16.mxu0 %v970_v49 }
  0x50   : > { %616 = vmatpush2.bf16.msra.mxu0 %v972_v50 }
  0x51   : > { %617 = vmatprep.subr.bf16.mxu0 %v974_v51 }
  0x54   : > { %618 = vmatpush2.bf16.msra.mxu0 %v976_v52 }
  0x57   : > { %620 = vmatmul.mubr.bf16.vlgmr.msra.gmra.mxu0 %v821_v53 }
  0xf9   : > { %v662_v54 = vpop.f32.mrf.mxu1 }
  0xfb   : > { %v664_v55 = vpop.f32.mrf.mxu1 }
  0xfd   : > { %v666_v56 = vpop.f32.mrf.mxu1 }
  0xff   : > { %v667_v57 = vpop.f32.mrf.mxu1 }
 0x117   : > { %v621_v59 = vpop.f32.mrf.mxu0 }
 0x118   : > { %v663_v60 = vadd.f32 %v662_v54, %v621_v59 }
 0x119   : > { %v623_v62 = vpop.f32.mrf.mxu0 }
 0x11a   : > { %v669_v63 = vadd.f32 %v663_v60, %v284_v58  ;;  %v665_v0 = vadd.f32 %v664_v55, %v623_v62  ;;  %676 = sbr.rel (%p872_p7) target bundleno = 298 (0x12a), region = 40 }
 0x11b   : > { %v625_v1 = vpop.f32.mrf.mxu0 }
 0x11c   : > { %671 = vst [vmem:[%s1154_s3] sm:$0xff] %v669_v63  ;;  %v670_v2 = vadd.f32 %v665_v0, %v285_v61 }
 0x11d   : > { %v626_v3 = vpop.f32.mrf.mxu0 }
 0x11e   : > { %672 = vst [vmem:[%s1154_s3 + $0x8] sm:$0xff] %v670_v2 }
 0x11f   : > { %v681_v4 = vlaneseq  ;;  %v679_v6 = vld [vmem:[%s1153_s2] sm:$0x3] }
 0x121   : > { %v682_v5 = vshrl.u32 %v681_v4, 7 }
 0x123   : > { %v683_v7 = vsub.s32 0, %v682_v5  ;;  %v687_v8 = vsub.s32 1, %v682_v5  ;;  %v677_v9 = vld [vmem:[%s1154_s3] sm:$0xff] }
 0x125   : > { %v678_v10 = vld [vmem:[%s1154_s3 + $0x8] sm:$0xff]  ;;  %v684_v11 = vrot.slane %v679_v6, %v683_v7  ;;  %v688_v12 = vrot.slane %v679_v6, %v687_v8 }
 0x127   : > { %v691_v13 = vadd.f32 %v684_v11, %v677_v9  ;;  %v692_v14 = vadd.f32 %v688_v12, %v678_v10 }
 0x129   : > { %693 = vst [vmem:[%s1154_s3] sm:$0xff] %v691_v13  ;;  %694 = vst [vmem:[%s1154_s3 + $0x8] sm:$0xff] %v692_v14 }
 0x12a PF: > { %s13_s14 = sadd.s32 1, %s1001_s14   ;;  %s1155_s12 = smov %s997_s13 }
 0x12b   : > { %p10_p8 = scmp.ge.s32.totalorder %s13_s14, 8   ;;  %s1156_s13 = smov %s1158_s15 }
 0x12d   :  { %12 = sbr.rel (!%p10_p8) target bundleno = 2 (0x2), region = 76 }

// kernel: resnet18_forward.50
= control target key start
LH: loop header
LB: loop body
LE: loop exit
PB: predicated region body
PF: predicated region fallthrough
CT: control target
= control target key end

     0   :  { %s1027_s12 = smov 0   ;;  %s1029_s13 = smov 0   ;;  %s1153_s0 = inlined_call_operand.vmem [shape: bf16[8,2304], index: 0, kind: input, shape index: {}]   ;;  %s1154_s1 = inlined_call_operand.vmem [shape: bf16[2304,256], index: 1, kind: input, shape index: {}]   ;;  %s1155_s2 = inlined_call_operand.vmem [shape: f32[1,256], index: 2, kind: input, shape index: {}]   ;;  %s1156_s3 = inlined_call_operand.vmem [shape: f32[8,256], index: 3, kind: output, shape index: {}]  }
   0x1   :  { %s1031_s14 = smov 0  }
   0x2 LB: > { %s25_s15 = sadd.s32 1, %s999_s13  ;;  %p818_p0 = scmp.ge.s32.totalorder %s1003_s14, 1  ;;  %s1003_s14 = sphi %s1031_s14, %s13_s14   ;;  %s999_s13 = sphi %s1029_s13, %s1158_s13   ;;  %s995_s12 = sphi %s1027_s12, %s1157_s12  }
   0x3   : > { %p26_p1 = scmp.ge.s32.totalorder %s25_s15, 6  ;;  %p194_p2 = scmp.lt.s32.totalorder %s1003_s14, 7 }
   0x5   : > { %s1160_s15 = smov (%p26_p1, %s25_s15), 0  ;;  %p195_p3 = pnand %p818_p0, %p194_p2 }
   0x6   : > { %s240_s16 = smul.u32 (!%p195_p3), 3, %s995_s12  ;;  %p822_p6 = scmp.ne.s32.totalorder (!%p195_p3), %s995_s12, 0 }
   0x7   : > { %198 = sbr.rel (%p195_p3) target bundleno = 300 (0x12c), region = 32 }
   0x8   : > { %s250_s17 = smul.u32 (!%p195_p3), 48, %s995_s12  ;;  %p243_p4 = scmp.lt.s32.totalorder (!%p195_p3), %s240_s16, 17 }
   0xa   : > { %p252_p5 = scmp.lt.s32.totalorder (!%p195_p3), %s250_s17, 287 }
   0xc   : > { %s1162_s16 = smov (!%p243_p4, %s240_s16), 17  ;;  %s1164_s17 = smov (!%p252_p5, %s250_s17), 287 }
   0xd   : > { %s819_s18 = sshll.u32 %s1162_s16, 2  ;;  %s879_s22 = sshll.u32 %s1164_s17, 3 }
   0xe   : > { %s1052_s21 = scalar_lea.vmem %s1153_s0, %s819_s18  ;;  %s1057_s25 = scalar_lea.vmem %s1154_s1, %s879_s22 }
   0xf   : > { %281 = sbr.rel (%p822_p6) target bundleno = 22 (0x16), region = 36 }
  0x14   : > { %v1005_v0 = vmov 0.0  }
  0x15   : > { %282 = vst [vmem:[%s1156_s3] sm:$0xff] %v1005_v0  ;;  %283 = vst [vmem:[%s1156_s3 + $0x8] sm:$0xff] %v1005_v0 }
  0x16 PF: > { %v906_v1 = vld [vmem:[%s1057_s25 + $0x74] ss:$8 sps:$4 sm:$0xff]   ;;  %v908_v2 = vld [vmem:[%s1057_s25 + $0x70] ss:$8 sps:$4 sm:$0xff]   ;;  %v1006_v3 = vmov 0   ;;  %v286_v34 = vld [vmem:[%s1052_s21] sm:$0xff] }
  0x17   : > { %660 = vmatprep.mubr.bf16.mxu1 %v1006_v3  ;;  %587 = vmatprep.subr.bf16.mxu0 %v906_v1  ;;  %v909_v4 = vld [vmem:[%s1057_s25 + $0x64] ss:$8 sps:$4 sm:$0xff]   ;;  %v911_v5 = vld [vmem:[%s1057_s25 + $0x60] ss:$8 sps:$4 sm:$0xff]   ;;  %v912_v6 = vld [vmem:[%s1057_s25 + $0x54] ss:$8 sps:$4 sm:$0xff]   ;;  %v824_v36 = vcombine.high %v286_v34, %v286_v34  ;;  %v823_v53 = vcombine.low %v286_v34, %v286_v34 }
  0x18   : > { %588 = vmatpush1.bf16.msra.mxu0 %v908_v2  ;;  %v914_v7 = vld [vmem:[%s1057_s25 + $0x50] ss:$8 sps:$4 sm:$0xff]   ;;  %v915_v8 = vld [vmem:[%s1057_s25 + $0x44] ss:$8 sps:$4 sm:$0xff]   ;;  %v927_v9 = vld [vmem:[%s1057_s25 + $0x174] ss:$8 sps:$4 sm:$0xff]  }
  0x19   : > { %589 = vmatprep.subr.bf16.mxu0 %v909_v4  ;;  %v929_v10 = vld [vmem:[%s1057_s25 + $0x170] ss:$8 sps:$4 sm:$0xff]   ;;  %v917_v11 = vld [vmem:[%s1057_s25 + $0x40] ss:$8 sps:$4 sm:$0xff]   ;;  %v918_v12 = vld [vmem:[%s1057_s25 + $0x34] ss:$8 sps:$4 sm:$0xff]   ;;  %628 = vmatprep.subr.bf16.mxu1 %v927_v9 }
  0x1a   : > { %v933_v13 = vld [vmem:[%s1057_s25 + $0x164] ss:$8 sps:$4 sm:$0xff]   ;;  %629 = vmatpush1.bf16.msra.mxu1 %v929_v10  ;;  %v935_v14 = vld [vmem:[%s1057_s25 + $0x160] ss:$8 sps:$4 sm:$0xff]   ;;  %v920_v15 = vld [vmem:[%s1057_s25 + $0x30] ss:$8 sps:$4 sm:$0xff]   ;;  %619 = vmatprep.mubr.bf16.mxu0 %v824_v36 }
  0x1b   : > { %630 = vmatprep.subr.bf16.mxu1 %v933_v13  ;;  %v939_v16 = vld [vmem:[%s1057_s25 + $0x154] ss:$8 sps:$4 sm:$0xff]   ;;  %v921_v17 = vld [vmem:[%s1057_s25 + $0x24] ss:$8 sps:$4 sm:$0xff]   ;;  %v941_v18 = vld [vmem:[%s1057_s25 + $0x150] ss:$8 sps:$4 sm:$0xff]  }
  0x1c   : > { %590 = vmatpush1.bf16.msra.mxu0 %v911_v5  ;;  %v945_v19 = vld [vmem:[%s1057_s25 + $0x144] ss:$8 sps:$4 sm:$0xff]   ;;  %v923_v20 = vld [vmem:[%s1057_s25 + $0x20] ss:$8 sps:$4 sm:$0xff]   ;;  %v924_v21 = vld [vmem:[%s1057_s25 + $0x14] ss:$8 sps:$4 sm:$0xff]  }
  0x1d   : > { %591 = vmatprep.subr.bf16.mxu0 %v912_v6  ;;  %v947_v22 = vld [vmem:[%s1057_s25 + $0x140] ss:$8 sps:$4 sm:$0xff]   ;;  %v951_v23 = vld [vmem:[%s1057_s25 + $0x134] ss:$8 sps:$4 sm:$0xff]   ;;  %v926_v24 = vld [vmem:[%s1057_s25 + $0x10] ss:$8 sps:$4 sm:$0xff]  }
  0x1e   : > { %631 = vmatpush1.bf16.msra.mxu1 %v935_v14  ;;  %v930_v25 = vld [vmem:[%s1057_s25 + $0x4] ss:$8 sps:$4 sm:$0xff]   ;;  %v953_v26 = vld [vmem:[%s1057_s25 + $0x130] ss:$8 sps:$4 sm:$0xff]   ;;  %v932_v28 = vld [vmem:[%s1057_s25] ss:$8 sps:$4 sm:$0xff]  }
  0x1f   : > { %632 = vmatprep.subr.bf16.mxu1 %v939_v16  ;;  %v957_v27 = vld [vmem:[%s1057_s25 + $0x124] ss:$8 sps:$4 sm:$0xff]   ;;  %v936_v29 = vld [vmem:[%s1057_s25 + $0xf4] ss:$8 sps:$4 sm:$0xff]   ;;  %v959_v30 = vld [vmem:[%s1057_s25 + $0x120] ss:$8 sps:$4 sm:$0xff]  }
  0x20   : > { %592 = vmatpush1.bf16.msra.mxu0 %v914_v7  ;;  %v963_v31 = vld [vmem:[%s1057_s25 + $0x114] ss:$8 sps:$4 sm:$0xff]   ;;  %v938_v32 = vld [vmem:[%s1057_s25 + $0xf0] ss:$8 sps:$4 sm:$0xff]   ;;  %v942_v33 = vld [vmem:[%s1057_s25 + $0xe4] ss:$8 sps:$4 sm:$0xff]  }
  0x21   : > { %593 = vmatprep.subr.bf16.mxu0 %v915_v8  ;;  %v965_v35 = vld [vmem:[%s1057_s25 + $0x110] ss:$8 sps:$4 sm:$0xff]   ;;  %v969_v37 = vld [vmem:[%s1057_s25 + $0x104] ss:$8 sps:$4 sm:$0xff]   ;;  %v944_v38 = vld [vmem:[%s1057_s25 + $0xe0] ss:$8 sps:$4 sm:$0xff]  }
  0x22   : > { %633 = vmatpush1.bf16.msra.mxu1 %v941_v18  ;;  %v948_v39 = vld [vmem:[%s1057_s25 + $0xd4] ss:$8 sps:$4 sm:$0xff]   ;;  %v971_v40 = vld [vmem:[%s1057_s25 + $0x100] ss:$8 sps:$4 sm:$0xff]   ;;  %v950_v41 = vld [vmem:[%s1057_s25 + $0xd0] ss:$8 sps:$4 sm:$0xff]  }
  0x23   : > { %634 = vmatprep.subr.bf16.mxu1 %v945_v19  ;;  %v954_v42 = vld [vmem:[%s1057_s25 + $0xc4] ss:$8 sps:$4 sm:$0xff]   ;;  %v975_v43 = vld [vmem:[%s1052_s21 + $0x8] ss:$0 sps:$4 sm:$0xff]   ;;  %v960_v45 = vld [vmem:[%s1057_s25 + $0xb4] ss:$8 sps:$4 sm:$0xff]  }
  0x24   : > { %594 = vmatpush1.bf16.msra.mxu0 %v917_v11  ;;  %v956_v44 = vld [vmem:[%s1057_s25 + $0xc0] ss:$8 sps:$4 sm:$0xff]   ;;  %v962_v46 = vld [vmem:[%s1057_s25 + $0xb0] ss:$8 sps:$4 sm:$0xff]   ;;  %v966_v47 = vld [vmem:[%s1057_s25 + $0xa4] ss:$8 sps:$4 sm:$0xff]  }
  0x25   : > { %595 = vmatprep.subr.bf16.mxu0 %v918_v12  ;;  %v968_v48 = vld [vmem:[%s1057_s25 + $0xa0] ss:$8 sps:$4 sm:$0xff]   ;;  %v972_v49 = vld [vmem:[%s1057_s25 + $0x94] ss:$8 sps:$4 sm:$0xff]   ;;  %v974_v50 = vld [vmem:[%s1057_s25 + $0x90] ss:$8 sps:$4 sm:$0xff]  }
  0x26   : > { %635 = vmatpush1.bf16.msra.mxu1 %v947_v22  ;;  %v976_v51 = vld [vmem:[%s1057_s25 + $0x84] ss:$8 sps:$4 sm:$0xff]   ;;  %v978_v52 = vld [vmem:[%s1057_s25 + $0x80] ss:$8 sps:$4 sm:$0xff]   ;;  %p874_p7 = scmp.ne.s32.totalorder %s995_s12, 5 }
  0x27   : > { %636 = vmatprep.subr.bf16.mxu1 %v951_v23  ;;  %v284_v58 = vld [vmem:[%s1156_s3] sm:$0xff]  ;;  %v285_v61 = vld [vmem:[%s1156_s3 + $0x8] sm:$0xff] }
  0x28   : > { %596 = vmatpush1.bf16.msra.mxu0 %v920_v15 }
  0x29   : > { %597 = vmatprep.subr.bf16.mxu0 %v921_v17 }
  0x2a   : > { %637 = vmatpush1.bf16.msra.mxu1 %v953_v26 }
  0x2b   : > { %638 = vmatprep.subr.bf16.mxu1 %v957_v27 }
  0x2c   : > { %598 = vmatpush1.bf16.msra.mxu0 %v923_v20 }
  0x2d   : > { %599 = vmatprep.subr.bf16.mxu0 %v924_v21 }
  0x2e   : > { %639 = vmatpush1.bf16.msra.mxu1 %v959_v30 }
  0x2f   : > { %640 = vmatprep.subr.bf16.mxu1 %v963_v31 }
  0x30   : > { %600 = vmatpush1.bf16.msra.mxu0 %v926_v24 }
  0x31   : > { %601 = vmatprep.subr.bf16.mxu0 %v930_v25 }
  0x32   : > { %641 = vmatpush1.bf16.msra.mxu1 %v965_v35 }
  0x33   : > { %642 = vmatprep.subr.bf16.mxu1 %v969_v37 }
  0x34   : > { %602 = vmatpush1.bf16.msra.mxu0 %v932_v28 }
  0x35   : > { %603 = vmatprep.subr.bf16.mxu0 %v936_v29 }
  0x36   : > { %643 = vmatpush1.bf16.msra.mxu1 %v971_v40 }
  0x38   : > { %604 = vmatpush2.bf16.msra.mxu0 %v938_v32 }
  0x39   : > { %605 = vmatprep.subr.bf16.mxu0 %v942_v33  ;;  %661 = vmatmul.mubr.bf16.vlgmr.msra.gmra.mxu1 %v975_v43 }
  0x3c   : > { %606 = vmatpush2.bf16.msra.mxu0 %v944_v38 }
  0x3d   : > { %607 = vmatprep.subr.bf16.mxu0 %v948_v39 }
  0x40   : > { %608 = vmatpush2.bf16.msra.mxu0 %v950_v41 }
  0x41   : > { %609 = vmatprep.subr.bf16.mxu0 %v954_v42 }
  0x44   : > { %610 = vmatpush2.bf16.msra.mxu0 %v956_v44 }
  0x45   : > { %611 = vmatprep.subr.bf16.mxu0 %v960_v45 }
  0x48   : > { %612 = vmatpush2.bf16.msra.mxu0 %v962_v46 }
  0x49   : > { %613 = vmatprep.subr.bf16.mxu0 %v966_v47 }
  0x4c   : > { %614 = vmatpush2.bf16.msra.mxu0 %v968_v48 }
  0x4d   : > { %615 = vmatprep.subr.bf16.mxu0 %v972_v49 }
  0x50   : > { %616 = vmatpush2.bf16.msra.mxu0 %v974_v50 }
  0x51   : > { %617 = vmatprep.subr.bf16.mxu0 %v976_v51 }
  0x54   : > { %618 = vmatpush2.bf16.msra.mxu0 %v978_v52 }
  0x57   : > { %620 = vmatmul.mubr.bf16.vlgmr.msra.gmra.mxu0 %v823_v53 }
  0xf9   : > { %v662_v54 = vpop.f32.mrf.mxu1 }
  0xfb   : > { %v664_v55 = vpop.f32.mrf.mxu1 }
  0xfd   : > { %v666_v56 = vpop.f32.mrf.mxu1 }
  0xff   : > { %v667_v57 = vpop.f32.mrf.mxu1 }
 0x117   : > { %v621_v59 = vpop.f32.mrf.mxu0 }
 0x118   : > { %v663_v60 = vadd.f32 %v662_v54, %v621_v59 }
 0x119   : > { %v623_v62 = vpop.f32.mrf.mxu0 }
 0x11a   : > { %v669_v63 = vadd.f32 %v663_v60, %v284_v58  ;;  %v665_v0 = vadd.f32 %v664_v55, %v623_v62  ;;  %676 = sbr.rel (%p874_p7) target bundleno = 300 (0x12c), region = 40 }
 0x11b   : > { %v625_v1 = vpop.f32.mrf.mxu0 }
 0x11c   : > { %671 = vst [vmem:[%s1156_s3] sm:$0xff] %v669_v63  ;;  %v670_v2 = vadd.f32 %v665_v0, %v285_v61 }
 0x11d   : > { %v626_v3 = vpop.f32.mrf.mxu0 }
 0x11e   : > { %672 = vst [vmem:[%s1156_s3 + $0x8] sm:$0xff] %v670_v2 }
 0x11f   : > { %v681_v4 = vlaneseq  ;;  %v679_v6 = vld [vmem:[%s1155_s2] sm:$0x3] }
 0x121   : > { %v682_v5 = vshrl.u32 %v681_v4, 7 }
 0x123   : > { %v683_v7 = vsub.s32 0, %v682_v5  ;;  %v687_v8 = vsub.s32 1, %v682_v5  ;;  %v677_v9 = vld [vmem:[%s1156_s3] sm:$0xff] }
 0x125   : > { %v678_v10 = vld [vmem:[%s1156_s3 + $0x8] sm:$0xff]  ;;  %v684_v11 = vrot.slane %v679_v6, %v683_v7  ;;  %v688_v12 = vrot.slane %v679_v6, %v687_v8 }
 0x127   : > { %v691_v13 = vadd.f32 %v684_v11, %v677_v9  ;;  %v692_v14 = vadd.f32 %v688_v12, %v678_v10 }
 0x129   : > { %v693_v15 = vmax.f32 %v691_v13, 0.0  ;;  %v694_v16 = vmax.f32 %v692_v14, 0.0 }
 0x12b   : > { %695 = vst [vmem:[%s1156_s3] sm:$0xff] %v693_v15  ;;  %696 = vst [vmem:[%s1156_s3 + $0x8] sm:$0xff] %v694_v16 }
 0x12c PF: > { %s13_s14 = sadd.s32 1, %s1003_s14   ;;  %s1157_s12 = smov %s999_s13 }
 0x12d   : > { %p10_p8 = scmp.ge.s32.totalorder %s13_s14, 8   ;;  %s1158_s13 = smov %s1160_s15 }
 0x12f   :  { %12 = sbr.rel (!%p10_p8) target bundleno = 2 (0x2), region = 76 }

// kernel: resnet18_forward.53
= control target key start
LH: loop header
LB: loop body
LE: loop exit
PB: predicated region body
PF: predicated region fallthrough
CT: control target
= control target key end

     0   :  { %s1311_s12 = smov 0   ;;  %s1313_s13 = smov 0   ;;  %s1583_s0 = inlined_call_operand.vmem [shape: bf16[8,2304], index: 0, kind: input, shape index: {}]   ;;  %s1584_s1 = inlined_call_operand.vmem [shape: bf16[2304,512], index: 1, kind: input, shape index: {}]   ;;  %s1585_s2 = inlined_call_operand.vmem [shape: f32[1,512], index: 2, kind: input, shape index: {}]   ;;  %s1586_s3 = inlined_call_operand.vmem [shape: f32[8,512], index: 3, kind: output, shape index: {}]  }
   0x1   :  { %s1315_s14 = smov 0   ;;  %s1317_s15 = smov 0  }
   0x2   :  { %s1319_s16 = smov 0   ;;  %s1321_s17 = smov 0  }
   0x3   :  { %s1323_s18 = smov 0  }
   0x4 LB: > { %s25_s19 = sadd.s32 1, %s1279_s16  ;;  %s28_s20 = sadd.s32 1, %s1283_s17  ;;  %s1287_s18 = sphi %s1323_s18, %s13_s18   ;;  %s1283_s17 = sphi %s1321_s17, %s1592_s17   ;;  %s1279_s16 = sphi %s1319_s16, %s1591_s16   ;;  %s1275_s15 = sphi %s1317_s15, %s1590_s15   ;;  %s1271_s14 = sphi %s1315_s14, %s1589_s14   ;;  %s1267_s13 = sphi %s1313_s13, %s1588_s13   ;;  %s1263_s12 = sphi %s1311_s12, %s1587_s12  }
   0x5   : > { %p26_p0 = scmp.ge.s32.totalorder %s25_s19, 6  ;;  %p76_p1 = scmp.ne.s32.totalorder %s1267_s13, %s1263_s12 }
   0x6   : > { %p77_p2 = scmp.eq.s32.totalorder %s1287_s18, 0  ;;  %s69_s24 = sadd.s32 1, %s1267_s13 }
   0x7   : > { %s1594_s19 = smov (%p26_p0, %s25_s19), 0  ;;  %s1596_s20 = smov (!%p26_p0, %s28_s20), %s1283_s17 }
   0x8   : > { %p78_p3 = por %p77_p2, %p76_p1  ;;  %p30_p4 = scmp.ge.s32.totalorder %s1596_s20, 2 }
   0x9   : > { %s64_s21 = ssub.s32 %s1279_s16, %s1594_s19  ;;  %p1033_p6 = scmp.ge.s32.totalorder %s1287_s18, 12 }
   0xa   : > { %s1598_s20 = smov (%p30_p4, %s1596_s20), 0 }
   0xb   : > { %s65_s22 = ssub.s32 %s1283_s17, %s1598_s20  ;;  %156 = sbr.rel (%p1033_p6) target bundleno = 48 (0x30), region = 16 }
   0xc   : > { %s66_s23 = sor.u32 %s65_s22, %s64_s21 }
   0xd   : > { %p67_p5 = scmp.eq.s32.totalorder %s66_s23, 0 }
   0xf   : > { %s1362_s25 = scalar_select %p67_p5, %s1267_s13, %s69_s24  }
  0x10   : > { %172 = sbr.rel (!%p78_p3) target bundleno = 48 (0x30), region = 24  ;;  %s174_s26 = sand.u32 (%p78_p3), 1, %s1267_s13  }
  0x11   : > { %s1098_s27 = smul.u32 (%p78_p3), 384, %s174_s26  ;;  %s1034_s28 = sshll.u32 (%p78_p3), %s1283_s17, 1 }
  0x12   : > { %s1097_s29 = smul.u32 (%p78_p3), 192, %s1279_s16 }
  0x13   : > { %s1376_s8 = scalar_lea.vmem (%p78_p3), [#allocation2], %s1098_s27 }
  0x14   : > { %s180_s30 = sadd.s32 (%p78_p3), %s1097_s29, %s1034_s28 }
  0x15   : > { %s1036_s4 = sshll.u32 %s180_s30, 2 }
  0x16   : > { %s1371_s7 = scalar_lea.vmem %s1584_s1, %s1036_s4 }
  0x17   : > { %v305_v0 = vld [vmem:[%s1371_s7] sm:$0xff]  ;;  %v307_v1 = vld [vmem:[%s1371_s7 + $0x10] sm:$0xff] }
  0x18   : > { %v309_v2 = vld [vmem:[%s1371_s7 + $0x20] sm:$0xff]  ;;  %306 = vst [vmem:[%s1376_s8] sm:$0xff] %v305_v0  ;;  %308 = vst [vmem:[%s1376_s8 + $0x8] sm:$0xff] %v307_v1  ;;  %v311_v3 = vld [vmem:[%s1371_s7 + $0x30] sm:$0xff] }
  0x19   : > { %310 = vst [vmem:[%s1376_s8 + $0x10] sm:$0xff] %v309_v2  ;;  %v313_v4 = vld [vmem:[%s1371_s7 + $0x40] sm:$0xff]  ;;  %v315_v5 = vld [vmem:[%s1371_s7 + $0x50] sm:$0xff]  ;;  %312 = vst [vmem:[%s1376_s8 + $0x18] sm:$0xff] %v311_v3 }
  0x1a   : > { %314 = vst [vmem:[%s1376_s8 + $0x20] sm:$0xff] %v313_v4  ;;  %316 = vst [vmem:[%s1376_s8 + $0x28] sm:$0xff] %v315_v5  ;;  %v317_v6 = vld [vmem:[%s1371_s7 + $0x60] sm:$0xff]  ;;  %v319_v7 = vld [vmem:[%s1371_s7 + $0x70] sm:$0xff] }
  0x1b   : > { %v321_v8 = vld [vmem:[%s1371_s7 + $0x80] sm:$0xff]  ;;  %318 = vst [vmem:[%s1376_s8 + $0x30] sm:$0xff] %v317_v6  ;;  %320 = vst [vmem:[%s1376_s8 + $0x38] sm:$0xff] %v319_v7  ;;  %v323_v9 = vld [vmem:[%s1371_s7 + $0x90] sm:$0xff] }
  0x1c   : > { %322 = vst [vmem:[%s1376_s8 + $0x40] sm:$0xff] %v321_v8  ;;  %v325_v10 = vld [vmem:[%s1371_s7 + $0xa0] sm:$0xff]  ;;  %v327_v11 = vld [vmem:[%s1371_s7 + $0xb0] sm:$0xff]  ;;  %324 = vst [vmem:[%s1376_s8 + $0x48] sm:$0xff] %v323_v9 }
  0x1d   : > { %326 = vst [vmem:[%s1376_s8 + $0x50] sm:$0xff] %v325_v10  ;;  %328 = vst [vmem:[%s1376_s8 + $0x58] sm:$0xff] %v327_v11  ;;  %v329_v12 = vld [vmem:[%s1371_s7 + $0xc0] sm:$0xff]  ;;  %v331_v13 = vld [vmem:[%s1371_s7 + $0xd0] sm:$0xff] }
  0x1e   : > { %v333_v14 = vld [vmem:[%s1371_s7 + $0xe0] sm:$0xff]  ;;  %330 = vst [vmem:[%s1376_s8 + $0x60] sm:$0xff] %v329_v12  ;;  %332 = vst [vmem:[%s1376_s8 + $0x68] sm:$0xff] %v331_v13  ;;  %v335_v15 = vld [vmem:[%s1371_s7 + $0xf0] sm:$0xff] }
  0x1f   : > { %334 = vst [vmem:[%s1376_s8 + $0x70] sm:$0xff] %v333_v14  ;;  %v337_v16 = vld [vmem:[%s1371_s7 + $0x100] sm:$0xff]  ;;  %v339_v17 = vld [vmem:[%s1371_s7 + $0x110] sm:$0xff]  ;;  %336 = vst [vmem:[%s1376_s8 + $0x78] sm:$0xff] %v335_v15 }
  0x20   : > { %338 = vst [vmem:[%s1376_s8 + $0x80] sm:$0xff] %v337_v16  ;;  %340 = vst [vmem:[%s1376_s8 + $0x88] sm:$0xff] %v339_v17  ;;  %v341_v18 = vld [vmem:[%s1371_s7 + $0x120] sm:$0xff]  ;;  %v343_v19 = vld [vmem:[%s1371_s7 + $0x130] sm:$0xff] }
  0x21   : > { %v345_v20 = vld [vmem:[%s1371_s7 + $0x140] sm:$0xff]  ;;  %342 = vst [vmem:[%s1376_s8 + $0x90] sm:$0xff] %v341_v18  ;;  %344 = vst [vmem:[%s1376_s8 + $0x98] sm:$0xff] %v343_v19  ;;  %v347_v21 = vld [vmem:[%s1371_s7 + $0x150] sm:$0xff] }
  0x22   : > { %346 = vst [vmem:[%s1376_s8 + $0xa0] sm:$0xff] %v345_v20  ;;  %v349_v22 = vld [vmem:[%s1371_s7 + $0x160] sm:$0xff]  ;;  %v351_v23 = vld [vmem:[%s1371_s7 + $0x170] sm:$0xff]  ;;  %348 = vst [vmem:[%s1376_s8 + $0xa8] sm:$0xff] %v347_v21 }
  0x23   : > { %350 = vst [vmem:[%s1376_s8 + $0xb0] sm:$0xff] %v349_v22  ;;  %352 = vst [vmem:[%s1376_s8 + $0xb8] sm:$0xff] %v351_v23  ;;  %v353_v24 = vld [vmem:[%s1371_s7 + $0x180] sm:$0xff]  ;;  %v355_v25 = vld [vmem:[%s1371_s7 + $0x190] sm:$0xff] }
  0x24   : > { %v357_v26 = vld [vmem:[%s1371_s7 + $0x1a0] sm:$0xff]  ;;  %354 = vst [vmem:[%s1376_s8 + $0xc0] sm:$0xff] %v353_v24  ;;  %356 = vst [vmem:[%s1376_s8 + $0xc8] sm:$0xff] %v355_v25  ;;  %v359_v27 = vld [vmem:[%s1371_s7 + $0x1b0] sm:$0xff] }
  0x25   : > { %358 = vst [vmem:[%s1376_s8 + $0xd0] sm:$0xff] %v357_v26  ;;  %v361_v28 = vld [vmem:[%s1371_s7 + $0x1c0] sm:$0xff]  ;;  %v363_v29 = vld [vmem:[%s1371_s7 + $0x1d0] sm:$0xff]  ;;  %360 = vst [vmem:[%s1376_s8 + $0xd8] sm:$0xff] %v359_v27 }
  0x26   : > { %362 = vst [vmem:[%s1376_s8 + $0xe0] sm:$0xff] %v361_v28  ;;  %364 = vst [vmem:[%s1376_s8 + $0xe8] sm:$0xff] %v363_v29  ;;  %v365_v30 = vld [vmem:[%s1371_s7 + $0x1e0] sm:$0xff]  ;;  %v367_v31 = vld [vmem:[%s1371_s7 + $0x1f0] sm:$0xff] }
  0x27   : > { %v369_v32 = vld [vmem:[%s1371_s7 + $0x200] sm:$0xff]  ;;  %366 = vst [vmem:[%s1376_s8 + $0xf0] sm:$0xff] %v365_v30  ;;  %368 = vst [vmem:[%s1376_s8 + $0xf8] sm:$0xff] %v367_v31  ;;  %v371_v33 = vld [vmem:[%s1371_s7 + $0x210] sm:$0xff] }
  0x28   : > { %370 = vst [vmem:[%s1376_s8 + $0x100] sm:$0xff] %v369_v32  ;;  %v373_v34 = vld [vmem:[%s1371_s7 + $0x220] sm:$0xff]  ;;  %v375_v35 = vld [vmem:[%s1371_s7 + $0x230] sm:$0xff]  ;;  %372 = vst [vmem:[%s1376_s8 + $0x108] sm:$0xff] %v371_v33 }
  0x29   : > { %374 = vst [vmem:[%s1376_s8 + $0x110] sm:$0xff] %v373_v34  ;;  %376 = vst [vmem:[%s1376_s8 + $0x118] sm:$0xff] %v375_v35  ;;  %v377_v36 = vld [vmem:[%s1371_s7 + $0x240] sm:$0xff]  ;;  %v379_v37 = vld [vmem:[%s1371_s7 + $0x250] sm:$0xff] }
  0x2a   : > { %v381_v38 = vld [vmem:[%s1371_s7 + $0x260] sm:$0xff]  ;;  %378 = vst [vmem:[%s1376_s8 + $0x120] sm:$0xff] %v377_v36  ;;  %380 = vst [vmem:[%s1376_s8 + $0x128] sm:$0xff] %v379_v37  ;;  %v383_v39 = vld [vmem:[%s1371_s7 + $0x270] sm:$0xff] }
  0x2b   : > { %382 = vst [vmem:[%s1376_s8 + $0x130] sm:$0xff] %v381_v38  ;;  %v385_v40 = vld [vmem:[%s1371_s7 + $0x280] sm:$0xff]  ;;  %v387_v41 = vld [vmem:[%s1371_s7 + $0x290] sm:$0xff]  ;;  %384 = vst [vmem:[%s1376_s8 + $0x138] sm:$0xff] %v383_v39 }
  0x2c   : > { %386 = vst [vmem:[%s1376_s8 + $0x140] sm:$0xff] %v385_v40  ;;  %388 = vst [vmem:[%s1376_s8 + $0x148] sm:$0xff] %v387_v41  ;;  %v389_v42 = vld [vmem:[%s1371_s7 + $0x2a0] sm:$0xff]  ;;  %v391_v43 = vld [vmem:[%s1371_s7 + $0x2b0] sm:$0xff] }
  0x2d   : > { %v393_v44 = vld [vmem:[%s1371_s7 + $0x2c0] sm:$0xff]  ;;  %390 = vst [vmem:[%s1376_s8 + $0x150] sm:$0xff] %v389_v42  ;;  %392 = vst [vmem:[%s1376_s8 + $0x158] sm:$0xff] %v391_v43  ;;  %v395_v45 = vld [vmem:[%s1371_s7 + $0x2d0] sm:$0xff] }
  0x2e   : > { %394 = vst [vmem:[%s1376_s8 + $0x160] sm:$0xff] %v393_v44  ;;  %v397_v46 = vld [vmem:[%s1371_s7 + $0x2e0] sm:$0xff]  ;;  %v399_v47 = vld [vmem:[%s1371_s7 + $0x2f0] sm:$0xff]  ;;  %396 = vst [vmem:[%s1376_s8 + $0x168] sm:$0xff] %v395_v45 }
  0x2f   : > { %398 = vst [vmem:[%s1376_s8 + $0x170] sm:$0xff] %v397_v46  ;;  %400 = vst [vmem:[%s1376_s8 + $0x178] sm:$0xff] %v399_v47 }
  0x30 PF: > { %p1037_p7 = scmp.ge.s32.totalorder %s1287_s18, 1  ;;  %p413_p8 = scmp.lt.s32.totalorder %s1287_s18, 13 }
  0x32   : > { %p414_p9 = pnand %p1037_p7, %p413_p8 }
  0x33   : > { %s420_s9 = sand.u32 (!%p414_p9), 1, %s1263_s12   ;;  %s460_s10 = smul.u32 (!%p414_p9), 3, %s1271_s14 }
  0x34   : > { %417 = sbr.rel (%p414_p9) target bundleno = 345 (0x159), region = 66  ;;  %s1039_s21 = sshll.u32 (!%p414_p9), %s1275_s15, 1 }
  0x35   : > { %s1099_s11 = smul.u32 (!%p414_p9), 384, %s420_s9  ;;  %p463_p10 = scmp.lt.s32.totalorder (!%p414_p9), %s460_s10, 17 }
  0x36   : > { %p473_p11 = scmp.lt.s32.totalorder (!%p414_p9), %s1039_s21, 3  ;;  %p1042_p12 = scmp.ne.s32.totalorder (!%p414_p9), %s1271_s14, 0 }
  0x37   : > { %s1493_s5 = scalar_lea.vmem (!%p414_p9), [#allocation2], %s1099_s11 }
  0x39   : > { %s1600_s10 = smov (!%p463_p10, %s460_s10), 17  ;;  %s1602_s21 = smov (!%p473_p11, %s1039_s21), 3 }
  0x3a   : > { %s1038_s22 = sshll.u32 %s1600_s10, 2  ;;  %s475_s12 = scalar_lea.vmem %s1585_s2, %s1602_s21 }
  0x3b   : > { %s1481_s26 = scalar_lea.vmem %s1583_s0, %s1038_s22  ;;  %s1041_s29 = sshll.u32 %s1602_s21, 3 }
  0x3c   : > { %s1491_s4 = scalar_lea.vmem %s1586_s3, %s1041_s29  ;;  %491 = sbr.rel (%p1042_p12) target bundleno = 67 (0x43), region = 74 }
  0x41   : > { %v1289_v48 = vmov 0.0  }
  0x42   : > { %492 = vst [vmem:[%s1491_s4] sm:$0xff] %v1289_v48  ;;  %493 = vst [vmem:[%s1491_s4 + $0x8] sm:$0xff] %v1289_v48 }
  0x43 PF: > { %v1158_v49 = vld [vmem:[%s1493_s5 + $0x74] ss:$8 sps:$4 sm:$0xff]   ;;  %v1160_v50 = vld [vmem:[%s1493_s5 + $0x70] ss:$8 sps:$4 sm:$0xff]   ;;  %v1290_v51 = vmov 0   ;;  %v496_v18 = vld [vmem:[%s1481_s26] sm:$0xff] }
  0x44   : > { %870 = vmatprep.mubr.bf16.mxu1 %v1290_v51  ;;  %797 = vmatprep.subr.bf16.mxu0 %v1158_v49  ;;  %v1161_v52 = vld [vmem:[%s1493_s5 + $0x64] ss:$8 sps:$4 sm:$0xff]   ;;  %v1163_v53 = vld [vmem:[%s1493_s5 + $0x60] ss:$8 sps:$4 sm:$0xff]   ;;  %v1164_v54 = vld [vmem:[%s1493_s5 + $0x54] ss:$8 sps:$4 sm:$0xff]   ;;  %v1044_v20 = vcombine.high %v496_v18, %v496_v18  ;;  %v1043_v37 = vcombine.low %v496_v18, %v496_v18 }
  0x45   : > { %798 = vmatpush1.bf16.msra.mxu0 %v1160_v50  ;;  %v1166_v55 = vld [vmem:[%s1493_s5 + $0x50] ss:$8 sps:$4 sm:$0xff]   ;;  %v1167_v56 = vld [vmem:[%s1493_s5 + $0x44] ss:$8 sps:$4 sm:$0xff]   ;;  %v1179_v57 = vld [vmem:[%s1493_s5 + $0x174] ss:$8 sps:$4 sm:$0xff]  }
  0x46   : > { %799 = vmatprep.subr.bf16.mxu0 %v1161_v52  ;;  %v1181_v58 = vld [vmem:[%s1493_s5 + $0x170] ss:$8 sps:$4 sm:$0xff]   ;;  %v1169_v59 = vld [vmem:[%s1493_s5 + $0x40] ss:$8 sps:$4 sm:$0xff]   ;;  %v1170_v60 = vld [vmem:[%s1493_s5 + $0x34] ss:$8 sps:$4 sm:$0xff]   ;;  %838 = vmatprep.subr.bf16.mxu1 %v1179_v57 }
  0x47   : > { %v1185_v61 = vld [vmem:[%s1493_s5 + $0x164] ss:$8 sps:$4 sm:$0xff]   ;;  %839 = vmatpush1.bf16.msra.mxu1 %v1181_v58  ;;  %v1187_v62 = vld [vmem:[%s1493_s5 + $0x160] ss:$8 sps:$4 sm:$0xff]   ;;  %v1172_v63 = vld [vmem:[%s1493_s5 + $0x30] ss:$8 sps:$4 sm:$0xff]   ;;  %829 = vmatprep.mubr.bf16.mxu0 %v1044_v20 }
  0x48   : > { %840 = vmatprep.subr.bf16.mxu1 %v1185_v61  ;;  %v1191_v0 = vld [vmem:[%s1493_s5 + $0x154] ss:$8 sps:$4 sm:$0xff]   ;;  %v1173_v1 = vld [vmem:[%s1493_s5 + $0x24] ss:$8 sps:$4 sm:$0xff]   ;;  %v1193_v2 = vld [vmem:[%s1493_s5 + $0x150] ss:$8 sps:$4 sm:$0xff]  }
  0x49   : > { %800 = vmatpush1.bf16.msra.mxu0 %v1163_v53  ;;  %v1197_v3 = vld [vmem:[%s1493_s5 + $0x144] ss:$8 sps:$4 sm:$0xff]   ;;  %v1175_v4 = vld [vmem:[%s1493_s5 + $0x20] ss:$8 sps:$4 sm:$0xff]   ;;  %v1176_v5 = vld [vmem:[%s1493_s5 + $0x14] ss:$8 sps:$4 sm:$0xff]  }
  0x4a   : > { %801 = vmatprep.subr.bf16.mxu0 %v1164_v54  ;;  %v1199_v6 = vld [vmem:[%s1493_s5 + $0x140] ss:$8 sps:$4 sm:$0xff]   ;;  %v1203_v7 = vld [vmem:[%s1493_s5 + $0x134] ss:$8 sps:$4 sm:$0xff]   ;;  %v1178_v8 = vld [vmem:[%s1493_s5 + $0x10] ss:$8 sps:$4 sm:$0xff]  }
  0x4b   : > { %841 = vmatpush1.bf16.msra.mxu1 %v1187_v62  ;;  %v1182_v9 = vld [vmem:[%s1493_s5 + $0x4] ss:$8 sps:$4 sm:$0xff]   ;;  %v1205_v10 = vld [vmem:[%s1493_s5 + $0x130] ss:$8 sps:$4 sm:$0xff]   ;;  %v1184_v12 = vld [vmem:[%s1493_s5] ss:$8 sps:$4 sm:$0xff]  }
  0x4c   : > { %842 = vmatprep.subr.bf16.mxu1 %v1191_v0  ;;  %v1209_v11 = vld [vmem:[%s1493_s5 + $0x124] ss:$8 sps:$4 sm:$0xff]   ;;  %v1188_v13 = vld [vmem:[%s1493_s5 + $0xf4] ss:$8 sps:$4 sm:$0xff]   ;;  %v1211_v14 = vld [vmem:[%s1493_s5 + $0x120] ss:$8 sps:$4 sm:$0xff]  }
  0x4d   : > { %802 = vmatpush1.bf16.msra.mxu0 %v1166_v55  ;;  %v1215_v15 = vld [vmem:[%s1493_s5 + $0x114] ss:$8 sps:$4 sm:$0xff]   ;;  %v1190_v16 = vld [vmem:[%s1493_s5 + $0xf0] ss:$8 sps:$4 sm:$0xff]   ;;  %v1194_v17 = vld [vmem:[%s1493_s5 + $0xe4] ss:$8 sps:$4 sm:$0xff]  }
  0x4e   : > { %803 = vmatprep.subr.bf16.mxu0 %v1167_v56  ;;  %v1217_v19 = vld [vmem:[%s1493_s5 + $0x110] ss:$8 sps:$4 sm:$0xff]   ;;  %v1221_v21 = vld [vmem:[%s1493_s5 + $0x104] ss:$8 sps:$4 sm:$0xff]   ;;  %v1196_v22 = vld [vmem:[%s1493_s5 + $0xe0] ss:$8 sps:$4 sm:$0xff]  }
  0x4f   : > { %843 = vmatpush1.bf16.msra.mxu1 %v1193_v2  ;;  %v1200_v23 = vld [vmem:[%s1493_s5 + $0xd4] ss:$8 sps:$4 sm:$0xff]   ;;  %v1223_v24 = vld [vmem:[%s1493_s5 + $0x100] ss:$8 sps:$4 sm:$0xff]   ;;  %v1202_v25 = vld [vmem:[%s1493_s5 + $0xd0] ss:$8 sps:$4 sm:$0xff]  }
  0x50   : > { %844 = vmatprep.subr.bf16.mxu1 %v1197_v3  ;;  %v1206_v26 = vld [vmem:[%s1493_s5 + $0xc4] ss:$8 sps:$4 sm:$0xff]   ;;  %v1227_v27 = vld [vmem:[%s1481_s26 + $0x8] ss:$0 sps:$4 sm:$0xff]   ;;  %v1212_v29 = vld [vmem:[%s1493_s5 + $0xb4] ss:$8 sps:$4 sm:$0xff]  }
  0x51   : > { %804 = vmatpush1.bf16.msra.mxu0 %v1169_v59  ;;  %v1208_v28 = vld [vmem:[%s1493_s5 + $0xc0] ss:$8 sps:$4 sm:$0xff]   ;;  %v1214_v30 = vld [vmem:[%s1493_s5 + $0xb0] ss:$8 sps:$4 sm:$0xff]   ;;  %v1218_v31 = vld [vmem:[%s1493_s5 + $0xa4] ss:$8 sps:$4 sm:$0xff]  }
  0x52   : > { %805 = vmatprep.subr.bf16.mxu0 %v1170_v60  ;;  %v1220_v32 = vld [vmem:[%s1493_s5 + $0xa0] ss:$8 sps:$4 sm:$0xff]   ;;  %v1224_v33 = vld [vmem:[%s1493_s5 + $0x94] ss:$8 sps:$4 sm:$0xff]   ;;  %v1226_v34 = vld [vmem:[%s1493_s5 + $0x90] ss:$8 sps:$4 sm:$0xff]  }
  0x53   : > { %845 = vmatpush1.bf16.msra.mxu1 %v1199_v6  ;;  %v1228_v35 = vld [vmem:[%s1493_s5 + $0x84] ss:$8 sps:$4 sm:$0xff]   ;;  %v1230_v36 = vld [vmem:[%s1493_s5 + $0x80] ss:$8 sps:$4 sm:$0xff]   ;;  %p1094_p13 = scmp.ne.s32.totalorder %s1271_s14, 5 }
  0x54   : > { %846 = vmatprep.subr.bf16.mxu1 %v1203_v7  ;;  %v494_v42 = vld [vmem:[%s1491_s4] sm:$0xff]  ;;  %v495_v45 = vld [vmem:[%s1491_s4 + $0x8] sm:$0xff] }
  0x55   : > { %806 = vmatpush1.bf16.msra.mxu0 %v1172_v63 }
  0x56   : > { %807 = vmatprep.subr.bf16.mxu0 %v1173_v1 }
  0x57   : > { %847 = vmatpush1.bf16.msra.mxu1 %v1205_v10 }
  0x58   : > { %848 = vmatprep.subr.bf16.mxu1 %v1209_v11 }
  0x59   : > { %808 = vmatpush1.bf16.msra.mxu0 %v1175_v4 }
  0x5a   : > { %809 = vmatprep.subr.bf16.mxu0 %v1176_v5 }
  0x5b   : > { %849 = vmatpush1.bf16.msra.mxu1 %v1211_v14 }
  0x5c   : > { %850 = vmatprep.subr.bf16.mxu1 %v1215_v15 }
  0x5d   : > { %810 = vmatpush1.bf16.msra.mxu0 %v1178_v8 }
  0x5e   : > { %811 = vmatprep.subr.bf16.mxu0 %v1182_v9 }
  0x5f   : > { %851 = vmatpush1.bf16.msra.mxu1 %v1217_v19 }
  0x60   : > { %852 = vmatprep.subr.bf16.mxu1 %v1221_v21 }
  0x61   : > { %812 = vmatpush1.bf16.msra.mxu0 %v1184_v12 }
  0x62   : > { %813 = vmatprep.subr.bf16.mxu0 %v1188_v13 }
  0x63   : > { %853 = vmatpush1.bf16.msra.mxu1 %v1223_v24 }
  0x65   : > { %814 = vmatpush2.bf16.msra.mxu0 %v1190_v16 }
  0x66   : > { %815 = vmatprep.subr.bf16.mxu0 %v1194_v17  ;;  %871 = vmatmul.mubr.bf16.vlgmr.msra.gmra.mxu1 %v1227_v27 }
  0x69   : > { %816 = vmatpush2.bf16.msra.mxu0 %v1196_v22 }
  0x6a   : > { %817 = vmatprep.subr.bf16.mxu0 %v1200_v23 }
  0x6d   : > { %818 = vmatpush2.bf16.msra.mxu0 %v1202_v25 }
  0x6e   : > { %819 = vmatprep.subr.bf16.mxu0 %v1206_v26 }
  0x71   : > { %820 = vmatpush2.bf16.msra.mxu0 %v1208_v28 }
  0x72   : > { %821 = vmatprep.subr.bf16.mxu0 %v1212_v29 }
  0x75   : > { %822 = vmatpush2.bf16.msra.mxu0 %v1214_v30 }
  0x76   : > { %823 = vmatprep.subr.bf16.mxu0 %v1218_v31 }
  0x79   : > { %824 = vmatpush2.bf16.msra.mxu0 %v1220_v32 }
  0x7a   : > { %825 = vmatprep.subr.bf16.mxu0 %v1224_v33 }
  0x7d   : > { %826 = vmatpush2.bf16.msra.mxu0 %v1226_v34 }
  0x7e   : > { %827 = vmatprep.subr.bf16.mxu0 %v1228_v35 }
  0x81   : > { %828 = vmatpush2.bf16.msra.mxu0 %v1230_v36 }
  0x84   : > { %830 = vmatmul.mubr.bf16.vlgmr.msra.gmra.mxu0 %v1043_v37 }
 0x126   : > { %v872_v38 = vpop.f32.mrf.mxu1 }
 0x128   : > { %v874_v39 = vpop.f32.mrf.mxu1 }
 0x12a   : > { %v876_v40 = vpop.f32.mrf.mxu1 }
 0x12c   : > { %v877_v41 = vpop.f32.mrf.mxu1 }
 0x144   : > { %v831_v43 = vpop.f32.mrf.mxu0 }
 0x145   : > { %v873_v44 = vadd.f32 %v872_v38, %v831_v43 }
 0x146   : > { %v833_v46 = vpop.f32.mrf.mxu0 }
 0x147   : > { %v879_v47 = vadd.f32 %v873_v44, %v494_v42  ;;  %v875_v48 = vadd.f32 %v874_v39, %v833_v46  ;;  %886 = sbr.rel (%p1094_p13) target bundleno = 345 (0x159), region = 78 }
 0x148   : > { %v835_v49 = vpop.f32.mrf.mxu0 }
 0x149   : > { %v880_v50 = vadd.f32 %v875_v48, %v495_v45  ;;  %881 = vst [vmem:[%s1491_s4] sm:$0xff] %v879_v47 }
 0x14a   : > { %v836_v51 = vpop.f32.mrf.mxu0 }
 0x14b   : > { %882 = vst [vmem:[%s1491_s4 + $0x8] sm:$0xff] %v880_v50 }
 0x14c   : > { %v891_v52 = vlaneseq  ;;  %v889_v54 = vld [vmem:[%s475_s12] sm:$0x3] }
 0x14e   : > { %v892_v53 = vshrl.u32 %v891_v52, 7 }
 0x150   : > { %v893_v55 = vsub.s32 0, %v892_v53  ;;  %v897_v56 = vsub.s32 1, %v892_v53  ;;  %v887_v57 = vld [vmem:[%s1491_s4] sm:$0xff] }
 0x152   : > { %v888_v58 = vld [vmem:[%s1491_s4 + $0x8] sm:$0xff]  ;;  %v894_v59 = vrot.slane %v889_v54, %v893_v55  ;;  %v898_v60 = vrot.slane %v889_v54, %v897_v56 }
 0x154   : > { %v901_v61 = vadd.f32 %v894_v59, %v887_v57  ;;  %v902_v62 = vadd.f32 %v898_v60, %v888_v58 }
 0x156   : > { %v903_v63 = vmax.f32 %v901_v61, 0.0  ;;  %v904_v0 = vmax.f32 %v902_v62, 0.0 }
 0x158   : > { %905 = vst [vmem:[%s1491_s4] sm:$0xff] %v903_v63  ;;  %906 = vst [vmem:[%s1491_s4 + $0x8] sm:$0xff] %v904_v0 }
 0x159 PF: > { %s13_s18 = sadd.s32 1, %s1287_s18   ;;  %s1587_s12 = smov %s1267_s13 }
 0x15a   : > { %p10_p0 = scmp.ge.s32.totalorder %s13_s18, 14   ;;  %s1588_s13 = smov %s1362_s25 }
 0x15b   : > { %s1589_s14 = smov %s1279_s16  ;;  %s1590_s15 = smov %s1283_s17 }
 0x15c   : > { %s1591_s16 = smov %s1594_s19  ;;  %s1592_s17 = smov %s1598_s20 }
 0x15d   :  { %12 = sbr.rel (!%p10_p0) target bundleno = 4 (0x4), region = 119 }

// kernel: resnet18_forward.56
= control target key start
LH: loop header
LB: loop body
LE: loop exit
PB: predicated region body
PF: predicated region fallthrough
CT: control target
= control target key end

     0   :  { %s86_s0 = inlined_call_operand.vmem [shape: f32[8,512], index: 0, kind: input, shape index: {}]   ;;  %s87_s1 = inlined_call_operand.vmem [shape: f32[8,512], index: 1, kind: input, shape index: {}]   ;;  %s88_s2 = inlined_call_operand.vmem [shape: f32[8,512], index: 2, kind: output, shape index: {}]  }
   0x1   :  { %v11_v0 = vld [vmem:[%s86_s0] sm:$0xff]  ;;  %v12_v2 = vld [vmem:[%s86_s0 + $0x8] sm:$0xff]  ;;  %v13_v5 = vld [vmem:[%s86_s0 + $0x10] sm:$0xff] }
   0x2   :  { %v15_v1 = vld [vmem:[%s87_s1] sm:$0xff]  ;;  %v16_v4 = vld [vmem:[%s87_s1 + $0x8] sm:$0xff]  ;;  %v17_v6 = vld [vmem:[%s87_s1 + $0x10] sm:$0xff] }
   0x3   :  { %v19_v3 = vadd.f32 %v15_v1, %v11_v0  ;;  %v20_v7 = vadd.f32 %v16_v4, %v12_v2  ;;  %v21_v8 = vadd.f32 %v17_v6, %v13_v5  ;;  %v14_v9 = vld [vmem:[%s86_s0 + $0x18] sm:$0xff] }
   0x4   :  { %v18_v10 = vld [vmem:[%s87_s1 + $0x18] sm:$0xff] }
   0x5   :  { %v23_v11 = vmax.f32 %v19_v3, 0.0  ;;  %v22_v12 = vadd.f32 %v18_v10, %v14_v9  ;;  %v24_v13 = vmax.f32 %v20_v7, 0.0  ;;  %v25_v14 = vmax.f32 %v21_v8, 0.0 }
   0x7   :  { %27 = vst [vmem:[%s88_s2] sm:$0xff] %v23_v11  ;;  %v26_v15 = vmax.f32 %v22_v12, 0.0  ;;  %28 = vst [vmem:[%s88_s2 + $0x8] sm:$0xff] %v24_v13 }
   0x8   :  { %29 = vst [vmem:[%s88_s2 + $0x10] sm:$0xff] %v25_v14 }
   0x9   :  { %30 = vst [vmem:[%s88_s2 + $0x18] sm:$0xff] %v26_v15 }

// kernel: resnet18_forward.55
= control target key start
LH: loop header
LB: loop body
LE: loop exit
PB: predicated region body
PF: predicated region fallthrough
CT: control target
= control target key end

     0   :  { %s1022_s12 = smov 0   ;;  %s1024_s13 = smov 0   ;;  %s1215_s0 = inlined_call_operand.vmem [shape: bf16[8,256], index: 0, kind: input, shape index: {}]   ;;  %s1216_s1 = inlined_call_operand.vmem [shape: bf16[256,512], index: 1, kind: input, shape index: {}]   ;;  %s1217_s2 = inlined_call_operand.vmem [shape: f32[1,512], index: 2, kind: input, shape index: {}]   ;;  %s1218_s3 = inlined_call_operand.vmem [shape: f32[8,512], index: 3, kind: output, shape index: {}]  }
   0x1   :  { %s1026_s14 = smov 0   ;;  %s1028_s15 = smov 0  }
   0x2   :  { %s1030_s16 = smov 0  }
   0x3 LB: > { %s28_s17 = sadd.s32 1, %s995_s15  ;;  %p76_p1 = scmp.ne.s32.totalorder %s987_s13, %s983_s12  ;;  %s999_s16 = sphi %s1030_s16, %s13_s16   ;;  %s995_s15 = sphi %s1028_s15, %s1222_s15   ;;  %s991_s14 = sphi %s1026_s14, %s1221_s14   ;;  %s987_s13 = sphi %s1024_s13, %s1220_s13   ;;  %s983_s12 = sphi %s1022_s12, %s1219_s12  }
   0x4   : > { %p30_p0 = scmp.ge.s32.totalorder %s28_s17, 2  ;;  %p77_p2 = scmp.eq.s32.totalorder %s999_s16, 0 }
   0x5   : > { %s69_s19 = sadd.s32 1, %s987_s13  ;;  %p824_p5 = scmp.ge.s32.totalorder %s999_s16, 2 }
   0x6   : > { %s1224_s17 = smov (%p30_p0, %s28_s17), 0  ;;  %p78_p3 = por %p77_p2, %p76_p1 }
   0x7   : > { %s65_s18 = ssub.s32 %s995_s15, %s1224_s17  ;;  %169 = sbr.rel (%p824_p5) target bundleno = 32 (0x20), region = 20 }
   0x8   : > { %p67_p4 = scmp.eq.s32.totalorder %s65_s18, 0 }
   0xa   : > { %s1057_s20 = scalar_select %p67_p4, %s987_s13, %s69_s19  }
   0xc   : > { %172 = sbr.rel (!%p78_p3) target bundleno = 32 (0x20), region = 24  ;;  %s174_s21 = sand.u32 (%p78_p3), 1, %s987_s13  }
   0xd   : > { %s869_s22 = sshll.u32 (%p78_p3), %s995_s15, 3  ;;  %s825_s23 = sshll.u32 (%p78_p3), %s174_s21, 8 }
   0xe   : > { %s1065_s26 = scalar_lea.vmem (%p78_p3), %s1216_s1, %s869_s22  ;;  %s1070_s27 = scalar_lea.vmem (%p78_p3), [#allocation2], %s825_s23 }
   0xf   : > { %v273_v0 = vld [vmem:[%s1065_s26] sm:$0xff] (%p78_p3)  ;;  %v275_v1 = vld [vmem:[%s1065_s26 + $0x10] sm:$0xff] (%p78_p3) }
  0x10   : > { %v277_v2 = vld [vmem:[%s1065_s26 + $0x20] sm:$0xff] (%p78_p3)  ;;  %274 = vst [vmem:[%s1070_s27] sm:$0xff] (%p78_p3), %v273_v0  ;;  %276 = vst [vmem:[%s1070_s27 + $0x8] sm:$0xff] (%p78_p3), %v275_v1  ;;  %v279_v3 = vld [vmem:[%s1065_s26 + $0x30] sm:$0xff] (%p78_p3) }
  0x11   : > { %278 = vst [vmem:[%s1070_s27 + $0x10] sm:$0xff] %v277_v2  ;;  %v281_v4 = vld [vmem:[%s1065_s26 + $0x40] sm:$0xff]  ;;  %v283_v5 = vld [vmem:[%s1065_s26 + $0x50] sm:$0xff]  ;;  %280 = vst [vmem:[%s1070_s27 + $0x18] sm:$0xff] %v279_v3 }
  0x12   : > { %282 = vst [vmem:[%s1070_s27 + $0x20] sm:$0xff] %v281_v4  ;;  %284 = vst [vmem:[%s1070_s27 + $0x28] sm:$0xff] %v283_v5  ;;  %v285_v6 = vld [vmem:[%s1065_s26 + $0x60] sm:$0xff]  ;;  %v287_v7 = vld [vmem:[%s1065_s26 + $0x70] sm:$0xff] }
  0x13   : > { %v289_v8 = vld [vmem:[%s1065_s26 + $0x80] sm:$0xff]  ;;  %286 = vst [vmem:[%s1070_s27 + $0x30] sm:$0xff] %v285_v6  ;;  %288 = vst [vmem:[%s1070_s27 + $0x38] sm:$0xff] %v287_v7  ;;  %v291_v9 = vld [vmem:[%s1065_s26 + $0x90] sm:$0xff] }
  0x14   : > { %290 = vst [vmem:[%s1070_s27 + $0x40] sm:$0xff] %v289_v8  ;;  %v293_v10 = vld [vmem:[%s1065_s26 + $0xa0] sm:$0xff]  ;;  %v295_v11 = vld [vmem:[%s1065_s26 + $0xb0] sm:$0xff]  ;;  %292 = vst [vmem:[%s1070_s27 + $0x48] sm:$0xff] %v291_v9 }
  0x15   : > { %294 = vst [vmem:[%s1070_s27 + $0x50] sm:$0xff] %v293_v10  ;;  %296 = vst [vmem:[%s1070_s27 + $0x58] sm:$0xff] %v295_v11  ;;  %v297_v12 = vld [vmem:[%s1065_s26 + $0xc0] sm:$0xff]  ;;  %v299_v13 = vld [vmem:[%s1065_s26 + $0xd0] sm:$0xff] }
  0x16   : > { %v301_v14 = vld [vmem:[%s1065_s26 + $0xe0] sm:$0xff]  ;;  %298 = vst [vmem:[%s1070_s27 + $0x60] sm:$0xff] %v297_v12  ;;  %300 = vst [vmem:[%s1070_s27 + $0x68] sm:$0xff] %v299_v13  ;;  %v303_v15 = vld [vmem:[%s1065_s26 + $0xf0] sm:$0xff] }
  0x17   : > { %302 = vst [vmem:[%s1070_s27 + $0x70] sm:$0xff] %v301_v14  ;;  %v305_v16 = vld [vmem:[%s1065_s26 + $0x100] sm:$0xff]  ;;  %v307_v17 = vld [vmem:[%s1065_s26 + $0x110] sm:$0xff]  ;;  %304 = vst [vmem:[%s1070_s27 + $0x78] sm:$0xff] %v303_v15 }
  0x18   : > { %306 = vst [vmem:[%s1070_s27 + $0x80] sm:$0xff] %v305_v16  ;;  %308 = vst [vmem:[%s1070_s27 + $0x88] sm:$0xff] %v307_v17  ;;  %v309_v18 = vld [vmem:[%s1065_s26 + $0x120] sm:$0xff]  ;;  %v311_v19 = vld [vmem:[%s1065_s26 + $0x130] sm:$0xff] }
  0x19   : > { %v313_v20 = vld [vmem:[%s1065_s26 + $0x140] sm:$0xff]  ;;  %310 = vst [vmem:[%s1070_s27 + $0x90] sm:$0xff] %v309_v18  ;;  %312 = vst [vmem:[%s1070_s27 + $0x98] sm:$0xff] %v311_v19  ;;  %v315_v21 = vld [vmem:[%s1065_s26 + $0x150] sm:$0xff] }
  0x1a   : > { %314 = vst [vmem:[%s1070_s27 + $0xa0] sm:$0xff] %v313_v20  ;;  %v317_v22 = vld [vmem:[%s1065_s26 + $0x160] sm:$0xff]  ;;  %v319_v23 = vld [vmem:[%s1065_s26 + $0x170] sm:$0xff]  ;;  %316 = vst [vmem:[%s1070_s27 + $0xa8] sm:$0xff] %v315_v21 }
  0x1b   : > { %318 = vst [vmem:[%s1070_s27 + $0xb0] sm:$0xff] %v317_v22  ;;  %320 = vst [vmem:[%s1070_s27 + $0xb8] sm:$0xff] %v319_v23  ;;  %v321_v24 = vld [vmem:[%s1065_s26 + $0x180] sm:$0xff]  ;;  %v323_v25 = vld [vmem:[%s1065_s26 + $0x190] sm:$0xff] }
  0x1c   : > { %v325_v26 = vld [vmem:[%s1065_s26 + $0x1a0] sm:$0xff]  ;;  %322 = vst [vmem:[%s1070_s27 + $0xc0] sm:$0xff] %v321_v24  ;;  %324 = vst [vmem:[%s1070_s27 + $0xc8] sm:$0xff] %v323_v25  ;;  %v327_v27 = vld [vmem:[%s1065_s26 + $0x1b0] sm:$0xff] }
  0x1d   : > { %326 = vst [vmem:[%s1070_s27 + $0xd0] sm:$0xff] %v325_v26  ;;  %v329_v28 = vld [vmem:[%s1065_s26 + $0x1c0] sm:$0xff]  ;;  %v331_v29 = vld [vmem:[%s1065_s26 + $0x1d0] sm:$0xff]  ;;  %328 = vst [vmem:[%s1070_s27 + $0xd8] sm:$0xff] %v327_v27 }
  0x1e   : > { %330 = vst [vmem:[%s1070_s27 + $0xe0] sm:$0xff] %v329_v28  ;;  %332 = vst [vmem:[%s1070_s27 + $0xe8] sm:$0xff] %v331_v29  ;;  %v333_v30 = vld [vmem:[%s1065_s26 + $0x1e0] sm:$0xff]  ;;  %v335_v31 = vld [vmem:[%s1065_s26 + $0x1f0] sm:$0xff] }
  0x1f   : > { %334 = vst [vmem:[%s1070_s27 + $0xf0] sm:$0xff] %v333_v30  ;;  %336 = vst [vmem:[%s1070_s27 + $0xf8] sm:$0xff] %v335_v31 }
  0x20 PF: > { %p828_p6 = scmp.ge.s32.totalorder %s999_s16, 1  ;;  %p349_p7 = scmp.lt.s32.totalorder %s999_s16, 3 }
  0x22   : > { %p350_p8 = pnand %p828_p6, %p349_p7 }
  0x23   : > { %s356_s28 = sand.u32 (!%p350_p8), 1, %s983_s12   ;;  %s830_s4 = sshll.u32 (!%p350_p8), %s991_s14, 1 }
  0x24   : > { %353 = sbr.rel (%p350_p8) target bundleno = 312 (0x138), region = 66  ;;  %s829_s5 = sshll.u32 (!%p350_p8), %s356_s28, 8 }
  0x25   : > { %p409_p9 = scmp.lt.s32.totalorder (!%p350_p8), %s830_s4, 3  ;;  %s1144_s6 = scalar_lea.vmem (!%p350_p8), [#allocation2], %s829_s5 }
  0x29   : > { %v1139_v32 = vld [vmem:[%s1215_s0] sm:$0xff]  ;;  %v911_v34 = vld [vmem:[%s1144_s6 + $0x74] ss:$8 sps:$4 sm:$0xff]   ;;  %s1226_s4 = smov (!%p409_p9, %s830_s4), 3  ;;  %v913_v35 = vld [vmem:[%s1144_s6 + $0x70] ss:$8 sps:$4 sm:$0xff]   ;;  %v683_v5 = vlaneseq }
  0x2a   : > { %v834_v33 = vcombine.high %v1139_v32, %v1139_v32  ;;  %631 = vmatprep.subr.bf16.mxu0 %v911_v34  ;;  %v914_v36 = vld [vmem:[%s1144_s6 + $0x64] ss:$8 sps:$4 sm:$0xff]   ;;  %s832_s7 = sshll.u32 %s1226_s4, 3  ;;  %v916_v37 = vld [vmem:[%s1144_s6 + $0x60] ss:$8 sps:$4 sm:$0xff]   ;;  %v1001_v39 = vmov 0.0   ;;  %v833_v3 = vcombine.low %v1139_v32, %v1139_v32  ;;  %s411_s14 = scalar_lea.vmem %s1217_s2, %s1226_s4 }
  0x2b   : > { %632 = vmatpush1.bf16.msra.mxu0 %v913_v35  ;;  %s1156_s10 = scalar_lea.vmem %s1218_s3, %s832_s7  ;;  %v917_v38 = vld [vmem:[%s1144_s6 + $0x54] ss:$8 sps:$4 sm:$0xff]   ;;  %v919_v40 = vld [vmem:[%s1144_s6 + $0x50] ss:$8 sps:$4 sm:$0xff]   ;;  %v920_v41 = vld [vmem:[%s1144_s6 + $0x44] ss:$8 sps:$4 sm:$0xff]  }
  0x2c   : > { %663 = vmatprep.mubr.bf16.mxu0 %v834_v33  ;;  %633 = vmatprep.subr.bf16.mxu0 %v914_v36  ;;  %427 = vst [vmem:[%s1156_s10] sm:$0xff] %v1001_v39  ;;  %428 = vst [vmem:[%s1156_s10 + $0x8] sm:$0xff] %v1001_v39  ;;  %v922_v42 = vld [vmem:[%s1144_s6 + $0x40] ss:$8 sps:$4 sm:$0xff]   ;;  %v923_v43 = vld [vmem:[%s1144_s6 + $0x34] ss:$8 sps:$4 sm:$0xff]   ;;  %v684_v9 = vshrl.u32 %v683_v5, 7 }
  0x2d   : > { %v925_v44 = vld [vmem:[%s1144_s6 + $0x30] ss:$8 sps:$4 sm:$0xff]   ;;  %v926_v45 = vld [vmem:[%s1144_s6 + $0x24] ss:$8 sps:$4 sm:$0xff]   ;;  %v928_v46 = vld [vmem:[%s1144_s6 + $0x20] ss:$8 sps:$4 sm:$0xff]  }
  0x2e   : > { %v929_v47 = vld [vmem:[%s1144_s6 + $0x14] ss:$8 sps:$4 sm:$0xff]   ;;  %v931_v48 = vld [vmem:[%s1144_s6 + $0x10] ss:$8 sps:$4 sm:$0xff]   ;;  %v932_v49 = vld [vmem:[%s1144_s6 + $0x4] ss:$8 sps:$4 sm:$0xff]  }
  0x2f   : > { %634 = vmatpush1.bf16.msra.mxu0 %v916_v37  ;;  %v934_v50 = vld [vmem:[%s1144_s6] ss:$8 sps:$4 sm:$0xff]   ;;  %v935_v51 = vld [vmem:[%s1144_s6 + $0xf4] ss:$8 sps:$4 sm:$0xff]   ;;  %v937_v52 = vld [vmem:[%s1144_s6 + $0xf0] ss:$8 sps:$4 sm:$0xff]  }
  0x30   : > { %635 = vmatprep.subr.bf16.mxu0 %v917_v38  ;;  %v938_v53 = vld [vmem:[%s1144_s6 + $0xe4] ss:$8 sps:$4 sm:$0xff]   ;;  %v940_v54 = vld [vmem:[%s1144_s6 + $0xe0] ss:$8 sps:$4 sm:$0xff]   ;;  %v941_v55 = vld [vmem:[%s1144_s6 + $0xd4] ss:$8 sps:$4 sm:$0xff]  }
  0x31   : > { %v943_v56 = vld [vmem:[%s1144_s6 + $0xd0] ss:$8 sps:$4 sm:$0xff]   ;;  %v944_v57 = vld [vmem:[%s1144_s6 + $0xc4] ss:$8 sps:$4 sm:$0xff]   ;;  %v946_v58 = vld [vmem:[%s1144_s6 + $0xc0] ss:$8 sps:$4 sm:$0xff]  }
  0x32   : > { %v947_v59 = vld [vmem:[%s1144_s6 + $0xb4] ss:$8 sps:$4 sm:$0xff]   ;;  %v949_v60 = vld [vmem:[%s1144_s6 + $0xb0] ss:$8 sps:$4 sm:$0xff]   ;;  %v950_v61 = vld [vmem:[%s1144_s6 + $0xa4] ss:$8 sps:$4 sm:$0xff]  }
  0x33   : > { %636 = vmatpush1.bf16.msra.mxu0 %v919_v40  ;;  %v952_v62 = vld [vmem:[%s1144_s6 + $0xa0] ss:$8 sps:$4 sm:$0xff]   ;;  %v953_v63 = vld [vmem:[%s1144_s6 + $0x94] ss:$8 sps:$4 sm:$0xff]   ;;  %v955_v0 = vld [vmem:[%s1144_s6 + $0x90] ss:$8 sps:$4 sm:$0xff]  }
  0x34   : > { %637 = vmatprep.subr.bf16.mxu0 %v920_v41  ;;  %v956_v1 = vld [vmem:[%s1144_s6 + $0x84] ss:$8 sps:$4 sm:$0xff]   ;;  %v958_v2 = vld [vmem:[%s1144_s6 + $0x80] ss:$8 sps:$4 sm:$0xff]   ;;  %v685_v11 = vsub.s32 0, %v684_v9  ;;  %v689_v12 = vsub.s32 1, %v684_v9 }
  0x35   : > { %v429_v4 = vld [vmem:[%s1156_s10] sm:$0xff] }
  0x36   : > { %v681_v14 = vld [vmem:[%s411_s14] sm:$0x3] }
  0x37   : > { %638 = vmatpush1.bf16.msra.mxu0 %v922_v42  ;;  %v686_v15 = vrot.slane %v681_v14, %v685_v11  ;;  %v690_v16 = vrot.slane %v681_v14, %v689_v12 }
  0x38   : > { %639 = vmatprep.subr.bf16.mxu0 %v923_v43 }
  0x3b   : > { %640 = vmatpush1.bf16.msra.mxu0 %v925_v44 }
  0x3c   : > { %641 = vmatprep.subr.bf16.mxu0 %v926_v45 }
  0x3f   : > { %642 = vmatpush1.bf16.msra.mxu0 %v928_v46 }
  0x40   : > { %643 = vmatprep.subr.bf16.mxu0 %v929_v47 }
  0x43   : > { %644 = vmatpush1.bf16.msra.mxu0 %v931_v48 }
  0x44   : > { %645 = vmatprep.subr.bf16.mxu0 %v932_v49 }
  0x47   : > { %646 = vmatpush1.bf16.msra.mxu0 %v934_v50 }
  0x48   : > { %647 = vmatprep.subr.bf16.mxu0 %v935_v51 }
  0x4b   : > { %648 = vmatpush2.bf16.msra.mxu0 %v937_v52 }
  0x4c   : > { %649 = vmatprep.subr.bf16.mxu0 %v938_v53 }
  0x4f   : > { %650 = vmatpush2.bf16.msra.mxu0 %v940_v54 }
  0x50   : > { %651 = vmatprep.subr.bf16.mxu0 %v941_v55 }
  0x53   : > { %652 = vmatpush2.bf16.msra.mxu0 %v943_v56 }
  0x54   : > { %653 = vmatprep.subr.bf16.mxu0 %v944_v57 }
  0x57   : > { %654 = vmatpush2.bf16.msra.mxu0 %v946_v58 }
  0x58   : > { %655 = vmatprep.subr.bf16.mxu0 %v947_v59 }
  0x5b   : > { %656 = vmatpush2.bf16.msra.mxu0 %v949_v60 }
  0x5c   : > { %657 = vmatprep.subr.bf16.mxu0 %v950_v61 }
  0x5f   : > { %658 = vmatpush2.bf16.msra.mxu0 %v952_v62 }
  0x60   : > { %659 = vmatprep.subr.bf16.mxu0 %v953_v63 }
  0x63   : > { %660 = vmatpush2.bf16.msra.mxu0 %v955_v0 }
  0x64   : > { %661 = vmatprep.subr.bf16.mxu0 %v956_v1 }
  0x67   : > { %662 = vmatpush2.bf16.msra.mxu0 %v958_v2 }
  0x6a   : > { %664 = vmatmul.mubr.bf16.vlgmr.msra.gmra.mxu0 %v833_v3 }
 0x12a   : > { %v665_v6 = vpop.f32.mrf.mxu0 }
 0x12b   : > { %v672_v7 = vadd.f32 %v665_v6, %v429_v4 }
 0x12c   : > { %v667_v8 = vpop.f32.mrf.mxu0 }
 0x12d   : > { %674 = vst [vmem:[%s1156_s10] sm:$0xff] %v672_v7  ;;  %675 = vst [vmem:[%s1156_s10 + $0x8] sm:$0xff] %v667_v8  ;;  %v694_v19 = vadd.f32 %v690_v16, %v667_v8 }
 0x12e   : > { %v669_v10 = vpop.f32.mrf.mxu0 }
 0x12f   : > { %696 = vst [vmem:[%s1156_s10 + $0x8] sm:$0xff] %v694_v19 }
 0x130   : > { %v670_v13 = vpop.f32.mrf.mxu0 }
 0x134   : > { %v679_v17 = vld [vmem:[%s1156_s10] sm:$0xff] }
 0x135   : > { %v693_v18 = vadd.f32 %v686_v15, %v679_v17 }
 0x137   : > { %695 = vst [vmem:[%s1156_s10] sm:$0xff] %v693_v18 }
 0x138 PF: > { %s13_s16 = sadd.s32 1, %s999_s16   ;;  %s1219_s12 = smov %s987_s13 }
 0x139   : > { %p10_p10 = scmp.ge.s32.totalorder %s13_s16, 4   ;;  %s1220_s13 = smov %s1057_s20 }
 0x13a   : > { %s1221_s14 = smov %s995_s15  ;;  %s1222_s15 = smov %s1224_s17 }
 0x13b   :  { %12 = sbr.rel (!%p10_p10) target bundleno = 3 (0x3), region = 119 }

// kernel: resnet18_forward.54
= control target key start
LH: loop header
LB: loop body
LE: loop exit
PB: predicated region body
PF: predicated region fallthrough
CT: control target
= control target key end

     0   :  { %s1513_s12 = smov 0   ;;  %s1515_s13 = smov 0   ;;  %s1833_s0 = inlined_call_operand.vmem [shape: bf16[8,4608], index: 0, kind: input, shape index: {}]   ;;  %s1834_s1 = inlined_call_operand.vmem [shape: bf16[4608,512], index: 1, kind: input, shape index: {}]   ;;  %s1835_s2 = inlined_call_operand.vmem [shape: f32[1,512], index: 2, kind: input, shape index: {}]   ;;  %s1836_s3 = inlined_call_operand.vmem [shape: f32[8,512], index: 3, kind: output, shape index: {}]  }
   0x1   :  { %s1517_s14 = smov 0   ;;  %s1519_s15 = smov 0  }
   0x2   :  { %s1521_s16 = smov 0   ;;  %s1523_s17 = smov 0  }
   0x3   :  { %s1525_s18 = smov 0  }
   0x4 LB: > { %s25_s19 = sadd.s32 1, %s1482_s16  ;;  %s28_s20 = sadd.s32 1, %s1486_s17  ;;  %s1490_s18 = sphi %s1525_s18, %s13_s18   ;;  %s1486_s17 = sphi %s1523_s17, %s1842_s17   ;;  %s1482_s16 = sphi %s1521_s16, %s1841_s16   ;;  %s1478_s15 = sphi %s1519_s15, %s1840_s15   ;;  %s1474_s14 = sphi %s1517_s14, %s1839_s14   ;;  %s1470_s13 = sphi %s1515_s13, %s1838_s13   ;;  %s1466_s12 = sphi %s1513_s12, %s1837_s12  }
   0x5   : > { %p26_p0 = scmp.ge.s32.totalorder %s25_s19, 9  ;;  %p76_p1 = scmp.ne.s32.totalorder %s1470_s13, %s1466_s12 }
   0x6   : > { %p77_p2 = scmp.eq.s32.totalorder %s1490_s18, 0  ;;  %s69_s24 = sadd.s32 1, %s1470_s13 }
   0x7   : > { %s1844_s19 = smov (%p26_p0, %s25_s19), 0  ;;  %s1846_s20 = smov (!%p26_p0, %s28_s20), %s1486_s17 }
   0x8   : > { %p78_p3 = por %p77_p2, %p76_p1  ;;  %p30_p4 = scmp.ge.s32.totalorder %s1846_s20, 2 }
   0x9   : > { %s64_s21 = ssub.s32 %s1482_s16, %s1844_s19  ;;  %p1193_p6 = scmp.ge.s32.totalorder %s1490_s18, 18 }
   0xa   : > { %s1848_s20 = smov (%p30_p4, %s1846_s20), 0 }
   0xb   : > { %s65_s22 = ssub.s32 %s1486_s17, %s1848_s20  ;;  %156 = sbr.rel (%p1193_p6) target bundleno = 55 (0x37), region = 16 }
   0xc   : > { %s66_s23 = sor.u32 %s65_s22, %s64_s21 }
   0xd   : > { %p67_p5 = scmp.eq.s32.totalorder %s66_s23, 0 }
   0xf   : > { %s1564_s25 = scalar_select %p67_p5, %s1470_s13, %s69_s24  }
  0x10   : > { %172 = sbr.rel (!%p78_p3) target bundleno = 55 (0x37), region = 24  ;;  %s174_s26 = sand.u32 (%p78_p3), 1, %s1470_s13  }
  0x11   : > { %s1196_s27 = sshll.u32 (%p78_p3), %s1486_s17, 1  ;;  %s1194_s28 = sshll.u32 (%p78_p3), %s174_s26, 9 }
  0x12   : > { %s1278_s29 = sshll.u32 (%p78_p3), %s1482_s16, 8  ;;  %s1578_s8 = scalar_lea.vmem (%p78_p3), [#allocation2], %s1194_s28 }
  0x13   : > { %s180_s30 = sadd.s32 (%p78_p3), %s1278_s29, %s1196_s27 }
  0x14   : > { %s1198_s4 = sshll.u32 (%p78_p3), %s180_s30, 2 }
  0x15   : > { %s1573_s7 = scalar_lea.vmem %s1834_s1, %s1198_s4 }
  0x16   : > { %v337_v0 = vld [vmem:[%s1573_s7] sm:$0xff]  ;;  %v339_v1 = vld [vmem:[%s1573_s7 + $0x10] sm:$0xff] }
  0x17   : > { %v341_v2 = vld [vmem:[%s1573_s7 + $0x20] sm:$0xff]  ;;  %338 = vst [vmem:[%s1578_s8] sm:$0xff] %v337_v0  ;;  %340 = vst [vmem:[%s1578_s8 + $0x8] sm:$0xff] %v339_v1  ;;  %v343_v3 = vld [vmem:[%s1573_s7 + $0x30] sm:$0xff] }
  0x18   : > { %342 = vst [vmem:[%s1578_s8 + $0x10] sm:$0xff] %v341_v2  ;;  %v345_v4 = vld [vmem:[%s1573_s7 + $0x40] sm:$0xff]  ;;  %v347_v5 = vld [vmem:[%s1573_s7 + $0x50] sm:$0xff]  ;;  %344 = vst [vmem:[%s1578_s8 + $0x18] sm:$0xff] %v343_v3 }
  0x19   : > { %346 = vst [vmem:[%s1578_s8 + $0x20] sm:$0xff] %v345_v4  ;;  %348 = vst [vmem:[%s1578_s8 + $0x28] sm:$0xff] %v347_v5  ;;  %v349_v6 = vld [vmem:[%s1573_s7 + $0x60] sm:$0xff]  ;;  %v351_v7 = vld [vmem:[%s1573_s7 + $0x70] sm:$0xff] }
  0x1a   : > { %v353_v8 = vld [vmem:[%s1573_s7 + $0x80] sm:$0xff]  ;;  %350 = vst [vmem:[%s1578_s8 + $0x30] sm:$0xff] %v349_v6  ;;  %352 = vst [vmem:[%s1578_s8 + $0x38] sm:$0xff] %v351_v7  ;;  %v355_v9 = vld [vmem:[%s1573_s7 + $0x90] sm:$0xff] }
  0x1b   : > { %354 = vst [vmem:[%s1578_s8 + $0x40] sm:$0xff] %v353_v8  ;;  %v357_v10 = vld [vmem:[%s1573_s7 + $0xa0] sm:$0xff]  ;;  %v359_v11 = vld [vmem:[%s1573_s7 + $0xb0] sm:$0xff]  ;;  %356 = vst [vmem:[%s1578_s8 + $0x48] sm:$0xff] %v355_v9 }
  0x1c   : > { %358 = vst [vmem:[%s1578_s8 + $0x50] sm:$0xff] %v357_v10  ;;  %360 = vst [vmem:[%s1578_s8 + $0x58] sm:$0xff] %v359_v11  ;;  %v361_v12 = vld [vmem:[%s1573_s7 + $0xc0] sm:$0xff]  ;;  %v363_v13 = vld [vmem:[%s1573_s7 + $0xd0] sm:$0xff] }
  0x1d   : > { %v365_v14 = vld [vmem:[%s1573_s7 + $0xe0] sm:$0xff]  ;;  %362 = vst [vmem:[%s1578_s8 + $0x60] sm:$0xff] %v361_v12  ;;  %364 = vst [vmem:[%s1578_s8 + $0x68] sm:$0xff] %v363_v13  ;;  %v367_v15 = vld [vmem:[%s1573_s7 + $0xf0] sm:$0xff] }
  0x1e   : > { %366 = vst [vmem:[%s1578_s8 + $0x70] sm:$0xff] %v365_v14  ;;  %v369_v16 = vld [vmem:[%s1573_s7 + $0x100] sm:$0xff]  ;;  %v371_v17 = vld [vmem:[%s1573_s7 + $0x110] sm:$0xff]  ;;  %368 = vst [vmem:[%s1578_s8 + $0x78] sm:$0xff] %v367_v15 }
  0x1f   : > { %370 = vst [vmem:[%s1578_s8 + $0x80] sm:$0xff] %v369_v16  ;;  %372 = vst [vmem:[%s1578_s8 + $0x88] sm:$0xff] %v371_v17  ;;  %v373_v18 = vld [vmem:[%s1573_s7 + $0x120] sm:$0xff]  ;;  %v375_v19 = vld [vmem:[%s1573_s7 + $0x130] sm:$0xff] }
  0x20   : > { %v377_v20 = vld [vmem:[%s1573_s7 + $0x140] sm:$0xff]  ;;  %374 = vst [vmem:[%s1578_s8 + $0x90] sm:$0xff] %v373_v18  ;;  %376 = vst [vmem:[%s1578_s8 + $0x98] sm:$0xff] %v375_v19  ;;  %v379_v21 = vld [vmem:[%s1573_s7 + $0x150] sm:$0xff] }
  0x21   : > { %378 = vst [vmem:[%s1578_s8 + $0xa0] sm:$0xff] %v377_v20  ;;  %v381_v22 = vld [vmem:[%s1573_s7 + $0x160] sm:$0xff]  ;;  %v383_v23 = vld [vmem:[%s1573_s7 + $0x170] sm:$0xff]  ;;  %380 = vst [vmem:[%s1578_s8 + $0xa8] sm:$0xff] %v379_v21 }
  0x22   : > { %382 = vst [vmem:[%s1578_s8 + $0xb0] sm:$0xff] %v381_v22  ;;  %384 = vst [vmem:[%s1578_s8 + $0xb8] sm:$0xff] %v383_v23  ;;  %v385_v24 = vld [vmem:[%s1573_s7 + $0x180] sm:$0xff]  ;;  %v387_v25 = vld [vmem:[%s1573_s7 + $0x190] sm:$0xff] }
  0x23   : > { %v389_v26 = vld [vmem:[%s1573_s7 + $0x1a0] sm:$0xff]  ;;  %386 = vst [vmem:[%s1578_s8 + $0xc0] sm:$0xff] %v385_v24  ;;  %388 = vst [vmem:[%s1578_s8 + $0xc8] sm:$0xff] %v387_v25  ;;  %v391_v27 = vld [vmem:[%s1573_s7 + $0x1b0] sm:$0xff] }
  0x24   : > { %390 = vst [vmem:[%s1578_s8 + $0xd0] sm:$0xff] %v389_v26  ;;  %v393_v28 = vld [vmem:[%s1573_s7 + $0x1c0] sm:$0xff]  ;;  %v395_v29 = vld [vmem:[%s1573_s7 + $0x1d0] sm:$0xff]  ;;  %392 = vst [vmem:[%s1578_s8 + $0xd8] sm:$0xff] %v391_v27 }
  0x25   : > { %394 = vst [vmem:[%s1578_s8 + $0xe0] sm:$0xff] %v393_v28  ;;  %396 = vst [vmem:[%s1578_s8 + $0xe8] sm:$0xff] %v395_v29  ;;  %v397_v30 = vld [vmem:[%s1573_s7 + $0x1e0] sm:$0xff]  ;;  %v399_v31 = vld [vmem:[%s1573_s7 + $0x1f0] sm:$0xff] }
  0x26   : > { %v401_v32 = vld [vmem:[%s1573_s7 + $0x200] sm:$0xff]  ;;  %398 = vst [vmem:[%s1578_s8 + $0xf0] sm:$0xff] %v397_v30  ;;  %400 = vst [vmem:[%s1578_s8 + $0xf8] sm:$0xff] %v399_v31  ;;  %v403_v33 = vld [vmem:[%s1573_s7 + $0x210] sm:$0xff] }
  0x27   : > { %402 = vst [vmem:[%s1578_s8 + $0x100] sm:$0xff] %v401_v32  ;;  %v405_v34 = vld [vmem:[%s1573_s7 + $0x220] sm:$0xff]  ;;  %v407_v35 = vld [vmem:[%s1573_s7 + $0x230] sm:$0xff]  ;;  %404 = vst [vmem:[%s1578_s8 + $0x108] sm:$0xff] %v403_v33 }
  0x28   : > { %406 = vst [vmem:[%s1578_s8 + $0x110] sm:$0xff] %v405_v34  ;;  %408 = vst [vmem:[%s1578_s8 + $0x118] sm:$0xff] %v407_v35  ;;  %v409_v36 = vld [vmem:[%s1573_s7 + $0x240] sm:$0xff]  ;;  %v411_v37 = vld [vmem:[%s1573_s7 + $0x250] sm:$0xff] }
  0x29   : > { %v413_v38 = vld [vmem:[%s1573_s7 + $0x260] sm:$0xff]  ;;  %410 = vst [vmem:[%s1578_s8 + $0x120] sm:$0xff] %v409_v36  ;;  %412 = vst [vmem:[%s1578_s8 + $0x128] sm:$0xff] %v411_v37  ;;  %v415_v39 = vld [vmem:[%s1573_s7 + $0x270] sm:$0xff] }
  0x2a   : > { %414 = vst [vmem:[%s1578_s8 + $0x130] sm:$0xff] %v413_v38  ;;  %v417_v40 = vld [vmem:[%s1573_s7 + $0x280] sm:$0xff]  ;;  %v419_v41 = vld [vmem:[%s1573_s7 + $0x290] sm:$0xff]  ;;  %416 = vst [vmem:[%s1578_s8 + $0x138] sm:$0xff] %v415_v39 }
  0x2b   : > { %418 = vst [vmem:[%s1578_s8 + $0x140] sm:$0xff] %v417_v40  ;;  %420 = vst [vmem:[%s1578_s8 + $0x148] sm:$0xff] %v419_v41  ;;  %v421_v42 = vld [vmem:[%s1573_s7 + $0x2a0] sm:$0xff]  ;;  %v423_v43 = vld [vmem:[%s1573_s7 + $0x2b0] sm:$0xff] }
  0x2c   : > { %v425_v44 = vld [vmem:[%s1573_s7 + $0x2c0] sm:$0xff]  ;;  %422 = vst [vmem:[%s1578_s8 + $0x150] sm:$0xff] %v421_v42  ;;  %424 = vst [vmem:[%s1578_s8 + $0x158] sm:$0xff] %v423_v43  ;;  %v427_v45 = vld [vmem:[%s1573_s7 + $0x2d0] sm:$0xff] }
  0x2d   : > { %426 = vst [vmem:[%s1578_s8 + $0x160] sm:$0xff] %v425_v44  ;;  %v429_v46 = vld [vmem:[%s1573_s7 + $0x2e0] sm:$0xff]  ;;  %v431_v47 = vld [vmem:[%s1573_s7 + $0x2f0] sm:$0xff]  ;;  %428 = vst [vmem:[%s1578_s8 + $0x168] sm:$0xff] %v427_v45 }
  0x2e   : > { %430 = vst [vmem:[%s1578_s8 + $0x170] sm:$0xff] %v429_v46  ;;  %432 = vst [vmem:[%s1578_s8 + $0x178] sm:$0xff] %v431_v47  ;;  %v433_v48 = vld [vmem:[%s1573_s7 + $0x300] sm:$0xff]  ;;  %v435_v49 = vld [vmem:[%s1573_s7 + $0x310] sm:$0xff] }
  0x2f   : > { %v437_v50 = vld [vmem:[%s1573_s7 + $0x320] sm:$0xff]  ;;  %434 = vst [vmem:[%s1578_s8 + $0x180] sm:$0xff] %v433_v48  ;;  %436 = vst [vmem:[%s1578_s8 + $0x188] sm:$0xff] %v435_v49  ;;  %v439_v51 = vld [vmem:[%s1573_s7 + $0x330] sm:$0xff] }
  0x30   : > { %438 = vst [vmem:[%s1578_s8 + $0x190] sm:$0xff] %v437_v50  ;;  %v441_v52 = vld [vmem:[%s1573_s7 + $0x340] sm:$0xff]  ;;  %v443_v53 = vld [vmem:[%s1573_s7 + $0x350] sm:$0xff]  ;;  %440 = vst [vmem:[%s1578_s8 + $0x198] sm:$0xff] %v439_v51 }
  0x31   : > { %442 = vst [vmem:[%s1578_s8 + $0x1a0] sm:$0xff] %v441_v52  ;;  %444 = vst [vmem:[%s1578_s8 + $0x1a8] sm:$0xff] %v443_v53  ;;  %v445_v54 = vld [vmem:[%s1573_s7 + $0x360] sm:$0xff]  ;;  %v447_v55 = vld [vmem:[%s1573_s7 + $0x370] sm:$0xff] }
  0x32   : > { %v449_v56 = vld [vmem:[%s1573_s7 + $0x380] sm:$0xff]  ;;  %446 = vst [vmem:[%s1578_s8 + $0x1b0] sm:$0xff] %v445_v54  ;;  %448 = vst [vmem:[%s1578_s8 + $0x1b8] sm:$0xff] %v447_v55  ;;  %v451_v57 = vld [vmem:[%s1573_s7 + $0x390] sm:$0xff] }
  0x33   : > { %450 = vst [vmem:[%s1578_s8 + $0x1c0] sm:$0xff] %v449_v56  ;;  %v453_v58 = vld [vmem:[%s1573_s7 + $0x3a0] sm:$0xff]  ;;  %v455_v59 = vld [vmem:[%s1573_s7 + $0x3b0] sm:$0xff]  ;;  %452 = vst [vmem:[%s1578_s8 + $0x1c8] sm:$0xff] %v451_v57 }
  0x34   : > { %454 = vst [vmem:[%s1578_s8 + $0x1d0] sm:$0xff] %v453_v58  ;;  %456 = vst [vmem:[%s1578_s8 + $0x1d8] sm:$0xff] %v455_v59  ;;  %v457_v60 = vld [vmem:[%s1573_s7 + $0x3c0] sm:$0xff]  ;;  %v459_v61 = vld [vmem:[%s1573_s7 + $0x3d0] sm:$0xff] }
  0x35   : > { %v461_v62 = vld [vmem:[%s1573_s7 + $0x3e0] sm:$0xff]  ;;  %458 = vst [vmem:[%s1578_s8 + $0x1e0] sm:$0xff] %v457_v60  ;;  %460 = vst [vmem:[%s1578_s8 + $0x1e8] sm:$0xff] %v459_v61  ;;  %v463_v63 = vld [vmem:[%s1573_s7 + $0x3f0] sm:$0xff] }
  0x36   : > { %462 = vst [vmem:[%s1578_s8 + $0x1f0] sm:$0xff] %v461_v62  ;;  %464 = vst [vmem:[%s1578_s8 + $0x1f8] sm:$0xff] %v463_v63 }
  0x37 PF: > { %p1199_p7 = scmp.ge.s32.totalorder %s1490_s18, 1  ;;  %p477_p8 = scmp.lt.s32.totalorder %s1490_s18, 19 }
  0x39   : > { %p478_p9 = pnand %p1199_p7, %p477_p8 }
  0x3a   : > { %s484_s9 = sand.u32 (!%p478_p9), 1, %s1466_s12   ;;  %s1201_s10 = sshll.u32 (!%p478_p9), %s1474_s14, 2 }
  0x3b   : > { %481 = sbr.rel (%p478_p9) target bundleno = 351 (0x15f), region = 66  ;;  %s1200_s11 = sshll.u32 (!%p478_p9), %s484_s9, 9 }
  0x3c   : > { %p527_p10 = scmp.lt.s32.totalorder (!%p478_p9), %s1201_s10, 35  ;;  %s1203_s21 = sshll.u32 (!%p478_p9), %s1478_s15, 1 }
  0x3d   : > { %p537_p11 = scmp.lt.s32.totalorder (!%p478_p9), %s1203_s21, 3  ;;  %s1727_s5 = scalar_lea.vmem (!%p478_p9), [#allocation2], %s1200_s11 }
  0x3e   : > { %p1206_p12 = scmp.ne.s32.totalorder (!%p478_p9), %s1474_s14, 0 }
  0x40   : > { %s1850_s10 = smov (!%p527_p10, %s1201_s10), 35  ;;  %s1852_s21 = smov (!%p537_p11, %s1203_s21), 3 }
  0x41   : > { %s1202_s22 = sshll.u32 %s1850_s10, 2  ;;  %s539_s12 = scalar_lea.vmem %s1835_s2, %s1852_s21 }
  0x42   : > { %s1713_s26 = scalar_lea.vmem %s1833_s0, %s1202_s22  ;;  %s1205_s29 = sshll.u32 %s1852_s21, 3 }
  0x43   : > { %s1725_s15 = scalar_lea.vmem %s1836_s3, %s1205_s29  ;;  %554 = sbr.rel (%p1206_p12) target bundleno = 74 (0x4a), region = 74 }
  0x48   : > { %v1492_v0 = vmov 0.0  }
  0x49   : > { %555 = vst [vmem:[%s1725_s15] sm:$0xff] %v1492_v0  ;;  %556 = vst [vmem:[%s1725_s15 + $0x8] sm:$0xff] %v1492_v0 }
  0x4a PF: > { %v1336_v1 = vld [vmem:[%s1727_s5 + $0x74] ss:$8 sps:$4 sm:$0xff]   ;;  %v1340_v3 = vld [vmem:[%s1727_s5 + $0x70] ss:$8 sps:$4 sm:$0xff]   ;;  %v1342_v5 = vld [vmem:[%s1727_s5 + $0x64] ss:$8 sps:$4 sm:$0xff]  }
  0x4b   : > { %v1338_v2 = vld [vmem:[%s1727_s5 + $0x174] ss:$8 sps:$4 sm:$0xff]   ;;  %959 = vmatprep.subr.bf16.mxu0 %v1336_v1  ;;  %v1341_v4 = vld [vmem:[%s1727_s5 + $0x170] ss:$8 sps:$4 sm:$0xff]   ;;  %v1344_v6 = vld [vmem:[%s1727_s5 + $0x164] ss:$8 sps:$4 sm:$0xff]  }
  0x4c   : > { %1000 = vmatprep.subr.bf16.mxu1 %v1338_v2  ;;  %960 = vmatpush1.bf16.msra.mxu0 %v1340_v3  ;;  %v1346_v7 = vld [vmem:[%s1727_s5 + $0x60] ss:$8 sps:$4 sm:$0xff]   ;;  %v1348_v9 = vld [vmem:[%s1727_s5 + $0x54] ss:$8 sps:$4 sm:$0xff]   ;;  %v1352_v11 = vld [vmem:[%s1727_s5 + $0x50] ss:$8 sps:$4 sm:$0xff]  }
  0x4d   : > { %1001 = vmatpush1.bf16.msra.mxu1 %v1341_v4  ;;  %961 = vmatprep.subr.bf16.mxu0 %v1342_v5  ;;  %v1347_v8 = vld [vmem:[%s1727_s5 + $0x160] ss:$8 sps:$4 sm:$0xff]   ;;  %v1350_v10 = vld [vmem:[%s1727_s5 + $0x154] ss:$8 sps:$4 sm:$0xff]   ;;  %v1353_v12 = vld [vmem:[%s1727_s5 + $0x150] ss:$8 sps:$4 sm:$0xff]  }
  0x4e   : > { %1002 = vmatprep.subr.bf16.mxu1 %v1344_v6  ;;  %v1354_v13 = vld [vmem:[%s1727_s5 + $0x44] ss:$8 sps:$4 sm:$0xff]   ;;  %v1358_v15 = vld [vmem:[%s1727_s5 + $0x40] ss:$8 sps:$4 sm:$0xff]   ;;  %v1360_v17 = vld [vmem:[%s1727_s5 + $0x34] ss:$8 sps:$4 sm:$0xff]  }
  0x4f   : > { %v1356_v14 = vld [vmem:[%s1727_s5 + $0x144] ss:$8 sps:$4 sm:$0xff]   ;;  %v1359_v16 = vld [vmem:[%s1727_s5 + $0x140] ss:$8 sps:$4 sm:$0xff]   ;;  %v1362_v18 = vld [vmem:[%s1727_s5 + $0x134] ss:$8 sps:$4 sm:$0xff]  }
  0x50   : > { %962 = vmatpush1.bf16.msra.mxu0 %v1346_v7  ;;  %v1364_v19 = vld [vmem:[%s1727_s5 + $0x30] ss:$8 sps:$4 sm:$0xff]   ;;  %v1366_v21 = vld [vmem:[%s1727_s5 + $0x24] ss:$8 sps:$4 sm:$0xff]   ;;  %v1370_v23 = vld [vmem:[%s1727_s5 + $0x20] ss:$8 sps:$4 sm:$0xff]  }
  0x51   : > { %1003 = vmatpush1.bf16.msra.mxu1 %v1347_v8  ;;  %963 = vmatprep.subr.bf16.mxu0 %v1348_v9  ;;  %v1365_v20 = vld [vmem:[%s1727_s5 + $0x130] ss:$8 sps:$4 sm:$0xff]   ;;  %v1368_v22 = vld [vmem:[%s1727_s5 + $0x124] ss:$8 sps:$4 sm:$0xff]   ;;  %v1371_v24 = vld [vmem:[%s1727_s5 + $0x120] ss:$8 sps:$4 sm:$0xff]  }
  0x52   : > { %1004 = vmatprep.subr.bf16.mxu1 %v1350_v10  ;;  %v1372_v25 = vld [vmem:[%s1727_s5 + $0x14] ss:$8 sps:$4 sm:$0xff]   ;;  %v1376_v27 = vld [vmem:[%s1727_s5 + $0x10] ss:$8 sps:$4 sm:$0xff]   ;;  %v1378_v29 = vld [vmem:[%s1727_s5 + $0x4] ss:$8 sps:$4 sm:$0xff]  }
  0x53   : > { %v1374_v26 = vld [vmem:[%s1727_s5 + $0x114] ss:$8 sps:$4 sm:$0xff]   ;;  %v1377_v28 = vld [vmem:[%s1727_s5 + $0x110] ss:$8 sps:$4 sm:$0xff]   ;;  %v1380_v30 = vld [vmem:[%s1727_s5 + $0x104] ss:$8 sps:$4 sm:$0xff]  }
  0x54   : > { %964 = vmatpush1.bf16.msra.mxu0 %v1352_v11  ;;  %v1382_v31 = vld [vmem:[%s1727_s5] ss:$8 sps:$4 sm:$0xff]   ;;  %v1384_v33 = vld [vmem:[%s1727_s5 + $0xf4] ss:$8 sps:$4 sm:$0xff]   ;;  %v1388_v35 = vld [vmem:[%s1727_s5 + $0xf0] ss:$8 sps:$4 sm:$0xff]  }
  0x55   : > { %1005 = vmatpush1.bf16.msra.mxu1 %v1353_v12  ;;  %965 = vmatprep.subr.bf16.mxu0 %v1354_v13  ;;  %v1383_v32 = vld [vmem:[%s1727_s5 + $0x100] ss:$8 sps:$4 sm:$0xff]   ;;  %v1386_v34 = vld [vmem:[%s1727_s5 + $0x1f4] ss:$8 sps:$4 sm:$0xff]   ;;  %v1389_v36 = vld [vmem:[%s1727_s5 + $0x1f0] ss:$8 sps:$4 sm:$0xff]  }
  0x56   : > { %1006 = vmatprep.subr.bf16.mxu1 %v1356_v14  ;;  %v1390_v37 = vld [vmem:[%s1727_s5 + $0xe4] ss:$8 sps:$4 sm:$0xff]   ;;  %v1394_v39 = vld [vmem:[%s1727_s5 + $0xe0] ss:$8 sps:$4 sm:$0xff]   ;;  %v1396_v41 = vld [vmem:[%s1727_s5 + $0xd4] ss:$8 sps:$4 sm:$0xff]  }
  0x57   : > { %v1392_v38 = vld [vmem:[%s1727_s5 + $0x1e4] ss:$8 sps:$4 sm:$0xff]   ;;  %v1395_v40 = vld [vmem:[%s1727_s5 + $0x1e0] ss:$8 sps:$4 sm:$0xff]   ;;  %v1398_v42 = vld [vmem:[%s1727_s5 + $0x1d4] ss:$8 sps:$4 sm:$0xff]  }
  0x58   : > { %966 = vmatpush1.bf16.msra.mxu0 %v1358_v15  ;;  %v1400_v43 = vld [vmem:[%s1727_s5 + $0xd0] ss:$8 sps:$4 sm:$0xff]   ;;  %v1402_v45 = vld [vmem:[%s1727_s5 + $0xc4] ss:$8 sps:$4 sm:$0xff]   ;;  %v1406_v50 = vld [vmem:[%s1727_s5 + $0xc0] ss:$8 sps:$4 sm:$0xff]  }
  0x59   : > { %1007 = vmatpush1.bf16.msra.mxu1 %v1359_v16  ;;  %967 = vmatprep.subr.bf16.mxu0 %v1360_v17  ;;  %v1401_v44 = vld [vmem:[%s1727_s5 + $0x1d0] ss:$8 sps:$4 sm:$0xff]   ;;  %v1404_v46 = vld [vmem:[%s1727_s5 + $0x1c4] ss:$8 sps:$4 sm:$0xff]   ;;  %v1407_v51 = vld [vmem:[%s1727_s5 + $0x1c0] ss:$8 sps:$4 sm:$0xff]  }
  0x5a   : > { %1008 = vmatprep.subr.bf16.mxu1 %v1362_v18  ;;  %v559_v47 = vld [vmem:[%s1713_s26] sm:$0xff]  ;;  %v560_v49 = vld [vmem:[%s1713_s26 + $0x8] sm:$0xff]  ;;  %v1408_v53 = vld [vmem:[%s1727_s5 + $0xb4] ss:$8 sps:$4 sm:$0xff]   ;;  %p1275_p13 = scmp.ne.s32.totalorder %s1474_s14, 8 }
  0x5b   : > { %v1208_v48 = vcombine.high %v559_v47, %v559_v47  ;;  %v1210_v52 = vcombine.high %v560_v49, %v560_v49  ;;  %v1410_v54 = vld [vmem:[%s1727_s5 + $0x1b4] ss:$8 sps:$4 sm:$0xff]   ;;  %v1412_v55 = vld [vmem:[%s1727_s5 + $0xb0] ss:$8 sps:$4 sm:$0xff]   ;;  %v1414_v57 = vld [vmem:[%s1727_s5 + $0xa4] ss:$8 sps:$4 sm:$0xff]   ;;  %v1207_v5 = vcombine.low %v559_v47, %v559_v47  ;;  %v1209_v6 = vcombine.low %v560_v49, %v560_v49 }
  0x5c   : > { %968 = vmatpush1.bf16.msra.mxu0 %v1364_v19  ;;  %v1413_v56 = vld [vmem:[%s1727_s5 + $0x1b0] ss:$8 sps:$4 sm:$0xff]   ;;  %v1416_v58 = vld [vmem:[%s1727_s5 + $0x1a4] ss:$8 sps:$4 sm:$0xff]   ;;  %v1418_v59 = vld [vmem:[%s1727_s5 + $0xa0] ss:$8 sps:$4 sm:$0xff]  }
  0x5d   : > { %1009 = vmatpush1.bf16.msra.mxu1 %v1365_v20  ;;  %969 = vmatprep.subr.bf16.mxu0 %v1366_v21  ;;  %v1419_v60 = vld [vmem:[%s1727_s5 + $0x1a0] ss:$8 sps:$4 sm:$0xff]   ;;  %v1420_v61 = vld [vmem:[%s1727_s5 + $0x94] ss:$8 sps:$4 sm:$0xff]   ;;  %v1424_v63 = vld [vmem:[%s1727_s5 + $0x90] ss:$8 sps:$4 sm:$0xff]  }
  0x5e   : > { %1010 = vmatprep.subr.bf16.mxu1 %v1368_v22  ;;  %991 = vmatprep.mubr.bf16.mxu0 %v1208_v48  ;;  %v1422_v62 = vld [vmem:[%s1727_s5 + $0x194] ss:$8 sps:$4 sm:$0xff]   ;;  %v1425_v0 = vld [vmem:[%s1727_s5 + $0x190] ss:$8 sps:$4 sm:$0xff]   ;;  %v1426_v1 = vld [vmem:[%s1727_s5 + $0x84] ss:$8 sps:$4 sm:$0xff]  }
  0x5f   : > { %1032 = vmatprep.mubr.bf16.mxu1 %v1210_v52  ;;  %v1428_v2 = vld [vmem:[%s1727_s5 + $0x184] ss:$8 sps:$4 sm:$0xff]   ;;  %v1430_v3 = vld [vmem:[%s1727_s5 + $0x80] ss:$8 sps:$4 sm:$0xff]  }
  0x60   : > { %970 = vmatpush1.bf16.msra.mxu0 %v1370_v23  ;;  %v1431_v4 = vld [vmem:[%s1727_s5 + $0x180] ss:$8 sps:$4 sm:$0xff]  }
  0x61   : > { %1011 = vmatpush1.bf16.msra.mxu1 %v1371_v24  ;;  %971 = vmatprep.subr.bf16.mxu0 %v1372_v25  ;;  %v557_v8 = vld [vmem:[%s1725_s15] sm:$0xff]  ;;  %v558_v12 = vld [vmem:[%s1725_s15 + $0x8] sm:$0xff] }
  0x62   : > { %1012 = vmatprep.subr.bf16.mxu1 %v1374_v26 }
  0x64   : > { %972 = vmatpush1.bf16.msra.mxu0 %v1376_v27 }
  0x65   : > { %1013 = vmatpush1.bf16.msra.mxu1 %v1377_v28  ;;  %973 = vmatprep.subr.bf16.mxu0 %v1378_v29 }
  0x66   : > { %1014 = vmatprep.subr.bf16.mxu1 %v1380_v30 }
  0x68   : > { %974 = vmatpush1.bf16.msra.mxu0 %v1382_v31 }
  0x69   : > { %1015 = vmatpush1.bf16.msra.mxu1 %v1383_v32  ;;  %975 = vmatprep.subr.bf16.mxu0 %v1384_v33 }
  0x6a   : > { %1016 = vmatprep.subr.bf16.mxu1 %v1386_v34 }
  0x6c   : > { %976 = vmatpush2.bf16.msra.mxu0 %v1388_v35 }
  0x6d   : > { %1017 = vmatpush2.bf16.msra.mxu1 %v1389_v36  ;;  %977 = vmatprep.subr.bf16.mxu0 %v1390_v37 }
  0x6e   : > { %1018 = vmatprep.subr.bf16.mxu1 %v1392_v38 }
  0x70   : > { %978 = vmatpush2.bf16.msra.mxu0 %v1394_v39 }
  0x71   : > { %1019 = vmatpush2.bf16.msra.mxu1 %v1395_v40  ;;  %979 = vmatprep.subr.bf16.mxu0 %v1396_v41 }
  0x72   : > { %1020 = vmatprep.subr.bf16.mxu1 %v1398_v42 }
  0x74   : > { %980 = vmatpush2.bf16.msra.mxu0 %v1400_v43 }
  0x75   : > { %1021 = vmatpush2.bf16.msra.mxu1 %v1401_v44  ;;  %981 = vmatprep.subr.bf16.mxu0 %v1402_v45 }
  0x76   : > { %1022 = vmatprep.subr.bf16.mxu1 %v1404_v46 }
  0x78   : > { %982 = vmatpush2.bf16.msra.mxu0 %v1406_v50 }
  0x79   : > { %1023 = vmatpush2.bf16.msra.mxu1 %v1407_v51  ;;  %983 = vmatprep.subr.bf16.mxu0 %v1408_v53 }
  0x7a   : > { %1024 = vmatprep.subr.bf16.mxu1 %v1410_v54 }
  0x7c   : > { %984 = vmatpush2.bf16.msra.mxu0 %v1412_v55 }
  0x7d   : > { %1025 = vmatpush2.bf16.msra.mxu1 %v1413_v56  ;;  %985 = vmatprep.subr.bf16.mxu0 %v1414_v57 }
  0x7e   : > { %1026 = vmatprep.subr.bf16.mxu1 %v1416_v58 }
  0x80   : > { %986 = vmatpush2.bf16.msra.mxu0 %v1418_v59 }
  0x81   : > { %1027 = vmatpush2.bf16.msra.mxu1 %v1419_v60  ;;  %987 = vmatprep.subr.bf16.mxu0 %v1420_v61 }
  0x82   : > { %1028 = vmatprep.subr.bf16.mxu1 %v1422_v62 }
  0x84   : > { %988 = vmatpush2.bf16.msra.mxu0 %v1424_v63 }
  0x85   : > { %1029 = vmatpush2.bf16.msra.mxu1 %v1425_v0  ;;  %989 = vmatprep.subr.bf16.mxu0 %v1426_v1 }
  0x86   : > { %1030 = vmatprep.subr.bf16.mxu1 %v1428_v2 }
  0x88   : > { %990 = vmatpush2.bf16.msra.mxu0 %v1430_v3 }
  0x89   : > { %1031 = vmatpush2.bf16.msra.mxu1 %v1431_v4 }
  0x8b   : > { %992 = vmatmul.mubr.bf16.vlgmr.msra.gmra.mxu0 %v1207_v5 }
  0x8c   : > { %1033 = vmatmul.mubr.bf16.vlgmr.msra.gmra.mxu1 %v1209_v6 }
 0x14b   : > { %v993_v7 = vpop.f32.mrf.mxu0 }
 0x14c   : > { %v1034_v9 = vpop.f32.mrf.mxu1 }
 0x14d   : > { %v1035_v10 = vadd.f32 %v1034_v9, %v993_v7  ;;  %v995_v11 = vpop.f32.mrf.mxu0 }
 0x14e   : > { %v1036_v13 = vpop.f32.mrf.mxu1 }
 0x14f   : > { %v1041_v14 = vadd.f32 %v1035_v10, %v557_v8  ;;  %v1037_v15 = vadd.f32 %v1036_v13, %v995_v11  ;;  %v997_v16 = vpop.f32.mrf.mxu0  ;;  %1048 = sbr.rel (%p1275_p13) target bundleno = 351 (0x15f), region = 78 }
 0x150   : > { %v1038_v17 = vpop.f32.mrf.mxu1 }
 0x151   : > { %v1042_v18 = vadd.f32 %v1037_v15, %v558_v12  ;;  %1043 = vst [vmem:[%s1725_s15] sm:$0xff] %v1041_v14  ;;  %v998_v19 = vpop.f32.mrf.mxu0 }
 0x152   : > { %v1039_v20 = vpop.f32.mrf.mxu1 }
 0x153   : > { %1044 = vst [vmem:[%s1725_s15 + $0x8] sm:$0xff] %v1042_v18 }
 0x154   : > { %v1053_v21 = vlaneseq  ;;  %v1051_v23 = vld [vmem:[%s539_s12] sm:$0x3] }
 0x156   : > { %v1054_v22 = vshrl.u32 %v1053_v21, 7 }
 0x158   : > { %v1055_v24 = vsub.s32 0, %v1054_v22  ;;  %v1059_v25 = vsub.s32 1, %v1054_v22  ;;  %v1049_v26 = vld [vmem:[%s1725_s15] sm:$0xff] }
 0x15a   : > { %v1050_v27 = vld [vmem:[%s1725_s15 + $0x8] sm:$0xff]  ;;  %v1056_v28 = vrot.slane %v1051_v23, %v1055_v24  ;;  %v1060_v29 = vrot.slane %v1051_v23, %v1059_v25 }
 0x15c   : > { %v1063_v30 = vadd.f32 %v1056_v28, %v1049_v26  ;;  %v1064_v31 = vadd.f32 %v1060_v29, %v1050_v27 }
 0x15e   : > { %1065 = vst [vmem:[%s1725_s15] sm:$0xff] %v1063_v30  ;;  %1066 = vst [vmem:[%s1725_s15 + $0x8] sm:$0xff] %v1064_v31 }
 0x15f PF: > { %s13_s18 = sadd.s32 1, %s1490_s18   ;;  %s1837_s12 = smov %s1470_s13 }
 0x160   : > { %p10_p0 = scmp.ge.s32.totalorder %s13_s18, 20   ;;  %s1838_s13 = smov %s1564_s25 }
 0x161   : > { %s1839_s14 = smov %s1482_s16  ;;  %s1840_s15 = smov %s1486_s17 }
 0x162   : > { %s1841_s16 = smov %s1844_s19  ;;  %s1842_s17 = smov %s1848_s20 }
 0x163   :  { %12 = sbr.rel (!%p10_p0) target bundleno = 4 (0x4), region = 119 }

// kernel: resnet18_forward.60
= control target key start
LH: loop header
LB: loop body
LE: loop exit
PB: predicated region body
PF: predicated region fallthrough
CT: control target
= control target key end

     0   :  { %s193_s6 = smov 0   ;;  %s213_s0 = inlined_call_operand.vmem [shape: f32[2,1,512], index: 0, kind: input, shape index: {}]   ;;  %s214_s1 = inlined_call_operand.vmem [shape: f32[2,1,512], index: 1, kind: output, shape index: {}]  }
   0x1 LB: > { %s172_s7 = sadd.s32 4294967295, %s195_s6   ;;  %p176_p0 = scmp.ge.s32.totalorder %s195_s6, 1  ;;  %s195_s6 = sphi %s193_s6, %s11_s6  }
   0x2   : > { %p86_p1 = scmp.lt.s32.totalorder %s195_s6, 3 }
   0x4   : > { %p87_p2 = pnand %p176_p0, %p86_p1 }
   0x5   : > { %p104_p3 = scmp.lt.s32.totalorder (!%p87_p2), %s172_s7, 1 }
   0x6   : > { %90 = sbr.rel (%p87_p2) target bundleno = 16 (0x10), region = 24 }
   0xb   : > { %v114_v0 = vlaneseq  ;;  %s216_s7 = smov (!%p104_p3, %s172_s7), 1 }
   0xc   : > { %s177_s8 = sshll.u32 %s216_s7, 2 }
   0xd   : > { %vm116_vm0 = vcmp.lt.s32.totalorder %v114_v0, 512  ;;  %s107_s11 = scalar_lea.vmem %s213_s0, %s177_s8  ;;  %s111_s14 = scalar_lea.vmem %s214_s1, %s177_s8 }
   0xe   : > { %v112_v1 = vld [vmem:[%s107_s11] sm:$0xf] }
   0xf   : > { %118 = vst.msk [vmem:[%s111_s14] sm:$0xf] %vm116_vm0, %v112_v1 }
  0x10 PF: > { %s11_s6 = sadd.s32 1, %s195_s6  }
  0x11   : > { %p8_p4 = scmp.ge.s32.totalorder %s11_s6, 4  }
  0x13   :  { %10 = sbr.rel (!%p8_p4) target bundleno = 1 (0x1), region = 54 }

// kernel: resnet18_forward.57
= control target key start
LH: loop header
LB: loop body
LE: loop exit
PB: predicated region body
PF: predicated region fallthrough
CT: control target
= control target key end

     0   :  { %s1515_s12 = smov 0   ;;  %s1517_s13 = smov 0   ;;  %s1835_s0 = inlined_call_operand.vmem [shape: bf16[8,4608], index: 0, kind: input, shape index: {}]   ;;  %s1836_s1 = inlined_call_operand.vmem [shape: bf16[4608,512], index: 1, kind: input, shape index: {}]   ;;  %s1837_s2 = inlined_call_operand.vmem [shape: f32[1,512], index: 2, kind: input, shape index: {}]   ;;  %s1838_s3 = inlined_call_operand.vmem [shape: f32[8,512], index: 3, kind: output, shape index: {}]  }
   0x1   :  { %s1519_s14 = smov 0   ;;  %s1521_s15 = smov 0  }
   0x2   :  { %s1523_s16 = smov 0   ;;  %s1525_s17 = smov 0  }
   0x3   :  { %s1527_s18 = smov 0  }
   0x4 LB: > { %s25_s19 = sadd.s32 1, %s1484_s16  ;;  %s28_s20 = sadd.s32 1, %s1488_s17  ;;  %s1492_s18 = sphi %s1527_s18, %s13_s18   ;;  %s1488_s17 = sphi %s1525_s17, %s1844_s17   ;;  %s1484_s16 = sphi %s1523_s16, %s1843_s16   ;;  %s1480_s15 = sphi %s1521_s15, %s1842_s15   ;;  %s1476_s14 = sphi %s1519_s14, %s1841_s14   ;;  %s1472_s13 = sphi %s1517_s13, %s1840_s13   ;;  %s1468_s12 = sphi %s1515_s12, %s1839_s12  }
   0x5   : > { %p26_p0 = scmp.ge.s32.totalorder %s25_s19, 9  ;;  %p76_p1 = scmp.ne.s32.totalorder %s1472_s13, %s1468_s12 }
   0x6   : > { %p77_p2 = scmp.eq.s32.totalorder %s1492_s18, 0  ;;  %s69_s24 = sadd.s32 1, %s1472_s13 }
   0x7   : > { %s1846_s19 = smov (%p26_p0, %s25_s19), 0  ;;  %s1848_s20 = smov (!%p26_p0, %s28_s20), %s1488_s17 }
   0x8   : > { %p78_p3 = por %p77_p2, %p76_p1  ;;  %p30_p4 = scmp.ge.s32.totalorder %s1848_s20, 2 }
   0x9   : > { %s64_s21 = ssub.s32 %s1484_s16, %s1846_s19  ;;  %p1195_p6 = scmp.ge.s32.totalorder %s1492_s18, 18 }
   0xa   : > { %s1850_s20 = smov (%p30_p4, %s1848_s20), 0 }
   0xb   : > { %s65_s22 = ssub.s32 %s1488_s17, %s1850_s20  ;;  %156 = sbr.rel (%p1195_p6) target bundleno = 55 (0x37), region = 16 }
   0xc   : > { %s66_s23 = sor.u32 %s65_s22, %s64_s21 }
   0xd   : > { %p67_p5 = scmp.eq.s32.totalorder %s66_s23, 0 }
   0xf   : > { %s1566_s25 = scalar_select %p67_p5, %s1472_s13, %s69_s24  }
  0x10   : > { %172 = sbr.rel (!%p78_p3) target bundleno = 55 (0x37), region = 24  ;;  %s174_s26 = sand.u32 (%p78_p3), 1, %s1472_s13  }
  0x11   : > { %s1198_s27 = sshll.u32 (%p78_p3), %s1488_s17, 1  ;;  %s1196_s28 = sshll.u32 (%p78_p3), %s174_s26, 9 }
  0x12   : > { %s1280_s29 = sshll.u32 (%p78_p3), %s1484_s16, 8  ;;  %s1580_s8 = scalar_lea.vmem (%p78_p3), [#allocation2], %s1196_s28 }
  0x13   : > { %s180_s30 = sadd.s32 (%p78_p3), %s1280_s29, %s1198_s27 }
  0x14   : > { %s1200_s4 = sshll.u32 (%p78_p3), %s180_s30, 2 }
  0x15   : > { %s1575_s7 = scalar_lea.vmem %s1836_s1, %s1200_s4 }
  0x16   : > { %v337_v0 = vld [vmem:[%s1575_s7] sm:$0xff]  ;;  %v339_v1 = vld [vmem:[%s1575_s7 + $0x10] sm:$0xff] }
  0x17   : > { %v341_v2 = vld [vmem:[%s1575_s7 + $0x20] sm:$0xff]  ;;  %338 = vst [vmem:[%s1580_s8] sm:$0xff] %v337_v0  ;;  %340 = vst [vmem:[%s1580_s8 + $0x8] sm:$0xff] %v339_v1  ;;  %v343_v3 = vld [vmem:[%s1575_s7 + $0x30] sm:$0xff] }
  0x18   : > { %342 = vst [vmem:[%s1580_s8 + $0x10] sm:$0xff] %v341_v2  ;;  %v345_v4 = vld [vmem:[%s1575_s7 + $0x40] sm:$0xff]  ;;  %v347_v5 = vld [vmem:[%s1575_s7 + $0x50] sm:$0xff]  ;;  %344 = vst [vmem:[%s1580_s8 + $0x18] sm:$0xff] %v343_v3 }
  0x19   : > { %346 = vst [vmem:[%s1580_s8 + $0x20] sm:$0xff] %v345_v4  ;;  %348 = vst [vmem:[%s1580_s8 + $0x28] sm:$0xff] %v347_v5  ;;  %v349_v6 = vld [vmem:[%s1575_s7 + $0x60] sm:$0xff]  ;;  %v351_v7 = vld [vmem:[%s1575_s7 + $0x70] sm:$0xff] }
  0x1a   : > { %v353_v8 = vld [vmem:[%s1575_s7 + $0x80] sm:$0xff]  ;;  %350 = vst [vmem:[%s1580_s8 + $0x30] sm:$0xff] %v349_v6  ;;  %352 = vst [vmem:[%s1580_s8 + $0x38] sm:$0xff] %v351_v7  ;;  %v355_v9 = vld [vmem:[%s1575_s7 + $0x90] sm:$0xff] }
  0x1b   : > { %354 = vst [vmem:[%s1580_s8 + $0x40] sm:$0xff] %v353_v8  ;;  %v357_v10 = vld [vmem:[%s1575_s7 + $0xa0] sm:$0xff]  ;;  %v359_v11 = vld [vmem:[%s1575_s7 + $0xb0] sm:$0xff]  ;;  %356 = vst [vmem:[%s1580_s8 + $0x48] sm:$0xff] %v355_v9 }
  0x1c   : > { %358 = vst [vmem:[%s1580_s8 + $0x50] sm:$0xff] %v357_v10  ;;  %360 = vst [vmem:[%s1580_s8 + $0x58] sm:$0xff] %v359_v11  ;;  %v361_v12 = vld [vmem:[%s1575_s7 + $0xc0] sm:$0xff]  ;;  %v363_v13 = vld [vmem:[%s1575_s7 + $0xd0] sm:$0xff] }
  0x1d   : > { %v365_v14 = vld [vmem:[%s1575_s7 + $0xe0] sm:$0xff]  ;;  %362 = vst [vmem:[%s1580_s8 + $0x60] sm:$0xff] %v361_v12  ;;  %364 = vst [vmem:[%s1580_s8 + $0x68] sm:$0xff] %v363_v13  ;;  %v367_v15 = vld [vmem:[%s1575_s7 + $0xf0] sm:$0xff] }
  0x1e   : > { %366 = vst [vmem:[%s1580_s8 + $0x70] sm:$0xff] %v365_v14  ;;  %v369_v16 = vld [vmem:[%s1575_s7 + $0x100] sm:$0xff]  ;;  %v371_v17 = vld [vmem:[%s1575_s7 + $0x110] sm:$0xff]  ;;  %368 = vst [vmem:[%s1580_s8 + $0x78] sm:$0xff] %v367_v15 }
  0x1f   : > { %370 = vst [vmem:[%s1580_s8 + $0x80] sm:$0xff] %v369_v16  ;;  %372 = vst [vmem:[%s1580_s8 + $0x88] sm:$0xff] %v371_v17  ;;  %v373_v18 = vld [vmem:[%s1575_s7 + $0x120] sm:$0xff]  ;;  %v375_v19 = vld [vmem:[%s1575_s7 + $0x130] sm:$0xff] }
  0x20   : > { %v377_v20 = vld [vmem:[%s1575_s7 + $0x140] sm:$0xff]  ;;  %374 = vst [vmem:[%s1580_s8 + $0x90] sm:$0xff] %v373_v18  ;;  %376 = vst [vmem:[%s1580_s8 + $0x98] sm:$0xff] %v375_v19  ;;  %v379_v21 = vld [vmem:[%s1575_s7 + $0x150] sm:$0xff] }
  0x21   : > { %378 = vst [vmem:[%s1580_s8 + $0xa0] sm:$0xff] %v377_v20  ;;  %v381_v22 = vld [vmem:[%s1575_s7 + $0x160] sm:$0xff]  ;;  %v383_v23 = vld [vmem:[%s1575_s7 + $0x170] sm:$0xff]  ;;  %380 = vst [vmem:[%s1580_s8 + $0xa8] sm:$0xff] %v379_v21 }
  0x22   : > { %382 = vst [vmem:[%s1580_s8 + $0xb0] sm:$0xff] %v381_v22  ;;  %384 = vst [vmem:[%s1580_s8 + $0xb8] sm:$0xff] %v383_v23  ;;  %v385_v24 = vld [vmem:[%s1575_s7 + $0x180] sm:$0xff]  ;;  %v387_v25 = vld [vmem:[%s1575_s7 + $0x190] sm:$0xff] }
  0x23   : > { %v389_v26 = vld [vmem:[%s1575_s7 + $0x1a0] sm:$0xff]  ;;  %386 = vst [vmem:[%s1580_s8 + $0xc0] sm:$0xff] %v385_v24  ;;  %388 = vst [vmem:[%s1580_s8 + $0xc8] sm:$0xff] %v387_v25  ;;  %v391_v27 = vld [vmem:[%s1575_s7 + $0x1b0] sm:$0xff] }
  0x24   : > { %390 = vst [vmem:[%s1580_s8 + $0xd0] sm:$0xff] %v389_v26  ;;  %v393_v28 = vld [vmem:[%s1575_s7 + $0x1c0] sm:$0xff]  ;;  %v395_v29 = vld [vmem:[%s1575_s7 + $0x1d0] sm:$0xff]  ;;  %392 = vst [vmem:[%s1580_s8 + $0xd8] sm:$0xff] %v391_v27 }
  0x25   : > { %394 = vst [vmem:[%s1580_s8 + $0xe0] sm:$0xff] %v393_v28  ;;  %396 = vst [vmem:[%s1580_s8 + $0xe8] sm:$0xff] %v395_v29  ;;  %v397_v30 = vld [vmem:[%s1575_s7 + $0x1e0] sm:$0xff]  ;;  %v399_v31 = vld [vmem:[%s1575_s7 + $0x1f0] sm:$0xff] }
  0x26   : > { %v401_v32 = vld [vmem:[%s1575_s7 + $0x200] sm:$0xff]  ;;  %398 = vst [vmem:[%s1580_s8 + $0xf0] sm:$0xff] %v397_v30  ;;  %400 = vst [vmem:[%s1580_s8 + $0xf8] sm:$0xff] %v399_v31  ;;  %v403_v33 = vld [vmem:[%s1575_s7 + $0x210] sm:$0xff] }
  0x27   : > { %402 = vst [vmem:[%s1580_s8 + $0x100] sm:$0xff] %v401_v32  ;;  %v405_v34 = vld [vmem:[%s1575_s7 + $0x220] sm:$0xff]  ;;  %v407_v35 = vld [vmem:[%s1575_s7 + $0x230] sm:$0xff]  ;;  %404 = vst [vmem:[%s1580_s8 + $0x108] sm:$0xff] %v403_v33 }
  0x28   : > { %406 = vst [vmem:[%s1580_s8 + $0x110] sm:$0xff] %v405_v34  ;;  %408 = vst [vmem:[%s1580_s8 + $0x118] sm:$0xff] %v407_v35  ;;  %v409_v36 = vld [vmem:[%s1575_s7 + $0x240] sm:$0xff]  ;;  %v411_v37 = vld [vmem:[%s1575_s7 + $0x250] sm:$0xff] }
  0x29   : > { %v413_v38 = vld [vmem:[%s1575_s7 + $0x260] sm:$0xff]  ;;  %410 = vst [vmem:[%s1580_s8 + $0x120] sm:$0xff] %v409_v36  ;;  %412 = vst [vmem:[%s1580_s8 + $0x128] sm:$0xff] %v411_v37  ;;  %v415_v39 = vld [vmem:[%s1575_s7 + $0x270] sm:$0xff] }
  0x2a   : > { %414 = vst [vmem:[%s1580_s8 + $0x130] sm:$0xff] %v413_v38  ;;  %v417_v40 = vld [vmem:[%s1575_s7 + $0x280] sm:$0xff]  ;;  %v419_v41 = vld [vmem:[%s1575_s7 + $0x290] sm:$0xff]  ;;  %416 = vst [vmem:[%s1580_s8 + $0x138] sm:$0xff] %v415_v39 }
  0x2b   : > { %418 = vst [vmem:[%s1580_s8 + $0x140] sm:$0xff] %v417_v40  ;;  %420 = vst [vmem:[%s1580_s8 + $0x148] sm:$0xff] %v419_v41  ;;  %v421_v42 = vld [vmem:[%s1575_s7 + $0x2a0] sm:$0xff]  ;;  %v423_v43 = vld [vmem:[%s1575_s7 + $0x2b0] sm:$0xff] }
  0x2c   : > { %v425_v44 = vld [vmem:[%s1575_s7 + $0x2c0] sm:$0xff]  ;;  %422 = vst [vmem:[%s1580_s8 + $0x150] sm:$0xff] %v421_v42  ;;  %424 = vst [vmem:[%s1580_s8 + $0x158] sm:$0xff] %v423_v43  ;;  %v427_v45 = vld [vmem:[%s1575_s7 + $0x2d0] sm:$0xff] }
  0x2d   : > { %426 = vst [vmem:[%s1580_s8 + $0x160] sm:$0xff] %v425_v44  ;;  %v429_v46 = vld [vmem:[%s1575_s7 + $0x2e0] sm:$0xff]  ;;  %v431_v47 = vld [vmem:[%s1575_s7 + $0x2f0] sm:$0xff]  ;;  %428 = vst [vmem:[%s1580_s8 + $0x168] sm:$0xff] %v427_v45 }
  0x2e   : > { %430 = vst [vmem:[%s1580_s8 + $0x170] sm:$0xff] %v429_v46  ;;  %432 = vst [vmem:[%s1580_s8 + $0x178] sm:$0xff] %v431_v47  ;;  %v433_v48 = vld [vmem:[%s1575_s7 + $0x300] sm:$0xff]  ;;  %v435_v49 = vld [vmem:[%s1575_s7 + $0x310] sm:$0xff] }
  0x2f   : > { %v437_v50 = vld [vmem:[%s1575_s7 + $0x320] sm:$0xff]  ;;  %434 = vst [vmem:[%s1580_s8 + $0x180] sm:$0xff] %v433_v48  ;;  %436 = vst [vmem:[%s1580_s8 + $0x188] sm:$0xff] %v435_v49  ;;  %v439_v51 = vld [vmem:[%s1575_s7 + $0x330] sm:$0xff] }
  0x30   : > { %438 = vst [vmem:[%s1580_s8 + $0x190] sm:$0xff] %v437_v50  ;;  %v441_v52 = vld [vmem:[%s1575_s7 + $0x340] sm:$0xff]  ;;  %v443_v53 = vld [vmem:[%s1575_s7 + $0x350] sm:$0xff]  ;;  %440 = vst [vmem:[%s1580_s8 + $0x198] sm:$0xff] %v439_v51 }
  0x31   : > { %442 = vst [vmem:[%s1580_s8 + $0x1a0] sm:$0xff] %v441_v52  ;;  %444 = vst [vmem:[%s1580_s8 + $0x1a8] sm:$0xff] %v443_v53  ;;  %v445_v54 = vld [vmem:[%s1575_s7 + $0x360] sm:$0xff]  ;;  %v447_v55 = vld [vmem:[%s1575_s7 + $0x370] sm:$0xff] }
  0x32   : > { %v449_v56 = vld [vmem:[%s1575_s7 + $0x380] sm:$0xff]  ;;  %446 = vst [vmem:[%s1580_s8 + $0x1b0] sm:$0xff] %v445_v54  ;;  %448 = vst [vmem:[%s1580_s8 + $0x1b8] sm:$0xff] %v447_v55  ;;  %v451_v57 = vld [vmem:[%s1575_s7 + $0x390] sm:$0xff] }
  0x33   : > { %450 = vst [vmem:[%s1580_s8 + $0x1c0] sm:$0xff] %v449_v56  ;;  %v453_v58 = vld [vmem:[%s1575_s7 + $0x3a0] sm:$0xff]  ;;  %v455_v59 = vld [vmem:[%s1575_s7 + $0x3b0] sm:$0xff]  ;;  %452 = vst [vmem:[%s1580_s8 + $0x1c8] sm:$0xff] %v451_v57 }
  0x34   : > { %454 = vst [vmem:[%s1580_s8 + $0x1d0] sm:$0xff] %v453_v58  ;;  %456 = vst [vmem:[%s1580_s8 + $0x1d8] sm:$0xff] %v455_v59  ;;  %v457_v60 = vld [vmem:[%s1575_s7 + $0x3c0] sm:$0xff]  ;;  %v459_v61 = vld [vmem:[%s1575_s7 + $0x3d0] sm:$0xff] }
  0x35   : > { %v461_v62 = vld [vmem:[%s1575_s7 + $0x3e0] sm:$0xff]  ;;  %458 = vst [vmem:[%s1580_s8 + $0x1e0] sm:$0xff] %v457_v60  ;;  %460 = vst [vmem:[%s1580_s8 + $0x1e8] sm:$0xff] %v459_v61  ;;  %v463_v63 = vld [vmem:[%s1575_s7 + $0x3f0] sm:$0xff] }
  0x36   : > { %462 = vst [vmem:[%s1580_s8 + $0x1f0] sm:$0xff] %v461_v62  ;;  %464 = vst [vmem:[%s1580_s8 + $0x1f8] sm:$0xff] %v463_v63 }
  0x37 PF: > { %p1201_p7 = scmp.ge.s32.totalorder %s1492_s18, 1  ;;  %p477_p8 = scmp.lt.s32.totalorder %s1492_s18, 19 }
  0x39   : > { %p478_p9 = pnand %p1201_p7, %p477_p8 }
  0x3a   : > { %s484_s9 = sand.u32 (!%p478_p9), 1, %s1468_s12   ;;  %s1203_s10 = sshll.u32 (!%p478_p9), %s1476_s14, 2 }
  0x3b   : > { %481 = sbr.rel (%p478_p9) target bundleno = 353 (0x161), region = 66  ;;  %s1202_s11 = sshll.u32 (!%p478_p9), %s484_s9, 9 }
  0x3c   : > { %p527_p10 = scmp.lt.s32.totalorder (!%p478_p9), %s1203_s10, 35  ;;  %s1205_s21 = sshll.u32 (!%p478_p9), %s1480_s15, 1 }
  0x3d   : > { %p537_p11 = scmp.lt.s32.totalorder (!%p478_p9), %s1205_s21, 3  ;;  %s1729_s5 = scalar_lea.vmem (!%p478_p9), [#allocation2], %s1202_s11 }
  0x3e   : > { %p1208_p12 = scmp.ne.s32.totalorder (!%p478_p9), %s1476_s14, 0 }
  0x40   : > { %s1852_s10 = smov (!%p527_p10, %s1203_s10), 35  ;;  %s1854_s21 = smov (!%p537_p11, %s1205_s21), 3 }
  0x41   : > { %s1204_s22 = sshll.u32 %s1852_s10, 2  ;;  %s539_s12 = scalar_lea.vmem %s1837_s2, %s1854_s21 }
  0x42   : > { %s1715_s26 = scalar_lea.vmem %s1835_s0, %s1204_s22  ;;  %s1207_s29 = sshll.u32 %s1854_s21, 3 }
  0x43   : > { %s1727_s15 = scalar_lea.vmem %s1838_s3, %s1207_s29  ;;  %554 = sbr.rel (%p1208_p12) target bundleno = 74 (0x4a), region = 74 }
  0x48   : > { %v1494_v0 = vmov 0.0  }
  0x49   : > { %555 = vst [vmem:[%s1727_s15] sm:$0xff] %v1494_v0  ;;  %556 = vst [vmem:[%s1727_s15 + $0x8] sm:$0xff] %v1494_v0 }
  0x4a PF: > { %v1338_v1 = vld [vmem:[%s1729_s5 + $0x74] ss:$8 sps:$4 sm:$0xff]   ;;  %v1342_v3 = vld [vmem:[%s1729_s5 + $0x70] ss:$8 sps:$4 sm:$0xff]   ;;  %v1344_v5 = vld [vmem:[%s1729_s5 + $0x64] ss:$8 sps:$4 sm:$0xff]  }
  0x4b   : > { %v1340_v2 = vld [vmem:[%s1729_s5 + $0x174] ss:$8 sps:$4 sm:$0xff]   ;;  %959 = vmatprep.subr.bf16.mxu0 %v1338_v1  ;;  %v1343_v4 = vld [vmem:[%s1729_s5 + $0x170] ss:$8 sps:$4 sm:$0xff]   ;;  %v1346_v6 = vld [vmem:[%s1729_s5 + $0x164] ss:$8 sps:$4 sm:$0xff]  }
  0x4c   : > { %1000 = vmatprep.subr.bf16.mxu1 %v1340_v2  ;;  %960 = vmatpush1.bf16.msra.mxu0 %v1342_v3  ;;  %v1348_v7 = vld [vmem:[%s1729_s5 + $0x60] ss:$8 sps:$4 sm:$0xff]   ;;  %v1350_v9 = vld [vmem:[%s1729_s5 + $0x54] ss:$8 sps:$4 sm:$0xff]   ;;  %v1354_v11 = vld [vmem:[%s1729_s5 + $0x50] ss:$8 sps:$4 sm:$0xff]  }
  0x4d   : > { %1001 = vmatpush1.bf16.msra.mxu1 %v1343_v4  ;;  %961 = vmatprep.subr.bf16.mxu0 %v1344_v5  ;;  %v1349_v8 = vld [vmem:[%s1729_s5 + $0x160] ss:$8 sps:$4 sm:$0xff]   ;;  %v1352_v10 = vld [vmem:[%s1729_s5 + $0x154] ss:$8 sps:$4 sm:$0xff]   ;;  %v1355_v12 = vld [vmem:[%s1729_s5 + $0x150] ss:$8 sps:$4 sm:$0xff]  }
  0x4e   : > { %1002 = vmatprep.subr.bf16.mxu1 %v1346_v6  ;;  %v1356_v13 = vld [vmem:[%s1729_s5 + $0x44] ss:$8 sps:$4 sm:$0xff]   ;;  %v1360_v15 = vld [vmem:[%s1729_s5 + $0x40] ss:$8 sps:$4 sm:$0xff]   ;;  %v1362_v17 = vld [vmem:[%s1729_s5 + $0x34] ss:$8 sps:$4 sm:$0xff]  }
  0x4f   : > { %v1358_v14 = vld [vmem:[%s1729_s5 + $0x144] ss:$8 sps:$4 sm:$0xff]   ;;  %v1361_v16 = vld [vmem:[%s1729_s5 + $0x140] ss:$8 sps:$4 sm:$0xff]   ;;  %v1364_v18 = vld [vmem:[%s1729_s5 + $0x134] ss:$8 sps:$4 sm:$0xff]  }
  0x50   : > { %962 = vmatpush1.bf16.msra.mxu0 %v1348_v7  ;;  %v1366_v19 = vld [vmem:[%s1729_s5 + $0x30] ss:$8 sps:$4 sm:$0xff]   ;;  %v1368_v21 = vld [vmem:[%s1729_s5 + $0x24] ss:$8 sps:$4 sm:$0xff]   ;;  %v1372_v23 = vld [vmem:[%s1729_s5 + $0x20] ss:$8 sps:$4 sm:$0xff]  }
  0x51   : > { %1003 = vmatpush1.bf16.msra.mxu1 %v1349_v8  ;;  %963 = vmatprep.subr.bf16.mxu0 %v1350_v9  ;;  %v1367_v20 = vld [vmem:[%s1729_s5 + $0x130] ss:$8 sps:$4 sm:$0xff]   ;;  %v1370_v22 = vld [vmem:[%s1729_s5 + $0x124] ss:$8 sps:$4 sm:$0xff]   ;;  %v1373_v24 = vld [vmem:[%s1729_s5 + $0x120] ss:$8 sps:$4 sm:$0xff]  }
  0x52   : > { %1004 = vmatprep.subr.bf16.mxu1 %v1352_v10  ;;  %v1374_v25 = vld [vmem:[%s1729_s5 + $0x14] ss:$8 sps:$4 sm:$0xff]   ;;  %v1378_v27 = vld [vmem:[%s1729_s5 + $0x10] ss:$8 sps:$4 sm:$0xff]   ;;  %v1380_v29 = vld [vmem:[%s1729_s5 + $0x4] ss:$8 sps:$4 sm:$0xff]  }
  0x53   : > { %v1376_v26 = vld [vmem:[%s1729_s5 + $0x114] ss:$8 sps:$4 sm:$0xff]   ;;  %v1379_v28 = vld [vmem:[%s1729_s5 + $0x110] ss:$8 sps:$4 sm:$0xff]   ;;  %v1382_v30 = vld [vmem:[%s1729_s5 + $0x104] ss:$8 sps:$4 sm:$0xff]  }
  0x54   : > { %964 = vmatpush1.bf16.msra.mxu0 %v1354_v11  ;;  %v1384_v31 = vld [vmem:[%s1729_s5] ss:$8 sps:$4 sm:$0xff]   ;;  %v1386_v33 = vld [vmem:[%s1729_s5 + $0xf4] ss:$8 sps:$4 sm:$0xff]   ;;  %v1390_v35 = vld [vmem:[%s1729_s5 + $0xf0] ss:$8 sps:$4 sm:$0xff]  }
  0x55   : > { %1005 = vmatpush1.bf16.msra.mxu1 %v1355_v12  ;;  %965 = vmatprep.subr.bf16.mxu0 %v1356_v13  ;;  %v1385_v32 = vld [vmem:[%s1729_s5 + $0x100] ss:$8 sps:$4 sm:$0xff]   ;;  %v1388_v34 = vld [vmem:[%s1729_s5 + $0x1f4] ss:$8 sps:$4 sm:$0xff]   ;;  %v1391_v36 = vld [vmem:[%s1729_s5 + $0x1f0] ss:$8 sps:$4 sm:$0xff]  }
  0x56   : > { %1006 = vmatprep.subr.bf16.mxu1 %v1358_v14  ;;  %v1392_v37 = vld [vmem:[%s1729_s5 + $0xe4] ss:$8 sps:$4 sm:$0xff]   ;;  %v1396_v39 = vld [vmem:[%s1729_s5 + $0xe0] ss:$8 sps:$4 sm:$0xff]   ;;  %v1398_v41 = vld [vmem:[%s1729_s5 + $0xd4] ss:$8 sps:$4 sm:$0xff]  }
  0x57   : > { %v1394_v38 = vld [vmem:[%s1729_s5 + $0x1e4] ss:$8 sps:$4 sm:$0xff]   ;;  %v1397_v40 = vld [vmem:[%s1729_s5 + $0x1e0] ss:$8 sps:$4 sm:$0xff]   ;;  %v1400_v42 = vld [vmem:[%s1729_s5 + $0x1d4] ss:$8 sps:$4 sm:$0xff]  }
  0x58   : > { %966 = vmatpush1.bf16.msra.mxu0 %v1360_v15  ;;  %v1402_v43 = vld [vmem:[%s1729_s5 + $0xd0] ss:$8 sps:$4 sm:$0xff]   ;;  %v1404_v45 = vld [vmem:[%s1729_s5 + $0xc4] ss:$8 sps:$4 sm:$0xff]   ;;  %v1408_v50 = vld [vmem:[%s1729_s5 + $0xc0] ss:$8 sps:$4 sm:$0xff]  }
  0x59   : > { %1007 = vmatpush1.bf16.msra.mxu1 %v1361_v16  ;;  %967 = vmatprep.subr.bf16.mxu0 %v1362_v17  ;;  %v1403_v44 = vld [vmem:[%s1729_s5 + $0x1d0] ss:$8 sps:$4 sm:$0xff]   ;;  %v1406_v46 = vld [vmem:[%s1729_s5 + $0x1c4] ss:$8 sps:$4 sm:$0xff]   ;;  %v1409_v51 = vld [vmem:[%s1729_s5 + $0x1c0] ss:$8 sps:$4 sm:$0xff]  }
  0x5a   : > { %1008 = vmatprep.subr.bf16.mxu1 %v1364_v18  ;;  %v559_v47 = vld [vmem:[%s1715_s26] sm:$0xff]  ;;  %v560_v49 = vld [vmem:[%s1715_s26 + $0x8] sm:$0xff]  ;;  %v1410_v53 = vld [vmem:[%s1729_s5 + $0xb4] ss:$8 sps:$4 sm:$0xff]   ;;  %p1277_p13 = scmp.ne.s32.totalorder %s1476_s14, 8 }
  0x5b   : > { %v1210_v48 = vcombine.high %v559_v47, %v559_v47  ;;  %v1212_v52 = vcombine.high %v560_v49, %v560_v49  ;;  %v1412_v54 = vld [vmem:[%s1729_s5 + $0x1b4] ss:$8 sps:$4 sm:$0xff]   ;;  %v1414_v55 = vld [vmem:[%s1729_s5 + $0xb0] ss:$8 sps:$4 sm:$0xff]   ;;  %v1416_v57 = vld [vmem:[%s1729_s5 + $0xa4] ss:$8 sps:$4 sm:$0xff]   ;;  %v1209_v5 = vcombine.low %v559_v47, %v559_v47  ;;  %v1211_v6 = vcombine.low %v560_v49, %v560_v49 }
  0x5c   : > { %968 = vmatpush1.bf16.msra.mxu0 %v1366_v19  ;;  %v1415_v56 = vld [vmem:[%s1729_s5 + $0x1b0] ss:$8 sps:$4 sm:$0xff]   ;;  %v1418_v58 = vld [vmem:[%s1729_s5 + $0x1a4] ss:$8 sps:$4 sm:$0xff]   ;;  %v1420_v59 = vld [vmem:[%s1729_s5 + $0xa0] ss:$8 sps:$4 sm:$0xff]  }
  0x5d   : > { %1009 = vmatpush1.bf16.msra.mxu1 %v1367_v20  ;;  %969 = vmatprep.subr.bf16.mxu0 %v1368_v21  ;;  %v1421_v60 = vld [vmem:[%s1729_s5 + $0x1a0] ss:$8 sps:$4 sm:$0xff]   ;;  %v1422_v61 = vld [vmem:[%s1729_s5 + $0x94] ss:$8 sps:$4 sm:$0xff]   ;;  %v1426_v63 = vld [vmem:[%s1729_s5 + $0x90] ss:$8 sps:$4 sm:$0xff]  }
  0x5e   : > { %1010 = vmatprep.subr.bf16.mxu1 %v1370_v22  ;;  %991 = vmatprep.mubr.bf16.mxu0 %v1210_v48  ;;  %v1424_v62 = vld [vmem:[%s1729_s5 + $0x194] ss:$8 sps:$4 sm:$0xff]   ;;  %v1427_v0 = vld [vmem:[%s1729_s5 + $0x190] ss:$8 sps:$4 sm:$0xff]   ;;  %v1428_v1 = vld [vmem:[%s1729_s5 + $0x84] ss:$8 sps:$4 sm:$0xff]  }
  0x5f   : > { %1032 = vmatprep.mubr.bf16.mxu1 %v1212_v52  ;;  %v1430_v2 = vld [vmem:[%s1729_s5 + $0x184] ss:$8 sps:$4 sm:$0xff]   ;;  %v1432_v3 = vld [vmem:[%s1729_s5 + $0x80] ss:$8 sps:$4 sm:$0xff]  }
  0x60   : > { %970 = vmatpush1.bf16.msra.mxu0 %v1372_v23  ;;  %v1433_v4 = vld [vmem:[%s1729_s5 + $0x180] ss:$8 sps:$4 sm:$0xff]  }
  0x61   : > { %1011 = vmatpush1.bf16.msra.mxu1 %v1373_v24  ;;  %971 = vmatprep.subr.bf16.mxu0 %v1374_v25  ;;  %v557_v8 = vld [vmem:[%s1727_s15] sm:$0xff]  ;;  %v558_v12 = vld [vmem:[%s1727_s15 + $0x8] sm:$0xff] }
  0x62   : > { %1012 = vmatprep.subr.bf16.mxu1 %v1376_v26 }
  0x64   : > { %972 = vmatpush1.bf16.msra.mxu0 %v1378_v27 }
  0x65   : > { %1013 = vmatpush1.bf16.msra.mxu1 %v1379_v28  ;;  %973 = vmatprep.subr.bf16.mxu0 %v1380_v29 }
  0x66   : > { %1014 = vmatprep.subr.bf16.mxu1 %v1382_v30 }
  0x68   : > { %974 = vmatpush1.bf16.msra.mxu0 %v1384_v31 }
  0x69   : > { %1015 = vmatpush1.bf16.msra.mxu1 %v1385_v32  ;;  %975 = vmatprep.subr.bf16.mxu0 %v1386_v33 }
  0x6a   : > { %1016 = vmatprep.subr.bf16.mxu1 %v1388_v34 }
  0x6c   : > { %976 = vmatpush2.bf16.msra.mxu0 %v1390_v35 }
  0x6d   : > { %1017 = vmatpush2.bf16.msra.mxu1 %v1391_v36  ;;  %977 = vmatprep.subr.bf16.mxu0 %v1392_v37 }
  0x6e   : > { %1018 = vmatprep.subr.bf16.mxu1 %v1394_v38 }
  0x70   : > { %978 = vmatpush2.bf16.msra.mxu0 %v1396_v39 }
  0x71   : > { %1019 = vmatpush2.bf16.msra.mxu1 %v1397_v40  ;;  %979 = vmatprep.subr.bf16.mxu0 %v1398_v41 }
  0x72   : > { %1020 = vmatprep.subr.bf16.mxu1 %v1400_v42 }
  0x74   : > { %980 = vmatpush2.bf16.msra.mxu0 %v1402_v43 }
  0x75   : > { %1021 = vmatpush2.bf16.msra.mxu1 %v1403_v44  ;;  %981 = vmatprep.subr.bf16.mxu0 %v1404_v45 }
  0x76   : > { %1022 = vmatprep.subr.bf16.mxu1 %v1406_v46 }
  0x78   : > { %982 = vmatpush2.bf16.msra.mxu0 %v1408_v50 }
  0x79   : > { %1023 = vmatpush2.bf16.msra.mxu1 %v1409_v51  ;;  %983 = vmatprep.subr.bf16.mxu0 %v1410_v53 }
  0x7a   : > { %1024 = vmatprep.subr.bf16.mxu1 %v1412_v54 }
  0x7c   : > { %984 = vmatpush2.bf16.msra.mxu0 %v1414_v55 }
  0x7d   : > { %1025 = vmatpush2.bf16.msra.mxu1 %v1415_v56  ;;  %985 = vmatprep.subr.bf16.mxu0 %v1416_v57 }
  0x7e   : > { %1026 = vmatprep.subr.bf16.mxu1 %v1418_v58 }
  0x80   : > { %986 = vmatpush2.bf16.msra.mxu0 %v1420_v59 }
  0x81   : > { %1027 = vmatpush2.bf16.msra.mxu1 %v1421_v60  ;;  %987 = vmatprep.subr.bf16.mxu0 %v1422_v61 }
  0x82   : > { %1028 = vmatprep.subr.bf16.mxu1 %v1424_v62 }
  0x84   : > { %988 = vmatpush2.bf16.msra.mxu0 %v1426_v63 }
  0x85   : > { %1029 = vmatpush2.bf16.msra.mxu1 %v1427_v0  ;;  %989 = vmatprep.subr.bf16.mxu0 %v1428_v1 }
  0x86   : > { %1030 = vmatprep.subr.bf16.mxu1 %v1430_v2 }
  0x88   : > { %990 = vmatpush2.bf16.msra.mxu0 %v1432_v3 }
  0x89   : > { %1031 = vmatpush2.bf16.msra.mxu1 %v1433_v4 }
  0x8b   : > { %992 = vmatmul.mubr.bf16.vlgmr.msra.gmra.mxu0 %v1209_v5 }
  0x8c   : > { %1033 = vmatmul.mubr.bf16.vlgmr.msra.gmra.mxu1 %v1211_v6 }
 0x14b   : > { %v993_v7 = vpop.f32.mrf.mxu0 }
 0x14c   : > { %v1034_v9 = vpop.f32.mrf.mxu1 }
 0x14d   : > { %v1035_v10 = vadd.f32 %v1034_v9, %v993_v7  ;;  %v995_v11 = vpop.f32.mrf.mxu0 }
 0x14e   : > { %v1036_v13 = vpop.f32.mrf.mxu1 }
 0x14f   : > { %v1041_v14 = vadd.f32 %v1035_v10, %v557_v8  ;;  %v1037_v15 = vadd.f32 %v1036_v13, %v995_v11  ;;  %v997_v16 = vpop.f32.mrf.mxu0  ;;  %1048 = sbr.rel (%p1277_p13) target bundleno = 353 (0x161), region = 78 }
 0x150   : > { %v1038_v17 = vpop.f32.mrf.mxu1 }
 0x151   : > { %v1042_v18 = vadd.f32 %v1037_v15, %v558_v12  ;;  %1043 = vst [vmem:[%s1727_s15] sm:$0xff] %v1041_v14  ;;  %v998_v19 = vpop.f32.mrf.mxu0 }
 0x152   : > { %v1039_v20 = vpop.f32.mrf.mxu1 }
 0x153   : > { %1044 = vst [vmem:[%s1727_s15 + $0x8] sm:$0xff] %v1042_v18 }
 0x154   : > { %v1053_v21 = vlaneseq  ;;  %v1051_v23 = vld [vmem:[%s539_s12] sm:$0x3] }
 0x156   : > { %v1054_v22 = vshrl.u32 %v1053_v21, 7 }
 0x158   : > { %v1055_v24 = vsub.s32 0, %v1054_v22  ;;  %v1059_v25 = vsub.s32 1, %v1054_v22  ;;  %v1049_v26 = vld [vmem:[%s1727_s15] sm:$0xff] }
 0x15a   : > { %v1050_v27 = vld [vmem:[%s1727_s15 + $0x8] sm:$0xff]  ;;  %v1056_v28 = vrot.slane %v1051_v23, %v1055_v24  ;;  %v1060_v29 = vrot.slane %v1051_v23, %v1059_v25 }
 0x15c   : > { %v1063_v30 = vadd.f32 %v1056_v28, %v1049_v26  ;;  %v1064_v31 = vadd.f32 %v1060_v29, %v1050_v27 }
 0x15e   : > { %v1065_v32 = vmax.f32 %v1063_v30, 0.0  ;;  %v1066_v33 = vmax.f32 %v1064_v31, 0.0 }
 0x160   : > { %1067 = vst [vmem:[%s1727_s15] sm:$0xff] %v1065_v32  ;;  %1068 = vst [vmem:[%s1727_s15 + $0x8] sm:$0xff] %v1066_v33 }
 0x161 PF: > { %s13_s18 = sadd.s32 1, %s1492_s18   ;;  %s1839_s12 = smov %s1472_s13 }
 0x162   : > { %p10_p0 = scmp.ge.s32.totalorder %s13_s18, 20   ;;  %s1840_s13 = smov %s1566_s25 }
 0x163   : > { %s1841_s14 = smov %s1484_s16  ;;  %s1842_s15 = smov %s1488_s17 }
 0x164   : > { %s1843_s16 = smov %s1846_s19  ;;  %s1844_s17 = smov %s1850_s20 }
 0x165   :  { %12 = sbr.rel (!%p10_p0) target bundleno = 4 (0x4), region = 119 }

// kernel: resnet18_forward.61
= control target key start
LH: loop header
LB: loop body
LE: loop exit
PB: predicated region body
PF: predicated region fallthrough
CT: control target
= control target key end

     0   :  { %s638_s1 = inlined_call_operand.vmem [shape: bf16[512,128], index: 1, kind: input, shape index: {}]   ;;  %s639_s0 = inlined_call_operand.vmem [shape: bf16[8,512], index: 0, kind: input, shape index: {}]   ;;  %s640_s2 = inlined_call_operand.vmem [shape: f32[1,128], index: 2, kind: input, shape index: {}]   ;;  %s641_s3 = inlined_call_operand.vmem [shape: f32[8,128], index: 3, kind: output, shape index: {}]  }
   0x1   :  { %v474_v0 = vld [vmem:[%s638_s1 + $0x78] sm:$0xff]   ;;  %v478_v4 = vld [vmem:[%s638_s1 + $0x70] sm:$0xff]   ;;  %v482_v8 = vld [vmem:[%s638_s1 + $0x68] sm:$0xff]  }
   0x2   :  { %v475_v1 = vld [vmem:[%s638_s1 + $0xf8] sm:$0xff]   ;;  %429 = vmatprep.subr.bf16.mxu0 %v474_v0  ;;  %v479_v5 = vld [vmem:[%s638_s1 + $0xf0] sm:$0xff]   ;;  %v483_v9 = vld [vmem:[%s638_s1 + $0xe8] sm:$0xff]  }
   0x3   :  { %v476_v2 = vld [vmem:[%s638_s1 + $0x38] sm:$0xff]   ;;  %451 = vmatprep.subr.bf16.mxu1 %v475_v1  ;;  %v480_v6 = vld [vmem:[%s638_s1 + $0x30] sm:$0xff]   ;;  %v484_v10 = vld [vmem:[%s638_s1 + $0x28] sm:$0xff]  }
   0x4   :  { %v477_v3 = vld [vmem:[%s638_s1 + $0xb8] sm:$0xff]   ;;  %430 = vmatpush3.bf16.msra.mxu0 %v476_v2  ;;  %v481_v7 = vld [vmem:[%s638_s1 + $0xb0] sm:$0xff]   ;;  %v485_v11 = vld [vmem:[%s638_s1 + $0xa8] sm:$0xff]  }
   0x5   :  { %452 = vmatpush3.bf16.msra.mxu1 %v477_v3  ;;  %431 = vmatprep.subr.bf16.mxu0 %v478_v4  ;;  %v486_v12 = vld [vmem:[%s638_s1 + $0x60] sm:$0xff]   ;;  %v490_v16 = vld [vmem:[%s638_s1 + $0x58] sm:$0xff]   ;;  %v494_v20 = vld [vmem:[%s638_s1 + $0x50] sm:$0xff]  }
   0x6   :  { %453 = vmatprep.subr.bf16.mxu1 %v479_v5  ;;  %v487_v13 = vld [vmem:[%s638_s1 + $0xe0] sm:$0xff]   ;;  %v491_v17 = vld [vmem:[%s638_s1 + $0xd8] sm:$0xff]   ;;  %v495_v21 = vld [vmem:[%s638_s1 + $0xd0] sm:$0xff]  }
   0x7   :  { %v488_v14 = vld [vmem:[%s638_s1 + $0x20] sm:$0xff]   ;;  %v492_v18 = vld [vmem:[%s638_s1 + $0x18] sm:$0xff]   ;;  %v496_v22 = vld [vmem:[%s638_s1 + $0x10] sm:$0xff]  }
   0x8   :  { %432 = vmatpush3.bf16.msra.mxu0 %v480_v6  ;;  %v489_v15 = vld [vmem:[%s638_s1 + $0xa0] sm:$0xff]   ;;  %v493_v19 = vld [vmem:[%s638_s1 + $0x98] sm:$0xff]   ;;  %v497_v23 = vld [vmem:[%s638_s1 + $0x90] sm:$0xff]  }
   0x9   :  { %454 = vmatpush3.bf16.msra.mxu1 %v481_v7  ;;  %433 = vmatprep.subr.bf16.mxu0 %v482_v8  ;;  %v498_v24 = vld [vmem:[%s638_s1 + $0x48] sm:$0xff]   ;;  %v502_v28 = vld [vmem:[%s638_s1 + $0x40] sm:$0xff]  }
   0xa   :  { %455 = vmatprep.subr.bf16.mxu1 %v483_v9  ;;  %v499_v25 = vld [vmem:[%s638_s1 + $0xc8] sm:$0xff]   ;;  %v503_v29 = vld [vmem:[%s638_s1 + $0xc0] sm:$0xff]  }
   0xb   :  { %v500_v26 = vld [vmem:[%s638_s1 + $0x8] sm:$0xff]   ;;  %v504_v30 = vld [vmem:[%s638_s1] sm:$0xff]  }
   0xc   :  { %434 = vmatpush3.bf16.msra.mxu0 %v484_v10  ;;  %v501_v27 = vld [vmem:[%s638_s1 + $0x88] sm:$0xff]   ;;  %v505_v31 = vld [vmem:[%s638_s1 + $0x80] sm:$0xff]  }
   0xd   :  { %456 = vmatpush3.bf16.msra.mxu1 %v485_v11  ;;  %435 = vmatprep.subr.bf16.mxu0 %v486_v12  ;;  %v21_v32 = vld [vmem:[%s639_s0] sm:$0xff]  ;;  %v22_v33 = vld [vmem:[%s639_s0 + $0x8] sm:$0xff] }
   0xe   :  { %457 = vmatprep.subr.bf16.mxu1 %v487_v13  ;;  %v392_v34 = vcombine.low %v21_v32, %v21_v32  ;;  %v393_v35 = vcombine.high %v21_v32, %v21_v32  ;;  %v394_v36 = vcombine.low %v22_v33, %v22_v33  ;;  %v395_v37 = vcombine.high %v22_v33, %v22_v33  ;;  %v428_v47 = vld [vmem:[%s640_s2] ss:$0 sm:$0xff] }
  0x10   :  { %436 = vmatpush3.bf16.msra.mxu0 %v488_v14  ;;  %325 = vmatprep.mubr.bf16.mxu0 %v393_v35 }
  0x11   :  { %458 = vmatpush3.bf16.msra.mxu1 %v489_v15  ;;  %437 = vmatprep.subr.bf16.mxu0 %v490_v16 }
  0x12   :  { %459 = vmatprep.subr.bf16.mxu1 %v491_v17  ;;  %365 = vmatprep.mubr.bf16.mxu1 %v395_v37 }
  0x14   :  { %438 = vmatpush3.bf16.msra.mxu0 %v492_v18 }
  0x15   :  { %460 = vmatpush3.bf16.msra.mxu1 %v493_v19  ;;  %439 = vmatprep.subr.bf16.mxu0 %v494_v20 }
  0x16   :  { %461 = vmatprep.subr.bf16.mxu1 %v495_v21 }
  0x18   :  { %440 = vmatpush3.bf16.msra.mxu0 %v496_v22 }
  0x19   :  { %462 = vmatpush3.bf16.msra.mxu1 %v497_v23  ;;  %441 = vmatprep.subr.bf16.mxu0 %v498_v24 }
  0x1a   :  { %463 = vmatprep.subr.bf16.mxu1 %v499_v25 }
  0x1c   :  { %442 = vmatpush3.bf16.msra.mxu0 %v500_v26 }
  0x1d   :  { %464 = vmatpush3.bf16.msra.mxu1 %v501_v27  ;;  %443 = vmatprep.subr.bf16.mxu0 %v502_v28 }
  0x1e   :  { %465 = vmatprep.subr.bf16.mxu1 %v503_v29 }
  0x20   :  { %444 = vmatpush3.bf16.msra.mxu0 %v504_v30 }
  0x21   :  { %466 = vmatpush3.bf16.msra.mxu1 %v505_v31 }
  0x23   :  { %326 = vmatmul.mubr.bf16.vlgmr.msra.gmra.mxu0 %v392_v34 }
  0x24   :  { %366 = vmatmul.mubr.bf16.vlgmr.msra.gmra.mxu1 %v394_v36 }
  0xe3   :  { %v445_v38 = vpop.f32.mrf.mxu0 }
  0xe4   :  { %v467_v39 = vpop.f32.mrf.mxu1 }
  0xe5   :  { %v446_v40 = vpop.f32.mrf.mxu0 }
  0xe6   :  { %v468_v41 = vpop.f32.mrf.mxu1  ;;  %v447_v42 = vadd.f32 %v446_v40, %v445_v38 }
  0xe7   :  { %v469_v43 = vadd.f32 %v468_v41, %v467_v39  ;;  %v448_v44 = vpop.f32.mrf.mxu0 }
  0xe8   :  { %v470_v45 = vpop.f32.mrf.mxu1 }
  0xe9   :  { %v368_v46 = vadd.f32 %v469_v43, %v447_v42  ;;  %v449_v48 = vpop.f32.mrf.mxu0 }
  0xea   :  { %v471_v49 = vpop.f32.mrf.mxu1 }
  0xeb   :  { %v386_v50 = vadd.f32 %v428_v47, %v368_v46 }
  0xed   :  { %387 = vst [vmem:[%s641_s3] sm:$0xff] %v386_v50 }

</bundles_post_ra>
